<compile_context>
chip_gen: v7x
topology: tpu7x:2x2x1
jax: 0.10.0
libtpu: 0.0.40
codegen_flags: <defaults>
</compile_context>

<pallas_src>
import functools
import math

import jax
import jax.numpy as jnp
from jax.experimental import pallas as pl
from jax.experimental.pallas import tpu as pltpu

_LANE = 128      # vreg lane width
_SUBLANE = 8     # vreg sublane width

# Full-f32 MXU contraction (explicit, per review).  Switch to bf16 operand
# casts for a ~2-3x MXU speedup if the PINN tolerates it.
_MATMUL_PRECISION = jax.lax.Precision.HIGHEST


def _round_up(v, m):
    return (v + m - 1) // m * m


def _softplus(x):
    # Branch-free, numerically-stable softplus. For x > 20, log1p(exp(-x))
    # underflows relative to x in f32, so this matches PyTorch's
    # nn.Softplus(beta=1, threshold=20) to f32 precision.
    return jnp.maximum(x, 0.0) + jnp.log1p(jnp.exp(-jnp.abs(x)))


# --------------------------------------------------------------------------
# Kernel
# --------------------------------------------------------------------------
def _mlp_kernel(x_ref, w_in_ref, b_in_ref, w_h_ref, b_h_ref, w_out_ref,
                b_out_ref, o_ref, *, n_layers, k_in):
    # x_ref:    (TILE_G, K_in)          K_in  = G*input_dim
    # w_in_ref: (K_in, W)               W     = G*hidden   (multiple of 128)
    # b_in_ref: (1, W)
    # w_h_ref:  (n_layers, W, W)        block-diagonal per layer
    # b_h_ref:  (n_layers, 1, W)
    # w_out_ref:(W, O)                  O     = G*output_dim (compact)
    # b_out_ref:(1, O)
    # o_ref:    (TILE_G, O)
    x = x_ref[...]
    w_in = w_in_ref[...]

    if k_in <= 32:
        # Degenerate-K first layer: VPU broadcast-FMAs instead of an MXU
        # push/pop round-trip.  With packing, every lane of h is live.
        h = b_in_ref[...]                       # (1, W) -> broadcasts below
        for k in range(k_in):                   # static unroll
            h = h + x[:, k:k + 1] * w_in[k:k + 1, :]
    else:
        h = jnp.dot(x, w_in, preferred_element_type=jnp.float32,
                    precision=_MATMUL_PRECISION) + b_in_ref[...]
    h = _softplus(h)

    for i in range(n_layers):                   # static unroll over layers
        h = jnp.dot(h, w_h_ref[i], preferred_element_type=jnp.float32,
                    precision=_MATMUL_PRECISION) + b_h_ref[i]
        h = _softplus(h)

    y = jnp.dot(h, w_out_ref[...], preferred_element_type=jnp.float32,
                precision=_MATMUL_PRECISION) + b_out_ref[...]
    o_ref[...] = y.astype(o_ref.dtype)


# --------------------------------------------------------------------------
# One-time parameter preparation (hoisted out of the forward pass)
# --------------------------------------------------------------------------
def _choose_group(hidden):
    """Batch-packing factor G so that G*hidden fills whole 128-lane vregs."""
    g = _LANE // math.gcd(hidden, _LANE)        # smallest G with G*H % 128 == 0
    if g > 16:
        return 1                                # awkward hidden: zero-pad instead
    if g * hidden < 2 * _LANE and 2 * g <= 16:
        g *= 2                                  # widen to 256 lanes (2x256^2 MXU)
    return g


def _block_diag(w, g):
    """(..., a, b) -> (..., g*a, g*b) with g copies of w on the diagonal."""
    if g == 1:
        return w
    a, b = w.shape[-2:]
    lead = w.shape[:-2]
    eye = jnp.eye(g, dtype=w.dtype).reshape((g, 1, g, 1))
    bd = eye * w[..., None, :, None, :]         # (..., g, a, g, b)
    return bd.reshape(*lead, g * a, g * b)


def pack_params(params):
    """Pad / block-diag-pack the weights once; call outside the train loop."""
    w_in, b_in, w_h, b_h, w_out, b_out = [jnp.asarray(p, jnp.float32)
                                          for p in params]
    input_dim, hidden = w_in.shape
    g = _choose_group(hidden)

    # Fallback for hidden sizes that don't pack nicely: zero-pad lanes (g=1).
    hp = hidden if g > 1 else _round_up(hidden, _LANE)
    dh = hp - hidden
    if dh:
        w_in = jnp.pad(w_in, ((0, 0), (0, dh)))
        b_in = jnp.pad(b_in, ((0, 0), (0, dh)))
        w_h = jnp.pad(w_h, ((0, 0), (0, dh), (0, dh)))
        b_h = jnp.pad(b_h, ((0, 0), (0, dh)))
        w_out = jnp.pad(w_out, ((0, dh), (0, 0)))

    w_in_p = _block_diag(w_in, g)                     # (g*input_dim, g*hp)
    b_in_p = jnp.tile(b_in, (1, g))                   # (1, g*hp)
    w_h_p = _block_diag(w_h, g)                       # (L, g*hp, g*hp)
    b_h_p = jnp.tile(b_h, (1, g))[:, None, :]         # (L, 1, g*hp)
    w_out_p = _block_diag(w_out, g)                   # (g*hp, g*output_dim)
    b_out_p = jnp.tile(b_out, (1, g))                 # (1, g*output_dim)
    return (w_in_p, b_in_p, w_h_p, b_h_p, w_out_p, b_out_p)


# --------------------------------------------------------------------------
# Forward pass
# --------------------------------------------------------------------------
def _choose_tile(n_rows, group, cap_rows=2048):
    """Batch tile in *packed* rows (multiple of 8 sublanes)."""
    ng = pl.cdiv(n_rows, group)
    cap = max(_SUBLANE, (cap_rows // group) // _SUBLANE * _SUBLANE)
    if ng <= _SUBLANE:
        return _SUBLANE
    grid = pl.cdiv(ng, cap)
    if grid < 2:
        grid = 2          # >=2 tiles so both v7x TensorCores get work
    elif grid % 2:
        grid += 1         # prefer an even, balanced grid on v7x (best effort)
    return min(cap, _round_up(pl.cdiv(ng, grid), _SUBLANE))


def net_forward(x, packed_params, *, tile=None):
    """Full MLP forward pass in one batch-tiled Pallas kernel.

    `packed_params` must come from `pack_params` (one-time prep)."""
    w_in_p, b_in_p, w_h_p, b_h_p, w_out_p, b_out_p = packed_params
    n, input_dim = x.shape
    k_in, width = w_in_p.shape
    assert k_in % input_dim == 0
    group = k_in // input_dim
    n_layers = w_h_p.shape[0]
    out_w = w_out_p.shape[1]
    output_dim = out_w // group

    if tile is None:
        tile = _choose_tile(n, group)
    tile = max(_SUBLANE, _round_up(tile, _SUBLANE))

    # ---- pad batch to a tile multiple and pack G rows per packed row ------
    ng = pl.cdiv(n, group)
    ng_pad = _round_up(max(ng, tile), tile)
    n_pad = ng_pad * group
    if n_pad != n:
        x = jnp.pad(x, ((0, n_pad - n), (0, 0)))
    x_packed = x.reshape(ng_pad, k_in)

    kernel = functools.partial(_mlp_kernel, n_layers=n_layers, k_in=k_in)

    # Weight/bias blocks have constant index_maps, so they are DMA'd once and
    # stay resident.  Total footprint (weights + tiles) is ~2 MiB for
    # hidden=32 packed to 256 lanes, far below every generation's VMEM limit.
    grid_spec = pltpu.PrefetchScalarGridSpec(
        num_scalar_prefetch=0,
        grid=(ng_pad // tile,),
        in_specs=[
            pl.BlockSpec((tile, k_in), lambda i: (i, 0)),
            pl.BlockSpec((k_in, width), lambda i: (0, 0)),
            pl.BlockSpec((1, width), lambda i: (0, 0)),
            pl.BlockSpec((n_layers, width, width), lambda i: (0, 0, 0)),
            pl.BlockSpec((n_layers, 1, width), lambda i: (0, 0, 0)),
            pl.BlockSpec((width, out_w), lambda i: (0, 0)),
            pl.BlockSpec((1, out_w), lambda i: (0, 0)),
        ],
        out_specs=pl.BlockSpec((tile, out_w), lambda i: (i, 0)),
    )

    out = pl.pallas_call(
        kernel,
        out_shape=jax.ShapeDtypeStruct((ng_pad, out_w), x.dtype),
        grid_spec=grid_spec,
        compiler_params=pltpu.CompilerParams(
            dimension_semantics=("parallel",)),
    )(x_packed, w_in_p, b_in_p, w_h_p, b_h_p, w_out_p, b_out_p)

    # Un-pack: packed row j, cols [g*OUT:(g+1)*OUT] == output of row j*G+g.
    return out.reshape(n_pad, output_dim)[:n]


# --------------------------------------------------------------------------
# Reference / init / test
# --------------------------------------------------------------------------
def init_params(key, input_dim, output_dim, hidden_dim, n_layers):
    """Deterministic init mimicking PyTorch Linear's U(-1/sqrt(fan_in), ...)."""
    keys = jax.random.split(key, 6)

    def uniform(k, shape, fan_in):
        bound = 1.0 / jnp.sqrt(jnp.float32(fan_in))
        return jax.random.uniform(k, shape, jnp.float32, -bound, bound)

    w_in = uniform(keys[0], (input_dim, hidden_dim), input_dim)
    b_in = uniform(keys[1], (1, hidden_dim), input_dim)
    w_h = uniform(keys[2], (n_layers, hidden_dim, hidden_dim), hidden_dim)
    b_h = uniform(keys[3], (n_layers, hidden_dim), hidden_dim)
    w_out = uniform(keys[4], (hidden_dim, output_dim), hidden_dim)
    b_out = uniform(keys[5], (1, output_dim), hidden_dim)
    return (w_in, b_in, w_h, b_h, w_out, b_out)


def net_forward_ref(x, params):
    """Pure-JAX reference with PyTorch's thresholded softplus semantics."""
    def softplus_torch(v):
        return jnp.where(v > 20.0, v, jnp.log1p(jnp.exp(jnp.minimum(v, 20.0))))

    w_in, b_in, w_h, b_h, w_out, b_out = params
    h = softplus_torch(x @ w_in + b_in)
    for i in range(w_h.shape[0]):
        h = softplus_torch(h @ w_h[i] + b_h[i][None, :])
    return h @ w_out + b_out


if __name__ == "__main__":
    # Wave-equation PINN: inputs are (x, t) -> input_dim=2, scalar field output.
    input_dim, output_dim, hidden_dim, n_layers = 2, 1, 32, 3
    batch = 256

    key = jax.random.PRNGKey(0)
    k_x, k_p = jax.random.split(key)
    x = jax.random.uniform(k_x, (batch, input_dim), jnp.float32, -1.0, 1.0)
    params = init_params(k_p, input_dim, output_dim, hidden_dim, n_layers)

    packed = pack_params(params)           # one-time weight prep (G=8, W=256)
    out = net_forward(x, packed)           # auto tile -> 16 packed rows, grid=(2,)
    out = jax.block_until_ready(out)

    ref = net_forward_ref(x, params)
    assert out.shape == (batch, output_dim)
    assert jnp.allclose(out, ref, atol=1e-5, rtol=1e-5)

    print("KERNEL_OK")
</pallas_src>

<mosaic_0001>
module attributes {stable_mosaic.version = 11 : i64} {
  func.func @_mlp_kernel(%arg0: i32, %arg1: memref<16x16xf32, #tpu.memory_space<vmem>>, %arg2: memref<16x256xf32, #tpu.memory_space<vmem>>, %arg3: memref<1x256xf32, #tpu.memory_space<vmem>>, %arg4: memref<3x256x256xf32, #tpu.memory_space<vmem>>, %arg5: memref<3x1x256xf32, #tpu.memory_space<vmem>>, %arg6: memref<256x8xf32, #tpu.memory_space<vmem>>, %arg7: memref<1x8xf32, #tpu.memory_space<vmem>>, %arg8: memref<16x8xf32, #tpu.memory_space<vmem>>) attributes {dimension_semantics = [#tpu.dimension_semantics<parallel>], iteration_bounds = array<i64: 2>, scalar_prefetch = 0 : i64, scratch_operands = 0 : i64, tpu.core_type = #tpu.core_type<tc>, window_params = [{transform_indices = @transform_0, window_bounds = array<i64: 16, 16>}, {pipeline_mode = #tpu.pipeline_mode<synchronous>, transform_indices = @transform_1, window_bounds = array<i64: 16, 256>}, {pipeline_mode = #tpu.pipeline_mode<synchronous>, transform_indices = @transform_2, window_bounds = array<i64: 1, 256>}, {pipeline_mode = #tpu.pipeline_mode<synchronous>, transform_indices = @transform_3, window_bounds = array<i64: 3, 256, 256>}, {pipeline_mode = #tpu.pipeline_mode<synchronous>, transform_indices = @transform_4, window_bounds = array<i64: 3, 1, 256>}, {pipeline_mode = #tpu.pipeline_mode<synchronous>, transform_indices = @transform_5, window_bounds = array<i64: 256, 8>}, {pipeline_mode = #tpu.pipeline_mode<synchronous>, transform_indices = @transform_6, window_bounds = array<i64: 1, 8>}, {transform_indices = @transform_7, window_bounds = array<i64: 16, 8>}]} {
    %c0 = arith.constant 0 : index
    %c0_0 = arith.constant 0 : index
    %0 = vector.load %arg1[%c0, %c0_0] : memref<16x16xf32, #tpu.memory_space<vmem>>, vector<16x16xf32>
    %c0_1 = arith.constant 0 : index
    %c0_2 = arith.constant 0 : index
    %1 = vector.load %arg2[%c0_1, %c0_2] : memref<16x256xf32, #tpu.memory_space<vmem>>, vector<16x256xf32>
    %c0_3 = arith.constant 0 : index
    %c0_4 = arith.constant 0 : index
    %2 = vector.load %arg3[%c0_3, %c0_4] : memref<1x256xf32, #tpu.memory_space<vmem>>, vector<1x256xf32>
    %3 = vector.extract_strided_slice %0 {offsets = [0, 0], sizes = [16, 1], strides = [1, 1]} : vector<16x16xf32> to vector<16x1xf32>
    %4 = vector.extract_strided_slice %1 {offsets = [0, 0], sizes = [1, 256], strides = [1, 1]} : vector<16x256xf32> to vector<1x256xf32>
    %5 = vector.broadcast %3 : vector<16x1xf32> to vector<16x256xf32>
    %6 = vector.broadcast %4 : vector<1x256xf32> to vector<16x256xf32>
    %7 = arith.mulf %5, %6 : vector<16x256xf32>
    %8 = vector.broadcast %2 : vector<1x256xf32> to vector<16x256xf32>
    %9 = arith.addf %8, %7 : vector<16x256xf32>
    %10 = vector.extract_strided_slice %0 {offsets = [0, 1], sizes = [16, 1], strides = [1, 1]} : vector<16x16xf32> to vector<16x1xf32>
    %11 = vector.extract_strided_slice %1 {offsets = [1, 0], sizes = [1, 256], strides = [1, 1]} : vector<16x256xf32> to vector<1x256xf32>
    %12 = vector.broadcast %10 : vector<16x1xf32> to vector<16x256xf32>
    %13 = vector.broadcast %11 : vector<1x256xf32> to vector<16x256xf32>
    %14 = arith.mulf %12, %13 : vector<16x256xf32>
    %15 = arith.addf %9, %14 : vector<16x256xf32>
    %16 = vector.extract_strided_slice %0 {offsets = [0, 2], sizes = [16, 1], strides = [1, 1]} : vector<16x16xf32> to vector<16x1xf32>
    %17 = vector.extract_strided_slice %1 {offsets = [2, 0], sizes = [1, 256], strides = [1, 1]} : vector<16x256xf32> to vector<1x256xf32>
    %18 = vector.broadcast %16 : vector<16x1xf32> to vector<16x256xf32>
    %19 = vector.broadcast %17 : vector<1x256xf32> to vector<16x256xf32>
    %20 = arith.mulf %18, %19 : vector<16x256xf32>
    %21 = arith.addf %15, %20 : vector<16x256xf32>
    %22 = vector.extract_strided_slice %0 {offsets = [0, 3], sizes = [16, 1], strides = [1, 1]} : vector<16x16xf32> to vector<16x1xf32>
    %23 = vector.extract_strided_slice %1 {offsets = [3, 0], sizes = [1, 256], strides = [1, 1]} : vector<16x256xf32> to vector<1x256xf32>
    %24 = vector.broadcast %22 : vector<16x1xf32> to vector<16x256xf32>
    %25 = vector.broadcast %23 : vector<1x256xf32> to vector<16x256xf32>
    %26 = arith.mulf %24, %25 : vector<16x256xf32>
    %27 = arith.addf %21, %26 : vector<16x256xf32>
    %28 = vector.extract_strided_slice %0 {offsets = [0, 4], sizes = [16, 1], strides = [1, 1]} : vector<16x16xf32> to vector<16x1xf32>
    %29 = vector.extract_strided_slice %1 {offsets = [4, 0], sizes = [1, 256], strides = [1, 1]} : vector<16x256xf32> to vector<1x256xf32>
    %30 = vector.broadcast %28 : vector<16x1xf32> to vector<16x256xf32>
    %31 = vector.broadcast %29 : vector<1x256xf32> to vector<16x256xf32>
    %32 = arith.mulf %30, %31 : vector<16x256xf32>
    %33 = arith.addf %27, %32 : vector<16x256xf32>
    %34 = vector.extract_strided_slice %0 {offsets = [0, 5], sizes = [16, 1], strides = [1, 1]} : vector<16x16xf32> to vector<16x1xf32>
    %35 = vector.extract_strided_slice %1 {offsets = [5, 0], sizes = [1, 256], strides = [1, 1]} : vector<16x256xf32> to vector<1x256xf32>
    %36 = vector.broadcast %34 : vector<16x1xf32> to vector<16x256xf32>
    %37 = vector.broadcast %35 : vector<1x256xf32> to vector<16x256xf32>
    %38 = arith.mulf %36, %37 : vector<16x256xf32>
    %39 = arith.addf %33, %38 : vector<16x256xf32>
    %40 = vector.extract_strided_slice %0 {offsets = [0, 6], sizes = [16, 1], strides = [1, 1]} : vector<16x16xf32> to vector<16x1xf32>
    %41 = vector.extract_strided_slice %1 {offsets = [6, 0], sizes = [1, 256], strides = [1, 1]} : vector<16x256xf32> to vector<1x256xf32>
    %42 = vector.broadcast %40 : vector<16x1xf32> to vector<16x256xf32>
    %43 = vector.broadcast %41 : vector<1x256xf32> to vector<16x256xf32>
    %44 = arith.mulf %42, %43 : vector<16x256xf32>
    %45 = arith.addf %39, %44 : vector<16x256xf32>
    %46 = vector.extract_strided_slice %0 {offsets = [0, 7], sizes = [16, 1], strides = [1, 1]} : vector<16x16xf32> to vector<16x1xf32>
    %47 = vector.extract_strided_slice %1 {offsets = [7, 0], sizes = [1, 256], strides = [1, 1]} : vector<16x256xf32> to vector<1x256xf32>
    %48 = vector.broadcast %46 : vector<16x1xf32> to vector<16x256xf32>
    %49 = vector.broadcast %47 : vector<1x256xf32> to vector<16x256xf32>
    %50 = arith.mulf %48, %49 : vector<16x256xf32>
    %51 = arith.addf %45, %50 : vector<16x256xf32>
    %52 = vector.extract_strided_slice %0 {offsets = [0, 8], sizes = [16, 1], strides = [1, 1]} : vector<16x16xf32> to vector<16x1xf32>
    %53 = vector.extract_strided_slice %1 {offsets = [8, 0], sizes = [1, 256], strides = [1, 1]} : vector<16x256xf32> to vector<1x256xf32>
    %54 = vector.broadcast %52 : vector<16x1xf32> to vector<16x256xf32>
    %55 = vector.broadcast %53 : vector<1x256xf32> to vector<16x256xf32>
    %56 = arith.mulf %54, %55 : vector<16x256xf32>
    %57 = arith.addf %51, %56 : vector<16x256xf32>
    %58 = vector.extract_strided_slice %0 {offsets = [0, 9], sizes = [16, 1], strides = [1, 1]} : vector<16x16xf32> to vector<16x1xf32>
    %59 = vector.extract_strided_slice %1 {offsets = [9, 0], sizes = [1, 256], strides = [1, 1]} : vector<16x256xf32> to vector<1x256xf32>
    %60 = vector.broadcast %58 : vector<16x1xf32> to vector<16x256xf32>
    %61 = vector.broadcast %59 : vector<1x256xf32> to vector<16x256xf32>
    %62 = arith.mulf %60, %61 : vector<16x256xf32>
    %63 = arith.addf %57, %62 : vector<16x256xf32>
    %64 = vector.extract_strided_slice %0 {offsets = [0, 10], sizes = [16, 1], strides = [1, 1]} : vector<16x16xf32> to vector<16x1xf32>
    %65 = vector.extract_strided_slice %1 {offsets = [10, 0], sizes = [1, 256], strides = [1, 1]} : vector<16x256xf32> to vector<1x256xf32>
    %66 = vector.broadcast %64 : vector<16x1xf32> to vector<16x256xf32>
    %67 = vector.broadcast %65 : vector<1x256xf32> to vector<16x256xf32>
    %68 = arith.mulf %66, %67 : vector<16x256xf32>
    %69 = arith.addf %63, %68 : vector<16x256xf32>
    %70 = vector.extract_strided_slice %0 {offsets = [0, 11], sizes = [16, 1], strides = [1, 1]} : vector<16x16xf32> to vector<16x1xf32>
    %71 = vector.extract_strided_slice %1 {offsets = [11, 0], sizes = [1, 256], strides = [1, 1]} : vector<16x256xf32> to vector<1x256xf32>
    %72 = vector.broadcast %70 : vector<16x1xf32> to vector<16x256xf32>
    %73 = vector.broadcast %71 : vector<1x256xf32> to vector<16x256xf32>
    %74 = arith.mulf %72, %73 : vector<16x256xf32>
    %75 = arith.addf %69, %74 : vector<16x256xf32>
    %76 = vector.extract_strided_slice %0 {offsets = [0, 12], sizes = [16, 1], strides = [1, 1]} : vector<16x16xf32> to vector<16x1xf32>
    %77 = vector.extract_strided_slice %1 {offsets = [12, 0], sizes = [1, 256], strides = [1, 1]} : vector<16x256xf32> to vector<1x256xf32>
    %78 = vector.broadcast %76 : vector<16x1xf32> to vector<16x256xf32>
    %79 = vector.broadcast %77 : vector<1x256xf32> to vector<16x256xf32>
    %80 = arith.mulf %78, %79 : vector<16x256xf32>
    %81 = arith.addf %75, %80 : vector<16x256xf32>
    %82 = vector.extract_strided_slice %0 {offsets = [0, 13], sizes = [16, 1], strides = [1, 1]} : vector<16x16xf32> to vector<16x1xf32>
    %83 = vector.extract_strided_slice %1 {offsets = [13, 0], sizes = [1, 256], strides = [1, 1]} : vector<16x256xf32> to vector<1x256xf32>
    %84 = vector.broadcast %82 : vector<16x1xf32> to vector<16x256xf32>
    %85 = vector.broadcast %83 : vector<1x256xf32> to vector<16x256xf32>
    %86 = arith.mulf %84, %85 : vector<16x256xf32>
    %87 = arith.addf %81, %86 : vector<16x256xf32>
    %88 = vector.extract_strided_slice %0 {offsets = [0, 14], sizes = [16, 1], strides = [1, 1]} : vector<16x16xf32> to vector<16x1xf32>
    %89 = vector.extract_strided_slice %1 {offsets = [14, 0], sizes = [1, 256], strides = [1, 1]} : vector<16x256xf32> to vector<1x256xf32>
    %90 = vector.broadcast %88 : vector<16x1xf32> to vector<16x256xf32>
    %91 = vector.broadcast %89 : vector<1x256xf32> to vector<16x256xf32>
    %92 = arith.mulf %90, %91 : vector<16x256xf32>
    %93 = arith.addf %87, %92 : vector<16x256xf32>
    %94 = vector.extract_strided_slice %0 {offsets = [0, 15], sizes = [16, 1], strides = [1, 1]} : vector<16x16xf32> to vector<16x1xf32>
    %95 = vector.extract_strided_slice %1 {offsets = [15, 0], sizes = [1, 256], strides = [1, 1]} : vector<16x256xf32> to vector<1x256xf32>
    %96 = vector.broadcast %94 : vector<16x1xf32> to vector<16x256xf32>
    %97 = vector.broadcast %95 : vector<1x256xf32> to vector<16x256xf32>
    %98 = arith.mulf %96, %97 : vector<16x256xf32>
    %99 = arith.addf %93, %98 : vector<16x256xf32>
    %cst = arith.constant 0.000000e+00 : f32
    %100 = vector.broadcast %cst : f32 to vector<16x256xf32>
    %101 = arith.maximumf %99, %100 : vector<16x256xf32>
    %102 = math.absf %99 : vector<16x256xf32>
    %cst_5 = arith.constant 0.000000e+00 : f32
    %103 = vector.broadcast %cst_5 : f32 to vector<16x256xf32>
    %104 = arith.subf %103, %102 : vector<16x256xf32>
    %105 = math.exp %104 : vector<16x256xf32>
    %106 = math.log1p %105 : vector<16x256xf32>
    %107 = arith.addf %101, %106 : vector<16x256xf32>
    %c0_6 = arith.constant 0 : index
    %c0_7 = arith.constant 0 : index
    %c0_8 = arith.constant 0 : index
    %108 = vector.load %arg4[%c0_6, %c0_7, %c0_8] : memref<3x256x256xf32, #tpu.memory_space<vmem>>, vector<1x256x256xf32>
    %109 = vector.shape_cast %108 : vector<1x256x256xf32> to vector<256x256xf32>
    %cst_9 = arith.constant dense<0.000000e+00> : vector<16x256xf32>
    %110 = tpu.matmul %107, %109, %cst_9 {dimension_numbers = #tpu.dot_dimension_numbers<[1], [0], [0], [1], [0, 0, 1, 1], [], []>, precision = #tpu.contract_precision<fp32>} : vector<16x256xf32>, vector<256x256xf32>, vector<16x256xf32> -> vector<16x256xf32>
    %c0_10 = arith.constant 0 : index
    %c0_11 = arith.constant 0 : index
    %c0_12 = arith.constant 0 : index
    %111 = vector.load %arg5[%c0_10, %c0_11, %c0_12] : memref<3x1x256xf32, #tpu.memory_space<vmem>>, vector<1x1x256xf32>
    %112 = vector.shape_cast %111 : vector<1x1x256xf32> to vector<1x256xf32>
    %113 = vector.broadcast %112 : vector<1x256xf32> to vector<16x256xf32>
    %114 = arith.addf %110, %113 : vector<16x256xf32>
    %cst_13 = arith.constant 0.000000e+00 : f32
    %115 = vector.broadcast %cst_13 : f32 to vector<16x256xf32>
    %116 = arith.maximumf %114, %115 : vector<16x256xf32>
    %117 = math.absf %114 : vector<16x256xf32>
    %cst_14 = arith.constant 0.000000e+00 : f32
    %118 = vector.broadcast %cst_14 : f32 to vector<16x256xf32>
    %119 = arith.subf %118, %117 : vector<16x256xf32>
    %120 = math.exp %119 : vector<16x256xf32>
    %121 = math.log1p %120 : vector<16x256xf32>
    %122 = arith.addf %116, %121 : vector<16x256xf32>
    %c1 = arith.constant 1 : index
    %c0_15 = arith.constant 0 : index
    %c0_16 = arith.constant 0 : index
    %123 = vector.load %arg4[%c1, %c0_15, %c0_16] : memref<3x256x256xf32, #tpu.memory_space<vmem>>, vector<1x256x256xf32>
    %124 = vector.shape_cast %123 : vector<1x256x256xf32> to vector<256x256xf32>
    %cst_17 = arith.constant dense<0.000000e+00> : vector<16x256xf32>
    %125 = tpu.matmul %122, %124, %cst_17 {dimension_numbers = #tpu.dot_dimension_numbers<[1], [0], [0], [1], [0, 0, 1, 1], [], []>, precision = #tpu.contract_precision<fp32>} : vector<16x256xf32>, vector<256x256xf32>, vector<16x256xf32> -> vector<16x256xf32>
    %c1_18 = arith.constant 1 : index
    %c0_19 = arith.constant 0 : index
    %c0_20 = arith.constant 0 : index
    %126 = vector.load %arg5[%c1_18, %c0_19, %c0_20] : memref<3x1x256xf32, #tpu.memory_space<vmem>>, vector<1x1x256xf32>
    %127 = vector.shape_cast %126 : vector<1x1x256xf32> to vector<1x256xf32>
    %128 = vector.broadcast %127 : vector<1x256xf32> to vector<16x256xf32>
    %129 = arith.addf %125, %128 : vector<16x256xf32>
    %cst_21 = arith.constant 0.000000e+00 : f32
    %130 = vector.broadcast %cst_21 : f32 to vector<16x256xf32>
    %131 = arith.maximumf %129, %130 : vector<16x256xf32>
    %132 = math.absf %129 : vector<16x256xf32>
    %cst_22 = arith.constant 0.000000e+00 : f32
    %133 = vector.broadcast %cst_22 : f32 to vector<16x256xf32>
    %134 = arith.subf %133, %132 : vector<16x256xf32>
    %135 = math.exp %134 : vector<16x256xf32>
    %136 = math.log1p %135 : vector<16x256xf32>
    %137 = arith.addf %131, %136 : vector<16x256xf32>
    %c2 = arith.constant 2 : index
    %c0_23 = arith.constant 0 : index
    %c0_24 = arith.constant 0 : index
    %138 = vector.load %arg4[%c2, %c0_23, %c0_24] : memref<3x256x256xf32, #tpu.memory_space<vmem>>, vector<1x256x256xf32>
    %139 = vector.shape_cast %138 : vector<1x256x256xf32> to vector<256x256xf32>
    %cst_25 = arith.constant dense<0.000000e+00> : vector<16x256xf32>
    %140 = tpu.matmul %137, %139, %cst_25 {dimension_numbers = #tpu.dot_dimension_numbers<[1], [0], [0], [1], [0, 0, 1, 1], [], []>, precision = #tpu.contract_precision<fp32>} : vector<16x256xf32>, vector<256x256xf32>, vector<16x256xf32> -> vector<16x256xf32>
    %c2_26 = arith.constant 2 : index
    %c0_27 = arith.constant 0 : index
    %c0_28 = arith.constant 0 : index
    %141 = vector.load %arg5[%c2_26, %c0_27, %c0_28] : memref<3x1x256xf32, #tpu.memory_space<vmem>>, vector<1x1x256xf32>
    %142 = vector.shape_cast %141 : vector<1x1x256xf32> to vector<1x256xf32>
    %143 = vector.broadcast %142 : vector<1x256xf32> to vector<16x256xf32>
    %144 = arith.addf %140, %143 : vector<16x256xf32>
    %cst_29 = arith.constant 0.000000e+00 : f32
    %145 = vector.broadcast %cst_29 : f32 to vector<16x256xf32>
    %146 = arith.maximumf %144, %145 : vector<16x256xf32>
    %147 = math.absf %144 : vector<16x256xf32>
    %cst_30 = arith.constant 0.000000e+00 : f32
    %148 = vector.broadcast %cst_30 : f32 to vector<16x256xf32>
    %149 = arith.subf %148, %147 : vector<16x256xf32>
    %150 = math.exp %149 : vector<16x256xf32>
    %151 = math.log1p %150 : vector<16x256xf32>
    %152 = arith.addf %146, %151 : vector<16x256xf32>
    %c0_31 = arith.constant 0 : index
    %c0_32 = arith.constant 0 : index
    %153 = vector.load %arg6[%c0_31, %c0_32] : memref<256x8xf32, #tpu.memory_space<vmem>>, vector<256x8xf32>
    %cst_33 = arith.constant dense<0.000000e+00> : vector<16x8xf32>
    %154 = tpu.matmul %152, %153, %cst_33 {dimension_numbers = #tpu.dot_dimension_numbers<[1], [0], [0], [1], [0, 0, 1, 1], [], []>, precision = #tpu.contract_precision<fp32>} : vector<16x256xf32>, vector<256x8xf32>, vector<16x8xf32> -> vector<16x8xf32>
    %c0_34 = arith.constant 0 : index
    %c0_35 = arith.constant 0 : index
    %155 = vector.load %arg7[%c0_34, %c0_35] : memref<1x8xf32, #tpu.memory_space<vmem>>, vector<1x8xf32>
    %156 = vector.broadcast %155 : vector<1x8xf32> to vector<16x8xf32>
    %157 = arith.addf %154, %156 : vector<16x8xf32>
    %c0_36 = arith.constant 0 : index
    %c0_37 = arith.constant 0 : index
    %158 = vector.load %arg8[%c0_36, %c0_37] : memref<16x8xf32, #tpu.memory_space<vmem>>, vector<16x8xf32>
    tpu.vector_store %arg8[%c0_36, %c0_37], %157 {strides = array<i32>} : memref<16x8xf32, #tpu.memory_space<vmem>>, vector<16x8xf32>,
    return
  }
  func.func @transform_0(%arg0: i32) -> (i32, i32) {
    %c0_i32 = arith.constant 0 : i32
    %c0_i32_0 = arith.constant 0 : i32
    return %arg0, %c0_i32 : i32, i32
  }
  func.func @transform_1(%arg0: i32) -> (i32, i32) {
    %c0_i32 = arith.constant 0 : i32
    %c0_i32_0 = arith.constant 0 : i32
    %c0_i32_1 = arith.constant 0 : i32
    return %c0_i32, %c0_i32_0 : i32, i32
  }
  func.func @transform_2(%arg0: i32) -> (i32, i32) {
    %c0_i32 = arith.constant 0 : i32
    %c0_i32_0 = arith.constant 0 : i32
    %c0_i32_1 = arith.constant 0 : i32
    return %c0_i32, %c0_i32_0 : i32, i32
  }
  func.func @transform_3(%arg0: i32) -> (i32, i32, i32) {
    %c0_i32 = arith.constant 0 : i32
    %c0_i32_0 = arith.constant 0 : i32
    %c0_i32_1 = arith.constant 0 : i32
    %c0_i32_2 = arith.constant 0 : i32
    return %c0_i32, %c0_i32_0, %c0_i32_1 : i32, i32, i32
  }
  func.func @transform_4(%arg0: i32) -> (i32, i32, i32) {
    %c0_i32 = arith.constant 0 : i32
    %c0_i32_0 = arith.constant 0 : i32
    %c0_i32_1 = arith.constant 0 : i32
    %c0_i32_2 = arith.constant 0 : i32
    return %c0_i32, %c0_i32_0, %c0_i32_1 : i32, i32, i32
  }
  func.func @transform_5(%arg0: i32) -> (i32, i32) {
    %c0_i32 = arith.constant 0 : i32
    %c0_i32_0 = arith.constant 0 : i32
    %c0_i32_1 = arith.constant 0 : i32
    return %c0_i32, %c0_i32_0 : i32, i32
  }
  func.func @transform_6(%arg0: i32) -> (i32, i32) {
    %c0_i32 = arith.constant 0 : i32
    %c0_i32_0 = arith.constant 0 : i32
    %c0_i32_1 = arith.constant 0 : i32
    return %c0_i32, %c0_i32_0 : i32, i32
  }
  func.func @transform_7(%arg0: i32) -> (i32, i32) {
    %c0_i32 = arith.constant 0 : i32
    %c0_i32_0 = arith.constant 0 : i32
    return %arg0, %c0_i32 : i32, i32
  }
}

</mosaic_0001>

<bundles_post_ra>
// kernel: tpu_custom_call.1
= control target key start
LH: loop header
LB: loop body
LE: loop exit
PB: predicated region body
PF: predicated region fallthrough
CT: control target
= control target key end

     0   :  { %12 = vsyncpa [#allocation3], 0  ;;  %s8132_s24 = smov 0   ;;  %s13282_s0 = inlined_call_operand.vmem [shape: f32[32,16], index: 0, kind: input, shape index: {}]   ;;  %s13283_s1 = inlined_call_operand.vmem [shape: f32[16,256], index: 1, kind: input, shape index: {}]   ;;  %s13284_s2 = inlined_call_operand.vmem [shape: f32[1,256], index: 2, kind: input, shape index: {}]   ;;  %s13285_s3 = inlined_call_operand.hbm [shape: f32[3,256,256], index: 3, kind: input, shape index: {}]   ;;  %s13286_s4 = inlined_call_operand.vmem [shape: f32[3,1,256], index: 4, kind: input, shape index: {}]   ;;  %s13287_s5 = inlined_call_operand.vmem [shape: f32[256,8], index: 5, kind: input, shape index: {}]   ;;  %s13288_s6 = inlined_call_operand.vmem [shape: f32[1,8], index: 6, kind: input, shape index: {}]   ;;  %s13289_s7 = inlined_call_operand.vmem [shape: f32[32,8], index: 7, kind: output, shape index: {}]  }
   0x1 LB: > { %s6239_s25 = sadd.s32 4294967295, %s8071_s24   ;;  %p6241_p0 = scmp.ge.s32.totalorder %s8071_s24, 1  ;;  %s8071_s24 = sphi %s8132_s24, %s18_s24  }
   0x2   : > { %p201_p1 = scmp.lt.s32.totalorder %s8071_s24, 3  ;;  %s8073_s26 = smov [#allocation2]  }
   0x3   : > { %s219_s27 = sshll.u32 %s8073_s26, 4  ;;  %p8146_p3 = scmp.eq.s32.totalorder %s6239_s25, 0  ;;  %s220_s27 = int_to_ptr.vmem [resolvable:$true] %s219_s27 }
   0x4   : > { %p8140_p2 = pnand %p6241_p0, %p201_p1  ;;  %s8033_s10 = scalar_lea.hbm %s13285_s3, 24576 }
   0x5   : > { %s14209_s29 = scalar_select %p8146_p3, 1, 0 }
   0x6   : > { %s14208_s28 = scalar_select %p8140_p2, 1, 0 }
   0x7   : > { %p7903_p4 = pneg %p8140_p2  ;;  %p8034_p6 = scmp.ne.s32.totalorder %s13285_s3, %s8033_s10 }
   0x8   : > { %p8040_p10 = scmp.lt.u32.totalorder %s8033_s10, %s13285_s3 }
   0x9   : > { %p8154_p5 = pnand %p8146_p3, %p7903_p4 }
   0xb   : > { %p8035_p7 = pneg %p8154_p5 }
   0xd   : > { %p8036_p8 = pnand %p8035_p7, %p8034_p6 }
   0xf   : > { %p8037_p9 = pneg %p8036_p8 }
  0x11   : > { %p8042_p11 = pnand %p8040_p10, %p8037_p9 }
  0x13   : > { %8045 = shalt.err (!%p8042_p11)
}
  0x14   : > { %s8046_s15 = scalar_lea.vmem %s220_s27, 24576  ;;  %p8054_p1 = scmp.lt.s32.totalorder %s220_s27, %s220_s27 }
  0x15   : > { %p8047_p12 = scmp.ne.s32.totalorder %s220_s27, %s8046_s15  ;;  %p8055_p4 = scmp.lt.s32.totalorder %s8046_s15, %s8046_s15 }
  0x17   : > { %p8049_p13 = pnand %p8047_p12, %p8035_p7  ;;  %p8056_p3 = por %p8055_p4, %p8054_p1 }
  0x19   : > { %p8050_p0 = pneg %p8049_p13 }
  0x1b   : > { %p8057_p2 = pnand %p8056_p3, %p8050_p0 }
  0x1d   : > { %8060 = shalt.err (!%p8057_p2)
}
  0x1e   : > { %s8074_s16 = smov 256   ;;  %s8075_s17 = smov 16  }
  0x1f   : > { %7906 = dma.hbm_to_vmem [thread:$0]  (!%p8154_p5), %s13285_s3, 24576, %s220_s27, [#allocation3], %s8074_s16, %s8074_s16, %s8075_s17  }
  0x20   : > { %p14211_p6 = scmp.ne.s32.totalorder %s14208_s28, 0 }
  0x22   : > { %253 = sbr.rel (%p14211_p6) target bundleno = 2333 (0x91d), region = 48 }
  0x29   : > { %p14212_p8 = scmp.ne.s32.totalorder %s14209_s29, 0 }
  0x2b   : > { %8066 = dma.done.wait (%p14212_p8), [#allocation3], 24576  }
  0x2c   : > { %8068 = vsyncadd (%p14212_p8), [#allocation3], 4294942720  ;;  %s6246_s20 = sshll.u32 %s6239_s25, 1  ;;  %v13321_v0 = vmov 2   ;;  %v8077_v1 = vmov 0   ;;  %v13318_v3 = vmov 3  }
  0x2d   : > { %7938 = vset.pattern.permute.xlu1 %v13321_v0  ;;  %7936 = vset.pattern.permute.xlu0 %v8077_v1  ;;  %p286_p2 = scmp.lt.s32.totalorder %s6246_s20, 3  ;;  %v8079_v4 = vmov 1   ;;  %v8080_v5 = vmov 4   ;;  %v13315_v6 = vmov 5   ;;  %v8205_v7 = vld [vmem:[#allocation2 + $0x8] sm:$0xff]  ;;  %v8207_v8 = vld [vmem:[#allocation2 + $0x18] sm:$0xff] }
  0x2e   : > { %v837_v9 = vand.u32 4294901760, %v8205_v7  ;;  %v841_v10 = vand.u32 4294901760, %v8207_v8  ;;  %v8213_v11 = vld [vmem:[#allocation2] sm:$0xff]  ;;  %v8215_v12 = vld [vmem:[#allocation2 + $0x10] sm:$0xff]  ;;  %v8234_v18 = vld [vmem:[#allocation2 + $0x28] sm:$0xff]  ;;  %v13314_v20 = vmov 6  }
  0x2f   : > { %s15586_s20 = smov (!%p286_p2, %s6246_s20), 3  ;;  %v839_v13 = vand.u32 4294901760, %v8213_v11  ;;  %v843_v16 = vand.u32 4294901760, %v8215_v12  ;;  %v8236_v19 = vld [vmem:[#allocation2 + $0x38] sm:$0xff]  ;;  %v13306_v21 = vmov 8   ;;  %v845_v25 = vand.u32 4294901760, %v8234_v18 }
  0x30   : > { %s6247_s21 = sshll.u32 %s15586_s20, 3  ;;  %v8221_v14 = vsub.f32 %v8205_v7, %v837_v9  ;;  %v8226_v15 = vsub.f32 %v8207_v8, %v841_v10  ;;  %v8248_v26 = vld [vmem:[#allocation2 + $0x20] sm:$0xff]  ;;  %v8250_v27 = vld [vmem:[#allocation2 + $0x30] sm:$0xff]  ;;  %v849_v29 = vand.u32 4294901760, %v8236_v19  ;;  %v8084_v41 = vmov 7   ;;  %v8290_v47 = vld [vmem:[#allocation2 + $0x48] sm:$0xff] }
  0x31   : > { %s8192_s26 = scalar_lea.vmem %s13282_s0, %s6247_s21  ;;  %v8232_v17 = vsub.f32 %v8213_v11, %v839_v13  ;;  %v8245_v24 = vsub.f32 %v8215_v12, %v843_v16  ;;  %v847_v30 = vand.u32 4294901760, %v8248_v26  ;;  %v851_v34 = vand.u32 4294901760, %v8250_v27  ;;  %v8292_v48 = vld [vmem:[#allocation2 + $0x58] sm:$0xff]  ;;  %v8294_v49 = vld [vmem:[#allocation2 + $0x40] sm:$0xff]  ;;  %v8315_v59 = vld [vmem:[#allocation2 + $0x50] sm:$0xff]  ;;  %s295_s30 = scalar_lea.vmem %s13289_s7, %s6247_s21 }
  0x32   : > { %v8195_v2 = vld [vmem:[%s8192_s26] sm:$0xff]  ;;  %14213 = vst [vmem:[#allocation5_spill] sm:$0xff] %v8221_v14  ;;  %14214 = vst [vmem:[#allocation6_spill] sm:$0xff] %v8226_v15  ;;  %v13299_v22 = vand.u32 4294901760, %v8221_v14  ;;  %v13298_v23 = vand.u32 4294901760, %v8226_v15  ;;  %v8271_v36 = vsub.f32 %v8234_v18, %v845_v25  ;;  %v8276_v37 = vsub.f32 %v8236_v19, %v849_v29  ;;  %v8318_v61 = vld [vmem:[#allocation2 + $0x68] sm:$0xff] }
  0x33   : > { %366 = vperm.xlu1 %7938, %v8195_v2   ;;  %306 = vperm.xlu0 %7936, %v8195_v2   ;;  %14215 = vst [vmem:[#allocation7_spill] sm:$0xff] %v8232_v17  ;;  %14216 = vst [vmem:[#allocation8_spill] sm:$0xff] %v8245_v24  ;;  %v13297_v28 = vand.u32 4294901760, %v8232_v17  ;;  %v13296_v33 = vand.u32 4294901760, %v8245_v24  ;;  %v8281_v38 = vsub.f32 %v8248_v26, %v847_v30  ;;  %v13303_v42 = vmov 11   ;;  %v8408_v11 = vld [vmem:[#allocation2 + $0x98] sm:$0xff] }
  0x34   : > { %v1001_v31 = vsub.f32 %v8221_v14, %v13299_v22  ;;  %v1013_v32 = vsub.f32 %v8226_v15, %v13298_v23  ;;  %14217 = vst [vmem:[#allocation9_spill] sm:$0xff] %v8271_v36  ;;  %14218 = vst [vmem:[#allocation10_spill] sm:$0xff] %v8276_v37  ;;  %v13295_v45 = vand.u32 4294901760, %v8271_v36  ;;  %v13294_v46 = vand.u32 4294901760, %v8276_v37  ;;  %v8351_v22 = vld [vmem:[#allocation2 + $0x60] sm:$0xff] }
  0x35   : > { %v1007_v35 = vsub.f32 %v8232_v17, %v13297_v28  ;;  %14219 = vst [vmem:[#allocation11_spill] sm:$0xff] %v8281_v38  ;;  %v1019_v44 = vsub.f32 %v8245_v24, %v13296_v33  ;;  %v13293_v51 = vand.u32 4294901760, %v8281_v38  ;;  %v8308_v55 = vsub.f32 %v8250_v27, %v851_v34 }
  0x36   : > { %v1002_v39 = vand.u32 4294901760, %v1001_v31  ;;  %v1014_v40 = vand.u32 4294901760, %v1013_v32  ;;  %v1025_v53 = vsub.f32 %v8271_v36, %v13295_v45  ;;  %v1037_v54 = vsub.f32 %v8276_v37, %v13294_v46 }
  0x37   : > { %7939 = vset.pattern.permute.xlu1 %v13318_v3  ;;  %7937 = vset.pattern.permute.xlu0 %v8079_v4  ;;  %v1008_v43 = vand.u32 4294901760, %v1007_v35  ;;  %v1020_v52 = vand.u32 4294901760, %v1019_v44  ;;  %14220 = vst [vmem:[#allocation12_spill] sm:$0xff] %v8308_v55  ;;  %v1031_v56 = vsub.f32 %v8281_v38, %v13293_v51  ;;  %v853_v57 = vand.u32 4294901760, %v8290_v47  ;;  %v8328_v44 = vld [vmem:[#allocation2 + $0x78] sm:$0xff] }
  0x38   : > { %390 = vperm.xlu1 %7939, %v8195_v2   ;;  %342 = vperm.xlu0 %7937, %v8195_v2   ;;  %v6547_v50 = vpack.c.bf16 %v1014_v40, %v1002_v39  ;;  %v857_v58 = vand.u32 4294901760, %v8292_v48  ;;  %v855_v60 = vand.u32 4294901760, %v8294_v49  ;;  %v1026_v63 = vand.u32 4294901760, %v1025_v53 }
  0x39   : > { %v6549_v62 = vpack.c.bf16 %v1020_v52, %v1008_v43  ;;  %v13304_v31 = vmov 9   ;;  %v13300_v32 = vmov 14   ;;  %v1038_v35 = vand.u32 4294901760, %v1037_v54 }
  0x3a   : > { %6548 = vmatprep.subr.bf16.mxu0 %v6547_v50  ;;  %v13301_v39 = vand.u32 4294901760, %v8308_v55  ;;  %v8326_v40 = vsub.f32 %v8290_v47, %v853_v57  ;;  %v8335_v43 = vsub.f32 %v8292_v48, %v857_v58  ;;  %v859_v50 = vand.u32 4294901760, %v8315_v59 }
  0x3b   : > { %v8341_v52 = vsub.f32 %v8294_v49, %v855_v60  ;;  %v861_v53 = vand.u32 4294901760, %v8318_v61  ;;  %6550 = vmatpush1.bf16.msra.mxu0 %v6549_v62  ;;  %v6551_v54 = vpack.c.bf16 %v1038_v35, %v1026_v63  ;;  %v1032_v51 = vand.u32 4294901760, %v1031_v56 }
  0x3c   : > { %7940 = vset.pattern.permute.xlu1 %v8080_v5  ;;  %7941 = vset.pattern.permute.xlu0 %v13315_v6  ;;  %14221 = vst [vmem:[#allocation13_spill] sm:$0xff] %v8326_v40  ;;  %14222 = vst [vmem:[#allocation14_spill] sm:$0xff] %v8335_v43  ;;  %v1043_v46 = vsub.f32 %v8308_v55, %v13301_v39  ;;  %v13302_v45 = vand.u32 4294901760, %v8326_v40  ;;  %v13305_v33 = vand.u32 4294901760, %v8335_v43  ;;  %v865_v23 = vand.u32 4294901760, %v8328_v44  ;;  %v8368_v39 = vld [vmem:[%s8192_s26 + $0x8] sm:$0xff] }
  0x3d   : > { %414 = vperm.xlu1 %7940, %v8195_v2   ;;  %438 = vperm.xlu0 %7941, %v8195_v2   ;;  %14223 = vst [vmem:[#allocation15_spill] sm:$0xff] %v8341_v52  ;;  %v13309_v28 = vand.u32 4294901760, %v8341_v52  ;;  %v8359_v62 = vsub.f32 %v8315_v59, %v859_v50  ;;  %v8364_v63 = vsub.f32 %v8318_v61, %v861_v53  ;;  %v8088_v35 = vmov 10  }
  0x3e   : > { %6552 = vmatprep.subr.bf16.mxu0 %v6551_v54  ;;  %v1049_v56 = vsub.f32 %v8326_v40, %v13302_v45  ;;  %v8378_v54 = vpack.c.bf16 %v841_v10, %v837_v9  ;;  %v863_v7 = vand.u32 4294901760, %v8351_v22  ;;  %v8394_v9 = vpack.c.bf16 %v843_v16, %v839_v13 }
  0x3f   : > { %14224 = vst [vmem:[#allocation16_spill] sm:$0xff] %v8359_v62  ;;  %14225 = vst [vmem:[#allocation17_spill] sm:$0xff] %v8364_v63  ;;  %v1055_v45 = vsub.f32 %v8341_v52, %v13309_v28  ;;  %v8415_v13 = vpack.c.bf16 %v849_v29, %v845_v25  ;;  %v13311_v16 = vmov 12   ;;  %v8439_v19 = vpack.c.bf16 %v851_v34, %v847_v30 }
  0x40   : > { %14226 = vst [vmem:[#allocation18_spill] sm:$0xff] %v8378_v54  ;;  %6484 = vmatprep.subr.bf16.mxu1 %v8378_v54  ;;  %14227 = vst [vmem:[#allocation19_spill] sm:$0xff] %v8394_v9  ;;  %v8426_v18 = vsub.f32 %v8351_v22, %v863_v7  ;;  %v873_v29 = vand.u32 4294901760, %v8408_v11  ;;  %v13333_v0 = vmov 15  }
  0x41   : > { %7942 = vset.pattern.permute.xlu1 %v13314_v20  ;;  %7944 = vset.pattern.permute.xlu0 %v13306_v21  ;;  %v1056_v8 = vand.u32 4294901760, %v1055_v45  ;;  %14229 = vst [vmem:[#allocation21_spill] sm:$0xff] %v8415_v13  ;;  %14232 = vst [vmem:[#allocation24_spill] sm:$0xff] %v8439_v19 }
  0x42   : > { %462 = vperm.xlu1 %7942, %v8195_v2   ;;  %510 = vperm.xlu0 %7944, %v8195_v2   ;;  %14230 = vst [vmem:[#allocation22_spill] sm:$0xff] %v8426_v18  ;;  %v13313_v26 = vand.u32 4294901760, %v8426_v18  ;;  %v8462_v34 = vsub.f32 %v8408_v11, %v873_v29 }
  0x43   : > { %6486 = vmatpush1.bf16.msra.mxu1 %v8394_v9 }
  0x44   : > { %6488 = vmatprep.subr.bf16.mxu1 %v8415_v13  ;;  %14234 = vst [vmem:[#allocation26_spill] sm:$0xff] %v8462_v34 }
  0x46   : > { %7943 = vset.pattern.permute.xlu1 %v8084_v41  ;;  %7947 = vset.pattern.permute.xlu0 %v13303_v42  ;;  %v8383_v42 = vld [vmem:[#allocation2 + $0x70] sm:$0xff] }
  0x47   : > { %486 = vperm.xlu1 %7943, %v8195_v2   ;;  %582 = vperm.xlu0 %7947, %v8195_v2   ;;  %v867_v45 = vand.u32 4294901760, %v8383_v42 }
  0x48   : > { %6490 = vmatpush1.bf16.msra.mxu1 %v8439_v19 }
  0x4b   : > { %7945 = vset.pattern.permute.xlu1 %v13304_v31  ;;  %7950 = vset.pattern.permute.xlu0 %v13300_v32  ;;  %v1044_v32 = vand.u32 4294901760, %v1043_v46  ;;  %v1061_v46 = vsub.f32 %v8335_v43, %v13305_v33  ;;  %v1050_v31 = vand.u32 4294901760, %v1049_v56  ;;  %v13308_v33 = vand.u32 4294901760, %v8359_v62  ;;  %v8406_v56 = vld [vmem:[#allocation2 + $0x88] sm:$0xff] }
  0x4c   : > { %534 = vperm.xlu1 %7945, %v8195_v2   ;;  %654 = vperm.xlu0 %7950, %v8195_v2   ;;  %v869_v25 = vand.u32 4294901760, %v8406_v56 }
  0x4d   : > { %v1062_v21 = vand.u32 4294901760, %v1061_v46  ;;  %v1067_v10 = vsub.f32 %v8359_v62, %v13308_v33 }
  0x4e   : > { %v8457_v30 = vsub.f32 %v8406_v56, %v869_v25 }
  0x4f   : > { %v6555_v12 = vpack.c.bf16 %v1062_v21, %v1050_v31  ;;  %v1068_v46 = vand.u32 4294901760, %v1067_v10  ;;  %v8443_v31 = vld [vmem:[#allocation2 + $0x80] sm:$0xff]  ;;  %v8445_v10 = vld [vmem:[#allocation2 + $0x90] sm:$0xff] }
  0x50   : > { %7946 = vset.pattern.permute.xlu1 %v8088_v35  ;;  %7953 = vset.pattern.permute.xlu0 %v8079_v4  ;;  %v6553_v4 = vpack.c.bf16 %v1044_v32, %v1032_v51  ;;  %v13307_v51 = vand.u32 4294901760, %v8364_v63  ;;  %v8403_v32 = vsub.f32 %v8328_v44, %v865_v23  ;;  %14233 = vst [vmem:[#allocation25_spill] sm:$0xff] %v8457_v30  ;;  %v13316_v48 = vand.u32 4294901760, %v8457_v30 }
  0x51   : > { %558 = vperm.xlu1 %7946, %v8195_v2   ;;  %346 = vperm.xlu0 %7953, %v8368_v39  }
  0x52   : > { %6554 = vmatpush1.bf16.msra.mxu0 %v6553_v4  ;;  %14228 = vst [vmem:[#allocation20_spill] sm:$0xff] %v8403_v32  ;;  %v1073_v4 = vsub.f32 %v8364_v63, %v13307_v51  ;;  %v13310_v21 = vand.u32 4294901760, %v8403_v32  ;;  %v6557_v51 = vpack.c.bf16 %v1068_v46, %v1056_v8  ;;  %v8468_v8 = vpack.c.bf16 %v857_v58, %v853_v57 }
  0x53   : > { %6556 = vmatprep.subr.bf16.mxu0 %v6555_v12  ;;  %v1079_v46 = vsub.f32 %v8426_v18, %v13313_v26  ;;  %v1097_v26 = vsub.f32 %v8457_v30, %v13316_v48  ;;  %v8512_v48 = vld [vmem:[#allocation2 + $0xa0] sm:$0xff] }
  0x54   : > { %v1074_v33 = vand.u32 4294901760, %v1073_v4  ;;  %v1085_v28 = vsub.f32 %v8403_v32, %v13310_v21  ;;  %14235 = vst [vmem:[#allocation27_spill] sm:$0xff] %v8468_v8  ;;  %v13320_v4 = vand.u32 4294901760, %v8443_v31  ;;  %v13319_v21 = vand.u32 4294901760, %v8445_v10  ;;  %6492 = vmatprep.subr.bf16.mxu1 %v8468_v8 }
  0x55   : > { %7948 = vset.pattern.permute.xlu1 %v13311_v16  ;;  %7956 = vset.pattern.permute.xlu0 %v8080_v5  ;;  %v8433_v5 = vsub.f32 %v8383_v42, %v867_v45  ;;  %v8090_v16 = vmov 13   ;;  %v1080_v58 = vand.u32 4294901760, %v1079_v46  ;;  %v8502_v46 = vld [vmem:[#allocation2 + $0xb8] sm:$0xff] }
  0x56   : > { %606 = vperm.xlu1 %7948, %v8195_v2   ;;  %418 = vperm.xlu0 %7956, %v8368_v39   ;;  %v1086_v12 = vand.u32 4294901760, %v1085_v28  ;;  %v13317_v28 = vand.u32 4294901760, %v8462_v34 }
  0x57   : > { %14231 = vst [vmem:[#allocation23_spill] sm:$0xff] %v8433_v5  ;;  %v13312_v27 = vand.u32 4294901760, %v8433_v5  ;;  %6558 = vmatpush1.bf16.msra.mxu0 %v6557_v51  ;;  %v8486_v51 = vsub.f32 %v8443_v31, %v13320_v4 }
  0x58   : > { %v6559_v57 = vpack.c.bf16 %v1086_v12, %v1074_v33  ;;  %v1109_v33 = vsub.f32 %v8462_v34, %v13317_v28  ;;  %v8500_v12 = vld [vmem:[#allocation2 + $0xa8] sm:$0xff]  ;;  %v8514_v28 = vld [vmem:[#allocation2 + $0xb0] sm:$0xff] }
  0x59   : > { %v1091_v47 = vsub.f32 %v8433_v5, %v13312_v27  ;;  %14236 = vst [vmem:[#allocation28_spill] sm:$0xff] %v8486_v51  ;;  %v13323_v20 = vand.u32 4294901760, %v8486_v51 }
  0x5a   : > { %7949 = vset.pattern.permute.xlu1 %v8090_v16  ;;  %7959 = vset.pattern.permute.xlu0 %v8084_v41  ;;  %v8491_v41 = vsub.f32 %v8445_v10, %v13319_v21  ;;  %v1098_v21 = vand.u32 4294901760, %v1097_v26  ;;  %v1110_v4 = vand.u32 4294901760, %v1109_v33 }
  0x5b   : > { %630 = vperm.xlu1 %7949, %v8195_v2   ;;  %490 = vperm.xlu0 %7959, %v8368_v39   ;;  %v1092_v27 = vand.u32 4294901760, %v1091_v47  ;;  %v8510_v47 = vpack.c.bf16 %v859_v50, %v855_v60  ;;  %v1103_v49 = vsub.f32 %v8486_v51, %v13323_v20  ;;  %v13332_v60 = vand.u32 4294901760, %v8500_v12  ;;  %v8573_v20 = vld [vmem:[#allocation2 + $0xd0] sm:$0xff] }
  0x5c   : > { %14237 = vst [vmem:[#allocation29_spill] sm:$0xff] %v8491_v41  ;;  %6560 = vmatprep.subr.bf16.mxu0 %v6559_v57  ;;  %v13322_v6 = vand.u32 4294901760, %v8491_v41  ;;  %v13329_v50 = vand.u32 4294901760, %v8502_v46  ;;  %v6563_v26 = vpack.c.bf16 %v1110_v4, %v1098_v21  ;;  %v13328_v57 = vand.u32 4294901760, %v8512_v48  ;;  %v8569_v4 = vld [vmem:[#allocation2 + $0xc0] sm:$0xff] }
  0x5d   : > { %14238 = vst [vmem:[#allocation30_spill] sm:$0xff] %v8510_v47  ;;  %v6561_v3 = vpack.c.bf16 %v1092_v27, %v1080_v58  ;;  %v8526_v27 = vld [vmem:[#allocation2 + $0xc8] sm:$0xff]  ;;  %v13327_v58 = vand.u32 4294901760, %v8514_v28  ;;  %v1104_v33 = vand.u32 4294901760, %v1103_v49  ;;  %6494 = vmatpush1.bf16.msra.mxu1 %v8510_v47  ;;  %v14247_v11 = vand.u32 4294901760, %v8573_v20 }
  0x5e   : > { %v1115_v59 = vsub.f32 %v8491_v41, %v13322_v6  ;;  %v8547_v61 = vsub.f32 %v8502_v46, %v13329_v50  ;;  %v13326_v21 = vand.u32 4294901760, %v8526_v27  ;;  %v14274_v8 = vand.u32 4294901760, %v8569_v4 }
  0x5f   : > { %7951 = vset.pattern.permute.xlu1 %v13333_v0  ;;  %7962 = vset.pattern.permute.xlu0 %v8088_v35  ;;  %v8534_v35 = vpack.c.bf16 %v865_v23, %v861_v53  ;;  %v8549_v23 = vld [vmem:[#allocation2 + $0xd8] sm:$0xff]  ;;  %v8560_v44 = vsub.f32 %v8514_v28, %v13327_v58  ;;  %v8566_v53 = vpack.c.bf16 %v867_v45, %v863_v7  ;;  %v8606_v58 = vld [vmem:[#allocation2 + $0xe8] sm:$0xff] }
  0x60   : > { %678 = vperm.xlu1 %7951, %v8195_v2   ;;  %562 = vperm.xlu0 %7962, %v8368_v39   ;;  %v1116_v6 = vand.u32 4294901760, %v1115_v59  ;;  %v8542_v2 = vsub.f32 %v8500_v12, %v13332_v60  ;;  %14241 = vst [vmem:[#allocation33_spill] sm:$0xff] %v8547_v61  ;;  %v13335_v7 = vand.u32 4294901760, %v8549_v23  ;;  %v14283_v9 = vand.u32 4294901760, %v8606_v58 }
  0x61   : > { %14239 = vst [vmem:[#allocation31_spill] sm:$0xff] %v8534_v35  ;;  %6562 = vmatpush1.bf16.msra.mxu0 %v6561_v3  ;;  %6496 = vmatprep.subr.bf16.mxu1 %v8534_v35  ;;  %v8555_v3 = vsub.f32 %v8512_v48, %v13328_v57  ;;  %14243 = vst [vmem:[#allocation35_spill] sm:$0xff] %v8560_v44  ;;  %v13330_v42 = vand.u32 4294901760, %v8560_v44 }
  0x62   : > { %14240 = vst [vmem:[#allocation32_spill] sm:$0xff] %v8542_v2  ;;  %6564 = vmatprep.subr.bf16.mxu0 %v6563_v26  ;;  %14244 = vst [vmem:[#allocation36_spill] sm:$0xff] %v8566_v53  ;;  %v6565_v49 = vpack.c.bf16 %v1116_v6, %v1104_v33  ;;  %v13324_v59 = vand.u32 4294901760, %v8542_v2  ;;  %v13325_v26 = vand.u32 4294901760, %v8547_v61  ;;  %6498 = vmatpush1.bf16.msra.mxu1 %v8566_v53  ;;  %v14261_v53 = vand.u32 4294901760, %v8514_v28 }
  0x63   : > { %14242 = vst [vmem:[#allocation34_spill] sm:$0xff] %v8555_v3  ;;  %v13331_v22 = vand.u32 4294901760, %v8555_v3 }
  0x64   : > { %7952 = vset.pattern.permute.xlu1 %v8077_v1  ;;  %7965 = vset.pattern.permute.xlu0 %v8090_v16  ;;  %v1121_v6 = vsub.f32 %v8542_v2, %v13324_v59  ;;  %v1133_v45 = vsub.f32 %v8547_v61, %v13325_v26  ;;  %v8590_v1 = vsub.f32 %v8526_v27, %v13326_v21  ;;  %v13337_v16 = vand.u32 4294901760, %v8569_v4  ;;  %v8621_v21 = vld [vmem:[#allocation2 + $0xf8] sm:$0xff] }
  0x65   : > { %311 = vperm.xlu1 %7952, %v8368_v39   ;;  %634 = vperm.xlu0 %7965, %v8368_v39   ;;  %v1127_v33 = vsub.f32 %v8555_v3, %v13331_v22  ;;  %v1139_v59 = vsub.f32 %v8560_v44, %v13330_v42  ;;  %v8603_v26 = vsub.f32 %v8549_v23, %v13335_v7 }
  0x66   : > { %6566 = vmatpush1.bf16.msra.mxu0 %v6565_v49  ;;  %v1122_v49 = vand.u32 4294901760, %v1121_v6  ;;  %v1134_v57 = vand.u32 4294901760, %v1133_v45  ;;  %v13336_v50 = vand.u32 4294901760, %v8590_v1  ;;  %v8613_v42 = vpack.c.bf16 %v873_v29, %v869_v25 }
  0x67   : > { %v1128_v22 = vand.u32 4294901760, %v1127_v33  ;;  %v1140_v60 = vand.u32 4294901760, %v1139_v59  ;;  %v13340_v0 = vand.u32 4294901760, %v8603_v26  ;;  %v8619_v7 = vsub.f32 %v8569_v4, %v13337_v16  ;;  %v8634_v59 = vld [vmem:[#allocation2 + $0xe0] sm:$0xff] }
  0x68   : > { %14245 = vst [vmem:[#allocation37_spill] sm:$0xff] %v8613_v42  ;;  %v14246_v6 = vmov 2   ;;  %v6567_v45 = vpack.c.bf16 %v1134_v57, %v1122_v49  ;;  %v1145_v56 = vsub.f32 %v8590_v1, %v13336_v50  ;;  %6500 = vmatprep.subr.bf16.mxu1 %v8613_v42  ;;  %v8631_v25 = vsub.f32 %v8573_v20, %v14247_v11  ;;  %v8647_v11 = vld [vmem:[#allocation2 + $0xf0] sm:$0xff] }
  0x69   : > { %7954 = vset.pattern.permute.xlu1 %v14246_v6  ;;  %v6569_v33 = vpack.c.bf16 %v1140_v60, %v1128_v22  ;;  %v1157_v57 = vsub.f32 %v8603_v26, %v13340_v0  ;;  %v14248_v6 = vand.u32 4294901760, %v8443_v31  ;;  %v14249_v50 = vand.u32 4294901760, %v8445_v10 }
  0x6a   : > { %370 = vperm.xlu1 %7954, %v8368_v39   ;;  %v14251_v29 = vmov 15   ;;  %6568 = vmatprep.subr.bf16.mxu0 %v6567_v45  ;;  %v1146_v42 = vand.u32 4294901760, %v1145_v56  ;;  %v13343_v60 = vand.u32 4294901760, %v8631_v25  ;;  %v14252_v0 = vand.u32 4294901760, %v8606_v58 }
  0x6b   : > { %v8645_v16 = vpack.c.bf16 %v14249_v50, %v14248_v6  ;;  %7968 = vset.pattern.permute.xlu0 %v14251_v29  ;;  %6570 = vmatpush1.bf16.msra.mxu0 %v6569_v33  ;;  %v1158_v31 = vand.u32 4294901760, %v1157_v57  ;;  %v14253_v10 = vand.u32 4294901760, %v8619_v7  ;;  %v14254_v45 = vand.u32 4294901760, %v8500_v12  ;;  %v8678_v12 = vld [vmem:[#allocation2 + $0x108] sm:$0xff] }
  0x6c   : > { %v8655_v49 = vsub.f32 %v8606_v58, %v14252_v0  ;;  %v14255_v56 = vand.u32 4294901760, %v8502_v46  ;;  %v1163_v0 = vsub.f32 %v8631_v25, %v13343_v60  ;;  %v14257_v57 = vand.u32 4294901760, %v8621_v21  ;;  %v8680_v46 = vld [vmem:[#allocation2 + $0x118] sm:$0xff] }
  0x6d   : > { %14250 = vst [vmem:[#allocation38_spill] sm:$0xff] %v8645_v16  ;;  %v1151_v50 = vsub.f32 %v8619_v7, %v14253_v10  ;;  %6502 = vmatpush1.bf16.msra.mxu1 %v8645_v16  ;;  %v14259_v60 = vand.u32 4294901760, %v8634_v59 }
  0x6e   : > { %v8665_v6 = vpack.c.bf16 %v14255_v56, %v14254_v45  ;;  %v8675_v10 = vsub.f32 %v8621_v21, %v14257_v57  ;;  %v14258_v45 = vmov 3   ;;  %v6571_v56 = vpack.c.bf16 %v1158_v31, %v1146_v42  ;;  %v8717_v31 = vld [vmem:[#allocation2 + $0x110] sm:$0xff] }
  0x6f   : > { %7955 = vset.pattern.permute.xlu1 %v14258_v45  ;;  %v1152_v22 = vand.u32 4294901760, %v1151_v50  ;;  %v8687_v33 = vsub.f32 %v8634_v59, %v14259_v60  ;;  %v14260_v57 = vand.u32 4294901760, %v8512_v48  ;;  %v1164_v35 = vand.u32 4294901760, %v1163_v0 }
  0x70   : > { %14256 = vst [vmem:[#allocation39_spill] sm:$0xff] %v8665_v6  ;;  %6504 = vmatprep.subr.bf16.mxu1 %v8665_v6  ;;  %394 = vperm.xlu1 %7955, %v8368_v39   ;;  %v14263_v45 = vand.u32 4294901760, %v8655_v49  ;;  %v14264_v50 = vand.u32 4294901760, %v8647_v11  ;;  %v8705_v6 = vld [vmem:[#allocation2 + $0x100] sm:$0xff]  ;;  %v14265_v0 = vand.u32 4294901760, %v8526_v27  ;;  %v14270_v27 = vand.u32 4294901760, %v8678_v12 }
  0x71   : > { %v8693_v16 = vpack.c.bf16 %v14261_v53, %v14260_v57  ;;  %6572 = vmatprep.subr.bf16.mxu0 %v6571_v56  ;;  %v14266_v57 = vand.u32 4294901760, %v8549_v23  ;;  %v14268_v56 = vand.u32 4294901760, %v8675_v10  ;;  %v14269_v28 = vand.u32 4294901760, %v8687_v33 }
  0x72   : > { %v1169_v42 = vsub.f32 %v8655_v49, %v14263_v45  ;;  %v8703_v60 = vsub.f32 %v8647_v11, %v14264_v50  ;;  %v6573_v50 = vpack.c.bf16 %v1164_v35, %v1152_v22  ;;  %v8729_v23 = vsub.f32 %v8678_v12, %v14270_v27 }
  0x73   : > { %14262 = vst [vmem:[#allocation40_spill] sm:$0xff] %v8693_v16  ;;  %6506 = vmatpush1.bf16.msra.mxu1 %v8693_v16  ;;  %v8715_v45 = vpack.c.bf16 %v14266_v57, %v14265_v0  ;;  %v1181_v48 = vsub.f32 %v8675_v10, %v14268_v56  ;;  %v1175_v53 = vsub.f32 %v8687_v33, %v14269_v28  ;;  %v14272_v0 = vand.u32 4294901760, %v8680_v46 }
  0x74   : > { %v1170_v47 = vand.u32 4294901760, %v1169_v42  ;;  %v13360_v16 = vand.u32 4294901760, %v8703_v60  ;;  %14271 = vst [vmem:[#allocation42_spill] sm:$0xff] %v8729_v23  ;;  %v8738_v42 = vld [vmem:[#allocation2 + $0x128] sm:$0xff]  ;;  %v14273_v57 = vmov 5   ;;  %6574 = vmatpush1.bf16.msra.mxu0 %v6573_v50  ;;  %v13365_v50 = vand.u32 4294901760, %v8729_v23 }
  0x75   : > { %14267 = vst [vmem:[#allocation41_spill] sm:$0xff] %v8715_v45  ;;  %v8734_v35 = vsub.f32 %v8680_v46, %v14272_v0  ;;  %6508 = vmatprep.subr.bf16.mxu1 %v8715_v45  ;;  %7957 = vset.pattern.permute.xlu1 %v14273_v57  ;;  %v1182_v28 = vand.u32 4294901760, %v1181_v48  ;;  %v14275_v0 = vand.u32 4294901760, %v8573_v20  ;;  %v8751_v45 = vld [vmem:[#allocation2 + $0x138] sm:$0xff]  ;;  %v1176_v22 = vand.u32 4294901760, %v1175_v53 }
  0x76   : > { %v1187_v56 = vsub.f32 %v8703_v60, %v13360_v16  ;;  %442 = vperm.xlu1 %7957, %v8368_v39   ;;  %v14277_v57 = vand.u32 4294901760, %v8705_v6  ;;  %v14279_v20 = vand.u32 4294901760, %v8717_v31  ;;  %v14281_v13 = vand.u32 4294901760, %v8738_v42 }
  0x77   : > { %v8749_v19 = vpack.c.bf16 %v14275_v0, %v14274_v8  ;;  %v13368_v48 = vand.u32 4294901760, %v8734_v35  ;;  %v6575_v27 = vpack.c.bf16 %v1182_v28, %v1170_v47  ;;  %v1193_v0 = vsub.f32 %v8729_v23, %v13365_v50 }
  0x78   : > { %v8759_v16 = vsub.f32 %v8705_v6, %v14277_v57  ;;  %v1188_v4 = vand.u32 4294901760, %v1187_v56  ;;  %v8764_v8 = vsub.f32 %v8717_v31, %v14279_v20  ;;  %v8776_v56 = vld [vmem:[#allocation2 + $0x120] sm:$0xff]  ;;  %v8778_v20 = vld [vmem:[#allocation2 + $0x130] sm:$0xff]  ;;  %v8784_v50 = vsub.f32 %v8738_v42, %v14281_v13 }
  0x79   : > { %14276 = vst [vmem:[#allocation43_spill] sm:$0xff] %v8749_v19  ;;  %6510 = vmatpush1.bf16.msra.mxu1 %v8749_v19  ;;  %v1205_v57 = vsub.f32 %v8734_v35, %v13368_v48  ;;  %6576 = vmatprep.subr.bf16.mxu0 %v6575_v27  ;;  %v14284_v48 = vand.u32 4294901760, %v8621_v21  ;;  %v14286_v28 = vmov 6   ;;  %v1194_v54 = vand.u32 4294901760, %v1193_v0  ;;  %v8808_v0 = vld [vmem:[#allocation2 + $0x148] sm:$0xff] }
  0x7a   : > { %14278 = vst [vmem:[#allocation44_spill] sm:$0xff] %v8759_v16  ;;  %14280 = vst [vmem:[#allocation45_spill] sm:$0xff] %v8764_v8  ;;  %v6577_v19 = vpack.c.bf16 %v1188_v4, %v1176_v22  ;;  %7958 = vset.pattern.permute.xlu1 %v14286_v28  ;;  %v14287_v27 = vand.u32 4294901760, %v8759_v16  ;;  %v14288_v4 = vand.u32 4294901760, %v8751_v45  ;;  %v14290_v13 = vand.u32 4294901760, %v8764_v8 }
  0x7b   : > { %14282 = vst [vmem:[#allocation46_spill] sm:$0xff] %v8784_v50  ;;  %v8790_v47 = vpack.c.bf16 %v14284_v48, %v14283_v9  ;;  %v1206_v44 = vand.u32 4294901760, %v1205_v57  ;;  %466 = vperm.xlu1 %7958, %v8368_v39   ;;  %v8810_v57 = vld [vmem:[#allocation2 + $0x158] sm:$0xff]  ;;  %v14294_v21 = vand.u32 4294901760, %v8784_v50  ;;  %v14295_v61 = vand.u32 4294901760, %v8776_v56 }
  0x7c   : > { %v1199_v22 = vsub.f32 %v8759_v16, %v14287_v27  ;;  %v8799_v53 = vsub.f32 %v8751_v45, %v14288_v4  ;;  %6578 = vmatpush1.bf16.msra.mxu0 %v6577_v19  ;;  %v1211_v9 = vsub.f32 %v8764_v8, %v14290_v13  ;;  %v14291_v19 = vand.u32 4294901760, %v8634_v59  ;;  %v8833_v59 = vld [vmem:[#allocation2 + $0x140] sm:$0xff] }
  0x7d   : > { %14285 = vst [vmem:[#allocation47_spill] sm:$0xff] %v8790_v47  ;;  %v6579_v28 = vpack.c.bf16 %v1206_v44, %v1194_v54  ;;  %6512 = vmatprep.subr.bf16.mxu1 %v8790_v47  ;;  %v14292_v13 = vand.u32 4294901760, %v8647_v11  ;;  %v1217_v48 = vsub.f32 %v8784_v50, %v14294_v21  ;;  %v8826_v54 = vsub.f32 %v8776_v56, %v14295_v61 }
  0x7e   : > { %14289 = vst [vmem:[#allocation48_spill] sm:$0xff] %v8799_v53  ;;  %v1200_v27 = vand.u32 4294901760, %v1199_v22  ;;  %v13381_v4 = vand.u32 4294901760, %v8799_v53  ;;  %v1212_v58 = vand.u32 4294901760, %v1211_v9  ;;  %v14297_v44 = vand.u32 4294901760, %v8778_v20 }
  0x7f   : > { %v8818_v3 = vpack.c.bf16 %v14292_v13, %v14291_v19  ;;  %14296 = vst [vmem:[#allocation50_spill] sm:$0xff] %v8826_v54  ;;  %6580 = vmatprep.subr.bf16.mxu0 %v6579_v28  ;;  %v14299_v61 = vand.u32 4294901760, %v8678_v12  ;;  %v14300_v19 = vand.u32 4294901760, %v8680_v46  ;;  %v14302_v47 = vmov 8  }
  0x80   : > { %v8831_v22 = vsub.f32 %v8778_v20, %v14297_v44  ;;  %v1229_v11 = vsub.f32 %v8799_v53, %v13381_v4  ;;  %v8847_v44 = vld [vmem:[#allocation2 + $0x150] sm:$0xff]  ;;  %7960 = vset.pattern.permute.xlu1 %v14302_v47  ;;  %v6581_v28 = vpack.c.bf16 %v1212_v58, %v1200_v27  ;;  %v1218_v2 = vand.u32 4294901760, %v1217_v48  ;;  %v8865_v58 = vld [vmem:[#allocation2 + $0x168] sm:$0xff]  ;;  %v8880_v47 = vld [vmem:[#allocation2 + $0x178] sm:$0xff] }
  0x81   : > { %14293 = vst [vmem:[#allocation49_spill] sm:$0xff] %v8818_v3  ;;  %6514 = vmatpush1.bf16.msra.mxu1 %v8818_v3  ;;  %v8845_v13 = vpack.c.bf16 %v14300_v19, %v14299_v61  ;;  %v13388_v4 = vand.u32 4294901760, %v8826_v54  ;;  %514 = vperm.xlu1 %7960, %v8368_v39   ;;  %v14303_v21 = vand.u32 4294901760, %v8808_v0  ;;  %v14305_v46 = vand.u32 4294901760, %v8810_v57 }
  0x82   : > { %14298 = vst [vmem:[#allocation51_spill] sm:$0xff] %v8831_v22  ;;  %v13391_v3 = vand.u32 4294901760, %v8831_v22  ;;  %v1230_v9 = vand.u32 4294901760, %v1229_v11  ;;  %6582 = vmatpush1.bf16.msra.mxu0 %v6581_v28  ;;  %v14308_v19 = vand.u32 4294901760, %v8717_v31 }
  0x83   : > { %14301 = vst [vmem:[#allocation52_spill] sm:$0xff] %v8845_v13  ;;  %v8856_v12 = vsub.f32 %v8808_v0, %v14303_v21  ;;  %v8861_v61 = vsub.f32 %v8810_v57, %v14305_v46  ;;  %6516 = vmatprep.subr.bf16.mxu1 %v8845_v13  ;;  %v1223_v48 = vsub.f32 %v8826_v54, %v13388_v4  ;;  %v14307_v21 = vand.u32 4294901760, %v8705_v6 }
  0x84   : > { %v1235_v27 = vsub.f32 %v8831_v22, %v13391_v3  ;;  %v6583_v13 = vpack.c.bf16 %v1230_v9, %v1218_v2  ;;  %v14310_v4 = vand.u32 4294901760, %v8833_v59  ;;  %v14312_v6 = vand.u32 4294901760, %v8847_v44 }
  0x85   : > { %14304 = vst [vmem:[#allocation53_spill] sm:$0xff] %v8856_v12  ;;  %14306 = vst [vmem:[#allocation54_spill] sm:$0xff] %v8861_v61  ;;  %v8878_v46 = vpack.c.bf16 %v14308_v19, %v14307_v21  ;;  %v13392_v28 = vand.u32 4294901760, %v8856_v12  ;;  %v13393_v41 = vand.u32 4294901760, %v8861_v61  ;;  %v1224_v3 = vand.u32 4294901760, %v1223_v48  ;;  %v8905_v19 = vld [vmem:[#allocation2 + $0x160] sm:$0xff] }
  0x86   : > { %v8887_v51 = vsub.f32 %v8833_v59, %v14310_v4  ;;  %v1236_v11 = vand.u32 4294901760, %v1235_v27  ;;  %v8892_v31 = vsub.f32 %v8847_v44, %v14312_v6  ;;  %v13402_v2 = vand.u32 4294901760, %v8865_v58  ;;  %6584 = vmatprep.subr.bf16.mxu0 %v6583_v13  ;;  %v8907_v6 = vld [vmem:[#allocation2 + $0x170] sm:$0xff] }
  0x87   : > { %14309 = vst [vmem:[#allocation55_spill] sm:$0xff] %v8878_v46  ;;  %6518 = vmatpush1.bf16.msra.mxu1 %v8878_v46  ;;  %v14314_v9 = vmov 9   ;;  %v1241_v21 = vsub.f32 %v8856_v12, %v13392_v28  ;;  %v1253_v4 = vsub.f32 %v8861_v61, %v13393_v41  ;;  %v14316_v41 = vand.u32 4294901760, %v8738_v42 }
  0x88   : > { %14311 = vst [vmem:[#allocation56_spill] sm:$0xff] %v8887_v51  ;;  %14313 = vst [vmem:[#allocation57_spill] sm:$0xff] %v8892_v31  ;;  %7961 = vset.pattern.permute.xlu1 %v14314_v9  ;;  %v6585_v9 = vpack.c.bf16 %v1236_v11, %v1224_v3  ;;  %v13403_v13 = vand.u32 4294901760, %v8892_v31  ;;  %v8914_v28 = vsub.f32 %v8865_v58, %v13402_v2  ;;  %v14317_v48 = vand.u32 4294901760, %v8751_v45 }
  0x89   : > { %538 = vperm.xlu1 %7961, %v8368_v39   ;;  %v1242_v27 = vand.u32 4294901760, %v1241_v21  ;;  %v1254_v34 = vand.u32 4294901760, %v1253_v4  ;;  %v14319_v30 = vand.u32 4294901760, %v8887_v51  ;;  %v14320_v3 = vand.u32 4294901760, %v8880_v47  ;;  %v8937_v4 = vld [vmem:[#allocation2 + $0x188] sm:$0xff] }
  0x8a   : > { %14315 = vst [vmem:[#allocation58_spill] sm:$0xff] %v8914_v28  ;;  %v8920_v46 = vpack.c.bf16 %v14317_v48, %v14316_v41  ;;  %6586 = vmatpush1.bf16.msra.mxu0 %v6585_v9  ;;  %v1259_v42 = vsub.f32 %v8892_v31, %v13403_v13  ;;  %v14322_v2 = vand.u32 4294901760, %v8776_v56  ;;  %v14323_v13 = vand.u32 4294901760, %v8778_v20  ;;  %v8962_v20 = vld [vmem:[#allocation2 + $0x180] sm:$0xff] }
  0x8b   : > { %v1247_v5 = vsub.f32 %v8887_v51, %v14319_v30  ;;  %v8928_v11 = vsub.f32 %v8880_v47, %v14320_v3  ;;  %v8939_v30 = vld [vmem:[#allocation2 + $0x198] sm:$0xff]  ;;  %v6587_v48 = vpack.c.bf16 %v1254_v34, %v1242_v27  ;;  %v14325_v45 = vmov 11  }
  0x8c   : > { %14318 = vst [vmem:[#allocation59_spill] sm:$0xff] %v8920_v46  ;;  %6520 = vmatprep.subr.bf16.mxu1 %v8920_v46  ;;  %v8946_v18 = vpack.c.bf16 %v14323_v13, %v14322_v2  ;;  %v1260_v46 = vand.u32 4294901760, %v1259_v42  ;;  %v14326_v41 = vand.u32 4294901760, %v8914_v28  ;;  %v14327_v32 = vand.u32 4294901760, %v8905_v19 }
  0x8d   : > { %14321 = vst [vmem:[#allocation60_spill] sm:$0xff] %v8928_v11  ;;  %v1248_v3 = vand.u32 4294901760, %v1247_v5  ;;  %v13414_v9 = vand.u32 4294901760, %v8928_v11  ;;  %7963 = vset.pattern.permute.xlu1 %v14325_v45  ;;  %v14329_v5 = vand.u32 4294901760, %v8907_v6  ;;  %6588 = vmatprep.subr.bf16.mxu0 %v6587_v48  ;;  %v13415_v27 = vand.u32 4294901760, %v8937_v4 }
  0x8e   : > { %14324 = vst [vmem:[#allocation61_spill] sm:$0xff] %v8946_v18  ;;  %v1265_v21 = vsub.f32 %v8914_v28, %v14326_v41  ;;  %v8955_v34 = vsub.f32 %v8905_v19, %v14327_v32  ;;  %586 = vperm.xlu1 %7963, %v8368_v39   ;;  %v14331_v32 = vand.u32 4294901760, %v8808_v0  ;;  %v14332_v42 = vand.u32 4294901760, %v8810_v57  ;;  %v8976_v41 = vld [vmem:[#allocation2 + $0x190] sm:$0xff]  ;;  %6522 = vmatpush1.bf16.msra.mxu1 %v8946_v18 }
  0x8f   : > { %v8960_v56 = vsub.f32 %v8907_v6, %v14329_v5  ;;  %v1277_v2 = vsub.f32 %v8928_v11, %v13414_v9  ;;  %v6589_v5 = vpack.c.bf16 %v1260_v46, %v1248_v3  ;;  %v8984_v13 = vsub.f32 %v8937_v4, %v13415_v27  ;;  %v9008_v46 = vld [vmem:[#allocation2 + $0x1b8] sm:$0xff] }
  0x90   : > { %14328 = vst [vmem:[#allocation62_spill] sm:$0xff] %v8955_v34  ;;  %v8974_v45 = vpack.c.bf16 %v14332_v42, %v14331_v32  ;;  %v1266_v63 = vand.u32 4294901760, %v1265_v21  ;;  %v13420_v48 = vand.u32 4294901760, %v8955_v34  ;;  %v14335_v0 = vand.u32 4294901760, %v8939_v30  ;;  %v8993_v21 = vld [vmem:[#allocation2 + $0x1a8] sm:$0xff] }
  0x91   : > { %14330 = vst [vmem:[#allocation63_spill] sm:$0xff] %v8960_v56  ;;  %v13423_v62 = vand.u32 4294901760, %v8960_v56  ;;  %v1278_v9 = vand.u32 4294901760, %v1277_v2  ;;  %14334 = vst [vmem:[#allocation65_spill] sm:$0xff] %v8984_v13  ;;  %6590 = vmatpush1.bf16.msra.mxu0 %v6589_v5  ;;  %v13424_v32 = vand.u32 4294901760, %v8976_v41  ;;  %v14337_v42 = vand.u32 4294901760, %v8833_v59 }
  0x92   : > { %14333 = vst [vmem:[#allocation64_spill] sm:$0xff] %v8974_v45  ;;  %v8989_v57 = vsub.f32 %v8939_v30, %v14335_v0  ;;  %6524 = vmatprep.subr.bf16.mxu1 %v8974_v45  ;;  %v1271_v3 = vsub.f32 %v8955_v34, %v13420_v48  ;;  %v14338_v0 = vand.u32 4294901760, %v8847_v44  ;;  %v14340_v45 = vmov 12  }
  0x93   : > { %v1283_v2 = vsub.f32 %v8960_v56, %v13423_v62  ;;  %7964 = vset.pattern.permute.xlu1 %v14340_v45  ;;  %v6591_v5 = vpack.c.bf16 %v1278_v9, %v1266_v63  ;;  %v13427_v18 = vand.u32 4294901760, %v8984_v13  ;;  %v14341_v52 = vand.u32 4294901760, %v8962_v20 }
  0x94   : > { %14336 = vst [vmem:[#allocation66_spill] sm:$0xff] %v8989_v57  ;;  %v9006_v27 = vpack.c.bf16 %v14338_v0, %v14337_v42  ;;  %v13428_v48 = vand.u32 4294901760, %v8989_v57  ;;  %610 = vperm.xlu1 %7964, %v8368_v39   ;;  %v1272_v59 = vand.u32 4294901760, %v1271_v3  ;;  %v9022_v42 = vsub.f32 %v8976_v41, %v13424_v32  ;;  %v9036_v0 = vld [vmem:[#allocation2 + $0x1b0] sm:$0xff] }
  0x95   : > { %v9016_v62 = vsub.f32 %v8962_v20, %v14341_v52  ;;  %v1284_v44 = vand.u32 4294901760, %v1283_v2  ;;  %6592 = vmatprep.subr.bf16.mxu0 %v6591_v5  ;;  %v1289_v9 = vsub.f32 %v8984_v13, %v13427_v18  ;;  %v9034_v2 = vld [vmem:[#allocation2 + $0x1a0] sm:$0xff]  ;;  %v14344_v5 = vand.u32 4294901760, %v8993_v21 }
  0x96   : > { %14339 = vst [vmem:[#allocation67_spill] sm:$0xff] %v9006_v27  ;;  %14343 = vst [vmem:[#allocation69_spill] sm:$0xff] %v9022_v42  ;;  %6526 = vmatpush1.bf16.msra.mxu1 %v9006_v27  ;;  %v1301_v52 = vsub.f32 %v8989_v57, %v13428_v48  ;;  %v14346_v18 = vand.u32 4294901760, %v8865_v58  ;;  %v14347_v48 = vand.u32 4294901760, %v8880_v47  ;;  %v14352_v63 = vmov 14  }
  0x97   : > { %14342 = vst [vmem:[#allocation68_spill] sm:$0xff] %v9016_v62  ;;  %v6593_v32 = vpack.c.bf16 %v1284_v44, %v1272_v59  ;;  %v9042_v27 = vsub.f32 %v8993_v21, %v14344_v5  ;;  %v1290_v45 = vand.u32 4294901760, %v1289_v9  ;;  %v14349_v40 = vand.u32 4294901760, %v9016_v62 }
  0x98   : > { %v9048_v43 = vpack.c.bf16 %v14347_v48, %v14346_v18  ;;  %v1302_v3 = vand.u32 4294901760, %v1301_v52  ;;  %v14350_v59 = vand.u32 4294901760, %v9008_v46  ;;  %7966 = vset.pattern.permute.xlu1 %v14352_v63  ;;  %v14353_v58 = vand.u32 4294901760, %v9022_v42  ;;  %v9065_v52 = vld [vmem:[#allocation2 + $0x1c8] sm:$0xff] }
  0x99   : > { %14345 = vst [vmem:[#allocation70_spill] sm:$0xff] %v9042_v27  ;;  %v1295_v55 = vsub.f32 %v9016_v62, %v14349_v40  ;;  %6594 = vmatpush1.bf16.msra.mxu0 %v6593_v32  ;;  %v9067_v40 = vld [vmem:[#allocation2 + $0x1d8] sm:$0xff]  ;;  %658 = vperm.xlu1 %7966, %v8368_v39   ;;  %v14354_v63 = vand.u32 4294901760, %v8905_v19  ;;  %v14357_v9 = vand.u32 4294901760, %v9042_v27  ;;  %v14358_v37 = vand.u32 4294901760, %v9034_v2  ;;  %v9091_v19 = vld [vmem:[#allocation2 + $0x1c0] sm:$0xff] }
  0x9a   : > { %14348 = vst [vmem:[#allocation71_spill] sm:$0xff] %v9048_v43  ;;  %v9056_v44 = vsub.f32 %v9008_v46, %v14350_v59  ;;  %v1307_v47 = vsub.f32 %v9022_v42, %v14353_v58  ;;  %v6595_v5 = vpack.c.bf16 %v1302_v3, %v1290_v45  ;;  %6528 = vmatprep.subr.bf16.mxu1 %v9048_v43  ;;  %v14355_v58 = vand.u32 4294901760, %v8907_v6  ;;  %v301_v62 = vld [vmem:[%s13283_s1 + $0x10] sm:$0xff] }
  0x9b   : > { %v1296_v59 = vand.u32 4294901760, %v1295_v55  ;;  %v1313_v38 = vsub.f32 %v9042_v27, %v14357_v9  ;;  %v9084_v45 = vsub.f32 %v9034_v2, %v14358_v37  ;;  %v14360_v55 = vand.u32 4294901760, %v9036_v0 }
  0x9c   : > { %14351 = vst [vmem:[#allocation72_spill] sm:$0xff] %v9056_v44  ;;  %v13443_v32 = vand.u32 4294901760, %v9056_v44  ;;  %v9076_v18 = vpack.c.bf16 %v14355_v58, %v14354_v63  ;;  %v1308_v48 = vand.u32 4294901760, %v1307_v47  ;;  %6596 = vmatprep.subr.bf16.mxu0 %v6595_v5  ;;  %v13448_v47 = vand.u32 4294901760, %v9065_v52 }
  0x9d   : > { %14359 = vst [vmem:[#allocation74_spill] sm:$0xff] %v9084_v45  ;;  %v9089_v3 = vsub.f32 %v9036_v0, %v14360_v55  ;;  %v953_v9 = vand.u32 4294901760, %v9067_v40  ;;  %v14362_v37 = vand.u32 4294901760, %v8937_v4  ;;  %v14363_v63 = vand.u32 4294901760, %v8939_v30  ;;  %v9105_v55 = vld [vmem:[#allocation2 + $0x1d0] sm:$0xff]  ;;  %7967 = vset.pattern.permute.xlu1 %v14251_v29 }
  0x9e   : > { %14356 = vst [vmem:[#allocation73_spill] sm:$0xff] %v9076_v18  ;;  %v1325_v6 = vsub.f32 %v9056_v44, %v13443_v32  ;;  %6530 = vmatpush1.bf16.msra.mxu1 %v9076_v18  ;;  %v6597_v43 = vpack.c.bf16 %v1308_v48, %v1296_v59  ;;  %v1314_v5 = vand.u32 4294901760, %v1313_v38  ;;  %v13449_v36 = vand.u32 4294901760, %v9084_v45  ;;  %v822_v38 = vld [vmem:[#allocation2 + $0x1e8] sm:$0xff]  ;;  %682 = vperm.xlu1 %7967, %v8368_v39  }
  0x9f   : > { %14361 = vst [vmem:[#allocation75_spill] sm:$0xff] %v9089_v3  ;;  %v9103_v58 = vpack.c.bf16 %v14363_v63, %v14362_v37  ;;  %v13454_v32 = vand.u32 4294901760, %v9089_v3  ;;  %v9113_v24 = vsub.f32 %v9065_v52, %v13448_v47  ;;  %v9116_v4 = vsub.f32 %v9067_v40, %v953_v9  ;;  %v824_v63 = vld [vmem:[#allocation2 + $0x1f8] sm:$0xff] }
  0xa0   : > { %v1326_v18 = vand.u32 4294901760, %v1325_v6  ;;  %v951_v30 = vand.u32 4294901760, %v9091_v19  ;;  %6598 = vmatpush1.bf16.msra.mxu0 %v6597_v43  ;;  %v1319_v29 = vsub.f32 %v9084_v45, %v13449_v36  ;;  %v955_v59 = vand.u32 4294901760, %v9105_v55 }
  0xa1   : > { %14364 = vst [vmem:[#allocation76_spill] sm:$0xff] %v9103_v58  ;;  %14365 = vst [vmem:[#allocation77_spill] sm:$0xff] %v9113_v24  ;;  %6532 = vmatprep.subr.bf16.mxu1 %v9103_v58  ;;  %v1331_v48 = vsub.f32 %v9089_v3, %v13454_v32  ;;  %v14367_v40 = vand.u32 4294901760, %v8962_v20  ;;  %v14368_v6 = vand.u32 4294901760, %v8976_v41  ;;  %v13459_v39 = vand.u32 4294901760, %v9113_v24 }
  0xa2   : > { %14366 = vst [vmem:[#allocation78_spill] sm:$0xff] %v9116_v4  ;;  %v6599_v47 = vpack.c.bf16 %v1326_v18, %v1314_v5  ;;  %v13462_v43 = vand.u32 4294901760, %v9116_v4  ;;  %v9137_v36 = vsub.f32 %v9091_v19, %v951_v30  ;;  %v1320_v58 = vand.u32 4294901760, %v1319_v29  ;;  %v821_v29 = vld [vmem:[#allocation2 + $0x1e0] sm:$0xff] }
  0xa3   : > { %v9132_v37 = vpack.c.bf16 %v14368_v6, %v14367_v40  ;;  %v1332_v17 = vand.u32 4294901760, %v1331_v48  ;;  %v9140_v32 = vsub.f32 %v9105_v55, %v955_v59  ;;  %v957_v20 = vand.u32 4294901760, %v822_v38  ;;  %v823_v48 = vld [vmem:[#allocation2 + $0x1f0] sm:$0xff] }
  0xa4   : > { %14370 = vst [vmem:[#allocation80_spill] sm:$0xff] %v9137_v36  ;;  %6600 = vmatprep.subr.bf16.mxu0 %v6599_v47  ;;  %v1337_v41 = vsub.f32 %v9113_v24, %v13459_v39  ;;  %v1349_v18 = vsub.f32 %v9116_v4, %v13462_v43  ;;  %v13466_v19 = vand.u32 4294901760, %v9137_v36  ;;  %v961_v5 = vand.u32 4294901760, %v824_v63 }
  0xa5   : > { %14369 = vst [vmem:[#allocation79_spill] sm:$0xff] %v9132_v37  ;;  %14371 = vst [vmem:[#allocation81_spill] sm:$0xff] %v9140_v32  ;;  %6534 = vmatpush1.bf16.msra.mxu1 %v9132_v37  ;;  %v6601_v40 = vpack.c.bf16 %v1332_v17, %v1320_v58  ;;  %v13465_v55 = vand.u32 4294901760, %v9140_v32  ;;  %v9151_v6 = vsub.f32 %v822_v38, %v957_v20  ;;  %v14373_v47 = vand.u32 4294901760, %v8993_v21 }
  0xa6   : > { %v14374_v37 = vand.u32 4294901760, %v9008_v46  ;;  %v1338_v39 = vand.u32 4294901760, %v1337_v41  ;;  %v1350_v24 = vand.u32 4294901760, %v1349_v18  ;;  %v1343_v43 = vsub.f32 %v9137_v36, %v13466_v19 }
  0xa7   : > { %14372 = vst [vmem:[#allocation82_spill] sm:$0xff] %v9151_v6  ;;  %v9162_v4 = vsub.f32 %v824_v63, %v961_v5  ;;  %6602 = vmatpush1.bf16.msra.mxu0 %v6601_v40  ;;  %v1355_v17 = vsub.f32 %v9140_v32, %v13465_v55  ;;  %v13472_v58 = vand.u32 4294901760, %v9151_v6  ;;  %v959_v46 = vand.u32 4294901760, %v821_v29 }
  0xa8   : > { %v9157_v3 = vpack.c.bf16 %v14374_v37, %v14373_v47  ;;  %v963_v21 = vand.u32 4294901760, %v823_v48  ;;  %v6603_v38 = vpack.c.bf16 %v1350_v24, %v1338_v39  ;;  %v1344_v37 = vand.u32 4294901760, %v1343_v43 }
  0xa9   : > { %14376 = vst [vmem:[#allocation84_spill] sm:$0xff] %v9162_v4  ;;  %v13471_v41 = vand.u32 4294901760, %v9162_v4  ;;  %v14377_v18 = vand.u32 4294901760, %v9034_v2  ;;  %v14378_v63 = vand.u32 4294901760, %v9036_v0  ;;  %v1356_v40 = vand.u32 4294901760, %v1355_v17 }
  0xaa   : > { %14375 = vst [vmem:[#allocation83_spill] sm:$0xff] %v9157_v3  ;;  %6536 = vmatprep.subr.bf16.mxu1 %v9157_v3  ;;  %v1361_v55 = vsub.f32 %v9151_v6, %v13472_v58  ;;  %v9179_v19 = vsub.f32 %v821_v29, %v959_v46  ;;  %v9181_v3 = vsub.f32 %v823_v48, %v963_v21  ;;  %v14382_v2 = vand.u32 4294901760, %v9065_v52 }
  0xab   : > { %v9174_v47 = vpack.c.bf16 %v14378_v63, %v14377_v18  ;;  %6604 = vmatprep.subr.bf16.mxu0 %v6603_v38  ;;  %v1373_v24 = vsub.f32 %v9162_v4, %v13471_v41  ;;  %v6605_v39 = vpack.c.bf16 %v1356_v40, %v1344_v37  ;;  %v9194_v48 = vpack.c.bf16 %v955_v59, %v951_v30 }
  0xac   : > { %14380 = vst [vmem:[#allocation86_spill] sm:$0xff] %v9179_v19  ;;  %14381 = vst [vmem:[#allocation87_spill] sm:$0xff] %v9181_v3  ;;  %v9189_v0 = vpack.c.bf16 %v953_v9, %v14382_v2  ;;  %v1362_v43 = vand.u32 4294901760, %v1361_v55  ;;  %v13470_v17 = vand.u32 4294901760, %v9179_v19  ;;  %v13469_v29 = vand.u32 4294901760, %v9181_v3 }
  0xad   : > { %14379 = vst [vmem:[#allocation85_spill] sm:$0xff] %v9174_v47  ;;  %6538 = vmatpush1.bf16.msra.mxu1 %v9174_v47  ;;  %v1374_v18 = vand.u32 4294901760, %v1373_v24  ;;  %14384 = vst [vmem:[#allocation89_spill] sm:$0xff] %v9194_v48  ;;  %6606 = vmatpush1.bf16.msra.mxu0 %v6605_v39  ;;  %v9202_v9 = vpack.c.bf16 %v961_v5, %v957_v20  ;;  %v9205_v37 = vpack.c.bf16 %v963_v21, %v959_v46  ;;  %v314_v63 = vlaneseq }
  0xae   : > { %14383 = vst [vmem:[#allocation88_spill] sm:$0xff] %v9189_v0  ;;  %6540 = vmatprep.subr.bf16.mxu1 %v9189_v0  ;;  %v1367_v38 = vsub.f32 %v9179_v19, %v13470_v17  ;;  %v1379_v52 = vsub.f32 %v9181_v3, %v13469_v29  ;;  %v6611_v59 = vpack.c.bf16 %v8226_v15, %v8221_v14 }
  0xaf   : > { %14385 = vst [vmem:[#allocation90_spill] sm:$0xff] %v9202_v9  ;;  %v6607_v55 = vpack.c.bf16 %v1374_v18, %v1362_v43  ;;  %14386 = vst [vmem:[#allocation91_spill] sm:$0xff] %v9205_v37  ;;  %v315_v21 = vshrl.u32 %v314_v63, 7 }
  0xb0   : > { %v1368_v40 = vand.u32 4294901760, %v1367_v38  ;;  %v1380_v30 = vand.u32 4294901760, %v1379_v52  ;;  %v9230_v52 = vld [vmem:[%s13283_s1] sm:$0xff] }
  0xb1   : > { %6542 = vmatpush1.bf16.msra.mxu1 %v9194_v48  ;;  %6608 = vmatprep.subr.bf16.mxu0 %v6607_v55  ;;  %v9223_v18 = vsub.s32 0, %v315_v21  ;;  %v9235_v55 = vld [vmem:[%s13283_s1 + $0x8] sm:$0xff]  ;;  %v9237_v63 = vsub.s32 1, %v315_v21  ;;  %v9252_v29 = vsub.s32 2, %v315_v21  ;;  %v9266_v5 = vsub.s32 3, %v315_v21 }
  0xb2   : > { %6544 = vmatprep.subr.bf16.mxu1 %v9202_v9  ;;  %v6609_v24 = vpack.c.bf16 %v1380_v30, %v1368_v40  ;;  %v303_v30 = vld [vmem:[%s13284_s2] sm:$0x3]  ;;  %v367_v41 = vpop.permute.xlu1 %366  ;;  %v307_v38 = vpop.permute.xlu0 %306  ;;  %v9282_v43 = vsub.s32 5, %v315_v21  ;;  %v9326_v54 = vsub.s32 6, %v315_v21 }
  0xb3   : > { %14387 = vst [vmem:[#allocation92_spill] sm:$0xff] %v9223_v18  ;;  %14388 = vst [vmem:[#allocation93_spill] sm:$0xff] %v9237_v63  ;;  %v9257_v58 = vrot.slane %v303_v30, %v9223_v18  ;;  %v9260_v40 = vrot.slane %v303_v30, %v9237_v63  ;;  %v9270_v17 = vrot.slane %v9230_v52, %v9237_v63  ;;  %v9276_v30 = vsub.s32 4, %v315_v21 }
  0xb4   : > { %6610 = vmatpush1.bf16.msra.mxu0 %v6609_v24  ;;  %v9250_v24 = vrot.slane %v9235_v55, %v9223_v18  ;;  %v9274_v20 = vrot.slane %v9235_v55, %v9237_v63  ;;  %v9280_v2 = vrot.slane %v9230_v52, %v9252_v29  ;;  %v9296_v48 = vrot.slane %v9230_v52, %v9266_v5 }
  0xb5   : > { %6546 = vmatpush1.bf16.msra.mxu1 %v9205_v37  ;;  %6612 = vmatprep.subr.bf16.mxu0 %v6611_v59  ;;  %v9246_v59 = vrot.slane %v9230_v52, %v9223_v18  ;;  %v9288_v37 = vrot.slane %v9235_v55, %v9252_v29  ;;  %v9311_v9 = vrot.slane %v9235_v55, %v9276_v30 }
  0xb6   : > { %v323_v46 = vmul.f32 %v9250_v24, %v307_v38  ;;  %v9315_v34 = vrot.slane %v9230_v52, %v9282_v43  ;;  %v9324_v61 = vrot.slane %v9235_v55, %v9282_v43  ;;  %v9381_v36 = vrot.slane %v301_v62, %v9237_v63 }
  0xb7   : > { %v322_v39 = vmul.f32 %v9246_v59, %v307_v38  ;;  %v391_v0 = vpop.permute.xlu1 %390  ;;  %v343_v47 = vpop.permute.xlu0 %342  ;;  %v9300_v38 = vrot.slane %v9235_v55, %v9266_v5  ;;  %v382_v51 = vmul.f32 %v9288_v37, %v367_v41 }
  0xb8   : > { %v338_v14 = vadd.f32 %v9260_v40, %v323_v46  ;;  %v357_v28 = vmul.f32 %v9270_v17, %v343_v47  ;;  %v358_v11 = vmul.f32 %v9274_v20, %v343_v47  ;;  %v9306_v46 = vrot.slane %v9230_v52, %v9276_v30 }
  0xb9   : > { %v337_v15 = vadd.f32 %v9257_v58, %v322_v39  ;;  %v381_v39 = vmul.f32 %v9280_v2, %v367_v41  ;;  %v405_v22 = vmul.f32 %v9296_v48, %v391_v0  ;;  %v406_v50 = vmul.f32 %v9300_v38, %v391_v0 }
  0xba   : > { %v362_v31 = vadd.f32 %v358_v11, %v338_v14  ;;  %v9333_v11 = vsub.s32 7, %v315_v21 }
  0xbb   : > { %v361_v47 = vadd.f32 %v357_v28, %v337_v15 }
  0xbc   : > { %v386_v16 = vadd.f32 %v382_v51, %v362_v31  ;;  %v415_v56 = vpop.permute.xlu1 %414  ;;  %v439_v13 = vpop.permute.xlu0 %438  ;;  %v9342_v31 = vrot.slane %v9230_v52, %v9326_v54  ;;  %v9352_v0 = vrot.slane %v9230_v52, %v9333_v11 }
  0xbd   : > { %v385_v53 = vadd.f32 %v381_v39, %v361_v47  ;;  %v429_v15 = vmul.f32 %v9306_v46, %v415_v56  ;;  %v430_v14 = vmul.f32 %v9311_v9, %v415_v56  ;;  %v453_v28 = vmul.f32 %v9315_v34, %v439_v13 }
  0xbe   : > { %v410_v12 = vadd.f32 %v406_v50, %v386_v16  ;;  %v454_v51 = vmul.f32 %v9324_v61, %v439_v13  ;;  %v9346_v56 = vrot.slane %v9235_v55, %v9326_v54  ;;  %v9356_v13 = vrot.slane %v9235_v55, %v9333_v11 }
  0xbf   : > { %v409_v41 = vadd.f32 %v405_v22, %v385_v53 }
  0xc0   : > { %v434_v39 = vadd.f32 %v430_v14, %v410_v12  ;;  %v302_v12 = vld [vmem:[%s13283_s1 + $0x18] sm:$0xff] }
  0xc1   : > { %v433_v21 = vadd.f32 %v429_v15, %v409_v41  ;;  %v463_v53 = vpop.permute.xlu1 %462  ;;  %v9371_v41 = vrot.slane %v301_v62, %v9223_v18  ;;  %v9384_v55 = vrot.slane %v302_v12, %v9237_v63 }
  0xc2   : > { %v458_v15 = vadd.f32 %v454_v51, %v434_v39  ;;  %v477_v14 = vmul.f32 %v9342_v31, %v463_v53  ;;  %v511_v39 = vpop.permute.xlu0 %510 }
  0xc3   : > { %v457_v47 = vadd.f32 %v453_v28, %v433_v21  ;;  %v478_v28 = vmul.f32 %v9346_v56, %v463_v53  ;;  %v9374_v21 = vrot.slane %v302_v12, %v9223_v18  ;;  %v525_v4 = vmul.f32 %v9371_v41, %v511_v39 }
  0xc5   : > { %v481_v16 = vadd.f32 %v477_v14, %v457_v47  ;;  %v482_v50 = vadd.f32 %v478_v28, %v458_v15  ;;  %v526_v22 = vmul.f32 %v9374_v21, %v511_v39  ;;  %v9389_v47 = vrot.slane %v301_v62, %v9252_v29 }
  0xc6   : > { %v487_v51 = vpop.permute.xlu1 %486  ;;  %v9392_v15 = vrot.slane %v302_v12, %v9252_v29  ;;  %v583_v39 = vpop.permute.xlu0 %582 }
  0xc7   : > { %v501_v53 = vmul.f32 %v9352_v0, %v487_v51  ;;  %v502_v52 = vmul.f32 %v9356_v13, %v487_v51 }
  0xc9   : > { %v505_v6 = vadd.f32 %v501_v53, %v481_v16  ;;  %v506_v18 = vadd.f32 %v502_v52, %v482_v50  ;;  %v9397_v16 = vrot.slane %v301_v62, %v9266_v5  ;;  %v9400_v50 = vrot.slane %v302_v12, %v9266_v5 }
  0xcb   : > { %v535_v19 = vpop.permute.xlu1 %534  ;;  %v529_v14 = vadd.f32 %v525_v4, %v505_v6  ;;  %v530_v28 = vadd.f32 %v526_v22, %v506_v18  ;;  %v9405_v4 = vrot.slane %v301_v62, %v9276_v30  ;;  %v9408_v6 = vrot.slane %v302_v12, %v9276_v30 }
  0xcc   : > { %v549_v51 = vmul.f32 %v9381_v36, %v535_v19  ;;  %v550_v63 = vmul.f32 %v9384_v55, %v535_v19  ;;  %v597_v22 = vmul.f32 %v9397_v16, %v583_v39  ;;  %v598_v5 = vmul.f32 %v9400_v50, %v583_v39  ;;  %v655_v39 = vpop.permute.xlu0 %654 }
  0xce   : > { %v553_v53 = vadd.f32 %v549_v51, %v529_v14  ;;  %v554_v3 = vadd.f32 %v550_v63, %v530_v28  ;;  %v9413_v14 = vrot.slane %v301_v62, %v9282_v43  ;;  %v9416_v63 = vrot.slane %v302_v12, %v9282_v43 }
  0xcf   : > { %v9419_v28 = vrot.slane %v301_v62, %v9326_v54  ;;  %v9422_v51 = vrot.slane %v302_v12, %v9326_v54  ;;  %v9431_v54 = vrot.slane %v301_v62, %v9333_v11 }
  0xd0   : > { %v559_v52 = vpop.permute.xlu1 %558 }
  0xd1   : > { %v573_v32 = vmul.f32 %v9389_v47, %v559_v52  ;;  %v574_v29 = vmul.f32 %v9392_v15, %v559_v52  ;;  %v670_v42 = vmul.f32 %v9422_v51, %v655_v39 }
  0xd3   : > { %v577_v19 = vadd.f32 %v573_v32, %v553_v53  ;;  %v578_v18 = vadd.f32 %v574_v29, %v554_v3  ;;  %v669_v29 = vmul.f32 %v9419_v28, %v655_v39 }
  0xd5   : > { %v607_v45 = vpop.permute.xlu1 %606  ;;  %v601_v30 = vadd.f32 %v597_v22, %v577_v19  ;;  %v602_v32 = vadd.f32 %v598_v5, %v578_v18  ;;  %v9434_v19 = vrot.slane %v302_v12, %v9333_v11 }
  0xd6   : > { %v621_v3 = vmul.f32 %v9405_v4, %v607_v45  ;;  %v622_v52 = vmul.f32 %v9408_v6, %v607_v45 }
  0xd8   : > { %v625_v43 = vadd.f32 %v621_v3, %v601_v30  ;;  %v626_v27 = vadd.f32 %v622_v52, %v602_v32  ;;  %v347_v52 = vpop.permute.xlu0 %346 }
  0xda   : > { %v631_v53 = vpop.permute.xlu1 %630 }
  0xdb   : > { %v645_v44 = vmul.f32 %v9413_v14, %v631_v53  ;;  %v646_v57 = vmul.f32 %v9416_v63, %v631_v53 }
  0xdd   : > { %v649_v18 = vadd.f32 %v645_v44, %v625_v43  ;;  %v650_v45 = vadd.f32 %v646_v57, %v626_v27  ;;  %v359_v57 = vmul.f32 %v9270_v17, %v347_v52 }
  0xdf   : > { %v673_v22 = vadd.f32 %v669_v29, %v649_v18  ;;  %v674_v5 = vadd.f32 %v670_v42, %v650_v45  ;;  %v679_v8 = vpop.permute.xlu1 %678  ;;  %v360_v42 = vmul.f32 %v9274_v20, %v347_v52  ;;  %v419_v20 = vpop.permute.xlu0 %418 }
  0xe0   : > { %v693_v23 = vmul.f32 %v9431_v54, %v679_v8  ;;  %v694_v30 = vmul.f32 %v9434_v19, %v679_v8 }
  0xe2   : > { %v9438_v32 = vadd.f32 %v693_v23, %v673_v22  ;;  %v9440_v3 = vadd.f32 %v694_v30, %v674_v5 }
  0xe4   : > { %v705_v62 = vand.u32 2147483647, %v9438_v32  ;;  %v706_v39 = vand.u32 2147483647, %v9440_v3  ;;  %v312_v11 = vpop.permute.xlu1 %311 }
  0xe5   : > { %v324_v44 = vmul.f32 %v9246_v59, %v312_v11  ;;  %v325_v27 = vmul.f32 %v9250_v24, %v312_v11  ;;  %v432_v11 = vmul.f32 %v9311_v9, %v419_v20 }
  0xe6   : > { %v709_v12 = vsub.f32 0.0, %v705_v62  ;;  %v710_v8 = vsub.f32 0.0, %v706_v39 }
  0xe7   : > { %v339_v23 = vadd.f32 %v9257_v58, %v324_v44  ;;  %v340_v53 = vadd.f32 %v9260_v40, %v325_v27  ;;  %v431_v40 = vmul.f32 %v9306_v46, %v419_v20 }
  0xe8   : > { %v713_v29 = vmul.f32 1.442695, %v709_v12  ;;  %v715_v43 = vmul.f32 1.442695, %v710_v8 }
  0xe9   : > { %v371_v18 = vpop.permute.xlu1 %370  ;;  %v363_v45 = vadd.f32 %v359_v57, %v339_v23  ;;  %v364_v22 = vadd.f32 %v360_v42, %v340_v53 }
  0xea   : > { %7969 = vpow2.f32 %v713_v29  ;;  %v383_v59 = vmul.f32 %v9280_v2, %v371_v18  ;;  %v384_v24 = vmul.f32 %v9288_v37, %v371_v18 }
  0xeb   : > { %7971 = vpow2.f32 %v715_v43 }
  0xec   : > { %v387_v17 = vadd.f32 %v383_v59, %v363_v45  ;;  %v388_v5 = vadd.f32 %v384_v24, %v364_v22 }
  0xef   : > { %v395_v30 = vpop.permute.xlu1 %394 }
  0xf0   : > { %v407_v52 = vmul.f32 %v9296_v48, %v395_v30  ;;  %v408_v58 = vmul.f32 %v9300_v38, %v395_v30  ;;  %v491_v48 = vpop.permute.xlu0 %490 }
  0xf1   : > { %v503_v45 = vmul.f32 %v9352_v0, %v491_v48 }
  0xf2   : > { %v411_v62 = vadd.f32 %v407_v52, %v387_v17  ;;  %v412_v39 = vadd.f32 %v408_v58, %v388_v5 }
  0xf4   : > { %v7970_v27 = vpop.eup %7969  ;;  %v435_v2 = vadd.f32 %v431_v40, %v411_v62  ;;  %v436_v42 = vadd.f32 %v432_v11, %v412_v39  ;;  %v563_v52 = vpop.permute.xlu0 %562  ;;  %v701_v62 = vmax.f32 %v9438_v32, 0.0  ;;  %v702_v32 = vmax.f32 %v9440_v3, 0.0  ;;  %v14395_v3 = vld [vmem:[#allocation7_spill] sm:$0xff] }
  0xf5   : > { %v443_v44 = vpop.permute.xlu1 %442  ;;  %v7972_v57 = vpop.eup %7971  ;;  %v721_v37 = vadd.f32 1.0, %v7970_v27  ;;  %v724_v43 = vmul.f32 -0.5, %v7970_v27 }
  0xf6   : > { %v455_v12 = vmul.f32 %v9315_v34, %v443_v44  ;;  %v456_v8 = vmul.f32 %v9324_v61, %v443_v44  ;;  %v730_v23 = vadd.f32 1.0, %v7972_v57  ;;  %v733_v18 = vmul.f32 -0.5, %v7972_v57 }
  0xf7   : > { %7973 = vlog2.f32 %v721_v37  ;;  %v504_v34 = vmul.f32 %v9356_v13, %v491_v48  ;;  %v727_v61 = vand.u32 2147483647, %v7970_v27  ;;  %v725_v17 = vadd.f32 1.0, %v724_v43  ;;  %v14396_v43 = vld [vmem:[#allocation8_spill] sm:$0xff] }
  0xf8   : > { %7975 = vlog2.f32 %v730_v23  ;;  %v459_v46 = vadd.f32 %v455_v12, %v435_v2  ;;  %v460_v53 = vadd.f32 %v456_v8, %v436_v42  ;;  %v734_v5 = vadd.f32 1.0, %v733_v18 }
  0xf9   : > { %vm9465_vm0 = vcmp.lt.f32.partialorder %v727_v61, 0.0004427343  ;;  %v575_v13 = vmul.f32 %v9389_v47, %v563_v52  ;;  %v726_v44 = vmul.f32 %v7970_v27, %v725_v17  ;;  %v576_v47 = vmul.f32 %v9392_v15, %v563_v52  ;;  %v14397_v15 = vld [vmem:[#allocation9_spill] sm:$0xff] }
  0xfa   : > { %v467_v38 = vpop.permute.xlu1 %466  ;;  %v735_v2 = vmul.f32 %v7972_v57, %v734_v5  ;;  %v6613_v18 = vpack.c.bf16 %v14396_v43, %v14395_v3 }
  0xfb   : > { %v479_v29 = vmul.f32 %v9342_v31, %v467_v38  ;;  %v480_v9 = vmul.f32 %v9346_v56, %v467_v38  ;;  %v736_v56 = vand.u32 2147483647, %v7972_v57 }
  0xfd   : > { %v483_v22 = vadd.f32 %v479_v29, %v459_v46  ;;  %v484_v59 = vadd.f32 %v480_v9, %v460_v53  ;;  %vm737_vm1 = vcmp.lt.f32.partialorder %v736_v56, 0.0004427343  ;;  %v14402_v56 = vld [vmem:[#allocation14_spill] sm:$0xff] }
  0xff   : > { %v507_v20 = vadd.f32 %v503_v45, %v483_v22  ;;  %v508_v58 = vadd.f32 %v504_v34, %v484_v59  ;;  %v14398_v59 = vld [vmem:[#allocation10_spill] sm:$0xff] }
 0x100   : > { %v515_v24 = vpop.permute.xlu1 %514  ;;  %v6615_v34 = vpack.c.bf16 %v14398_v59, %v14397_v15 }
 0x101   : > { %v527_v30 = vmul.f32 %v9371_v41, %v515_v24  ;;  %v528_v31 = vmul.f32 %v9374_v21, %v515_v24  ;;  %v7974_v40 = vpop.eup %7973 }
 0x102   : > { %v7976_v39 = vpop.eup %7975  ;;  %v723_v11 = vmul.f32 0.6931472, %v7974_v40 }
 0x103   : > { %v531_v37 = vadd.f32 %v527_v30, %v507_v20  ;;  %v732_v42 = vmul.f32 0.6931472, %v7976_v39  ;;  %v532_v12 = vadd.f32 %v528_v31, %v508_v58  ;;  %v14400_v30 = vld [vmem:[#allocation12_spill] sm:$0xff]  ;;  %v14401_v31 = vld [vmem:[#allocation13_spill] sm:$0xff] }
 0x104   : > { %v729_v23 = vsel %vm9465_vm0, %v726_v44, %v723_v11  ;;  %v6619_v40 = vpack.c.bf16 %v14402_v56, %v14401_v31  ;;  %vm6168_vm0 = vcmask 64512  }
 0x105   : > { %v738_v48 = vsel %vm737_vm1, %v735_v2, %v732_v42  ;;  %v757_v38 = vadd.f32 %v729_v23, %v701_v62  ;;  %v14406_v23 = vld [vmem:[#allocation20_spill] sm:$0xff] }
 0x106   : > { %v758_v46 = vadd.f32 %v738_v48, %v702_v32  ;;  %v14405_v32 = vld [vmem:[#allocation17_spill] sm:$0xff] }
 0x107   : > { %v9476_v29 = vand.u32 4294901760, %v757_v38 }
 0x108   : > { %v539_v41 = vpop.permute.xlu1 %538 }
 0x109   : > { %v551_v21 = vmul.f32 %v9381_v36, %v539_v41  ;;  %v552_v8 = vmul.f32 %v9384_v55, %v539_v41  ;;  %14394 = vst [vmem:[#allocation94_spill] sm:$0xff] %v9476_v29  ;;  %v9479_v55 = vand.u32 4294901760, %v758_v46  ;;  %v9487_v61 = vsub.f32 %v757_v38, %v9476_v29 }
 0x10b   : > { %v555_v27 = vadd.f32 %v551_v21, %v531_v37  ;;  %v556_v57 = vadd.f32 %v552_v8, %v532_v12  ;;  %1383 = vmatprep.mubr.f32.mxu0 %v9479_v55  ;;  %v9491_v24 = vsub.f32 %v758_v46, %v9479_v55  ;;  %v13545_v17 = vand.u32 4294901760, %v9487_v61  ;;  %v14403_v12 = vld [vmem:[#allocation15_spill] sm:$0xff] }
 0x10c   : > { %1385 = vmatmul.mubr.f32.vlgmr.msra.gmra.mrb[0].mxu0 %v9476_v29 }
 0x10d   : > { %v587_v53 = vpop.permute.xlu1 %586  ;;  %v579_v9 = vadd.f32 %v575_v13, %v555_v27  ;;  %v580_v45 = vadd.f32 %v576_v47, %v556_v57  ;;  %6614 = vmatpush1.bf16.msra.mxu0 %v6613_v18  ;;  %v13546_v58 = vand.u32 4294901760, %v9491_v24  ;;  %v974_v39 = vsub.f32 %v9487_v61, %v13545_v17  ;;  %v14408_v57 = vld [vmem:[#allocation23_spill] sm:$0xff] }
 0x10e   : > { %v599_v36 = vmul.f32 %v9397_v16, %v587_v53  ;;  %v600_v22 = vmul.f32 %v9400_v50, %v587_v53  ;;  %v635_v16 = vpop.permute.xlu0 %634  ;;  %v14399_v50 = vld [vmem:[#allocation11_spill] sm:$0xff]  ;;  %6616 = vmatprep.subr.bf16.mxu0 %v6615_v34  ;;  %v6623_v47 = vpack.c.bf16 %v14406_v23, %v14405_v32  ;;  %v14409_v53 = vld [vmem:[#allocation25_spill] sm:$0xff] }
 0x10f   : > { %v6617_v52 = vpack.c.bf16 %v14400_v30, %v14399_v50  ;;  %v647_v11 = vmul.f32 %v9413_v14, %v635_v16  ;;  %v968_v44 = vsub.f32 %v9491_v24, %v13546_v58  ;;  %v648_v41 = vmul.f32 %v9416_v63, %v635_v16  ;;  %v14407_v63 = vld [vmem:[#allocation22_spill] sm:$0xff] }
 0x110   : > { %v603_v5 = vadd.f32 %v599_v36, %v579_v9  ;;  %v604_v62 = vadd.f32 %v600_v22, %v580_v45  ;;  %v975_v42 = vand.u32 4294901760, %v974_v39  ;;  %v6625_v46 = vpack.c.bf16 %v14408_v57, %v14407_v63  ;;  %v14410_v9 = vld [vmem:[#allocation26_spill] sm:$0xff] }
 0x111   : > { %6618 = vmatpush1.bf16.msra.mxu0 %v6617_v52  ;;  %v6627_v36 = vpack.c.bf16 %v14410_v9, %v14409_v53  ;;  %v14442_v58 = vld [vmem:[#allocation62_spill] sm:$0xff] }
 0x112   : > { %6620 = vmatprep.subr.bf16.mxu0 %v6619_v40  ;;  %v14413_v40 = vld [vmem:[#allocation32_spill] sm:$0xff] }
 0x113   : > { %v611_v20 = vpop.permute.xlu1 %610 }
 0x114   : > { %v623_v0 = vmul.f32 %v9405_v4, %v611_v20  ;;  %v624_v13 = vmul.f32 %v9408_v6, %v611_v20  ;;  %v969_v4 = vand.u32 4294901760, %v968_v44  ;;  %v14404_v6 = vld [vmem:[#allocation16_spill] sm:$0xff]  ;;  %v14416_v44 = vld [vmem:[#allocation35_spill] sm:$0xff] }
 0x115   : > { %v6621_v21 = vpack.c.bf16 %v14404_v6, %v14403_v12 }
 0x116   : > { %v627_v2 = vadd.f32 %v623_v0, %v603_v5  ;;  %v628_v37 = vadd.f32 %v624_v13, %v604_v62  ;;  %970 = vmatprep.mubr.f32.mxu1 %v969_v4  ;;  %v14412_v5 = vld [vmem:[#allocation29_spill] sm:$0xff]  ;;  %v14418_v4 = vpack.c.bf16 %v8631_v25, %v8619_v7 }
 0x117   : > { %976 = vmatmul.mubr.f32.vlgmr.msra.gmra.mrb[0].mxu1 %v975_v42  ;;  %6622 = vmatpush1.bf16.msra.mxu0 %v6621_v21  ;;  %v14414_v62 = vld [vmem:[#allocation33_spill] sm:$0xff]  ;;  %v14417_v42 = vpack.c.bf16 %v8603_v26, %v8590_v1  ;;  %v14419_v21 = vpack.c.bf16 %v8675_v10, %v8655_v49 }
 0x118   : > { %v659_v8 = vpop.permute.xlu1 %658  ;;  %v651_v14 = vadd.f32 %v647_v11, %v627_v2  ;;  %v652_v48 = vadd.f32 %v648_v41, %v628_v37  ;;  %6624 = vmatprep.subr.bf16.mxu0 %v6623_v47  ;;  %v6631_v0 = vpack.c.bf16 %v14414_v62, %v14413_v40  ;;  %v14415_v11 = vld [vmem:[#allocation34_spill] sm:$0xff] }
 0x119   : > { %v671_v38 = vmul.f32 %v9419_v28, %v659_v8  ;;  %v672_v27 = vmul.f32 %v9422_v51, %v659_v8  ;;  %v14411_v28 = vld [vmem:[#allocation28_spill] sm:$0xff]  ;;  %v6633_v2 = vpack.c.bf16 %v14416_v44, %v14415_v11  ;;  %v14420_v8 = vpack.c.bf16 %v8703_v60, %v8687_v33  ;;  %v14421_v47 = vld [vmem:[#allocation42_spill] sm:$0xff] }
 0x11a   : > { %v6629_v51 = vpack.c.bf16 %v14412_v5, %v14411_v28 }
 0x11b   : > { %v675_v45 = vadd.f32 %v671_v38, %v651_v14  ;;  %v676_v22 = vadd.f32 %v672_v27, %v652_v48  ;;  %6626 = vmatpush1.bf16.msra.mxu0 %v6625_v46  ;;  %v14422_v14 = vpack.c.bf16 %v8734_v35, %v14421_v47  ;;  %v14423_v46 = vld [vmem:[#allocation45_spill] sm:$0xff] }
 0x11c   : > { %6628 = vmatprep.subr.bf16.mxu0 %v6627_v36  ;;  %v14424_v36 = vld [vmem:[#allocation44_spill] sm:$0xff] }
 0x11d   : > { %v683_v18 = vpop.permute.xlu1 %682 }
 0x11e   : > { %v695_v34 = vmul.f32 %v9431_v54, %v683_v18  ;;  %v696_v16 = vmul.f32 %v9434_v19, %v683_v18  ;;  %v14425_v18 = vpack.c.bf16 %v14423_v46, %v14424_v36 }
 0x11f   : > { %6630 = vmatpush1.bf16.msra.mxu0 %v6629_v51  ;;  %v14429_v51 = vld [vmem:[#allocation51_spill] sm:$0xff] }
 0x120   : > { %v699_v20 = vadd.f32 %v695_v34, %v675_v45  ;;  %v700_v52 = vadd.f32 %v696_v16, %v676_v22  ;;  %6632 = vmatprep.subr.bf16.mxu0 %v6631_v0  ;;  %v14426_v22 = vld [vmem:[#allocation48_spill] sm:$0xff]  ;;  %v14427_v34 = vld [vmem:[#allocation46_spill] sm:$0xff] }
 0x121   : > { %v14428_v16 = vpack.c.bf16 %v14426_v22, %v14427_v34  ;;  %v14430_v0 = vld [vmem:[#allocation50_spill] sm:$0xff]  ;;  %v14447_v22 = vld [vmem:[#allocation69_spill] sm:$0xff]  ;;  %v14448_v34 = vld [vmem:[#allocation68_spill] sm:$0xff] }
 0x122   : > { %v707_v13 = vand.u32 2147483647, %v699_v20  ;;  %v708_v39 = vand.u32 2147483647, %v700_v52 }
 0x123   : > { %6634 = vmatpush1.bf16.msra.mxu0 %v6633_v2  ;;  %v14432_v2 = vld [vmem:[#allocation54_spill] sm:$0xff] }
 0x124   : > { %v711_v37 = vsub.f32 0.0, %v707_v13  ;;  %v712_v54 = vsub.f32 0.0, %v708_v39  ;;  %6636 = vmatprep.subr.bf16.mxu0 %v14417_v42  ;;  %v14431_v13 = vpack.c.bf16 %v14429_v51, %v14430_v0  ;;  %v14436_v42 = vld [vmem:[#allocation56_spill] sm:$0xff]  ;;  %v14444_v51 = vld [vmem:[#allocation66_spill] sm:$0xff]  ;;  %v14445_v0 = vld [vmem:[#allocation65_spill] sm:$0xff] }
 0x126   : > { %v717_v19 = vmul.f32 1.442695, %v711_v37  ;;  %v719_v41 = vmul.f32 1.442695, %v712_v54  ;;  %v14433_v37 = vld [vmem:[#allocation53_spill] sm:$0xff] }
 0x127   : > { %6638 = vmatpush1.bf16.msra.mxu0 %v14418_v4  ;;  %v14434_v54 = vpack.c.bf16 %v14432_v2, %v14433_v37 }
 0x128   : > { %7977 = vpow2.f32 %v717_v19  ;;  %6640 = vmatprep.subr.bf16.mxu0 %v14419_v21 }
 0x129   : > { %7979 = vpow2.f32 %v719_v41  ;;  %v14435_v41 = vld [vmem:[#allocation57_spill] sm:$0xff] }
 0x12a   : > { %v14437_v4 = vpack.c.bf16 %v14435_v41, %v14436_v42  ;;  %v14446_v41 = vpack.c.bf16 %v14444_v51, %v14445_v0 }
 0x12b   : > { %6642 = vmatpush1.bf16.msra.mxu0 %v14420_v8  ;;  %v14438_v8 = vld [vmem:[#allocation60_spill] sm:$0xff] }
 0x12c   : > { %6644 = vmatprep.subr.bf16.mxu0 %v14422_v14  ;;  %v14439_v14 = vld [vmem:[#allocation58_spill] sm:$0xff] }
 0x12f   : > { %6646 = vmatpush1.bf16.msra.mxu0 %v14425_v18  ;;  %v14440_v18 = vpack.c.bf16 %v14438_v8, %v14439_v14 }
 0x130   : > { %6648 = vmatprep.subr.bf16.mxu0 %v14428_v16 }
 0x132   : > { %v7978_v48 = vpop.eup %7977 }
 0x133   : > { %v7980_v38 = vpop.eup %7979  ;;  %v739_v27 = vadd.f32 1.0, %v7978_v48  ;;  %6650 = vmatpush1.bf16.msra.mxu0 %v14431_v13  ;;  %v742_v39 = vmul.f32 -0.5, %v7978_v48  ;;  %v14441_v13 = vld [vmem:[#allocation63_spill] sm:$0xff] }
 0x134   : > { %v748_v45 = vadd.f32 1.0, %v7980_v38  ;;  %6652 = vmatprep.subr.bf16.mxu0 %v14434_v54  ;;  %v751_v19 = vmul.f32 -0.5, %v7980_v38  ;;  %v754_v16 = vand.u32 2147483647, %v7980_v38  ;;  %v14443_v29 = vpack.c.bf16 %v14441_v13, %v14442_v58 }
 0x135   : > { %7981 = vlog2.f32 %v739_v27  ;;  %v743_v21 = vadd.f32 1.0, %v742_v39  ;;  %v745_v27 = vand.u32 2147483647, %v7978_v48  ;;  %v703_v39 = vmax.f32 %v699_v20, 0.0 }
 0x136   : > { %7983 = vlog2.f32 %v748_v45  ;;  %v752_v45 = vadd.f32 1.0, %v751_v19  ;;  %vm755_vm3 = vcmp.lt.f32.partialorder %v754_v16, 0.0004427343  ;;  %v14449_v13 = vpack.c.bf16 %v14447_v22, %v14448_v34 }
 0x137   : > { %6654 = vmatpush1.bf16.msra.mxu0 %v14437_v4  ;;  %v744_v37 = vmul.f32 %v7978_v48, %v743_v21  ;;  %vm746_vm2 = vcmp.lt.f32.partialorder %v745_v27, 0.0004427343  ;;  %v14451_v48 = vld [vmem:[#allocation70_spill] sm:$0xff] }
 0x138   : > { %6656 = vmatprep.subr.bf16.mxu0 %v14440_v18  ;;  %v753_v8 = vmul.f32 %v7980_v38, %v752_v45  ;;  %v704_v18 = vmax.f32 %v700_v52, 0.0  ;;  %v14456_v38 = vld [vmem:[#allocation74_spill] sm:$0xff] }
 0x13b   : > { %6658 = vmatpush1.bf16.msra.mxu0 %v14443_v29 }
 0x13c   : > { %6660 = vmatprep.subr.bf16.mxu0 %v14446_v41  ;;  %v14458_v41 = vld [vmem:[#allocation78_spill] sm:$0xff] }
 0x13f   : > { %v7982_v17 = vpop.eup %7981  ;;  %6662 = vmatpush1.bf16.msra.mxu0 %v14449_v13  ;;  %v14461_v13 = vld [vmem:[#allocation81_spill] sm:$0xff] }
 0x140   : > { %v7984_v2 = vpop.eup %7983  ;;  %v741_v54 = vmul.f32 0.6931472, %v7982_v17  ;;  %v14450_v17 = vld [vmem:[#allocation72_spill] sm:$0xff] }
 0x141   : > { %v750_v4 = vmul.f32 0.6931472, %v7984_v2  ;;  %v14452_v21 = vpack.c.bf16 %v14450_v17, %v14451_v48  ;;  %v14455_v2 = vld [vmem:[#allocation75_spill] sm:$0xff] }
 0x142   : > { %v747_v14 = vsel %vm746_vm2, %v744_v37, %v741_v54  ;;  %v14457_v52 = vpack.c.bf16 %v14455_v2, %v14456_v38  ;;  %v14462_v54 = vld [vmem:[#allocation80_spill] sm:$0xff] }
 0x143   : > { %v756_v19 = vsel %vm755_vm3, %v753_v8, %v750_v4  ;;  %v759_v42 = vadd.f32 %v747_v14, %v703_v39  ;;  %6664 = vmatprep.subr.bf16.mxu0 %v14452_v21  ;;  %v14459_v8 = vld [vmem:[#allocation77_spill] sm:$0xff]  ;;  %v14463_v39 = vpack.c.bf16 %v14461_v13, %v14462_v54  ;;  %v14464_v4 = vld [vmem:[#allocation84_spill] sm:$0xff] }
 0x144   : > { %v760_v29 = vadd.f32 %v756_v19, %v704_v18  ;;  %6666 = vmatpush1.bf16.msra.mxu0 %v14457_v52  ;;  %v14460_v14 = vpack.c.bf16 %v14458_v41, %v14459_v8  ;;  %v14465_v18 = vld [vmem:[#allocation82_spill] sm:$0xff]  ;;  %v14472_v13 = vld [vmem:[#allocation21_spill] sm:$0xff] }
 0x145   : > { %v9573_v51 = vand.u32 4294901760, %v759_v42  ;;  %v14466_v19 = vpack.c.bf16 %v14464_v4, %v14465_v18  ;;  %v14470_v41 = vld [vmem:[#allocation18_spill] sm:$0xff] }
 0x146   : > { %v9575_v20 = vand.u32 4294901760, %v760_v29  ;;  %6668 = vmatprep.subr.bf16.mxu0 %v14460_v14  ;;  %v14467_v14 = vld [vmem:[#allocation87_spill] sm:$0xff] }
 0x147   : > { %14453 = vst [vmem:[#allocation7_spill] sm:$0xff] %v9573_v51  ;;  %v9581_v37 = vsub.f32 %v759_v42, %v9573_v51 }
 0x148   : > { %14454 = vst [vmem:[#allocation8_spill] sm:$0xff] %v9575_v20  ;;  %1391 = vmatprep.mubr.f32.mxu0 %v9575_v20  ;;  %v982_v27 = vsub.f32 %v760_v29, %v9575_v20  ;;  %6670 = vmatpush1.bf16.msra.mxu0 %v14463_v39  ;;  %v14471_v39 = vld [vmem:[#allocation19_spill] sm:$0xff] }
 0x149   : > { %1393 = vmatmul.mubr.f32.gmra.mrb[2].mxu0 %v9573_v51  ;;  %v989_v45 = vand.u32 4294901760, %v9581_v37  ;;  %6672 = vmatprep.subr.bf16.mxu0 %v14466_v19  ;;  %v14468_v51 = vld [vmem:[#allocation86_spill] sm:$0xff]  ;;  %v14473_v19 = vld [vmem:[#allocation24_spill] sm:$0xff] }
 0x14a   : > { %1593 = vmatprep.mubr.f32.mxu0 %v9491_v24  ;;  %v983_v16 = vand.u32 4294901760, %v982_v27  ;;  %v14469_v20 = vpack.c.bf16 %v14467_v14, %v14468_v51 }
 0x14b   : > { %v990_v42 = vsub.f32 %v9581_v37, %v989_v45 }
 0x14c   : > { %v984_v21 = vsub.f32 %v982_v27, %v983_v16  ;;  %6674 = vmatpush1.bf16.msra.mxu0 %v14469_v20  ;;  %v14476_v20 = vld [vmem:[#allocation30_spill] sm:$0xff] }
 0x14d   : > { %v991_v52 = vand.u32 4294901760, %v990_v42  ;;  %6676 = vmatprep.subr.bf16.mxu0 %v14470_v41  ;;  %v14474_v42 = vand.u32 4294901760, %v9491_v24  ;;  %v14484_v24 = vld [vmem:[#allocation43_spill] sm:$0xff]  ;;  %v14504_v41 = vld [vmem:[#allocation6_spill] sm:$0xff] }
 0x14e   : > { %v985_v29 = vand.u32 4294901760, %v984_v21  ;;  %v14475_v21 = vld [vmem:[#allocation27_spill] sm:$0xff] }
 0x14f   : > { %1596 = vmatmul.mubr.f32.vlgmr.msra.gmra.mrb[0].mxu0 %v9487_v61 }
 0x150   : > { %986 = vmatprep.mubr.f32.mxu1 %v985_v29  ;;  %1603 = vmatprep.mubr.f32.mxu0 %v982_v27  ;;  %v14477_v29 = vld [vmem:[#allocation31_spill] sm:$0xff]  ;;  %v14479_v27 = vld [vmem:[#allocation37_spill] sm:$0xff] }
 0x151   : > { %992 = vmatmul.mubr.f32.gmra.mrb[2].mxu1 %v991_v52  ;;  %6678 = vmatpush1.bf16.msra.mxu0 %v14471_v39  ;;  %v14478_v52 = vld [vmem:[#allocation36_spill] sm:$0xff]  ;;  %v14480_v39 = vld [vmem:[#allocation38_spill] sm:$0xff] }
 0x152   : > { %6680 = vmatprep.subr.bf16.mxu0 %v14472_v13  ;;  %v14481_v13 = vld [vmem:[#allocation39_spill] sm:$0xff] }
 0x153   : > { %1606 = vmatmul.mubr.f32.gmra.mrb[2].mxu0 %v9581_v37  ;;  %v14482_v37 = vld [vmem:[#allocation40_spill] sm:$0xff] }
 0x154   : > { %1743 = vmatprep.mubr.f32.mxu0 %v14474_v42  ;;  %v14485_v42 = vld [vmem:[#allocation47_spill] sm:$0xff] }
 0x155   : > { %6682 = vmatpush1.bf16.msra.mxu0 %v14473_v19  ;;  %v14483_v19 = vld [vmem:[#allocation41_spill] sm:$0xff] }
 0x156   : > { %6684 = vmatprep.subr.bf16.mxu0 %v14475_v21  ;;  %v14486_v21 = vld [vmem:[#allocation49_spill] sm:$0xff] }
 0x159   : > { %6686 = vmatpush1.bf16.msra.mxu0 %v14476_v20  ;;  %v14487_v20 = vld [vmem:[#allocation52_spill] sm:$0xff] }
 0x15a   : > { %6688 = vmatprep.subr.bf16.mxu0 %v14477_v29  ;;  %v14488_v29 = vld [vmem:[#allocation55_spill] sm:$0xff] }
 0x15d   : > { %6690 = vmatpush1.bf16.msra.mxu0 %v14478_v52  ;;  %v14489_v52 = vld [vmem:[#allocation59_spill] sm:$0xff] }
 0x15e   : > { %6692 = vmatprep.subr.bf16.mxu0 %v14479_v27  ;;  %v14490_v27 = vld [vmem:[#allocation61_spill] sm:$0xff] }
 0x161   : > { %6694 = vmatpush1.bf16.msra.mxu0 %v14480_v39  ;;  %v14491_v39 = vld [vmem:[#allocation64_spill] sm:$0xff] }
 0x162   : > { %6696 = vmatprep.subr.bf16.mxu0 %v14481_v13  ;;  %v14492_v13 = vld [vmem:[#allocation67_spill] sm:$0xff] }
 0x165   : > { %6698 = vmatpush1.bf16.msra.mxu0 %v14482_v37  ;;  %v14493_v37 = vld [vmem:[#allocation71_spill] sm:$0xff] }
 0x166   : > { %6700 = vmatprep.subr.bf16.mxu0 %v14483_v19  ;;  %v14494_v19 = vld [vmem:[#allocation73_spill] sm:$0xff] }
 0x169   : > { %6702 = vmatpush1.bf16.msra.mxu0 %v14484_v24  ;;  %v14495_v24 = vld [vmem:[#allocation76_spill] sm:$0xff] }
 0x16a   : > { %6704 = vmatprep.subr.bf16.mxu0 %v14485_v42  ;;  %v14496_v42 = vld [vmem:[#allocation79_spill] sm:$0xff] }
 0x16d   : > { %6706 = vmatpush1.bf16.msra.mxu0 %v14486_v21  ;;  %v14497_v21 = vld [vmem:[#allocation83_spill] sm:$0xff] }
 0x16e   : > { %6708 = vmatprep.subr.bf16.mxu0 %v14487_v20  ;;  %v14498_v20 = vld [vmem:[#allocation85_spill] sm:$0xff] }
 0x171   : > { %6710 = vmatpush1.bf16.msra.mxu0 %v14488_v29  ;;  %v14499_v29 = vld [vmem:[#allocation88_spill] sm:$0xff] }
 0x172   : > { %6712 = vmatprep.subr.bf16.mxu0 %v14489_v52  ;;  %v14500_v52 = vld [vmem:[#allocation89_spill] sm:$0xff] }
 0x175   : > { %6714 = vmatpush1.bf16.msra.mxu0 %v14490_v27  ;;  %v14501_v27 = vld [vmem:[#allocation90_spill] sm:$0xff] }
 0x176   : > { %6716 = vmatprep.subr.bf16.mxu0 %v14491_v39  ;;  %v14502_v39 = vld [vmem:[#allocation5_spill] sm:$0xff] }
 0x179   : > { %6718 = vmatpush1.bf16.msra.mxu0 %v14492_v13  ;;  %v14503_v13 = vand.u32 4294901760, %v14502_v39 }
 0x17a   : > { %6720 = vmatprep.subr.bf16.mxu0 %v14493_v37  ;;  %v14505_v37 = vand.u32 4294901760, %v14504_v41  ;;  %v14512_v41 = vand.u32 4294901760, %v14399_v50  ;;  %v14518_v50 = vand.u32 4294901760, %v14405_v32  ;;  %v14525_v32 = vand.u32 4294901760, %v14412_v5 }
 0x17b   : > { %v14532_v5 = vand.u32 4294901760, %v8619_v7  ;;  %v2246_v7 = vld [vmem:[#allocation2 + $0x210] sm:$0xff] }
 0x17c   : > { %v6739_v14 = vpack.c.bf16 %v14505_v37, %v14503_v13  ;;  %v14513_v13 = vand.u32 4294901760, %v14400_v30  ;;  %v14519_v30 = vand.u32 4294901760, %v14406_v23  ;;  %v14526_v23 = vand.u32 4294901760, %v14413_v40 }
 0x17d   : > { %6722 = vmatpush1.bf16.msra.mxu0 %v14494_v19  ;;  %v14506_v19 = vld [vmem:[#allocation91_spill] sm:$0xff] }
 0x17e   : > { %6724 = vmatprep.subr.bf16.mxu0 %v14495_v24  ;;  %v14507_v24 = vand.u32 4294901760, %v14395_v3  ;;  %v6745_v39 = vpack.c.bf16 %v14513_v13, %v14512_v41  ;;  %v14514_v3 = vand.u32 4294901760, %v14401_v31  ;;  %v14520_v31 = vand.u32 4294901760, %v14407_v63  ;;  %v2247_v13 = vld [vmem:[#allocation2 + $0x218] sm:$0xff] }
 0x17f   : > { %v14527_v63 = vand.u32 4294901760, %v14414_v62  ;;  %v14534_v62 = vand.u32 4294901760, %v8655_v49  ;;  %v14538_v49 = vand.u32 4294901760, %v14421_v47  ;;  %v2254_v47 = vld [vmem:[#allocation2 + $0x250] sm:$0xff] }
 0x181   : > { %6726 = vmatpush1.bf16.msra.mxu0 %v14496_v42  ;;  %v14508_v42 = vand.u32 4294901760, %v14396_v43  ;;  %v14515_v43 = vand.u32 4294901760, %v14402_v56  ;;  %v14521_v56 = vand.u32 4294901760, %v14408_v57  ;;  %v14528_v57 = vand.u32 4294901760, %v14415_v11  ;;  %v2245_v11 = vld [vmem:[#allocation2 + $0x208] sm:$0xff] }
 0x182   : > { %6728 = vmatprep.subr.bf16.mxu0 %v14497_v21 }
 0x183   : > { %v6741_v21 = vpack.c.bf16 %v14508_v42, %v14507_v24  ;;  %v14533_v24 = vand.u32 4294901760, %v8631_v25  ;;  %v14535_v42 = vand.u32 4294901760, %v8675_v10  ;;  %v2249_v25 = vld [vmem:[#allocation2 + $0x228] sm:$0xff]  ;;  %v14539_v10 = vand.u32 4294901760, %v8734_v35 }
 0x185   : > { %6730 = vmatpush1.bf16.msra.mxu0 %v14498_v20  ;;  %v14509_v20 = vand.u32 4294901760, %v14397_v15  ;;  %v14516_v15 = vand.u32 4294901760, %v14403_v12  ;;  %v14523_v12 = vand.u32 4294901760, %v14410_v9  ;;  %v14530_v9 = vand.u32 4294901760, %v8590_v1 }
 0x186   : > { %6732 = vmatprep.subr.bf16.mxu0 %v14499_v29  ;;  %v14510_v29 = vand.u32 4294901760, %v14398_v59  ;;  %v14517_v59 = vand.u32 4294901760, %v14404_v6  ;;  %v14524_v6 = vand.u32 4294901760, %v14411_v28  ;;  %v14531_v28 = vand.u32 4294901760, %v8603_v26 }
 0x187   : > { %v6765_v40 = vpack.c.bf16 %v14533_v24, %v14532_v5  ;;  %v6767_v41 = vpack.c.bf16 %v14535_v42, %v14534_v62  ;;  %v14537_v1 = vand.u32 4294901760, %v8703_v60  ;;  %v2256_v24 = vld [vmem:[#allocation2 + $0x260] sm:$0xff] }
 0x188   : > { %v6763_v37 = vpack.c.bf16 %v14531_v28, %v14530_v9  ;;  %v2343_v28 = vand.u32 4294901760, %v2254_v47 }
 0x189   : > { %6734 = vmatpush1.bf16.msra.mxu0 %v14500_v52  ;;  %v6743_v52 = vpack.c.bf16 %v14510_v29, %v14509_v20  ;;  %v6757_v29 = vpack.c.bf16 %v14525_v32, %v14524_v6 }
 0x18a   : > { %6736 = vmatprep.subr.bf16.mxu0 %v14501_v27  ;;  %v14511_v27 = vand.u32 4294901760, %v9487_v61  ;;  %v6749_v61 = vpack.c.bf16 %v14517_v59, %v14516_v15  ;;  %v2251_v15 = vld [vmem:[#allocation2 + $0x238] sm:$0xff]  ;;  %v6771_v59 = vpack.c.bf16 %v14539_v10, %v14538_v49  ;;  %v14560_v49 = vld [vmem:[#allocation46_spill] sm:$0xff] }
 0x18b   : > { %v14561_v10 = vand.u32 4294901760, %v14560_v49 }
 0x18d   : > { %6738 = vmatpush1.bf16.msra.mxu0 %v14506_v19 }
 0x18e   : > { %6740 = vmatprep.subr.bf16.mxu0 %v6739_v14  ;;  %v6747_v14 = vpack.c.bf16 %v14515_v43, %v14514_v3  ;;  %v2321_v3 = vand.u32 4294901760, %v2245_v11  ;;  %v2325_v43 = vand.u32 4294901760, %v2247_v13 }
 0x190   : > { %1747 = vmatmul.mubr.f32.vlgmr.msra.gmra.mrb[0].mxu0 %v14511_v27  ;;  %v9708_v60 = vpack.c.bf16 %v2325_v43, %v2321_v3 }
 0x191   : > { %1755 = vmatprep.mubr.f32.mxu0 %v983_v16  ;;  %6742 = vmatpush1.bf16.msra.mxu0 %v6741_v21  ;;  %v6751_v16 = vpack.c.bf16 %v14519_v30, %v14518_v50  ;;  %v14522_v21 = vand.u32 4294901760, %v14409_v53  ;;  %v14529_v53 = vand.u32 4294901760, %v14416_v44  ;;  %v2244_v44 = vld [vmem:[#allocation2 + $0x200] sm:$0xff]  ;;  %v2329_v50 = vand.u32 4294901760, %v2249_v25 }
 0x192   : > { %6744 = vmatprep.subr.bf16.mxu0 %v6743_v52  ;;  %v6759_v52 = vpack.c.bf16 %v14527_v63, %v14526_v23  ;;  %v2333_v30 = vand.u32 4294901760, %v2251_v15  ;;  %14540 = vst [vmem:[#allocation9_spill] sm:$0xff] %v9708_v60  ;;  %v2257_v23 = vld [vmem:[#allocation2 + $0x268] sm:$0xff]  ;;  %6868 = vmatprep.subr.bf16.mxu1 %v9708_v60 }
 0x193   : > { %v6755_v20 = vpack.c.bf16 %v14523_v12, %v14522_v21  ;;  %v6761_v27 = vpack.c.bf16 %v14529_v53, %v14528_v57  ;;  %v2255_v12 = vld [vmem:[#allocation2 + $0x258] sm:$0xff]  ;;  %v2345_v5 = vand.u32 4294901760, %v2257_v23  ;;  %v10103_v60 = vld [vmem:[#allocation2 + $0x3a8] sm:$0xff] }
 0x194   : > { %1759 = vmatmul.mubr.f32.gmra.mrb[2].mxu0 %v989_v45  ;;  %v6753_v45 = vpack.c.bf16 %v14521_v56, %v14520_v31  ;;  %v2253_v31 = vld [vmem:[#allocation2 + $0x248] sm:$0xff]  ;;  %v9710_v56 = vsub.f32 %v2245_v11, %v2321_v3  ;;  %v9720_v32 = vpack.c.bf16 %v2333_v30, %v2329_v50  ;;  %v9725_v63 = vsub.f32 %v2251_v15, %v2333_v30 }
 0x195   : > { %6746 = vmatpush1.bf16.msra.mxu0 %v6745_v39  ;;  %2022 = vmatprep.mubr.f32.mxu0 %v9479_v55  ;;  %v14536_v39 = vand.u32 4294901760, %v8687_v33  ;;  %v2250_v33 = vld [vmem:[#allocation2 + $0x230] sm:$0xff]  ;;  %v2337_v53 = vand.u32 4294901760, %v2253_v31  ;;  %v2347_v15 = vand.u32 4294901760, %v2256_v24 }
 0x196   : > { %6748 = vmatprep.subr.bf16.mxu0 %v6747_v14  ;;  %v2323_v14 = vand.u32 4294901760, %v2244_v44  ;;  %14541 = vst [vmem:[#allocation10_spill] sm:$0xff] %v9710_v56  ;;  %14546 = vst [vmem:[#allocation15_spill] sm:$0xff] %v9720_v32  ;;  %v2335_v57 = vand.u32 4294901760, %v2250_v33 }
 0x197   : > { %v6769_v26 = vpack.c.bf16 %v14537_v1, %v14536_v39  ;;  %14548 = vst [vmem:[#allocation17_spill] sm:$0xff] %v9725_v63  ;;  %v9735_v11 = vsub.f32 %v2253_v31, %v2337_v53 }
 0x198   : > { %v9714_v21 = vsub.f32 %v2244_v44, %v2323_v14  ;;  %v9733_v42 = vsub.f32 %v2250_v33, %v2335_v57  ;;  %v14554_v44 = vand.u32 4294901760, %v14423_v46  ;;  %v9763_v33 = vsub.f32 %v2256_v24, %v2347_v15  ;;  %v14580_v24 = vld [vmem:[#allocation57_spill] sm:$0xff] }
 0x199   : > { %6750 = vmatpush1.bf16.msra.mxu0 %v6749_v61  ;;  %v2327_v61 = vand.u32 4294901760, %v2246_v7  ;;  %14552 = vst [vmem:[#allocation25_spill] sm:$0xff] %v9735_v11 }
 0x19a   : > { %6752 = vmatprep.subr.bf16.mxu0 %v6751_v16  ;;  %v2248_v16 = vld [vmem:[#allocation2 + $0x220] sm:$0xff]  ;;  %14543 = vst [vmem:[#allocation12_spill] sm:$0xff] %v9714_v21  ;;  %14551 = vst [vmem:[#allocation23_spill] sm:$0xff] %v9733_v42 }
 0x19b   : > { %v9716_v6 = vpack.c.bf16 %v2327_v61, %v2323_v14  ;;  %v9718_v35 = vsub.f32 %v2246_v7, %v2327_v61  ;;  %v9747_v7 = vsub.f32 %v2254_v47, %v2343_v28  ;;  %14567 = vst [vmem:[#allocation45_spill] sm:$0xff] %v9763_v33  ;;  %v10155_v33 = vld [vmem:[#allocation2 + $0x3e8] sm:$0xff] }
 0x19d   : > { %6754 = vmatpush1.bf16.msra.mxu0 %v6753_v45  ;;  %v9712_v45 = vsub.f32 %v2247_v13, %v2325_v43  ;;  %14544 = vst [vmem:[#allocation13_spill] sm:$0xff] %v9716_v6  ;;  %14545 = vst [vmem:[#allocation14_spill] sm:$0xff] %v9718_v35  ;;  %6870 = vmatpush1.bf16.msra.mxu1 %v9716_v6  ;;  %v2258_v13 = vld [vmem:[#allocation2 + $0x270] sm:$0xff]  ;;  %v10084_v6 = vld [vmem:[#allocation2 + $0x380] sm:$0xff] }
 0x19e   : > { %6756 = vmatprep.subr.bf16.mxu0 %v6755_v20  ;;  %v2252_v20 = vld [vmem:[#allocation2 + $0x240] sm:$0xff]  ;;  %6872 = vmatprep.subr.bf16.mxu1 %v9720_v32  ;;  %14558 = vst [vmem:[#allocation32_spill] sm:$0xff] %v9747_v7  ;;  %v2351_v30 = vand.u32 4294901760, %v2258_v13  ;;  %v10105_v35 = vld [vmem:[#allocation2 + $0x3b8] sm:$0xff] }
 0x19f   : > { %14542 = vst [vmem:[#allocation11_spill] sm:$0xff] %v9712_v45  ;;  %v2339_v9 = vand.u32 4294901760, %v2252_v20  ;;  %v13644_v21 = vand.u32 4294901760, %v10105_v35  ;;  %v2304_v7 = vld [vmem:[#allocation2 + $0x3e0] sm:$0xff] }
 0x1a0   : > { %v9765_v31 = vsub.f32 %v2258_v13, %v2351_v30  ;;  %v14581_v13 = vand.u32 4294901760, %v14580_v24 }
 0x1a1   : > { %6758 = vmatpush1.bf16.msra.mxu0 %v6757_v29  ;;  %v9722_v29 = vsub.f32 %v2249_v25, %v2329_v50  ;;  %v9745_v43 = vsub.f32 %v2252_v20, %v2339_v9  ;;  %v9749_v25 = vsub.f32 %v2257_v23, %v2345_v5  ;;  %v9756_v50 = vpack.c.bf16 %v2343_v28, %v2339_v9  ;;  %v14571_v20 = vld [vmem:[#allocation51_spill] sm:$0xff] }
 0x1a2   : > { %6760 = vmatprep.subr.bf16.mxu0 %v6759_v52  ;;  %v2331_v52 = vand.u32 4294901760, %v2248_v16  ;;  %14568 = vst [vmem:[#allocation44_spill] sm:$0xff] %v9765_v31  ;;  %v14572_v47 = vand.u32 4294901760, %v14571_v20  ;;  %v9776_v28 = vpack.c.bf16 %v2351_v30, %v2347_v15  ;;  %v14586_v15 = vand.u32 4294901760, %v14442_v58  ;;  %v10136_v31 = vld [vmem:[#allocation2 + $0x3c0] sm:$0xff] }
 0x1a3   : > { %14547 = vst [vmem:[#allocation16_spill] sm:$0xff] %v9722_v29  ;;  %14557 = vst [vmem:[#allocation29_spill] sm:$0xff] %v9745_v43  ;;  %v14589_v30 = vand.u32 4294901760, %v14445_v0  ;;  %v14595_v58 = vand.u32 4294901760, %v14450_v17  ;;  %v14597_v0 = vand.u32 4294901760, %v14455_v2  ;;  %v14604_v17 = vand.u32 4294901760, %v14465_v18 }
 0x1a4   : > { %v9729_v62 = vpack.c.bf16 %v2335_v57, %v2331_v52  ;;  %14559 = vst [vmem:[#allocation33_spill] sm:$0xff] %v9749_v25  ;;  %14564 = vst [vmem:[#allocation34_spill] sm:$0xff] %v9756_v50  ;;  %v14606_v2 = vand.u32 4294901760, %v14468_v51  ;;  %v14613_v18 = vld [vmem:[#allocation21_spill] sm:$0xff]  ;;  %v14616_v51 = vld [vmem:[#allocation27_spill] sm:$0xff] }
 0x1a5   : > { %6762 = vmatpush1.bf16.msra.mxu0 %v6761_v27  ;;  %v2341_v27 = vand.u32 4294901760, %v2255_v12  ;;  %14577 = vst [vmem:[#allocation62_spill] sm:$0xff] %v9776_v28  ;;  %v2306_v43 = vld [vmem:[#allocation2 + $0x3f0] sm:$0xff] }
 0x1a6   : > { %6764 = vmatprep.subr.bf16.mxu0 %v6763_v37  ;;  %v2259_v37 = vld [vmem:[#allocation2 + $0x278] sm:$0xff]  ;;  %14549 = vst [vmem:[#allocation20_spill] sm:$0xff] %v9729_v62  ;;  %6874 = vmatpush1.bf16.msra.mxu1 %v9729_v62 }
 0x1a7   : > { %v9741_v1 = vpack.c.bf16 %v2341_v27, %v2337_v53  ;;  %v9743_v3 = vsub.f32 %v2255_v12, %v2341_v27  ;;  %v2349_v14 = vand.u32 4294901760, %v2259_v37  ;;  %v14575_v53 = vld [vmem:[#allocation54_spill] sm:$0xff]  ;;  %v10079_v62 = vld [vmem:[#allocation2 + $0x398] sm:$0xff] }
 0x1a8   : > { %v14576_v27 = vand.u32 4294901760, %v14575_v53  ;;  %v13635_v32 = vand.u32 4294901760, %v10079_v62 }
 0x1a9   : > { %6766 = vmatpush1.bf16.msra.mxu0 %v6765_v40  ;;  %v9731_v40 = vsub.f32 %v2248_v16, %v2331_v52  ;;  %14555 = vst [vmem:[#allocation26_spill] sm:$0xff] %v9741_v1  ;;  %14556 = vst [vmem:[#allocation28_spill] sm:$0xff] %v9743_v3  ;;  %6876 = vmatprep.subr.bf16.mxu1 %v9741_v1  ;;  %v9761_v16 = vsub.f32 %v2259_v37, %v2349_v14  ;;  %v14573_v52 = vld [vmem:[#allocation53_spill] sm:$0xff]  ;;  %v14578_v37 = vld [vmem:[#allocation56_spill] sm:$0xff] }
 0x1aa   : > { %6768 = vmatprep.subr.bf16.mxu0 %v6767_v41  ;;  %v14553_v41 = vand.u32 4294901760, %v14424_v36  ;;  %v14562_v36 = vld [vmem:[#allocation48_spill] sm:$0xff]  ;;  %v14574_v57 = vand.u32 4294901760, %v14573_v52  ;;  %6878 = vmatpush1.bf16.msra.mxu1 %v9756_v50  ;;  %v10058_v50 = vld [vmem:[#allocation2 + $0x360] sm:$0xff]  ;;  %v10077_v1 = vld [vmem:[#allocation2 + $0x388] sm:$0xff] }
 0x1ab   : > { %14550 = vst [vmem:[#allocation22_spill] sm:$0xff] %v9731_v40  ;;  %v14563_v61 = vand.u32 4294901760, %v14562_v36  ;;  %14566 = vst [vmem:[#allocation42_spill] sm:$0xff] %v9761_v16  ;;  %v14587_v36 = vld [vmem:[#allocation63_spill] sm:$0xff]  ;;  %v10157_v16 = vld [vmem:[#allocation2 + $0x3f8] sm:$0xff] }
 0x1ac   : > { %v6773_v39 = vpack.c.bf16 %v14554_v44, %v14553_v41  ;;  %v6779_v9 = vpack.c.bf16 %v14576_v27, %v14574_v57  ;;  %v14582_v44 = vld [vmem:[#allocation58_spill] sm:$0xff]  ;;  %v14594_v57 = vand.u32 4294901760, %v14451_v48  ;;  %v14596_v27 = vand.u32 4294901760, %v14456_v38 }
 0x1ad   : > { %6770 = vmatpush1.bf16.msra.mxu0 %v6769_v26  ;;  %v6775_v46 = vpack.c.bf16 %v14563_v61, %v14561_v10  ;;  %v9759_v26 = vpack.c.bf16 %v2349_v14, %v2345_v5  ;;  %v14579_v5 = vand.u32 4294901760, %v14578_v37  ;;  %v14584_v14 = vld [vmem:[#allocation60_spill] sm:$0xff]  ;;  %v14588_v61 = vand.u32 4294901760, %v14587_v36 }
 0x1ae   : > { %6772 = vmatprep.subr.bf16.mxu0 %v6771_v59  ;;  %v14569_v59 = vld [vmem:[#allocation50_spill] sm:$0xff]  ;;  %v14585_v49 = vand.u32 4294901760, %v14584_v14  ;;  %v6791_v53 = vpack.c.bf16 %v14595_v58, %v14594_v57  ;;  %v14598_v37 = vand.u32 4294901760, %v14459_v8  ;;  %v14605_v38 = vand.u32 4294901760, %v14464_v4  ;;  %v14614_v4 = vld [vmem:[#allocation7_spill] sm:$0xff]  ;;  %v14615_v36 = vld [vmem:[#allocation24_spill] sm:$0xff] }
 0x1af   : > { %14565 = vst [vmem:[#allocation35_spill] sm:$0xff] %v9759_v26  ;;  %v14570_v12 = vand.u32 4294901760, %v14569_v59  ;;  %6880 = vmatprep.subr.bf16.mxu1 %v9759_v26  ;;  %v6781_v41 = vpack.c.bf16 %v14581_v13, %v14579_v5  ;;  %v14590_v59 = vld [vmem:[#allocation66_spill] sm:$0xff]  ;;  %v14602_v13 = vld [vmem:[#allocation81_spill] sm:$0xff]  ;;  %v2445_v25 = vand.u32 4294901760, %v10157_v16 }
 0x1b0   : > { %6882 = vmatpush1.bf16.msra.mxu1 %v9776_v28  ;;  %v14599_v5 = vld [vmem:[#allocation78_spill] sm:$0xff]  ;;  %v14603_v48 = vand.u32 4294901760, %v14602_v13  ;;  %v14638_v13 = vld [vmem:[#allocation76_spill] sm:$0xff]  ;;  %14669 = vst [vmem:[#allocation66_spill] sm:$0xff] %v10155_v33 }
 0x1b1   : > { %6774 = vmatpush1.bf16.msra.mxu0 %v6773_v39  ;;  %v6777_v23 = vpack.c.bf16 %v14572_v47, %v14570_v12  ;;  %v14583_v39 = vand.u32 4294901760, %v14582_v44  ;;  %v14591_v12 = vand.u32 4294901760, %v14590_v59  ;;  %v14592_v47 = vand.u32 4294901760, %v14448_v34  ;;  %v14620_v59 = vld [vmem:[#allocation37_spill] sm:$0xff]  ;;  %v10053_v28 = vld [vmem:[#allocation2 + $0x378] sm:$0xff]  ;;  %14670 = vst [vmem:[#allocation78_spill] sm:$0xff] %v10157_v16 }
 0x1b2   : > { %6776 = vmatprep.subr.bf16.mxu0 %v6775_v46  ;;  %v6785_v46 = vpack.c.bf16 %v14588_v61, %v14586_v15  ;;  %v14600_v34 = vand.u32 4294901760, %v14599_v5  ;;  %v6799_v44 = vpack.c.bf16 %v14605_v38, %v14604_v17  ;;  %v14612_v15 = vld [vmem:[#allocation19_spill] sm:$0xff]  ;;  %v14617_v61 = vld [vmem:[#allocation30_spill] sm:$0xff]  ;;  %v14634_v5 = vld [vmem:[#allocation64_spill] sm:$0xff]  ;;  %v13623_v26 = vand.u32 4294901760, %v10053_v28 }
 0x1b3   : > { %v6783_v10 = vpack.c.bf16 %v14585_v49, %v14583_v39  ;;  %v6787_v20 = vpack.c.bf16 %v14591_v12, %v14589_v30  ;;  %v14607_v39 = vld [vmem:[#allocation87_spill] sm:$0xff]  ;;  %v14609_v49 = vld [vmem:[#allocation18_spill] sm:$0xff]  ;;  %v14619_v30 = vld [vmem:[#allocation36_spill] sm:$0xff] }
 0x1b4   : > { %v6795_v24 = vpack.c.bf16 %v14600_v34, %v14598_v37  ;;  %v14608_v8 = vand.u32 4294901760, %v14607_v39  ;;  %v14621_v12 = vld [vmem:[#allocation38_spill] sm:$0xff]  ;;  %v14633_v37 = vld [vmem:[#allocation61_spill] sm:$0xff]  ;;  %v14635_v34 = vld [vmem:[#allocation67_spill] sm:$0xff] }
 0x1b5   : > { %6778 = vmatpush1.bf16.msra.mxu0 %v6777_v23  ;;  %v14593_v23 = vand.u32 4294901760, %v14447_v22  ;;  %v14601_v22 = vand.u32 4294901760, %v14462_v54  ;;  %v14610_v54 = vld [vmem:[#allocation94_spill] sm:$0xff]  ;;  %v14641_v17 = vld [vmem:[#allocation85_spill] sm:$0xff]  ;;  %v14642_v38 = vld [vmem:[#allocation88_spill] sm:$0xff] }
 0x1b6   : > { %6780 = vmatprep.subr.bf16.mxu0 %v6779_v9  ;;  %v6793_v9 = vpack.c.bf16 %v14597_v0, %v14596_v27  ;;  %v6801_v14 = vpack.c.bf16 %v14608_v8, %v14606_v2  ;;  %v14630_v27 = vld [vmem:[#allocation52_spill] sm:$0xff]  ;;  %v14631_v0 = vld [vmem:[#allocation55_spill] sm:$0xff]  ;;  %v14644_v2 = vld [vmem:[#allocation90_spill] sm:$0xff] }
 0x1b7   : > { %v6789_v52 = vpack.c.bf16 %v14593_v23, %v14592_v47  ;;  %v14623_v47 = vld [vmem:[#allocation40_spill] sm:$0xff]  ;;  %v14624_v23 = vld [vmem:[#allocation41_spill] sm:$0xff] }
 0x1b9   : > { %6782 = vmatpush1.bf16.msra.mxu0 %v6781_v41  ;;  %v6797_v41 = vpack.c.bf16 %v14603_v48, %v14601_v22  ;;  %v14637_v22 = vld [vmem:[#allocation73_spill] sm:$0xff]  ;;  %v14639_v48 = vld [vmem:[#allocation79_spill] sm:$0xff] }
 0x1ba   : > { %6784 = vmatprep.subr.bf16.mxu0 %v6783_v10  ;;  %v14611_v10 = vld [vmem:[#allocation8_spill] sm:$0xff] }
 0x1bd   : > { %6786 = vmatpush1.bf16.msra.mxu0 %v6785_v46  ;;  %v14618_v46 = vld [vmem:[#allocation31_spill] sm:$0xff] }
 0x1be   : > { %6788 = vmatprep.subr.bf16.mxu0 %v6787_v20  ;;  %v14622_v20 = vld [vmem:[#allocation39_spill] sm:$0xff] }
 0x1c1   : > { %6790 = vmatpush1.bf16.msra.mxu0 %v6789_v52  ;;  %v14625_v52 = vld [vmem:[#allocation43_spill] sm:$0xff] }
 0x1c2   : > { %6792 = vmatprep.subr.bf16.mxu0 %v6791_v53  ;;  %v14629_v53 = vld [vmem:[#allocation49_spill] sm:$0xff] }
 0x1c5   : > { %6794 = vmatpush1.bf16.msra.mxu0 %v6793_v9  ;;  %v14632_v9 = vld [vmem:[#allocation59_spill] sm:$0xff] }
 0x1c6   : > { %6796 = vmatprep.subr.bf16.mxu0 %v6795_v24  ;;  %v14636_v24 = vld [vmem:[#allocation71_spill] sm:$0xff] }
 0x1c9   : > { %6798 = vmatpush1.bf16.msra.mxu0 %v6797_v41  ;;  %v14640_v41 = vld [vmem:[#allocation83_spill] sm:$0xff] }
 0x1ca   : > { %6800 = vmatprep.subr.bf16.mxu0 %v6799_v44  ;;  %v14643_v44 = vld [vmem:[#allocation89_spill] sm:$0xff] }
 0x1cd   : > { %6802 = vmatpush1.bf16.msra.mxu0 %v6801_v14  ;;  %v9871_v14 = vld [vmem:[#allocation2 + $0x288] sm:$0xff] }
 0x1ce   : > { %6804 = vmatprep.subr.bf16.mxu0 %v14609_v49  ;;  %v9873_v49 = vld [vmem:[#allocation2 + $0x298] sm:$0xff] }
 0x1cf   : > { %v14675_v16 = vand.u32 4294901760, %v9873_v49 }
 0x1d0   : > { %2024 = vmatmul.mubr.f32.vlgmr.msra.gmra.mrb[0].mxu0 %v14610_v54 }
 0x1d1   : > { %2030 = vmatprep.mubr.f32.mxu0 %v14611_v10  ;;  %6806 = vmatpush1.bf16.msra.mxu0 %v14612_v15  ;;  %v13568_v15 = vand.u32 4294901760, %v9871_v14 }
 0x1d2   : > { %6808 = vmatprep.subr.bf16.mxu0 %v14613_v18  ;;  %v13567_v18 = vand.u32 4294901760, %v9873_v49 }
 0x1d4   : > { %2032 = vmatmul.mubr.f32.gmra.mrb[2].mxu0 %v14614_v4 }
 0x1d5   : > { %6810 = vmatpush1.bf16.msra.mxu0 %v14615_v36  ;;  %2167 = vmatprep.mubr.f32.mxu0 %v9479_v55  ;;  %v14626_v55 = vld [vmem:[#allocation47_spill] sm:$0xff]  ;;  %v9877_v36 = vld [vmem:[#allocation2 + $0x280] sm:$0xff] }
 0x1d6   : > { %6812 = vmatprep.subr.bf16.mxu0 %v14616_v51 }
 0x1d9   : > { %6814 = vmatpush1.bf16.msra.mxu0 %v14617_v61  ;;  %v9895_v61 = vld [vmem:[#allocation2 + $0x2a8] sm:$0xff] }
 0x1da   : > { %6816 = vmatprep.subr.bf16.mxu0 %v14618_v46  ;;  %v9897_v46 = vld [vmem:[#allocation2 + $0x2b8] sm:$0xff] }
 0x1dd   : > { %6818 = vmatpush1.bf16.msra.mxu0 %v14619_v30  ;;  %v13560_v30 = vand.u32 4294901760, %v9895_v61 }
 0x1de   : > { %6820 = vmatprep.subr.bf16.mxu0 %v14620_v59  ;;  %v13559_v59 = vand.u32 4294901760, %v9897_v46 }
 0x1e1   : > { %6822 = vmatpush1.bf16.msra.mxu0 %v14621_v12  ;;  %v9902_v12 = vld [vmem:[#allocation2 + $0x2a0] sm:$0xff] }
 0x1e2   : > { %6824 = vmatprep.subr.bf16.mxu0 %v14622_v20  ;;  %v9904_v20 = vld [vmem:[#allocation2 + $0x2b0] sm:$0xff] }
 0x1e5   : > { %6826 = vmatpush1.bf16.msra.mxu0 %v14623_v47  ;;  %v13558_v47 = vand.u32 4294901760, %v9902_v12 }
 0x1e6   : > { %6828 = vmatprep.subr.bf16.mxu0 %v14624_v23  ;;  %v13557_v23 = vand.u32 4294901760, %v9904_v20 }
 0x1e9   : > { %6830 = vmatpush1.bf16.msra.mxu0 %v14625_v52  ;;  %v9913_v52 = vpack.c.bf16 %v13559_v59, %v13560_v30 }
 0x1ea   : > { %6832 = vmatprep.subr.bf16.mxu0 %v14626_v55  ;;  %v9843_v57 = vpop.f32.mrb[0].mxu1  ;;  %v9919_v55 = vpack.c.bf16 %v13557_v23, %v13558_v47  ;;  %v9973_v23 = vld [vmem:[#allocation2 + $0x308] sm:$0xff]  ;;  %v9975_v47 = vld [vmem:[#allocation2 + $0x318] sm:$0xff] }
 0x1eb   : > { %14627 = vst [vmem:[#allocation65_spill] sm:$0xff] %v9843_v57  ;;  %v9845_v58 = vpop.f32.mrb[1].mxu1  ;;  %14649 = vst [vmem:[#allocation74_spill] sm:$0xff] %v9913_v52  ;;  %v13576_v59 = vand.u32 4294901760, %v9973_v23  ;;  %v13575_v30 = vand.u32 4294901760, %v9975_v47 }
 0x1ec   : > { %14628 = vst [vmem:[#allocation69_spill] sm:$0xff] %v9845_v58  ;;  %14650 = vst [vmem:[#allocation77_spill] sm:$0xff] %v9919_v55  ;;  %v10131_v58 = vld [vmem:[#allocation2 + $0x3d8] sm:$0xff] }
 0x1ed   : > { %6834 = vmatpush1.bf16.msra.mxu0 %v14629_v53  ;;  %v9921_v53 = vld [vmem:[#allocation2 + $0x2c8] sm:$0xff]  ;;  %v13657_v57 = vand.u32 4294901760, %v10131_v58 }
 0x1ee   : > { %6836 = vmatprep.subr.bf16.mxu0 %v14630_v27  ;;  %v9923_v27 = vld [vmem:[#allocation2 + $0x2d8] sm:$0xff] }
 0x1f1   : > { %6838 = vmatpush1.bf16.msra.mxu0 %v14631_v0  ;;  %v13556_v0 = vand.u32 4294901760, %v9921_v53 }
 0x1f2   : > { %6840 = vmatprep.subr.bf16.mxu0 %v14632_v9  ;;  %v13553_v9 = vand.u32 4294901760, %v9923_v27 }
 0x1f5   : > { %6842 = vmatpush1.bf16.msra.mxu0 %v14633_v37  ;;  %v9928_v37 = vld [vmem:[#allocation2 + $0x2c0] sm:$0xff] }
 0x1f6   : > { %6844 = vmatprep.subr.bf16.mxu0 %v14634_v5  ;;  %v9930_v5 = vld [vmem:[#allocation2 + $0x2d0] sm:$0xff] }
 0x1f9   : > { %6846 = vmatpush1.bf16.msra.mxu0 %v14635_v34  ;;  %v13555_v34 = vand.u32 4294901760, %v9928_v37 }
 0x1fa   : > { %6848 = vmatprep.subr.bf16.mxu0 %v14636_v24  ;;  %v13554_v24 = vand.u32 4294901760, %v9930_v5 }
 0x1fd   : > { %6850 = vmatpush1.bf16.msra.mxu0 %v14637_v22  ;;  %v9939_v22 = vpack.c.bf16 %v13553_v9, %v13556_v0 }
 0x1fe   : > { %6852 = vmatprep.subr.bf16.mxu0 %v14638_v13  ;;  %v9945_v13 = vpack.c.bf16 %v13554_v24, %v13555_v34 }
 0x1ff   : > { %14651 = vst [vmem:[#allocation80_spill] sm:$0xff] %v9939_v22 }
 0x200   : > { %14652 = vst [vmem:[#allocation84_spill] sm:$0xff] %v9945_v13 }
 0x201   : > { %6854 = vmatpush1.bf16.msra.mxu0 %v14639_v48  ;;  %v9947_v48 = vld [vmem:[#allocation2 + $0x2e8] sm:$0xff] }
 0x202   : > { %6856 = vmatprep.subr.bf16.mxu0 %v14640_v41  ;;  %v9949_v41 = vld [vmem:[#allocation2 + $0x2f8] sm:$0xff] }
 0x205   : > { %6858 = vmatpush1.bf16.msra.mxu0 %v14641_v17  ;;  %v13563_v17 = vand.u32 4294901760, %v9947_v48 }
 0x206   : > { %6860 = vmatprep.subr.bf16.mxu0 %v14642_v38  ;;  %v13562_v38 = vand.u32 4294901760, %v9949_v41 }
 0x208   : > { %v9965_v34 = vpack.c.bf16 %v13562_v38, %v13563_v17  ;;  %v9982_v38 = vld [vmem:[#allocation2 + $0x310] sm:$0xff] }
 0x209   : > { %6862 = vmatpush1.bf16.msra.mxu0 %v14643_v44  ;;  %v9954_v44 = vld [vmem:[#allocation2 + $0x2e0] sm:$0xff] }
 0x20a   : > { %6864 = vmatprep.subr.bf16.mxu0 %v14644_v2  ;;  %v9956_v2 = vld [vmem:[#allocation2 + $0x2f0] sm:$0xff]  ;;  %v13565_v9 = vand.u32 4294901760, %v9954_v44  ;;  %14653 = vst [vmem:[#allocation82_spill] sm:$0xff] %v9965_v34 }
 0x20b   : > { %v13564_v24 = vand.u32 4294901760, %v9956_v2 }
 0x20d   : > { %6866 = vmatpush1.bf16.msra.mxu0 %v14506_v19  ;;  %v9879_v19 = vld [vmem:[#allocation2 + $0x290] sm:$0xff]  ;;  %v9971_v0 = vpack.c.bf16 %v13564_v24, %v13565_v9  ;;  %v13577_v24 = vand.u32 4294901760, %v9982_v38  ;;  %v9991_v9 = vpack.c.bf16 %v13575_v30, %v13576_v59 }
 0x20e   : > { %v10008_v30 = vld [vmem:[#allocation2 + $0x330] sm:$0xff] }
 0x20f   : > { %14654 = vst [vmem:[#allocation86_spill] sm:$0xff] %v9971_v0  ;;  %14655 = vst [vmem:[#allocation5_spill] sm:$0xff] %v9991_v9 }
 0x210   : > { %2169 = vmatmul.mubr.f32.vlgmr.msra.gmra.mrb[0].mxu0 %v14610_v54  ;;  %v13566_v54 = vand.u32 4294901760, %v9877_v36 }
 0x211   : > { %2175 = vmatprep.mubr.f32.mxu0 %v14611_v10  ;;  %v13561_v10 = vand.u32 4294901760, %v9879_v19 }
 0x213   : > { %v9893_v51 = vpack.c.bf16 %v13561_v10, %v13566_v54  ;;  %v9980_v10 = vld [vmem:[#allocation2 + $0x300] sm:$0xff] }
 0x214   : > { %2177 = vmatmul.mubr.f32.gmra.mrb[2].mxu0 %v14614_v4  ;;  %v9887_v4 = vpack.c.bf16 %v13567_v18, %v13568_v15  ;;  %v13578_v17 = vand.u32 4294901760, %v9980_v10  ;;  %v9999_v18 = vld [vmem:[#allocation2 + $0x328] sm:$0xff]  ;;  %v10001_v15 = vld [vmem:[#allocation2 + $0x338] sm:$0xff] }
 0x215   : > { %14648 = vst [vmem:[#allocation75_spill] sm:$0xff] %v9893_v51 }
 0x216   : > { %14647 = vst [vmem:[#allocation70_spill] sm:$0xff] %v9887_v4  ;;  %6884 = vmatprep.subr.bf16.mxu1 %v9887_v4  ;;  %v9997_v54 = vpack.c.bf16 %v13577_v24, %v13578_v17  ;;  %v13593_v24 = vand.u32 4294901760, %v10008_v30  ;;  %v10051_v4 = vld [vmem:[#allocation2 + $0x368] sm:$0xff] }
 0x217   : > { %6886 = vmatpush1.bf16.msra.mxu1 %v9893_v51  ;;  %v10032_v51 = vld [vmem:[#allocation2 + $0x340] sm:$0xff] }
 0x218   : > { %6888 = vmatprep.subr.bf16.mxu1 %v9913_v52  ;;  %14656 = vst [vmem:[#allocation6_spill] sm:$0xff] %v9997_v54 }
 0x21b   : > { %6890 = vmatpush1.bf16.msra.mxu1 %v9919_v55  ;;  %v10027_v55 = vld [vmem:[#allocation2 + $0x358] sm:$0xff] }
 0x21c   : > { %6892 = vmatprep.subr.bf16.mxu1 %v9939_v22  ;;  %v10025_v22 = vld [vmem:[#allocation2 + $0x348] sm:$0xff]  ;;  %v13607_v52 = vand.u32 4294901760, %v10027_v55 }
 0x21f   : > { %6894 = vmatpush1.bf16.msra.mxu1 %v9945_v13  ;;  %v10006_v13 = vld [vmem:[#allocation2 + $0x320] sm:$0xff] }
 0x220   : > { %6896 = vmatprep.subr.bf16.mxu1 %v9965_v34  ;;  %v13591_v34 = vand.u32 4294901760, %v10001_v15  ;;  %v13594_v59 = vand.u32 4294901760, %v10006_v13 }
 0x223   : > { %6898 = vmatpush1.bf16.msra.mxu1 %v9971_v0  ;;  %v13592_v0 = vand.u32 4294901760, %v9999_v18 }
 0x224   : > { %v9867_v39 = vpop.f32.mrb[2].mxu1  ;;  %6900 = vmatprep.subr.bf16.mxu1 %v9991_v9  ;;  %v10023_v9 = vpack.c.bf16 %v13593_v24, %v13594_v59 }
 0x225   : > { %14645 = vst [vmem:[#allocation68_spill] sm:$0xff] %v9867_v39  ;;  %v9869_v8 = vpop.f32.mrb[3].mxu1  ;;  %v10017_v17 = vpack.c.bf16 %v13591_v34, %v13592_v0  ;;  %v10034_v34 = vld [vmem:[#allocation2 + $0x350] sm:$0xff]  ;;  %v13610_v0 = vand.u32 4294901760, %v10032_v51  ;;  %v10129_v39 = vld [vmem:[#allocation2 + $0x3c8] sm:$0xff] }
 0x226   : > { %14646 = vst [vmem:[#allocation72_spill] sm:$0xff] %v9869_v8  ;;  %14658 = vst [vmem:[#allocation46_spill] sm:$0xff] %v10023_v9  ;;  %v13609_v24 = vand.u32 4294901760, %v10034_v34  ;;  %v10110_v8 = vld [vmem:[#allocation2 + $0x3a0] sm:$0xff] }
 0x227   : > { %6902 = vmatpush1.bf16.msra.mxu1 %v9997_v54  ;;  %14657 = vst [vmem:[#allocation91_spill] sm:$0xff] %v10017_v17  ;;  %v13608_v54 = vand.u32 4294901760, %v10025_v22 }
 0x228   : > { %6904 = vmatprep.subr.bf16.mxu1 %v10017_v17  ;;  %v10049_v17 = vpack.c.bf16 %v13609_v24, %v13610_v0 }
 0x229   : > { %v10043_v59 = vpack.c.bf16 %v13607_v52, %v13608_v54  ;;  %v10060_v52 = vld [vmem:[#allocation2 + $0x370] sm:$0xff]  ;;  %v13626_v54 = vand.u32 4294901760, %v10058_v50 }
 0x22a   : > { %14660 = vst [vmem:[#allocation50_spill] sm:$0xff] %v10049_v17  ;;  %v13625_v24 = vand.u32 4294901760, %v10060_v52 }
 0x22b   : > { %6906 = vmatpush1.bf16.msra.mxu1 %v10023_v9  ;;  %14659 = vst [vmem:[#allocation48_spill] sm:$0xff] %v10043_v59  ;;  %v13624_v9 = vand.u32 4294901760, %v10051_v4 }
 0x22c   : > { %6908 = vmatprep.subr.bf16.mxu1 %v10043_v59  ;;  %v10075_v59 = vpack.c.bf16 %v13625_v24, %v13626_v54 }
 0x22d   : > { %v10069_v0 = vpack.c.bf16 %v13623_v26, %v13624_v9  ;;  %v10086_v26 = vld [vmem:[#allocation2 + $0x390] sm:$0xff]  ;;  %v13638_v9 = vand.u32 4294901760, %v10084_v6 }
 0x22e   : > { %14662 = vst [vmem:[#allocation53_spill] sm:$0xff] %v10075_v59  ;;  %v13637_v24 = vand.u32 4294901760, %v10086_v26 }
 0x22f   : > { %6910 = vmatpush1.bf16.msra.mxu1 %v10049_v17  ;;  %14661 = vst [vmem:[#allocation51_spill] sm:$0xff] %v10069_v0  ;;  %v13636_v17 = vand.u32 4294901760, %v10077_v1 }
 0x230   : > { %6912 = vmatprep.subr.bf16.mxu1 %v10069_v0  ;;  %v10101_v0 = vpack.c.bf16 %v13637_v24, %v13638_v9 }
 0x231   : > { %v10095_v54 = vpack.c.bf16 %v13635_v32, %v13636_v17  ;;  %v10112_v32 = vld [vmem:[#allocation2 + $0x3b0] sm:$0xff]  ;;  %v13647_v17 = vand.u32 4294901760, %v10110_v8 }
 0x232   : > { %14664 = vst [vmem:[#allocation56_spill] sm:$0xff] %v10101_v0  ;;  %v13646_v24 = vand.u32 4294901760, %v10112_v32 }
 0x233   : > { %6914 = vmatpush1.bf16.msra.mxu1 %v10075_v59  ;;  %14663 = vst [vmem:[#allocation54_spill] sm:$0xff] %v10095_v54  ;;  %v13645_v59 = vand.u32 4294901760, %v10103_v60 }
 0x234   : > { %6916 = vmatprep.subr.bf16.mxu1 %v10095_v54  ;;  %v10127_v54 = vpack.c.bf16 %v13646_v24, %v13647_v17 }
 0x235   : > { %v10121_v9 = vpack.c.bf16 %v13644_v21, %v13645_v59  ;;  %v10138_v21 = vld [vmem:[#allocation2 + $0x3d0] sm:$0xff]  ;;  %v13660_v59 = vand.u32 4294901760, %v10136_v31 }
 0x236   : > { %14666 = vst [vmem:[#allocation58_spill] sm:$0xff] %v10127_v54  ;;  %v13659_v24 = vand.u32 4294901760, %v10138_v21 }
 0x237   : > { %6918 = vmatpush1.bf16.msra.mxu1 %v10101_v0  ;;  %14665 = vst [vmem:[#allocation57_spill] sm:$0xff] %v10121_v9  ;;  %v13658_v0 = vand.u32 4294901760, %v10129_v39 }
 0x238   : > { %6920 = vmatprep.subr.bf16.mxu1 %v10121_v9  ;;  %v10153_v9 = vpack.c.bf16 %v13659_v24, %v13660_v59  ;;  %v2443_v24 = vand.u32 4294901760, %v2304_v7  ;;  %v2447_v59 = vand.u32 4294901760, %v2306_v43 }
 0x239   : > { %v10147_v17 = vpack.c.bf16 %v13657_v57, %v13658_v0  ;;  %v13673_v57 = vand.u32 4294901760, %v9710_v56  ;;  %v13674_v0 = vand.u32 4294901760, %v9712_v45 }
 0x23a   : > { %14668 = vst [vmem:[#allocation63_spill] sm:$0xff] %v10153_v9  ;;  %v10173_v42 = vpack.c.bf16 %v2447_v59, %v2443_v24 }
 0x23b   : > { %6922 = vmatpush1.bf16.msra.mxu1 %v10127_v54  ;;  %14667 = vst [vmem:[#allocation60_spill] sm:$0xff] %v10147_v17  ;;  %v2441_v54 = vand.u32 4294901760, %v10155_v33  ;;  %v2497_v11 = vsub.f32 %v9712_v45, %v13674_v0  ;;  %v10184_v33 = vsub.f32 %v9873_v49, %v14675_v16  ;;  %v14678_v45 = vand.u32 4294901760, %v9879_v19 }
 0x23c   : > { %6924 = vmatprep.subr.bf16.mxu1 %v10147_v17  ;;  %v2485_v17 = vsub.f32 %v9710_v56, %v13673_v57  ;;  %14672 = vst [vmem:[#allocation87_spill] sm:$0xff] %v10173_v42  ;;  %v14676_v57 = vand.u32 4294901760, %v9877_v36  ;;  %v14681_v16 = vand.u32 4294901760, %v9897_v46  ;;  %v14751_v56 = vld [vmem:[#allocation16_spill] sm:$0xff] }
 0x23d   : > { %v10165_v3 = vpack.c.bf16 %v2445_v25, %v2441_v54  ;;  %v2498_v63 = vand.u32 4294901760, %v2497_v11  ;;  %v14679_v11 = vand.u32 4294901760, %v9895_v61 }
 0x23e   : > { %v2486_v40 = vand.u32 4294901760, %v2485_v17  ;;  %v10189_v0 = vsub.f32 %v9877_v36, %v14676_v57  ;;  %v10194_v17 = vsub.f32 %v9879_v19, %v14678_v45  ;;  %v10205_v49 = vsub.f32 %v9897_v46, %v14681_v16 }
 0x23f   : > { %6926 = vmatpush1.bf16.msra.mxu1 %v10153_v9  ;;  %14671 = vst [vmem:[#allocation81_spill] sm:$0xff] %v10165_v3  ;;  %v14673_v9 = vand.u32 4294901760, %v9871_v14  ;;  %v14682_v57 = vand.u32 4294901760, %v9902_v12  ;;  %v14683_v45 = vand.u32 4294901760, %v9904_v20  ;;  %v14686_v16 = vand.u32 4294901760, %v9928_v37 }
 0x240   : > { %6928 = vmatprep.subr.bf16.mxu1 %v10165_v3  ;;  %14677 = vst [vmem:[#allocation94_spill] sm:$0xff] %v10189_v0  ;;  %v10403_v3 = vsub.f32 %v2304_v7, %v2443_v24  ;;  %v14756_v7 = vld [vmem:[#allocation28_spill] sm:$0xff] }
 0x241   : > { %v10179_v29 = vsub.f32 %v9871_v14, %v14673_v9  ;;  %v10200_v14 = vsub.f32 %v9895_v61, %v14679_v11  ;;  %v10210_v36 = vsub.f32 %v9902_v12, %v14682_v57  ;;  %v10215_v19 = vsub.f32 %v9904_v20, %v14683_v45 }
 0x242   : > { %v14684_v9 = vand.u32 4294901760, %v9921_v53  ;;  %v14685_v11 = vand.u32 4294901760, %v9923_v27  ;;  %v10230_v12 = vsub.f32 %v9928_v37, %v14686_v16  ;;  %v14687_v57 = vand.u32 4294901760, %v9930_v5  ;;  %14749 = vst [vmem:[#allocation85_spill] sm:$0xff] %v10403_v3 }
 0x243   : > { %14674 = vst [vmem:[#allocation18_spill] sm:$0xff] %v10179_v29  ;;  %6930 = vmatpush1.bf16.msra.mxu1 %v10173_v42  ;;  %14680 = vst [vmem:[#allocation8_spill] sm:$0xff] %v10200_v14  ;;  %v14688_v45 = vand.u32 4294901760, %v9947_v48  ;;  %v14691_v16 = vand.u32 4294901760, %v9956_v2 }
 0x244   : > { %v10220_v61 = vsub.f32 %v9921_v53, %v14684_v9  ;;  %v10225_v46 = vsub.f32 %v9923_v27, %v14685_v11  ;;  %v10235_v20 = vsub.f32 %v9930_v5, %v14687_v57  ;;  %v14689_v9 = vand.u32 4294901760, %v9949_v41 }
 0x245   : > { %v10240_v53 = vsub.f32 %v9947_v48, %v14688_v45  ;;  %v14690_v11 = vand.u32 4294901760, %v9954_v44  ;;  %v10255_v5 = vsub.f32 %v9956_v2, %v14691_v16  ;;  %v14693_v57 = vand.u32 4294901760, %v9973_v23 }
 0x246   : > { %v10245_v27 = vsub.f32 %v9949_v41, %v14689_v9  ;;  %v14695_v45 = vand.u32 4294901760, %v9975_v47  ;;  %v14697_v9 = vand.u32 4294901760, %v9980_v10  ;;  %v14701_v16 = vand.u32 4294901760, %v9999_v18 }
 0x247   : > { %v10250_v37 = vsub.f32 %v9954_v44, %v14690_v11  ;;  %14692 = vst [vmem:[#allocation19_spill] sm:$0xff] %v10255_v5  ;;  %v10260_v48 = vsub.f32 %v9973_v23, %v14693_v57  ;;  %v14699_v11 = vand.u32 4294901760, %v9982_v38  ;;  %v14703_v57 = vand.u32 4294901760, %v10001_v15 }
 0x248   : > { %v10265_v41 = vsub.f32 %v9975_v47, %v14695_v45  ;;  %v10270_v44 = vsub.f32 %v9980_v10, %v14697_v9  ;;  %v10280_v23 = vsub.f32 %v9999_v18, %v14701_v16  ;;  %v14705_v45 = vand.u32 4294901760, %v10006_v13 }
 0x249   : > { %14694 = vst [vmem:[#allocation21_spill] sm:$0xff] %v10260_v48  ;;  %v10275_v2 = vsub.f32 %v9982_v38, %v14699_v11  ;;  %v10285_v47 = vsub.f32 %v10001_v15, %v14703_v57  ;;  %v14707_v9 = vand.u32 4294901760, %v10008_v30  ;;  %v14709_v11 = vand.u32 4294901760, %v10025_v22 }
 0x24a   : > { %14696 = vst [vmem:[#allocation7_spill] sm:$0xff] %v10265_v41  ;;  %14698 = vst [vmem:[#allocation24_spill] sm:$0xff] %v10270_v44  ;;  %v10290_v10 = vsub.f32 %v10006_v13, %v14705_v45  ;;  %v14711_v16 = vand.u32 4294901760, %v10027_v55  ;;  %v14713_v57 = vand.u32 4294901760, %v10032_v51  ;;  %v14715_v45 = vand.u32 4294901760, %v10034_v34 }
 0x24b   : > { %14700 = vst [vmem:[#allocation27_spill] sm:$0xff] %v10275_v2  ;;  %14702 = vst [vmem:[#allocation30_spill] sm:$0xff] %v10280_v23  ;;  %v10295_v38 = vsub.f32 %v10008_v30, %v14707_v9  ;;  %v10300_v18 = vsub.f32 %v10025_v22, %v14709_v11  ;;  %v14717_v9 = vand.u32 4294901760, %v10051_v4  ;;  %v14719_v11 = vand.u32 4294901760, %v10053_v28 }
 0x24c   : > { %14704 = vst [vmem:[#allocation31_spill] sm:$0xff] %v10285_v47  ;;  %14706 = vst [vmem:[#allocation36_spill] sm:$0xff] %v10290_v10  ;;  %v10305_v15 = vsub.f32 %v10027_v55, %v14711_v16  ;;  %v10310_v13 = vsub.f32 %v10032_v51, %v14713_v57  ;;  %v10315_v30 = vsub.f32 %v10034_v34, %v14715_v45  ;;  %v14721_v16 = vand.u32 4294901760, %v10058_v50 }
 0x24d   : > { %14708 = vst [vmem:[#allocation37_spill] sm:$0xff] %v10295_v38  ;;  %14710 = vst [vmem:[#allocation38_spill] sm:$0xff] %v10300_v18  ;;  %v10320_v22 = vsub.f32 %v10051_v4, %v14717_v9  ;;  %v10325_v55 = vsub.f32 %v10053_v28, %v14719_v11  ;;  %v14723_v57 = vand.u32 4294901760, %v10060_v52  ;;  %v14725_v45 = vand.u32 4294901760, %v10077_v1 }
 0x24e   : > { %14712 = vst [vmem:[#allocation39_spill] sm:$0xff] %v10305_v15  ;;  %14714 = vst [vmem:[#allocation40_spill] sm:$0xff] %v10310_v13  ;;  %v10330_v51 = vsub.f32 %v10058_v50, %v14721_v16  ;;  %v14727_v9 = vand.u32 4294901760, %v10079_v62  ;;  %v14729_v11 = vand.u32 4294901760, %v10084_v6  ;;  %v14730_v16 = vand.u32 4294901760, %v10086_v26 }
 0x24f   : > { %14716 = vst [vmem:[#allocation41_spill] sm:$0xff] %v10315_v30  ;;  %14718 = vst [vmem:[#allocation43_spill] sm:$0xff] %v10320_v22  ;;  %v10335_v34 = vsub.f32 %v10060_v52, %v14723_v57  ;;  %v10340_v4 = vsub.f32 %v10077_v1, %v14725_v45  ;;  %v14731_v57 = vand.u32 4294901760, %v10103_v60  ;;  %v14733_v45 = vand.u32 4294901760, %v10105_v35 }
 0x250   : > { %14720 = vst [vmem:[#allocation47_spill] sm:$0xff] %v10325_v55  ;;  %14722 = vst [vmem:[#allocation49_spill] sm:$0xff] %v10330_v51  ;;  %v10345_v28 = vsub.f32 %v10079_v62, %v14727_v9  ;;  %v10350_v50 = vsub.f32 %v10084_v6, %v14729_v11  ;;  %v10355_v52 = vsub.f32 %v10086_v26, %v14730_v16  ;;  %v14735_v9 = vand.u32 4294901760, %v10110_v8 }
 0x251   : > { %14724 = vst [vmem:[#allocation52_spill] sm:$0xff] %v10335_v34  ;;  %14726 = vst [vmem:[#allocation55_spill] sm:$0xff] %v10340_v4  ;;  %v10360_v1 = vsub.f32 %v10103_v60, %v14731_v57  ;;  %v10365_v62 = vsub.f32 %v10105_v35, %v14733_v45  ;;  %v14736_v11 = vand.u32 4294901760, %v10112_v32  ;;  %v14737_v16 = vand.u32 4294901760, %v10129_v39 }
 0x252   : > { %14728 = vst [vmem:[#allocation59_spill] sm:$0xff] %v10345_v28  ;;  %v10370_v6 = vsub.f32 %v10110_v8, %v14735_v9  ;;  %v14739_v57 = vand.u32 4294901760, %v10131_v58  ;;  %v14741_v45 = vand.u32 4294901760, %v10136_v31  ;;  %v14743_v9 = vand.u32 4294901760, %v10138_v21 }
 0x253   : > { %14732 = vst [vmem:[#allocation61_spill] sm:$0xff] %v10360_v1  ;;  %14734 = vst [vmem:[#allocation64_spill] sm:$0xff] %v10365_v62  ;;  %v10375_v26 = vsub.f32 %v10112_v32, %v14736_v11  ;;  %v10380_v60 = vsub.f32 %v10129_v39, %v14737_v16  ;;  %v14745_v11 = vld [vmem:[#allocation66_spill] sm:$0xff]  ;;  %v14754_v62 = vld [vmem:[#allocation23_spill] sm:$0xff] }
 0x254   : > { %v10385_v35 = vsub.f32 %v10131_v58, %v14739_v57  ;;  %v10390_v8 = vsub.f32 %v10136_v31, %v14741_v45  ;;  %v10395_v32 = vsub.f32 %v10138_v21, %v14743_v9  ;;  %v10398_v42 = vsub.f32 %v14745_v11, %v2441_v54  ;;  %v14747_v39 = vld [vmem:[#allocation78_spill] sm:$0xff]  ;;  %v14752_v31 = vld [vmem:[#allocation17_spill] sm:$0xff] }
 0x255   : > { %14738 = vst [vmem:[#allocation67_spill] sm:$0xff] %v10380_v60  ;;  %v10401_v16 = vsub.f32 %v14747_v39, %v2445_v25  ;;  %v10405_v58 = vsub.f32 %v2306_v43, %v2447_v59  ;;  %v6931_v57 = vpack.c.bf16 %v2498_v63, %v2486_v40  ;;  %v13688_v45 = vand.u32 4294901760, %v14752_v31  ;;  %v14755_v9 = vld [vmem:[#allocation25_spill] sm:$0xff] }
 0x256   : > { %14740 = vst [vmem:[#allocation71_spill] sm:$0xff] %v10385_v35  ;;  %14742 = vst [vmem:[#allocation73_spill] sm:$0xff] %v10390_v8  ;;  %v13689_v35 = vand.u32 4294901760, %v14751_v56  ;;  %v14753_v8 = vld [vmem:[#allocation22_spill] sm:$0xff]  ;;  %v13695_v21 = vand.u32 4294901760, %v14754_v62  ;;  %v13700_v54 = vand.u32 4294901760, %v14756_v7 }
 0x257   : > { %14744 = vst [vmem:[#allocation76_spill] sm:$0xff] %v10395_v32  ;;  %14746 = vst [vmem:[#allocation79_spill] sm:$0xff] %v10398_v42  ;;  %v13691_v60 = vand.u32 4294901760, %v14753_v8  ;;  %v13697_v32 = vand.u32 4294901760, %v14755_v9  ;;  %6932 = vmatprep.subr.bf16.mxu1 %v6931_v57  ;;  %v14757_v43 = vld [vmem:[#allocation29_spill] sm:$0xff]  ;;  %v2521_v63 = vsub.f32 %v14752_v31, %v13688_v45 }
 0x258   : > { %14748 = vst [vmem:[#allocation83_spill] sm:$0xff] %v10401_v16  ;;  %14750 = vst [vmem:[#allocation88_spill] sm:$0xff] %v10405_v58  ;;  %v2509_v25 = vsub.f32 %v14751_v56, %v13689_v35  ;;  %v13702_v59 = vand.u32 4294901760, %v14757_v43  ;;  %v2527_v24 = vsub.f32 %v14754_v62, %v13695_v21  ;;  %v2545_v57 = vsub.f32 %v14756_v7, %v13700_v54  ;;  %v14758_v35 = vld [vmem:[#allocation32_spill] sm:$0xff]  ;;  %v14762_v7 = vld [vmem:[#allocation42_spill] sm:$0xff] }
 0x259   : > { %v2515_v40 = vsub.f32 %v14753_v8, %v13691_v60  ;;  %v2533_v11 = vsub.f32 %v14755_v9, %v13697_v32  ;;  %v13706_v58 = vand.u32 4294901760, %v14758_v35  ;;  %v2522_v60 = vand.u32 4294901760, %v2521_v63  ;;  %v14759_v32 = vld [vmem:[#allocation33_spill] sm:$0xff] }
 0x25a   : > { %v2510_v39 = vand.u32 4294901760, %v2509_v25  ;;  %v2539_v45 = vsub.f32 %v14757_v43, %v13702_v59  ;;  %v2528_v16 = vand.u32 4294901760, %v2527_v24  ;;  %v2546_v21 = vand.u32 4294901760, %v2545_v57  ;;  %v14763_v43 = vld [vmem:[#allocation45_spill] sm:$0xff]  ;;  %v14765_v24 = vld [vmem:[#allocation44_spill] sm:$0xff] }
 0x25b   : > { %v2516_v3 = vand.u32 4294901760, %v2515_v40  ;;  %v2534_v42 = vand.u32 4294901760, %v2533_v11  ;;  %v2551_v25 = vsub.f32 %v14758_v35, %v13706_v58  ;;  %v13705_v30 = vand.u32 4294901760, %v14759_v32 }
 0x25c   : > { %v2540_v1 = vand.u32 4294901760, %v2539_v45  ;;  %v10440_v13 = vpack.c.bf16 %v2522_v60, %v2510_v39  ;;  %v13707_v59 = vand.u32 4294901760, %v14762_v7  ;;  %v13708_v9 = vand.u32 4294901760, %v14763_v43 }
 0x25d   : > { %v10442_v54 = vpack.c.bf16 %v2528_v16, %v2516_v3  ;;  %v10446_v63 = vpack.c.bf16 %v2546_v21, %v2534_v42  ;;  %v2552_v40 = vand.u32 4294901760, %v2551_v25  ;;  %v2557_v45 = vsub.f32 %v14759_v32, %v13705_v30 }
 0x25e   : > { %14760 = vst [vmem:[#allocation89_spill] sm:$0xff] %v10440_v13  ;;  %v13709_v11 = vand.u32 4294901760, %v14765_v24  ;;  %v2569_v60 = vsub.f32 %v14762_v7, %v13707_v59  ;;  %v2563_v3 = vsub.f32 %v14763_v43, %v13708_v9  ;;  %v13710_v16 = vand.u32 4294901760, %v10179_v29  ;;  %v14789_v43 = vld [vmem:[#allocation72_spill] sm:$0xff] }
 0x25f   : > { %14761 = vst [vmem:[#allocation90_spill] sm:$0xff] %v10442_v54  ;;  %14764 = vst [vmem:[#allocation66_spill] sm:$0xff] %v10446_v63  ;;  %v13712_v42 = vand.u32 4294901760, %v10184_v33  ;;  %v10460_v21 = vpack.c.bf16 %v2552_v40, %v2540_v1  ;;  %v2558_v39 = vand.u32 4294901760, %v2557_v45  ;;  %v13711_v25 = vand.u32 4294901760, %v10189_v0 }
 0x260   : > { %v2575_v57 = vsub.f32 %v14765_v24, %v13709_v11  ;;  %v2570_v30 = vand.u32 4294901760, %v2569_v60  ;;  %v2564_v58 = vand.u32 4294901760, %v2563_v3  ;;  %v2581_v59 = vsub.f32 %v10179_v29, %v13710_v16 }
 0x261   : > { %14766 = vst [vmem:[#allocation78_spill] sm:$0xff] %v10460_v21  ;;  %v2593_v9 = vsub.f32 %v10184_v33, %v13712_v42  ;;  %v2587_v1 = vsub.f32 %v10189_v0, %v13711_v25  ;;  %v13713_v40 = vand.u32 4294901760, %v10194_v17  ;;  %v13715_v45 = vand.u32 4294901760, %v10200_v14 }
 0x262   : > { %v2576_v63 = vand.u32 4294901760, %v2575_v57  ;;  %v10477_v11 = vpack.c.bf16 %v2570_v30, %v2558_v39  ;;  %v2582_v60 = vand.u32 4294901760, %v2581_v59  ;;  %v13714_v21 = vand.u32 4294901760, %v10205_v49 }
 0x263   : > { %v2594_v3 = vand.u32 4294901760, %v2593_v9  ;;  %v2588_v54 = vand.u32 4294901760, %v2587_v1  ;;  %v2599_v57 = vsub.f32 %v10194_v17, %v13713_v40  ;;  %v2605_v25 = vsub.f32 %v10200_v14, %v13715_v45 }
 0x264   : > { %14767 = vst [vmem:[#allocation16_spill] sm:$0xff] %v10477_v11  ;;  %v10480_v16 = vpack.c.bf16 %v2576_v63, %v2564_v58  ;;  %v2617_v30 = vsub.f32 %v10205_v49, %v13714_v21  ;;  %v13716_v9 = vand.u32 4294901760, %v10210_v36  ;;  %v13717_v58 = vand.u32 4294901760, %v10215_v19 }
 0x265   : > { %v10488_v42 = vpack.c.bf16 %v2594_v3, %v2582_v60  ;;  %v2600_v59 = vand.u32 4294901760, %v2599_v57  ;;  %v2606_v63 = vand.u32 4294901760, %v2605_v25  ;;  %v13718_v39 = vand.u32 4294901760, %v10220_v61 }
 0x266   : > { %14768 = vst [vmem:[#allocation17_spill] sm:$0xff] %v10480_v16  ;;  %v13719_v1 = vand.u32 4294901760, %v10225_v46  ;;  %v2618_v40 = vand.u32 4294901760, %v2617_v30  ;;  %v2611_v60 = vsub.f32 %v10210_v36, %v13716_v9  ;;  %v2623_v3 = vsub.f32 %v10215_v19, %v13717_v58 }
 0x267   : > { %14769 = vst [vmem:[#allocation32_spill] sm:$0xff] %v10488_v42  ;;  %v13722_v21 = vand.u32 4294901760, %v10230_v12  ;;  %v10504_v45 = vpack.c.bf16 %v2600_v59, %v2588_v54  ;;  %v2629_v25 = vsub.f32 %v10220_v61, %v13718_v39  ;;  %v13720_v30 = vand.u32 4294901760, %v10235_v20 }
 0x268   : > { %v2641_v57 = vsub.f32 %v10225_v46, %v13719_v1  ;;  %v10513_v42 = vpack.c.bf16 %v2618_v40, %v2606_v63  ;;  %v2612_v9 = vand.u32 4294901760, %v2611_v60  ;;  %v2624_v16 = vand.u32 4294901760, %v2623_v3 }
 0x269   : > { %14770 = vst [vmem:[#allocation33_spill] sm:$0xff] %v10504_v45  ;;  %v2635_v58 = vsub.f32 %v10230_v12, %v13722_v21  ;;  %v2630_v54 = vand.u32 4294901760, %v2629_v25  ;;  %v2647_v39 = vsub.f32 %v10235_v20, %v13720_v30  ;;  %v13721_v45 = vand.u32 4294901760, %v10240_v53 }
 0x26a   : > { %14771 = vst [vmem:[#allocation42_spill] sm:$0xff] %v10513_v42  ;;  %v2642_v59 = vand.u32 4294901760, %v2641_v57  ;;  %v10522_v11 = vpack.c.bf16 %v2624_v16, %v2612_v9  ;;  %v13723_v40 = vand.u32 4294901760, %v10245_v27  ;;  %v13724_v63 = vand.u32 4294901760, %v10250_v37 }
 0x26b   : > { %v2636_v1 = vand.u32 4294901760, %v2635_v58  ;;  %v2648_v3 = vand.u32 4294901760, %v2647_v39  ;;  %v2653_v25 = vsub.f32 %v10240_v53, %v13721_v45  ;;  %v13725_v57 = vand.u32 4294901760, %v10255_v5 }
 0x26c   : > { %14772 = vst [vmem:[#allocation44_spill] sm:$0xff] %v10522_v11  ;;  %v10526_v60 = vpack.c.bf16 %v2642_v59, %v2630_v54  ;;  %v2665_v30 = vsub.f32 %v10245_v27, %v13723_v40  ;;  %v2659_v16 = vsub.f32 %v10250_v37, %v13724_v63  ;;  %v13726_v9 = vand.u32 4294901760, %v10260_v48 }
 0x26d   : > { %v13728_v58 = vand.u32 4294901760, %v10265_v41  ;;  %v10540_v54 = vpack.c.bf16 %v2648_v3, %v2636_v1  ;;  %v2654_v39 = vand.u32 4294901760, %v2653_v25  ;;  %v2671_v59 = vsub.f32 %v10255_v5, %v13725_v57 }
 0x26e   : > { %14773 = vst [vmem:[#allocation95_spill] sm:$0xff] %v10526_v60  ;;  %v13727_v45 = vand.u32 4294901760, %v10270_v44  ;;  %v2666_v21 = vand.u32 4294901760, %v2665_v30  ;;  %v2660_v60 = vand.u32 4294901760, %v2659_v16  ;;  %v2677_v40 = vsub.f32 %v10260_v48, %v13726_v9 }
 0x26f   : > { %14774 = vst [vmem:[#allocation96_spill] sm:$0xff] %v10540_v54  ;;  %v2689_v63 = vsub.f32 %v10265_v41, %v13728_v58  ;;  %v2672_v11 = vand.u32 4294901760, %v2671_v59  ;;  %v13729_v3 = vand.u32 4294901760, %v10275_v2  ;;  %v13731_v25 = vand.u32 4294901760, %v10280_v23 }
 0x270   : > { %v2683_v1 = vsub.f32 %v10270_v44, %v13727_v45  ;;  %v10557_v57 = vpack.c.bf16 %v2666_v21, %v2654_v39  ;;  %v2678_v30 = vand.u32 4294901760, %v2677_v40  ;;  %v13730_v54 = vand.u32 4294901760, %v10285_v47 }
 0x271   : > { %v2690_v16 = vand.u32 4294901760, %v2689_v63  ;;  %v10560_v9 = vpack.c.bf16 %v2672_v11, %v2660_v60  ;;  %v2695_v59 = vsub.f32 %v10275_v2, %v13729_v3  ;;  %v2701_v45 = vsub.f32 %v10280_v23, %v13731_v25 }
 0x272   : > { %14775 = vst [vmem:[#allocation97_spill] sm:$0xff] %v10557_v57  ;;  %v2684_v42 = vand.u32 4294901760, %v2683_v1  ;;  %v2713_v21 = vsub.f32 %v10285_v47, %v13730_v54  ;;  %v13732_v40 = vand.u32 4294901760, %v10290_v10  ;;  %v13733_v11 = vand.u32 4294901760, %v10295_v38 }
 0x273   : > { %14776 = vst [vmem:[#allocation98_spill] sm:$0xff] %v10560_v9  ;;  %v10568_v58 = vpack.c.bf16 %v2690_v16, %v2678_v30  ;;  %v2696_v63 = vand.u32 4294901760, %v2695_v59  ;;  %v2702_v60 = vand.u32 4294901760, %v2701_v45  ;;  %v13738_v39 = vand.u32 4294901760, %v10300_v18 }
 0x274   : > { %v13734_v1 = vand.u32 4294901760, %v10305_v15  ;;  %v2714_v3 = vand.u32 4294901760, %v2713_v21  ;;  %v2707_v30 = vsub.f32 %v10290_v10, %v13732_v40  ;;  %v2719_v16 = vsub.f32 %v10295_v38, %v13733_v11 }
 0x275   : > { %14777 = vst [vmem:[#allocation99_spill] sm:$0xff] %v10568_v58  ;;  %v10583_v54 = vpack.c.bf16 %v2696_v63, %v2684_v42  ;;  %v2725_v59 = vsub.f32 %v10300_v18, %v13738_v39  ;;  %v13737_v57 = vand.u32 4294901760, %v10320_v22  ;;  %v13735_v42 = vand.u32 4294901760, %v10325_v55 }
 0x276   : > { %v2737_v45 = vsub.f32 %v10305_v15, %v13734_v1  ;;  %v10591_v25 = vpack.c.bf16 %v2714_v3, %v2702_v60  ;;  %v2708_v21 = vand.u32 4294901760, %v2707_v30  ;;  %v2720_v58 = vand.u32 4294901760, %v2719_v16 }
 0x277   : > { %v2726_v9 = vand.u32 4294901760, %v2725_v59  ;;  %v13736_v63 = vand.u32 4294901760, %v10330_v51  ;;  %v2749_v1 = vsub.f32 %v10320_v22, %v13737_v57  ;;  %v13739_v3 = vand.u32 4294901760, %v10335_v34 }
 0x278   : > { %14778 = vst [vmem:[#allocation100_spill] sm:$0xff] %v10591_v25  ;;  %v2738_v40 = vand.u32 4294901760, %v2737_v45  ;;  %v10594_v13 = vpack.c.bf16 %v2720_v58, %v2708_v21  ;;  %v2761_v60 = vsub.f32 %v10325_v55, %v13735_v42  ;;  %v13740_v30 = vand.u32 4294901760, %v10340_v4 }
 0x279   : > { %v2755_v58 = vsub.f32 %v10330_v51, %v13736_v63  ;;  %v13741_v16 = vand.u32 4294901760, %v10345_v28  ;;  %v13742_v59 = vand.u32 4294901760, %v10350_v50  ;;  %v13743_v39 = vand.u32 4294901760, %v10355_v52 }
 0x27a   : > { %14779 = vst [vmem:[#allocation101_spill] sm:$0xff] %v10594_v13  ;;  %v10598_v11 = vpack.c.bf16 %v2738_v40, %v2726_v9  ;;  %v2750_v9 = vand.u32 4294901760, %v2749_v1  ;;  %v2767_v40 = vsub.f32 %v10335_v34, %v13739_v3  ;;  %v2762_v45 = vand.u32 4294901760, %v2761_v60 }
 0x27b   : > { %v2756_v21 = vand.u32 4294901760, %v2755_v58  ;;  %v2773_v42 = vsub.f32 %v10340_v4, %v13740_v30  ;;  %v2785_v63 = vsub.f32 %v10345_v28, %v13741_v16  ;;  %v2779_v1 = vsub.f32 %v10350_v50, %v13742_v59 }
 0x27c   : > { %14780 = vst [vmem:[#allocation102_spill] sm:$0xff] %v10598_v11  ;;  %v2768_v57 = vand.u32 4294901760, %v2767_v40  ;;  %v10626_v3 = vpack.c.bf16 %v2762_v45, %v2750_v9  ;;  %v2791_v30 = vsub.f32 %v10355_v52, %v13743_v39  ;;  %v13744_v40 = vand.u32 4294901760, %v10370_v6 }
 0x27d   : > { %v2774_v11 = vand.u32 4294901760, %v2773_v42  ;;  %v2786_v60 = vand.u32 4294901760, %v2785_v63  ;;  %v2780_v13 = vand.u32 4294901760, %v2779_v1  ;;  %v13745_v16 = vand.u32 4294901760, %v10375_v26  ;;  %v14787_v1 = vld [vmem:[#allocation69_spill] sm:$0xff] }
 0x27e   : > { %v10628_v58 = vpack.c.bf16 %v2768_v57, %v2756_v21  ;;  %v2792_v59 = vand.u32 4294901760, %v2791_v30  ;;  %v2803_v9 = vsub.f32 %v10370_v6, %v13744_v40  ;;  %v825_v40 = vld [vmem:[%s13286_s4] sm:$0x3] }
 0x27f   : > { %v10633_v25 = vpack.c.bf16 %v2786_v60, %v2774_v11  ;;  %v2815_v57 = vsub.f32 %v10375_v26, %v13745_v16  ;;  %v14786_v11 = vld [vmem:[#allocation65_spill] sm:$0xff] }
 0x280   : > { %v10643_v42 = vpack.c.bf16 %v2792_v59, %v2780_v13  ;;  %v2804_v63 = vand.u32 4294901760, %v2803_v9  ;;  %v14784_v59 = vld [vmem:[#allocation92_spill] sm:$0xff] }
 0x281   : > { %v2816_v45 = vand.u32 4294901760, %v2815_v57  ;;  %v830_v9 = vrot.slane %v825_v40, %v14784_v59 }
 0x283   : > { %v10645_v21 = vpack.c.bf16 %v2816_v45, %v2804_v63  ;;  %v14785_v63 = vld [vmem:[#allocation93_spill] sm:$0xff]  ;;  %v978_v8 = vadd.f32 %v14786_v11, %v830_v9  ;;  %v14790_v11 = vld [vmem:[#allocation12_spill] sm:$0xff] }
 0x284   : > { %v834_v45 = vrot.slane %v825_v40, %v14785_v63  ;;  %v14788_v40 = vld [vmem:[#allocation68_spill] sm:$0xff]  ;;  %v13781_v13 = vand.u32 4294901760, %v14790_v11 }
 0x285   : > { %v994_v63 = vadd.f32 %v14788_v40, %v830_v9 }
 0x286   : > { %v980_v60 = vadd.f32 %v14787_v1, %v834_v45  ;;  %v996_v39 = vadd.f32 %v14789_v43, %v834_v45 }
 0x2e3   : > { %v2170_v62 = vpop.f32.mrb[0].mxu0 }
 0x2e4   : > { %v10670_v59 = vadd.f32 %v2170_v62, %v978_v8  ;;  %v2172_v16 = vpop.f32.mrb[1].mxu0 }
 0x2e5   : > { %v10672_v57 = vadd.f32 %v2172_v16, %v980_v60 }
 0x2e6   : > { %v2187_v30 = vand.u32 2147483647, %v10670_v59 }
 0x2e7   : > { %v2188_v1 = vand.u32 2147483647, %v10672_v57  ;;  %v2178_v29 = vpop.f32.mrb[2].mxu0 }
 0x2e8   : > { %v2191_v62 = vsub.f32 0.0, %v2187_v30  ;;  %v10682_v8 = vadd.f32 %v2178_v29, %v994_v63  ;;  %v2180_v16 = vpop.f32.mrb[3].mxu0 }
 0x2e9   : > { %v2192_v60 = vsub.f32 0.0, %v2188_v1  ;;  %v10684_v0 = vadd.f32 %v2180_v16, %v996_v39 }
 0x2ea   : > { %v2195_v9 = vmul.f32 1.442695, %v2191_v62  ;;  %v2189_v40 = vand.u32 2147483647, %v10682_v8 }
 0x2eb   : > { %v2197_v43 = vmul.f32 1.442695, %v2192_v60  ;;  %v2190_v45 = vand.u32 2147483647, %v10684_v0 }
 0x2ec   : > { %7985 = vpow2.f32 %v2195_v9  ;;  %v2193_v30 = vsub.f32 0.0, %v2189_v40  ;;  %v14791_v40 = vld [vmem:[#allocation14_spill] sm:$0xff] }
 0x2ed   : > { %7987 = vpow2.f32 %v2197_v43  ;;  %v2194_v29 = vsub.f32 0.0, %v2190_v45  ;;  %v14792_v48 = vand.u32 4294901760, %v14791_v40 }
 0x2ee   : > { %v2199_v63 = vmul.f32 1.442695, %v2193_v30 }
 0x2ef   : > { %v2201_v1 = vmul.f32 1.442695, %v2194_v29 }
 0x2f0   : > { %7989 = vpow2.f32 %v2199_v63 }
 0x2f1   : > { %7991 = vpow2.f32 %v2201_v1 }
 0x2f6   : > { %v7986_v9 = vpop.eup %7985 }
 0x2f7   : > { %v7988_v43 = vpop.eup %7987  ;;  %v2203_v45 = vadd.f32 1.0, %v7986_v9  ;;  %v2206_v39 = vmul.f32 -0.5, %v7986_v9 }
 0x2f8   : > { %v2212_v29 = vadd.f32 1.0, %v7988_v43  ;;  %v2215_v14 = vmul.f32 -0.5, %v7988_v43  ;;  %v2218_v18 = vand.u32 2147483647, %v7988_v43 }
 0x2f9   : > { %7993 = vlog2.f32 %v2203_v45  ;;  %v2207_v30 = vadd.f32 1.0, %v2206_v39  ;;  %v2503_v39 = vsub.f32 %v14791_v40, %v14792_v48 }
 0x2fa   : > { %v7990_v62 = vpop.eup %7989  ;;  %7995 = vlog2.f32 %v2212_v29  ;;  %v2209_v29 = vand.u32 2147483647, %v7986_v9  ;;  %v2216_v38 = vadd.f32 1.0, %v2215_v14  ;;  %vm2219_vm5 = vcmp.lt.f32.partialorder %v2218_v18, 0.0004427343 }
 0x2fb   : > { %v7992_v1 = vpop.eup %7991  ;;  %v2221_v16 = vadd.f32 1.0, %v7990_v62  ;;  %v2224_v10 = vmul.f32 -0.5, %v7990_v62  ;;  %v2208_v14 = vmul.f32 %v7986_v9, %v2207_v30  ;;  %v2227_v15 = vand.u32 2147483647, %v7990_v62 }
 0x2fc   : > { %v2230_v60 = vadd.f32 1.0, %v7992_v1  ;;  %v2233_v63 = vmul.f32 -0.5, %v7992_v1  ;;  %vm2210_vm4 = vcmp.lt.f32.partialorder %v2209_v29, 0.0004427343  ;;  %v2217_v47 = vmul.f32 %v7988_v43, %v2216_v38 }
 0x2fd   : > { %7997 = vlog2.f32 %v2221_v16  ;;  %v2183_v16 = vmax.f32 %v10670_v59, 0.0  ;;  %v2225_v34 = vadd.f32 1.0, %v2224_v10  ;;  %v2184_v59 = vmax.f32 %v10672_v57, 0.0 }
 0x2fe   : > { %7999 = vlog2.f32 %v2230_v60  ;;  %v2491_v60 = vsub.f32 %v14790_v11, %v13781_v13  ;;  %v2234_v4 = vadd.f32 1.0, %v2233_v63  ;;  %v2236_v44 = vand.u32 2147483647, %v7992_v1 }
 0x2ff   : > { %v2185_v38 = vmax.f32 %v10682_v8, 0.0  ;;  %vm2228_vm6 = vcmp.lt.f32.partialorder %v2227_v15, 0.0004427343 }
 0x300   : > { %v2235_v57 = vmul.f32 %v7992_v1, %v2234_v4  ;;  %vm2237_vm7 = vcmp.lt.f32.partialorder %v2236_v44, 0.0004427343  ;;  %v2492_v1 = vand.u32 4294901760, %v2491_v60 }
 0x303   : > { %v7994_v23 = vpop.eup %7993 }
 0x304   : > { %v7996_v45 = vpop.eup %7995  ;;  %v2205_v51 = vmul.f32 0.6931472, %v7994_v23 }
 0x305   : > { %v2214_v55 = vmul.f32 0.6931472, %v7996_v45 }
 0x306   : > { %v2211_v28 = vsel %vm2210_vm4, %v2208_v14, %v2205_v51  ;;  %v2226_v51 = vmul.f32 %v7990_v62, %v2225_v34 }
 0x307   : > { %v7998_v13 = vpop.eup %7997  ;;  %v2239_v2 = vadd.f32 %v2211_v28, %v2183_v16  ;;  %v2220_v22 = vsel %vm2219_vm5, %v2217_v47, %v2214_v55  ;;  %v2186_v55 = vmax.f32 %v10684_v0, 0.0  ;;  %v2504_v0 = vand.u32 4294901760, %v2503_v39 }
 0x308   : > { %v8000_v10 = vpop.eup %7999  ;;  %v2240_v9 = vadd.f32 %v2220_v22, %v2184_v59  ;;  %v2223_v43 = vmul.f32 0.6931472, %v7998_v13 }
 0x309   : > { %v10727_v30 = vand.u32 4294901760, %v2239_v2  ;;  %v2232_v18 = vmul.f32 0.6931472, %v8000_v10  ;;  %v6933_v59 = vpack.c.bf16 %v2504_v0, %v2492_v1  ;;  %v14808_v1 = vld [vmem:[#allocation42_spill] sm:$0xff]  ;;  %v14809_v0 = vld [vmem:[#allocation44_spill] sm:$0xff] }
 0x30a   : > { %v10729_v28 = vand.u32 4294901760, %v2240_v9  ;;  %v2229_v47 = vsel %vm2228_vm6, %v2226_v51, %v2223_v43  ;;  %v14800_v43 = vld [vmem:[#allocation89_spill] sm:$0xff] }
 0x30b   : > { %14793 = vst [vmem:[#allocation65_spill] sm:$0xff] %v10727_v30  ;;  %v10733_v48 = vsub.f32 %v2239_v2, %v10727_v30  ;;  %v2241_v63 = vadd.f32 %v2229_v47, %v2185_v38  ;;  %v2238_v22 = vsel %vm2237_vm7, %v2235_v57, %v2232_v18  ;;  %v14801_v18 = vld [vmem:[#allocation90_spill] sm:$0xff] }
 0x30c   : > { %14794 = vst [vmem:[#allocation69_spill] sm:$0xff] %v10729_v28  ;;  %v10736_v8 = vsub.f32 %v2240_v9, %v10729_v28  ;;  %v2242_v34 = vadd.f32 %v2238_v22, %v2186_v55  ;;  %v14802_v57 = vld [vmem:[#allocation66_spill] sm:$0xff]  ;;  %v14804_v55 = vld [vmem:[#allocation16_spill] sm:$0xff] }
 0x30d   : > { %14795 = vst [vmem:[#allocation68_spill] sm:$0xff] %v10733_v48  ;;  %v13793_v13 = vand.u32 4294901760, %v10733_v48  ;;  %v10739_v15 = vand.u32 4294901760, %v2241_v63  ;;  %v14803_v47 = vld [vmem:[#allocation78_spill] sm:$0xff]  ;;  %v14806_v22 = vld [vmem:[#allocation32_spill] sm:$0xff] }
 0x30e   : > { %v10741_v4 = vand.u32 4294901760, %v2242_v34  ;;  %v13794_v62 = vand.u32 4294901760, %v10736_v8 }
 0x30f   : > { %14796 = vst [vmem:[#allocation72_spill] sm:$0xff] %v10739_v15  ;;  %v2458_v44 = vsub.f32 %v10733_v48, %v13793_v13  ;;  %v10748_v2 = vsub.f32 %v2241_v63, %v10739_v15  ;;  %v14805_v63 = vld [vmem:[#allocation17_spill] sm:$0xff] }
 0x310   : > { %14797 = vst [vmem:[#allocation12_spill] sm:$0xff] %v10741_v4  ;;  %v10751_v45 = vsub.f32 %v2242_v34, %v10741_v4  ;;  %v2452_v29 = vsub.f32 %v10736_v8, %v13794_v62  ;;  %v14807_v34 = vld [vmem:[#allocation33_spill] sm:$0xff]  ;;  %v14829_v62 = vld [vmem:[#allocation88_spill] sm:$0xff] }
 0x311   : > { %14798 = vst [vmem:[#allocation14_spill] sm:$0xff] %v10748_v2  ;;  %v13788_v16 = vand.u32 4294901760, %v10748_v2  ;;  %v2459_v39 = vand.u32 4294901760, %v2458_v44  ;;  %v14810_v44 = vld [vmem:[#allocation95_spill] sm:$0xff] }
 0x312   : > { %14799 = vst [vmem:[#allocation103_spill] sm:$0xff] %v10751_v45  ;;  %v2453_v14 = vand.u32 4294901760, %v2452_v29  ;;  %v13789_v60 = vand.u32 4294901760, %v10751_v45  ;;  %v14811_v29 = vld [vmem:[#allocation96_spill] sm:$0xff] }
 0x313   : > { %v2474_v10 = vsub.f32 %v10748_v2, %v13788_v16 }
 0x314   : > { %2454 = vmatprep.mubr.f32.mxu1 %v2453_v14  ;;  %v2468_v9 = vsub.f32 %v10751_v45, %v13789_v60  ;;  %v14812_v14 = vld [vmem:[#allocation40_spill] sm:$0xff] }
 0x315   : > { %2460 = vmatmul.mubr.f32.vlgmr.msra.gmra.mrb[4].mxu1 %v2459_v39  ;;  %v2475_v51 = vand.u32 4294901760, %v2474_v10  ;;  %v14813_v39 = vld [vmem:[#allocation41_spill] sm:$0xff]  ;;  %v14825_v60 = vld [vmem:[#allocation76_spill] sm:$0xff] }
 0x316   : > { %6934 = vmatpush1.bf16.msra.mxu1 %v6933_v59  ;;  %v2469_v38 = vand.u32 4294901760, %v2468_v9  ;;  %v13787_v59 = vand.u32 4294901760, %v14812_v14  ;;  %v13786_v10 = vand.u32 4294901760, %v14813_v39  ;;  %v14814_v9 = vld [vmem:[#allocation97_spill] sm:$0xff] }
 0x317   : > { %6936 = vmatprep.subr.bf16.mxu1 %v14800_v43 }
 0x318   : > { %2470 = vmatprep.mubr.f32.mxu1 %v2469_v38  ;;  %v14815_v38 = vld [vmem:[#allocation98_spill] sm:$0xff]  ;;  %v2731_v43 = vsub.f32 %v14812_v14, %v13787_v59 }
 0x319   : > { %2476 = vmatmul.mubr.f32.gmra.mrb[6].mxu1 %v2475_v51  ;;  %v2743_v51 = vsub.f32 %v14813_v39, %v13786_v10 }
 0x31a   : > { %6938 = vmatpush1.bf16.msra.mxu1 %v14801_v18  ;;  %2867 = vmatprep.mubr.f32.mxu1 %v10729_v28  ;;  %v14816_v18 = vld [vmem:[#allocation99_spill] sm:$0xff] }
 0x31b   : > { %6940 = vmatprep.subr.bf16.mxu1 %v14802_v57  ;;  %v14817_v57 = vld [vmem:[#allocation61_spill] sm:$0xff] }
 0x31e   : > { %6942 = vmatpush1.bf16.msra.mxu1 %v14803_v47  ;;  %v13790_v47 = vand.u32 4294901760, %v14817_v57 }
 0x31f   : > { %6944 = vmatprep.subr.bf16.mxu1 %v14804_v55  ;;  %v14818_v55 = vld [vmem:[#allocation64_spill] sm:$0xff] }
 0x322   : > { %6946 = vmatpush1.bf16.msra.mxu1 %v14805_v63  ;;  %v13791_v63 = vand.u32 4294901760, %v14818_v55 }
 0x323   : > { %6948 = vmatprep.subr.bf16.mxu1 %v14806_v22  ;;  %v2732_v22 = vand.u32 4294901760, %v2731_v43 }
 0x326   : > { %6950 = vmatpush1.bf16.msra.mxu1 %v14807_v34  ;;  %v2744_v34 = vand.u32 4294901760, %v2743_v51 }
 0x327   : > { %6952 = vmatprep.subr.bf16.mxu1 %v14808_v1  ;;  %v14819_v1 = vld [vmem:[#allocation100_spill] sm:$0xff] }
 0x32a   : > { %6954 = vmatpush1.bf16.msra.mxu1 %v14809_v0  ;;  %v2797_v0 = vsub.f32 %v14817_v57, %v13790_v47  ;;  %v13797_v47 = vand.u32 4294901760, %v14825_v60 }
 0x32b   : > { %6956 = vmatprep.subr.bf16.mxu1 %v14810_v44  ;;  %v2809_v44 = vsub.f32 %v14818_v55, %v13791_v63  ;;  %v14827_v63 = vld [vmem:[#allocation83_spill] sm:$0xff] }
 0x32c   : > { %v2798_v51 = vand.u32 4294901760, %v2797_v0  ;;  %v13802_v0 = vand.u32 4294901760, %v14827_v63 }
 0x32d   : > { %v2810_v59 = vand.u32 4294901760, %v2809_v44 }
 0x32e   : > { %6958 = vmatpush1.bf16.msra.mxu1 %v14811_v29  ;;  %v14820_v29 = vld [vmem:[#allocation101_spill] sm:$0xff] }
 0x32f   : > { %6960 = vmatprep.subr.bf16.mxu1 %v14814_v9  ;;  %v6973_v9 = vpack.c.bf16 %v2744_v34, %v2732_v22  ;;  %v14826_v34 = vld [vmem:[#allocation79_spill] sm:$0xff]  ;;  %v6983_v44 = vpack.c.bf16 %v2810_v59, %v2798_v51  ;;  %v2857_v51 = vsub.f32 %v14827_v63, %v13802_v0 }
 0x330   : > { %v14830_v59 = vand.u32 4294901760, %v14826_v34 }
 0x332   : > { %6962 = vmatpush1.bf16.msra.mxu1 %v14815_v38  ;;  %v14821_v38 = vld [vmem:[#allocation102_spill] sm:$0xff] }
 0x333   : > { %6964 = vmatprep.subr.bf16.mxu1 %v14816_v18  ;;  %v14822_v18 = vld [vmem:[#allocation67_spill] sm:$0xff] }
 0x334   : > { %v13792_v10 = vand.u32 4294901760, %v14822_v18 }
 0x336   : > { %6966 = vmatpush1.bf16.msra.mxu1 %v10583_v54  ;;  %v14823_v54 = vld [vmem:[#allocation71_spill] sm:$0xff] }
 0x337   : > { %6968 = vmatprep.subr.bf16.mxu1 %v14819_v1  ;;  %v13795_v43 = vand.u32 4294901760, %v14823_v54  ;;  %v14824_v1 = vld [vmem:[#allocation73_spill] sm:$0xff] }
 0x338   : > { %v13796_v16 = vand.u32 4294901760, %v14824_v1 }
 0x339   : > { %v2833_v22 = vsub.f32 %v14823_v54, %v13795_v43 }
 0x33a   : > { %6970 = vmatpush1.bf16.msra.mxu1 %v14820_v29  ;;  %v2821_v29 = vsub.f32 %v14822_v18, %v13792_v10  ;;  %v14828_v10 = vld [vmem:[#allocation85_spill] sm:$0xff] }
 0x33b   : > { %6972 = vmatprep.subr.bf16.mxu1 %v14821_v38  ;;  %v13805_v13 = vand.u32 4294901760, %v14828_v10  ;;  %v2834_v38 = vand.u32 4294901760, %v2833_v22 }
 0x33c   : > { %v2822_v43 = vand.u32 4294901760, %v2821_v29 }
 0x33d   : > { %v2851_v23 = vsub.f32 %v14828_v10, %v13805_v13  ;;  %v14833_v13 = vld [vmem:[#allocation11_spill] sm:$0xff] }
 0x33e   : > { %6974 = vmatpush1.bf16.msra.mxu1 %v6973_v9  ;;  %v2827_v9 = vsub.f32 %v14824_v1, %v13796_v16  ;;  %v6987_v22 = vpack.c.bf16 %v2834_v38, %v2822_v43  ;;  %v14843_v38 = vpack.c.bf16 %v14762_v7, %v14759_v32 }
 0x33f   : > { %6976 = vmatprep.subr.bf16.mxu1 %v10626_v3  ;;  %v2839_v3 = vsub.f32 %v14825_v60, %v13797_v47  ;;  %v2852_v0 = vand.u32 4294901760, %v2851_v23  ;;  %v14835_v23 = vld [vmem:[#allocation23_spill] sm:$0xff] }
 0x340   : > { %v2828_v16 = vand.u32 4294901760, %v2827_v9 }
 0x341   : > { %v2840_v47 = vand.u32 4294901760, %v2839_v3  ;;  %v14832_v3 = vld [vmem:[#allocation10_spill] sm:$0xff] }
 0x342   : > { %6978 = vmatpush1.bf16.msra.mxu1 %v10628_v58  ;;  %v2845_v58 = vsub.f32 %v14826_v34, %v14830_v59  ;;  %v2858_v59 = vand.u32 4294901760, %v2857_v51  ;;  %v6995_v48 = vpack.c.bf16 %v14833_v13, %v14832_v3  ;;  %v14846_v51 = vld [vmem:[#allocation18_spill] sm:$0xff] }
 0x343   : > { %6980 = vmatprep.subr.bf16.mxu1 %v10633_v25  ;;  %v14831_v25 = vand.u32 4294901760, %v14829_v62  ;;  %v6989_v2 = vpack.c.bf16 %v2840_v47, %v2828_v16  ;;  %v14839_v16 = vld [vmem:[#allocation25_spill] sm:$0xff] }
 0x344   : > { %v2846_v28 = vand.u32 4294901760, %v2845_v58  ;;  %v14841_v47 = vld [vmem:[#allocation29_spill] sm:$0xff] }
 0x345   : > { %v2863_v29 = vsub.f32 %v14829_v62, %v14831_v25  ;;  %v14842_v43 = vpack.c.bf16 %v14758_v35, %v14841_v47  ;;  %v14847_v25 = vpack.c.bf16 %v10184_v33, %v14846_v51 }
 0x346   : > { %6982 = vmatpush1.bf16.msra.mxu1 %v10643_v42  ;;  %v6991_v42 = vpack.c.bf16 %v2858_v59, %v2846_v28  ;;  %v14836_v28 = vld [vmem:[#allocation22_spill] sm:$0xff]  ;;  %v14850_v59 = vld [vmem:[#allocation8_spill] sm:$0xff] }
 0x347   : > { %6984 = vmatprep.subr.bf16.mxu1 %v6983_v44  ;;  %v2864_v45 = vand.u32 4294901760, %v2863_v29  ;;  %v6997_v44 = vpack.c.bf16 %v14791_v40, %v14790_v11  ;;  %v14848_v29 = vld [vmem:[#allocation94_spill] sm:$0xff] }
 0x349   : > { %v6993_v9 = vpack.c.bf16 %v2864_v45, %v2852_v0  ;;  %v14838_v45 = vld [vmem:[#allocation28_spill] sm:$0xff]  ;;  %v14844_v0 = vld [vmem:[#allocation45_spill] sm:$0xff] }
 0x34a   : > { %6986 = vmatpush1.bf16.msra.mxu1 %v10645_v21  ;;  %v14834_v21 = vpack.c.bf16 %v14752_v31, %v14751_v56  ;;  %v14845_v58 = vpack.c.bf16 %v14765_v24, %v14844_v0 }
 0x34b   : > { %6988 = vmatprep.subr.bf16.mxu1 %v6987_v22  ;;  %v14849_v22 = vpack.c.bf16 %v10194_v17, %v14848_v29 }
 0x34e   : > { %6990 = vmatpush1.bf16.msra.mxu1 %v6989_v2  ;;  %v14837_v2 = vpack.c.bf16 %v14835_v23, %v14836_v28 }
 0x34f   : > { %6992 = vmatprep.subr.bf16.mxu1 %v6991_v42  ;;  %v14851_v42 = vpack.c.bf16 %v10205_v49, %v14850_v59 }
 0x352   : > { %6994 = vmatpush1.bf16.msra.mxu1 %v6993_v9  ;;  %v14852_v9 = vpack.c.bf16 %v10215_v19, %v10210_v36 }
 0x353   : > { %6996 = vmatprep.subr.bf16.mxu1 %v6995_v48  ;;  %v14840_v48 = vpack.c.bf16 %v14838_v45, %v14839_v16 }
 0x355   : > { %2869 = vmatmul.mubr.f32.vlgmr.msra.gmra.mrb[4].mxu1 %v10727_v30  ;;  %v14869_v30 = vld [vmem:[#allocation38_spill] sm:$0xff] }
 0x356   : > { %2875 = vmatprep.mubr.f32.mxu1 %v10741_v4  ;;  %6998 = vmatpush1.bf16.msra.mxu1 %v6997_v44  ;;  %v14853_v44 = vpack.c.bf16 %v10225_v46, %v10220_v61 }
 0x357   : > { %7000 = vmatprep.subr.bf16.mxu1 %v14834_v21  ;;  %v14854_v21 = vpack.c.bf16 %v10235_v20, %v10230_v12 }
 0x359   : > { %2877 = vmatmul.mubr.f32.gmra.mrb[6].mxu1 %v10739_v15  ;;  %v14866_v15 = vld [vmem:[#allocation36_spill] sm:$0xff] }
 0x35a   : > { %7002 = vmatpush1.bf16.msra.mxu1 %v14837_v2  ;;  %3077 = vmatprep.mubr.f32.mxu1 %v10736_v8  ;;  %v14855_v2 = vpack.c.bf16 %v10245_v27, %v10240_v53 }
 0x35b   : > { %7004 = vmatprep.subr.bf16.mxu1 %v14840_v48  ;;  %v14856_v48 = vpack.c.bf16 %v10255_v5, %v10250_v37 }
 0x35e   : > { %7006 = vmatpush1.bf16.msra.mxu1 %v14842_v43  ;;  %v14857_v43 = vld [vmem:[#allocation21_spill] sm:$0xff] }
 0x35f   : > { %7008 = vmatprep.subr.bf16.mxu1 %v14843_v38  ;;  %v14858_v38 = vpack.c.bf16 %v10265_v41, %v14857_v43  ;;  %v14872_v41 = vld [vmem:[#allocation43_spill] sm:$0xff] }
 0x362   : > { %7010 = vmatpush1.bf16.msra.mxu1 %v14845_v58  ;;  %v14859_v58 = vld [vmem:[#allocation27_spill] sm:$0xff] }
 0x363   : > { %7012 = vmatprep.subr.bf16.mxu1 %v14847_v25  ;;  %v14860_v25 = vld [vmem:[#allocation24_spill] sm:$0xff] }
 0x366   : > { %7014 = vmatpush1.bf16.msra.mxu1 %v14849_v22  ;;  %v14861_v22 = vpack.c.bf16 %v14859_v58, %v14860_v25  ;;  %v14875_v25 = vld [vmem:[#allocation49_spill] sm:$0xff] }
 0x367   : > { %7016 = vmatprep.subr.bf16.mxu1 %v14851_v42  ;;  %v14862_v42 = vld [vmem:[#allocation31_spill] sm:$0xff] }
 0x36a   : > { %7018 = vmatpush1.bf16.msra.mxu1 %v14852_v9  ;;  %v14863_v9 = vld [vmem:[#allocation30_spill] sm:$0xff] }
 0x36b   : > { %7020 = vmatprep.subr.bf16.mxu1 %v14853_v44  ;;  %v14864_v44 = vpack.c.bf16 %v14862_v42, %v14863_v9  ;;  %v14878_v9 = vld [vmem:[#allocation55_spill] sm:$0xff] }
 0x36e   : > { %7022 = vmatpush1.bf16.msra.mxu1 %v14854_v21  ;;  %v14865_v21 = vld [vmem:[#allocation37_spill] sm:$0xff] }
 0x36f   : > { %7024 = vmatprep.subr.bf16.mxu1 %v14855_v2  ;;  %v14867_v4 = vpack.c.bf16 %v14865_v21, %v14866_v15  ;;  %v7037_v2 = vpack.c.bf16 %v14813_v39, %v14812_v14  ;;  %v14880_v39 = vpack.c.bf16 %v10355_v52, %v10350_v50 }
 0x372   : > { %7026 = vmatpush1.bf16.msra.mxu1 %v14856_v48  ;;  %v14868_v48 = vld [vmem:[#allocation39_spill] sm:$0xff] }
 0x373   : > { %7028 = vmatprep.subr.bf16.mxu1 %v14858_v38  ;;  %v14870_v5 = vpack.c.bf16 %v14868_v48, %v14869_v30  ;;  %v14871_v38 = vld [vmem:[#allocation47_spill] sm:$0xff] }
 0x374   : > { %v14873_v58 = vpack.c.bf16 %v14871_v38, %v14872_v41 }
 0x376   : > { %7030 = vmatpush1.bf16.msra.mxu1 %v14861_v22  ;;  %v14874_v22 = vld [vmem:[#allocation52_spill] sm:$0xff] }
 0x377   : > { %7032 = vmatprep.subr.bf16.mxu1 %v14864_v44  ;;  %v14876_v42 = vpack.c.bf16 %v14874_v22, %v14875_v25  ;;  %v14877_v44 = vld [vmem:[#allocation59_spill] sm:$0xff] }
 0x378   : > { %v14879_v21 = vpack.c.bf16 %v14877_v44, %v14878_v9 }
 0x37a   : > { %7034 = vmatpush1.bf16.msra.mxu1 %v14867_v4  ;;  %v7047_v4 = vpack.c.bf16 %v14818_v55, %v14817_v57 }
 0x37b   : > { %7036 = vmatprep.subr.bf16.mxu1 %v14870_v5  ;;  %v7051_v5 = vpack.c.bf16 %v14823_v54, %v14822_v18  ;;  %v14884_v54 = vld [vmem:[#allocation103_spill] sm:$0xff] }
 0x37c   : > { %v14886_v18 = vld [vmem:[#allocation15_spill] sm:$0xff] }
 0x37e   : > { %7038 = vmatpush1.bf16.msra.mxu1 %v7037_v2  ;;  %v7057_v2 = vpack.c.bf16 %v14829_v62, %v14828_v10  ;;  %v14890_v62 = vld [vmem:[#allocation26_spill] sm:$0xff] }
 0x37f   : > { %7040 = vmatprep.subr.bf16.mxu1 %v14873_v58  ;;  %v14881_v58 = vpack.c.bf16 %v10375_v26, %v10370_v6  ;;  %v14894_v10 = vld [vmem:[#allocation70_spill] sm:$0xff] }
 0x382   : > { %7042 = vmatpush1.bf16.msra.mxu1 %v14876_v42  ;;  %v7053_v42 = vpack.c.bf16 %v14825_v60, %v14824_v1  ;;  %v14888_v60 = vld [vmem:[#allocation20_spill] sm:$0xff] }
 0x383   : > { %7044 = vmatprep.subr.bf16.mxu1 %v14879_v21  ;;  %v7055_v21 = vpack.c.bf16 %v14827_v63, %v14826_v34  ;;  %v14897_v63 = vld [vmem:[#allocation77_spill] sm:$0xff] }
 0x386   : > { %7046 = vmatpush1.bf16.msra.mxu1 %v14880_v39  ;;  %v14882_v39 = vld [vmem:[#allocation9_spill] sm:$0xff] }
 0x387   : > { %7048 = vmatprep.subr.bf16.mxu1 %v7047_v4  ;;  %v14883_v4 = vld [vmem:[#allocation68_spill] sm:$0xff] }
 0x38a   : > { %7050 = vmatpush1.bf16.msra.mxu1 %v14881_v58  ;;  %v14885_v58 = vld [vmem:[#allocation13_spill] sm:$0xff] }
 0x38b   : > { %7052 = vmatprep.subr.bf16.mxu1 %v7051_v5  ;;  %v14887_v5 = vld [vmem:[#allocation14_spill] sm:$0xff] }
 0x38e   : > { %7054 = vmatpush1.bf16.msra.mxu1 %v7053_v42  ;;  %v14889_v42 = vand.u32 4294901760, %v10736_v8  ;;  %v14899_v8 = vld [vmem:[#allocation84_spill] sm:$0xff] }
 0x38f   : > { %7056 = vmatprep.subr.bf16.mxu1 %v7055_v21  ;;  %v14891_v21 = vld [vmem:[#allocation34_spill] sm:$0xff] }
 0x392   : > { %7058 = vmatpush1.bf16.msra.mxu1 %v7057_v2  ;;  %v14892_v2 = vld [vmem:[#allocation35_spill] sm:$0xff] }
 0x393   : > { %7060 = vmatprep.subr.bf16.mxu1 %v14882_v39  ;;  %v14893_v39 = vld [vmem:[#allocation62_spill] sm:$0xff] }
 0x395   : > { %3080 = vmatmul.mubr.f32.vlgmr.msra.gmra.mrb[4].mxu1 %v14883_v4 }
 0x396   : > { %3087 = vmatprep.mubr.f32.mxu1 %v14884_v54  ;;  %7062 = vmatpush1.bf16.msra.mxu1 %v14885_v58  ;;  %v14895_v58 = vld [vmem:[#allocation75_spill] sm:$0xff] }
 0x397   : > { %7064 = vmatprep.subr.bf16.mxu1 %v14886_v18  ;;  %v14896_v18 = vld [vmem:[#allocation74_spill] sm:$0xff] }
 0x399   : > { %3090 = vmatmul.mubr.f32.gmra.mrb[6].mxu1 %v14887_v5 }
 0x39a   : > { %7066 = vmatpush1.bf16.msra.mxu1 %v14888_v60  ;;  %3227 = vmatprep.mubr.f32.mxu1 %v14889_v42  ;;  %v14898_v60 = vld [vmem:[#allocation80_spill] sm:$0xff]  ;;  %v14900_v42 = vld [vmem:[#allocation82_spill] sm:$0xff] }
 0x39b   : > { %7068 = vmatprep.subr.bf16.mxu1 %v14890_v62  ;;  %v14901_v62 = vld [vmem:[#allocation86_spill] sm:$0xff] }
 0x39e   : > { %7070 = vmatpush1.bf16.msra.mxu1 %v14891_v21  ;;  %v14902_v21 = vld [vmem:[#allocation5_spill] sm:$0xff] }
 0x39f   : > { %7072 = vmatprep.subr.bf16.mxu1 %v14892_v2  ;;  %v14903_v2 = vld [vmem:[#allocation6_spill] sm:$0xff] }
 0x3a2   : > { %7074 = vmatpush1.bf16.msra.mxu1 %v14893_v39  ;;  %v14904_v39 = vld [vmem:[#allocation91_spill] sm:$0xff] }
 0x3a3   : > { %7076 = vmatprep.subr.bf16.mxu1 %v14894_v10  ;;  %v14905_v10 = vld [vmem:[#allocation46_spill] sm:$0xff] }
 0x3a6   : > { %7078 = vmatpush1.bf16.msra.mxu1 %v14895_v58  ;;  %v14906_v58 = vld [vmem:[#allocation48_spill] sm:$0xff] }
 0x3a7   : > { %7080 = vmatprep.subr.bf16.mxu1 %v14896_v18  ;;  %v14907_v18 = vld [vmem:[#allocation50_spill] sm:$0xff] }
 0x3aa   : > { %7082 = vmatpush1.bf16.msra.mxu1 %v14897_v63  ;;  %v14908_v63 = vld [vmem:[#allocation51_spill] sm:$0xff] }
 0x3ab   : > { %7084 = vmatprep.subr.bf16.mxu1 %v14898_v60  ;;  %v14909_v60 = vld [vmem:[#allocation53_spill] sm:$0xff] }
 0x3ae   : > { %7086 = vmatpush1.bf16.msra.mxu1 %v14899_v8  ;;  %v14910_v8 = vld [vmem:[#allocation54_spill] sm:$0xff] }
 0x3af   : > { %7088 = vmatprep.subr.bf16.mxu1 %v14900_v42  ;;  %v14911_v42 = vld [vmem:[#allocation56_spill] sm:$0xff] }
 0x3b2   : > { %7090 = vmatpush1.bf16.msra.mxu1 %v14901_v62  ;;  %v14912_v62 = vld [vmem:[#allocation57_spill] sm:$0xff] }
 0x3b3   : > { %7092 = vmatprep.subr.bf16.mxu1 %v14902_v21  ;;  %v14913_v21 = vld [vmem:[#allocation58_spill] sm:$0xff] }
 0x3b6   : > { %7094 = vmatpush1.bf16.msra.mxu1 %v14903_v2  ;;  %v14914_v2 = vld [vmem:[#allocation60_spill] sm:$0xff] }
 0x3b7   : > { %7096 = vmatprep.subr.bf16.mxu1 %v14904_v39  ;;  %v14915_v39 = vld [vmem:[#allocation63_spill] sm:$0xff] }
 0x3ba   : > { %7098 = vmatpush1.bf16.msra.mxu1 %v14905_v10  ;;  %v14916_v10 = vld [vmem:[#allocation81_spill] sm:$0xff] }
 0x3bb   : > { %7100 = vmatprep.subr.bf16.mxu1 %v14906_v58 }
 0x3be   : > { %7102 = vmatpush1.bf16.msra.mxu1 %v14907_v18  ;;  %v14917_v18 = vand.u32 4294901760, %v14832_v3  ;;  %v14925_v3 = vand.u32 4294901760, %v14884_v54  ;;  %v14932_v54 = vand.u32 4294901760, %v14758_v35  ;;  %v3730_v35 = vld [vmem:[#allocation2 + $0x410] sm:$0xff] }
 0x3bf   : > { %7104 = vmatprep.subr.bf16.mxu1 %v14908_v63  ;;  %v14918_v63 = vand.u32 4294901760, %v14833_v13  ;;  %v14926_v13 = vand.u32 4294901760, %v14836_v28  ;;  %v14934_v28 = vand.u32 4294901760, %v14762_v7  ;;  %v14938_v7 = vand.u32 4294901760, %v14846_v51  ;;  %v3738_v51 = vld [vmem:[#allocation2 + $0x450] sm:$0xff] }
 0x3c1   : > { %v7123_v58 = vpack.c.bf16 %v14918_v63, %v14917_v18 }
 0x3c2   : > { %7106 = vmatpush1.bf16.msra.mxu1 %v14909_v60  ;;  %v14919_v60 = vld [vmem:[#allocation87_spill] sm:$0xff] }
 0x3c3   : > { %7108 = vmatprep.subr.bf16.mxu1 %v14910_v8  ;;  %v14920_v8 = vand.u32 4294901760, %v14790_v11  ;;  %v14927_v11 = vand.u32 4294901760, %v14835_v23 }
 0x3c5   : > { %v7129_v63 = vpack.c.bf16 %v14927_v11, %v14926_v13  ;;  %v14939_v13 = vand.u32 4294901760, %v10184_v33 }
 0x3c6   : > { %7110 = vmatpush1.bf16.msra.mxu1 %v14911_v42  ;;  %v14921_v42 = vand.u32 4294901760, %v14791_v40  ;;  %v14928_v40 = vand.u32 4294901760, %v14839_v16  ;;  %v14935_v16 = vld [vmem:[#allocation69_spill] sm:$0xff] }
 0x3c7   : > { %7112 = vmatprep.subr.bf16.mxu1 %v14912_v62  ;;  %v7139_v11 = vpack.c.bf16 %v14939_v13, %v14938_v7 }
 0x3c8   : > { %v7125_v62 = vpack.c.bf16 %v14921_v42, %v14920_v8 }
 0x3ca   : > { %7114 = vmatpush1.bf16.msra.mxu1 %v14913_v21  ;;  %v14922_v21 = vand.u32 4294901760, %v14751_v56  ;;  %v14929_v56 = vand.u32 4294901760, %v14838_v45  ;;  %v14936_v45 = vand.u32 4294901760, %v14844_v0  ;;  %v3734_v0 = vld [vmem:[#allocation2 + $0x430] sm:$0xff] }
 0x3cb   : > { %7116 = vmatprep.subr.bf16.mxu1 %v14914_v2  ;;  %v14923_v2 = vand.u32 4294901760, %v14752_v31  ;;  %v14930_v31 = vand.u32 4294901760, %v14887_v5  ;;  %v14937_v5 = vand.u32 4294901760, %v14765_v24 }
 0x3cc   : > { %v7131_v18 = vpack.c.bf16 %v14929_v56, %v14928_v40 }
 0x3ce   : > { %7118 = vmatpush1.bf16.msra.mxu1 %v14915_v39  ;;  %v7127_v39 = vpack.c.bf16 %v14923_v2, %v14922_v21  ;;  %v3728_v21 = vld [vmem:[#allocation2 + $0x400] sm:$0xff]  ;;  %v7137_v2 = vpack.c.bf16 %v14937_v5, %v14936_v45 }
 0x3cf   : > { %7120 = vmatprep.subr.bf16.mxu1 %v14916_v10  ;;  %v14924_v10 = vand.u32 4294901760, %v14883_v4  ;;  %v3807_v42 = vand.u32 4294901760, %v3728_v21  ;;  %v3736_v45 = vld [vmem:[#allocation2 + $0x440] sm:$0xff] }
 0x3d2   : > { %7122 = vmatpush1.bf16.msra.mxu1 %v14919_v60  ;;  %v3741_v60 = vld [vmem:[#allocation2 + $0x468] sm:$0xff] }
 0x3d3   : > { %7124 = vmatprep.subr.bf16.mxu1 %v7123_v58  ;;  %v3729_v58 = vld [vmem:[#allocation2 + $0x408] sm:$0xff] }
 0x3d5   : > { %3231 = vmatmul.mubr.f32.vlgmr.msra.gmra.mrb[4].mxu1 %v14924_v10  ;;  %v14931_v10 = vand.u32 4294901760, %v14841_v47  ;;  %v3805_v47 = vand.u32 4294901760, %v3729_v58 }
 0x3d6   : > { %3239 = vmatprep.mubr.f32.mxu1 %v14925_v3  ;;  %7126 = vmatpush1.bf16.msra.mxu1 %v7125_v62  ;;  %v14933_v62 = vand.u32 4294901760, %v14759_v32  ;;  %v3733_v3 = vld [vmem:[#allocation2 + $0x428] sm:$0xff]  ;;  %v3735_v32 = vld [vmem:[#allocation2 + $0x438] sm:$0xff] }
 0x3d7   : > { %7128 = vmatprep.subr.bf16.mxu1 %v7127_v39  ;;  %v7133_v4 = vpack.c.bf16 %v14932_v54, %v14931_v10  ;;  %v3731_v39 = vld [vmem:[#allocation2 + $0x418] sm:$0xff]  ;;  %v3813_v40 = vand.u32 4294901760, %v3733_v3  ;;  %v3817_v56 = vand.u32 4294901760, %v3735_v32  ;;  %v3737_v10 = vld [vmem:[#allocation2 + $0x448] sm:$0xff]  ;;  %v11011_v54 = vsub.f32 %v3729_v58, %v3805_v47 }
 0x3d8   : > { %v7135_v23 = vpack.c.bf16 %v14934_v28, %v14933_v62  ;;  %v3809_v8 = vand.u32 4294901760, %v3731_v39  ;;  %v11015_v28 = vsub.f32 %v3728_v21, %v3807_v42  ;;  %v3819_v21 = vand.u32 4294901760, %v3734_v0 }
 0x3d9   : > { %3243 = vmatmul.mubr.f32.gmra.mrb[6].mxu1 %v14930_v31  ;;  %v3732_v31 = vld [vmem:[#allocation2 + $0x420] sm:$0xff]  ;;  %14941 = vst [vmem:[#allocation90_spill] sm:$0xff] %v11011_v54  ;;  %v11021_v7 = vpack.c.bf16 %v3817_v56, %v3813_v40  ;;  %v11023_v13 = vsub.f32 %v3733_v3, %v3813_v40  ;;  %v11026_v58 = vsub.f32 %v3735_v32, %v3817_v56  ;;  %v3742_v56 = vld [vmem:[#allocation2 + $0x470] sm:$0xff] }
 0x3da   : > { %7130 = vmatpush1.bf16.msra.mxu1 %v7129_v63  ;;  %3506 = vmatprep.mubr.f32.mxu1 %v14935_v16  ;;  %v3811_v63 = vand.u32 4294901760, %v3730_v35  ;;  %v11009_v24 = vpack.c.bf16 %v3809_v8, %v3805_v47  ;;  %v11013_v62 = vsub.f32 %v3731_v39, %v3809_v8  ;;  %14943 = vst [vmem:[#allocation78_spill] sm:$0xff] %v11015_v28  ;;  %v3815_v39 = vand.u32 4294901760, %v3732_v31  ;;  %v3740_v28 = vld [vmem:[#allocation2 + $0x460] sm:$0xff] }
 0x3db   : > { %7132 = vmatprep.subr.bf16.mxu1 %v7131_v18  ;;  %v3739_v18 = vld [vmem:[#allocation2 + $0x458] sm:$0xff]  ;;  %14946 = vst [vmem:[#allocation32_spill] sm:$0xff] %v11021_v7  ;;  %14947 = vst [vmem:[#allocation33_spill] sm:$0xff] %v11023_v13  ;;  %v3821_v47 = vand.u32 4294901760, %v3737_v10  ;;  %v11034_v32 = vsub.f32 %v3734_v0, %v3819_v21 }
 0x3dc   : > { %14940 = vst [vmem:[#allocation89_spill] sm:$0xff] %v11009_v24  ;;  %14942 = vst [vmem:[#allocation66_spill] sm:$0xff] %v11013_v62  ;;  %v11017_v5 = vpack.c.bf16 %v3811_v63, %v3807_v42  ;;  %v11019_v33 = vsub.f32 %v3730_v35, %v3811_v63  ;;  %7252 = vmatprep.subr.bf16.mxu0 %v11009_v24  ;;  %v3825_v8 = vand.u32 4294901760, %v3739_v18  ;;  %v3823_v42 = vand.u32 4294901760, %v3736_v45  ;;  %v3743_v63 = vld [vmem:[#allocation2 + $0x478] sm:$0xff] }
 0x3dd   : > { %14948 = vst [vmem:[#allocation42_spill] sm:$0xff] %v11026_v58  ;;  %v3827_v35 = vand.u32 4294901760, %v3738_v51  ;;  %v11030_v3 = vpack.c.bf16 %v3819_v21, %v3815_v39  ;;  %14951 = vst [vmem:[#allocation96_spill] sm:$0xff] %v11034_v32  ;;  %v11036_v40 = vsub.f32 %v3737_v10, %v3821_v47  ;;  %v3831_v10 = vand.u32 4294901760, %v3740_v28 }
 0x3de   : > { %14944 = vst [vmem:[#allocation16_spill] sm:$0xff] %v11017_v5  ;;  %14945 = vst [vmem:[#allocation17_spill] sm:$0xff] %v11019_v33  ;;  %7134 = vmatpush1.bf16.msra.mxu1 %v7133_v4  ;;  %7254 = vmatpush1.bf16.msra.mxu0 %v11017_v5  ;;  %v3829_v33 = vand.u32 4294901760, %v3741_v60  ;;  %v11032_v4 = vsub.f32 %v3732_v31, %v3815_v39  ;;  %v14954_v5 = vand.u32 4294901760, %v10194_v17  ;;  %v3833_v31 = vand.u32 4294901760, %v3743_v63 }
 0x3df   : > { %7136 = vmatprep.subr.bf16.mxu1 %v7135_v23  ;;  %7256 = vmatprep.subr.bf16.mxu0 %v11021_v7  ;;  %14949 = vst [vmem:[#allocation44_spill] sm:$0xff] %v11030_v3  ;;  %14952 = vst [vmem:[#allocation40_spill] sm:$0xff] %v11036_v40  ;;  %v14953_v23 = vand.u32 4294901760, %v14848_v29  ;;  %v11042_v58 = vpack.c.bf16 %v3825_v8, %v3821_v47  ;;  %v11044_v13 = vsub.f32 %v3739_v18, %v3825_v8 }
 0x3e0   : > { %14950 = vst [vmem:[#allocation95_spill] sm:$0xff] %v11032_v4  ;;  %v11046_v62 = vsub.f32 %v3736_v45, %v3823_v42  ;;  %v11048_v7 = vsub.f32 %v3738_v51, %v3827_v35  ;;  %v11050_v0 = vsub.f32 %v3741_v60, %v3829_v33  ;;  %v14960_v39 = vand.u32 4294901760, %v14850_v59 }
 0x3e1   : > { %v7141_v24 = vpack.c.bf16 %v14954_v5, %v14953_v23  ;;  %14955 = vst [vmem:[#allocation97_spill] sm:$0xff] %v11042_v58  ;;  %14956 = vst [vmem:[#allocation98_spill] sm:$0xff] %v11044_v13  ;;  %v14961_v29 = vand.u32 4294901760, %v10205_v49  ;;  %v11057_v5 = vpack.c.bf16 %v3827_v35, %v3823_v42  ;;  %v3835_v18 = vand.u32 4294901760, %v3742_v56  ;;  %v14977_v35 = vld [vmem:[#allocation19_spill] sm:$0xff] }
 0x3e2   : > { %14957 = vst [vmem:[#allocation99_spill] sm:$0xff] %v11046_v62  ;;  %7138 = vmatpush1.bf16.msra.mxu1 %v7137_v2  ;;  %14958 = vst [vmem:[#allocation61_spill] sm:$0xff] %v11048_v7  ;;  %7258 = vmatpush1.bf16.msra.mxu0 %v11030_v3  ;;  %v11060_v2 = vpack.c.bf16 %v3833_v31, %v3829_v33  ;;  %v11062_v45 = vsub.f32 %v3743_v63, %v3833_v31  ;;  %v14967_v59 = vand.u32 4294901760, %v10210_v36  ;;  %v14980_v23 = vld [vmem:[#allocation7_spill] sm:$0xff]  ;;  %v11482_v3 = vld [vmem:[#allocation2 + $0x5f8] sm:$0xff] }
 0x3e3   : > { %14959 = vst [vmem:[#allocation64_spill] sm:$0xff] %v11050_v0  ;;  %7140 = vmatprep.subr.bf16.mxu1 %v7139_v11  ;;  %v7143_v17 = vpack.c.bf16 %v14961_v29, %v14960_v39  ;;  %14962 = vst [vmem:[#allocation100_spill] sm:$0xff] %v11057_v5  ;;  %7260 = vmatprep.subr.bf16.mxu0 %v11042_v58  ;;  %v11064_v60 = vsub.f32 %v3740_v28, %v3831_v10  ;;  %v14968_v49 = vand.u32 4294901760, %v10215_v19  ;;  %v14984_v39 = vld [vmem:[#allocation27_spill] sm:$0xff]  ;;  %v11480_v58 = vld [vmem:[#allocation2 + $0x5e8] sm:$0xff] }
 0x3e4   : > { %14963 = vst [vmem:[#allocation101_spill] sm:$0xff] %v11060_v2  ;;  %14964 = vst [vmem:[#allocation102_spill] sm:$0xff] %v11062_v45  ;;  %v11066_v51 = vsub.f32 %v3742_v56, %v3835_v18  ;;  %v14969_v21 = vand.u32 4294901760, %v10220_v61  ;;  %v14970_v47 = vand.u32 4294901760, %v10225_v46  ;;  %v11077_v33 = vpack.c.bf16 %v3835_v18, %v3831_v10  ;;  %v14982_v10 = vld [vmem:[#allocation24_spill] sm:$0xff]  ;;  %v3790_v45 = vld [vmem:[#allocation2 + $0x5f0] sm:$0xff] }
 0x3e5   : > { %14965 = vst [vmem:[#allocation73_spill] sm:$0xff] %v11064_v60  ;;  %v7145_v11 = vpack.c.bf16 %v14968_v49, %v14967_v59  ;;  %v14973_v36 = vand.u32 4294901760, %v10235_v20  ;;  %v14974_v19 = vand.u32 4294901760, %v10240_v53  ;;  %v14975_v61 = vand.u32 4294901760, %v10245_v27  ;;  %v14988_v59 = vld [vmem:[#allocation31_spill] sm:$0xff]  ;;  %15081 = vst [vmem:[#allocation14_spill] sm:$0xff] %v11480_v58 }
 0x3e6   : > { %14966 = vst [vmem:[#allocation79_spill] sm:$0xff] %v11066_v51  ;;  %7142 = vmatpush1.bf16.msra.mxu1 %v7141_v24  ;;  %v7147_v8 = vpack.c.bf16 %v14970_v47, %v14969_v21  ;;  %7262 = vmatpush1.bf16.msra.mxu0 %v11057_v5  ;;  %14971 = vst [vmem:[#allocation10_spill] sm:$0xff] %v11077_v33  ;;  %v14972_v24 = vand.u32 4294901760, %v10230_v12  ;;  %v14976_v46 = vand.u32 4294901760, %v10250_v37  ;;  %v14978_v63 = vand.u32 4294901760, %v14977_v35  ;;  %v14991_v21 = vld [vmem:[#allocation37_spill] sm:$0xff] }
 0x3e7   : > { %7144 = vmatprep.subr.bf16.mxu1 %v7143_v17  ;;  %7264 = vmatprep.subr.bf16.mxu0 %v11060_v2  ;;  %v7151_v42 = vpack.c.bf16 %v14975_v61, %v14974_v19  ;;  %v14979_v12 = vand.u32 4294901760, %v14857_v43  ;;  %v14981_v20 = vand.u32 4294901760, %v14980_v23  ;;  %v14983_v53 = vand.u32 4294901760, %v14982_v10  ;;  %v14986_v17 = vld [vmem:[#allocation30_spill] sm:$0xff]  ;;  %v14996_v19 = vld [vmem:[#allocation41_spill] sm:$0xff]  ;;  %15082 = vst [vmem:[#allocation69_spill] sm:$0xff] %v11482_v3 }
 0x3e8   : > { %v7149_v28 = vpack.c.bf16 %v14973_v36, %v14972_v24  ;;  %v7153_v56 = vpack.c.bf16 %v14978_v63, %v14976_v46  ;;  %v14985_v27 = vand.u32 4294901760, %v14984_v39  ;;  %v14987_v18 = vand.u32 4294901760, %v14986_v17  ;;  %v15012_v39 = vld [vmem:[#allocation71_spill] sm:$0xff]  ;;  %v11461_v5 = vld [vmem:[#allocation2 + $0x5c0] sm:$0xff] }
 0x3e9   : > { %v7155_v31 = vpack.c.bf16 %v14981_v20, %v14979_v12  ;;  %v14989_v37 = vand.u32 4294901760, %v14988_v59  ;;  %v14992_v43 = vand.u32 4294901760, %v14991_v21  ;;  %v14994_v24 = vand.u32 4294901760, %v14868_v48  ;;  %v3788_v60 = vld [vmem:[#allocation2 + $0x5e0] sm:$0xff] }
 0x3ea   : > { %7146 = vmatpush1.bf16.msra.mxu1 %v7145_v11  ;;  %7266 = vmatpush1.bf16.msra.mxu0 %v11077_v33  ;;  %v7157_v29 = vpack.c.bf16 %v14985_v27, %v14983_v53  ;;  %v14990_v11 = vand.u32 4294901760, %v14866_v15  ;;  %v14997_v61 = vand.u32 4294901760, %v14996_v19  ;;  %v14998_v46 = vand.u32 4294901760, %v14872_v41  ;;  %v15032_v19 = vld [vmem:[#allocation34_spill] sm:$0xff]  ;;  %v11456_v33 = vld [vmem:[#allocation2 + $0x5d8] sm:$0xff] }
 0x3eb   : > { %7148 = vmatprep.subr.bf16.mxu1 %v7147_v8  ;;  %v7159_v49 = vpack.c.bf16 %v14989_v37, %v14987_v18  ;;  %v14993_v8 = vand.u32 4294901760, %v14869_v30  ;;  %v14999_v15 = vand.u32 4294901760, %v14871_v38  ;;  %v15000_v63 = vand.u32 4294901760, %v14875_v25  ;;  %v15018_v18 = vld [vmem:[#allocation83_spill] sm:$0xff] }
 0x3ec   : > { %v7161_v47 = vpack.c.bf16 %v14992_v43, %v14990_v11  ;;  %v15001_v30 = vand.u32 4294901760, %v14874_v22  ;;  %v15002_v48 = vand.u32 4294901760, %v14878_v9  ;;  %v15004_v23 = vand.u32 4294901760, %v10350_v50  ;;  %v15024_v43 = vld [vmem:[#allocation9_spill] sm:$0xff] }
 0x3ed   : > { %v7163_v36 = vpack.c.bf16 %v14994_v24, %v14993_v8  ;;  %v7167_v35 = vpack.c.bf16 %v14999_v15, %v14998_v46  ;;  %v15005_v41 = vand.u32 4294901760, %v10355_v52  ;;  %v15006_v38 = vand.u32 4294901760, %v14817_v57  ;;  %v15027_v8 = vld [vmem:[#allocation13_spill] sm:$0xff]  ;;  %v15029_v24 = vld [vmem:[#allocation72_spill] sm:$0xff]  ;;  %v15035_v46 = vld [vmem:[#allocation70_spill] sm:$0xff] }
 0x3ee   : > { %7150 = vmatpush1.bf16.msra.mxu1 %v7149_v28  ;;  %v14995_v28 = vand.u32 4294901760, %v14812_v14  ;;  %v15003_v14 = vand.u32 4294901760, %v14877_v44  ;;  %v15007_v25 = vand.u32 4294901760, %v14818_v55  ;;  %v15008_v22 = vand.u32 4294901760, %v10370_v6  ;;  %v15010_v44 = vld [vmem:[#allocation67_spill] sm:$0xff] }
 0x3ef   : > { %7152 = vmatprep.subr.bf16.mxu1 %v7151_v42  ;;  %v7173_v20 = vpack.c.bf16 %v15005_v41, %v15004_v23  ;;  %v15009_v9 = vand.u32 4294901760, %v10375_v26  ;;  %v15011_v53 = vand.u32 4294901760, %v15010_v44  ;;  %v15013_v50 = vand.u32 4294901760, %v15012_v39  ;;  %v15020_v26 = vld [vmem:[#allocation85_spill] sm:$0xff]  ;;  %v15036_v15 = vld [vmem:[#allocation75_spill] sm:$0xff]  ;;  %v15046_v41 = vld [vmem:[#allocation46_spill] sm:$0xff] }
 0x3f0   : > { %v7165_v42 = vpack.c.bf16 %v14997_v61, %v14995_v28  ;;  %v7171_v12 = vpack.c.bf16 %v15003_v14, %v15002_v48  ;;  %v15014_v52 = vand.u32 4294901760, %v14824_v1  ;;  %v15017_v55 = vand.u32 4294901760, %v14826_v34  ;;  %v15025_v1 = vld [vmem:[#allocation65_spill] sm:$0xff]  ;;  %v15028_v34 = vld [vmem:[#allocation15_spill] sm:$0xff]  ;;  %v15031_v28 = vld [vmem:[#allocation26_spill] sm:$0xff] }
 0x3f1   : > { %v7177_v10 = vpack.c.bf16 %v15009_v9, %v15008_v22  ;;  %v7179_v27 = vpack.c.bf16 %v15013_v50, %v15011_v53  ;;  %v15019_v6 = vand.u32 4294901760, %v15018_v18  ;;  %v15021_v37 = vand.u32 4294901760, %v15020_v26  ;;  %v15033_v61 = vld [vmem:[#allocation35_spill] sm:$0xff]  ;;  %v15042_v48 = vld [vmem:[#allocation86_spill] sm:$0xff]  ;;  %v15043_v14 = vld [vmem:[#allocation5_spill] sm:$0xff] }
 0x3f2   : > { %7154 = vmatpush1.bf16.msra.mxu1 %v7153_v56  ;;  %v7169_v56 = vpack.c.bf16 %v15001_v30, %v15000_v63  ;;  %v15038_v63 = vld [vmem:[#allocation77_spill] sm:$0xff]  ;;  %v15039_v30 = vld [vmem:[#allocation80_spill] sm:$0xff]  ;;  %v15045_v23 = vld [vmem:[#allocation91_spill] sm:$0xff]  ;;  %v13927_v2 = vand.u32 4294901760, %v11456_v33  ;;  %v3929_v51 = vand.u32 4294901760, %v11482_v3 }
 0x3f3   : > { %7156 = vmatprep.subr.bf16.mxu1 %v7155_v31  ;;  %v7175_v31 = vpack.c.bf16 %v15007_v25, %v15006_v38  ;;  %v7183_v59 = vpack.c.bf16 %v15019_v6, %v15017_v55  ;;  %v15048_v38 = vld [vmem:[#allocation50_spill] sm:$0xff]  ;;  %v15049_v25 = vld [vmem:[#allocation51_spill] sm:$0xff]  ;;  %v15052_v9 = vld [vmem:[#allocation56_spill] sm:$0xff] }
 0x3f4   : > { %v15051_v22 = vld [vmem:[#allocation54_spill] sm:$0xff]  ;;  %v15055_v53 = vld [vmem:[#allocation60_spill] sm:$0xff]  ;;  %v15056_v39 = vld [vmem:[#allocation63_spill] sm:$0xff] }
 0x3f5   : > { %v15054_v44 = vld [vmem:[#allocation58_spill] sm:$0xff]  ;;  %v15057_v50 = vld [vmem:[#allocation81_spill] sm:$0xff]  ;;  %v11204_v18 = vld [vmem:[#allocation2 + $0x490] sm:$0xff] }
 0x3f6   : > { %7158 = vmatpush1.bf16.msra.mxu1 %v7157_v29  ;;  %v15015_v29 = vld [vmem:[#allocation76_spill] sm:$0xff]  ;;  %v11202_v55 = vld [vmem:[#allocation2 + $0x480] sm:$0xff] }
 0x3f7   : > { %7160 = vmatprep.subr.bf16.mxu1 %v7159_v49  ;;  %v15016_v57 = vand.u32 4294901760, %v15015_v29  ;;  %v15022_v49 = vld [vmem:[#allocation88_spill] sm:$0xff]  ;;  %v13855_v6 = vand.u32 4294901760, %v11202_v55 }
 0x3f8   : > { %v15023_v11 = vand.u32 4294901760, %v15022_v49  ;;  %v11198_v29 = vld [vmem:[#allocation2 + $0x498] sm:$0xff]  ;;  %v11220_v49 = vld [vmem:[#allocation2 + $0x4a8] sm:$0xff] }
 0x3f9   : > { %v7181_v17 = vpack.c.bf16 %v15016_v57, %v15014_v52  ;;  %v11196_v52 = vld [vmem:[#allocation2 + $0x488] sm:$0xff]  ;;  %v15088_v3 = vand.u32 4294901760, %v11198_v29 }
 0x3fa   : > { %7162 = vmatpush1.bf16.msra.mxu1 %v7161_v47  ;;  %v7185_v21 = vpack.c.bf16 %v15023_v11, %v15021_v37  ;;  %v15026_v47 = vld [vmem:[#allocation12_spill] sm:$0xff]  ;;  %v13857_v57 = vand.u32 4294901760, %v11196_v52 }
 0x3fb   : > { %7164 = vmatprep.subr.bf16.mxu1 %v7163_v36  ;;  %v15030_v36 = vld [vmem:[#allocation20_spill] sm:$0xff] }
 0x3fc   : > { %v11222_v11 = vld [vmem:[#allocation2 + $0x4b8] sm:$0xff] }
 0x3fe   : > { %7166 = vmatpush1.bf16.msra.mxu1 %v7165_v42  ;;  %v15034_v42 = vld [vmem:[#allocation62_spill] sm:$0xff] }
 0x3ff   : > { %7168 = vmatprep.subr.bf16.mxu1 %v7167_v35  ;;  %v15037_v35 = vld [vmem:[#allocation74_spill] sm:$0xff] }
 0x402   : > { %7170 = vmatpush1.bf16.msra.mxu1 %v7169_v56  ;;  %v15040_v56 = vld [vmem:[#allocation84_spill] sm:$0xff] }
 0x403   : > { %7172 = vmatprep.subr.bf16.mxu1 %v7171_v12  ;;  %v15044_v12 = vld [vmem:[#allocation6_spill] sm:$0xff] }
 0x406   : > { %7174 = vmatpush1.bf16.msra.mxu1 %v7173_v20  ;;  %v15047_v20 = vld [vmem:[#allocation48_spill] sm:$0xff] }
 0x407   : > { %7176 = vmatprep.subr.bf16.mxu1 %v7175_v31  ;;  %v15050_v31 = vld [vmem:[#allocation53_spill] sm:$0xff] }
 0x40a   : > { %7178 = vmatpush1.bf16.msra.mxu1 %v7177_v10  ;;  %v15053_v10 = vld [vmem:[#allocation57_spill] sm:$0xff] }
 0x40b   : > { %7180 = vmatprep.subr.bf16.mxu1 %v7179_v27  ;;  %v15058_v27 = vld [vmem:[#allocation87_spill] sm:$0xff] }
 0x40e   : > { %7182 = vmatpush1.bf16.msra.mxu1 %v7181_v17  ;;  %v13856_v17 = vand.u32 4294901760, %v11198_v29 }
 0x40f   : > { %7184 = vmatprep.subr.bf16.mxu1 %v7183_v59  ;;  %v13850_v59 = vand.u32 4294901760, %v11204_v18 }
 0x410   : > { %v11212_v26 = vpack.c.bf16 %v13856_v17, %v13857_v57  ;;  %v11376_v17 = vld [vmem:[#allocation2 + $0x568] sm:$0xff]  ;;  %v11378_v57 = vld [vmem:[#allocation2 + $0x578] sm:$0xff] }
 0x411   : > { %v11218_v37 = vpack.c.bf16 %v13850_v59, %v13855_v6  ;;  %v11357_v59 = vld [vmem:[#allocation2 + $0x540] sm:$0xff] }
 0x412   : > { %7186 = vmatpush1.bf16.msra.mxu1 %v7185_v21  ;;  %15059 = vst [vmem:[#allocation11_spill] sm:$0xff] %v11212_v26  ;;  %7268 = vmatprep.subr.bf16.mxu0 %v11212_v26  ;;  %v13849_v21 = vand.u32 4294901760, %v11220_v49  ;;  %v11454_v26 = vld [vmem:[#allocation2 + $0x5c8] sm:$0xff] }
 0x413   : > { %7188 = vmatprep.subr.bf16.mxu1 %v15024_v43  ;;  %15060 = vst [vmem:[#allocation23_spill] sm:$0xff] %v11218_v37  ;;  %v13848_v43 = vand.u32 4294901760, %v11222_v11  ;;  %7270 = vmatpush1.bf16.msra.mxu0 %v11218_v37  ;;  %v11435_v37 = vld [vmem:[#allocation2 + $0x5a0] sm:$0xff] }
 0x415   : > { %3508 = vmatmul.mubr.f32.vlgmr.msra.gmra.mrb[4].mxu1 %v15025_v1 }
 0x416   : > { %3514 = vmatprep.mubr.f32.mxu1 %v15026_v47  ;;  %7190 = vmatpush1.bf16.msra.mxu1 %v15027_v8 }
 0x417   : > { %7192 = vmatprep.subr.bf16.mxu1 %v15028_v34 }
 0x419   : > { %3516 = vmatmul.mubr.f32.gmra.mrb[6].mxu1 %v15029_v24 }
 0x41a   : > { %7194 = vmatpush1.bf16.msra.mxu1 %v15030_v36  ;;  %3651 = vmatprep.mubr.f32.mxu1 %v14935_v16  ;;  %v15041_v16 = vld [vmem:[#allocation82_spill] sm:$0xff] }
 0x41b   : > { %7196 = vmatprep.subr.bf16.mxu1 %v15031_v28  ;;  %v11246_v28 = vld [vmem:[#allocation2 + $0x4c8] sm:$0xff] }
 0x41e   : > { %7198 = vmatpush1.bf16.msra.mxu1 %v15032_v19  ;;  %v11248_v19 = vld [vmem:[#allocation2 + $0x4d8] sm:$0xff] }
 0x41f   : > { %7200 = vmatprep.subr.bf16.mxu1 %v15033_v61  ;;  %v13845_v61 = vand.u32 4294901760, %v11246_v28 }
 0x422   : > { %7202 = vmatpush1.bf16.msra.mxu1 %v15034_v42  ;;  %v13840_v42 = vand.u32 4294901760, %v11248_v19 }
 0x423   : > { %7204 = vmatprep.subr.bf16.mxu1 %v15035_v46  ;;  %v11253_v46 = vld [vmem:[#allocation2 + $0x4c0] sm:$0xff] }
 0x426   : > { %7206 = vmatpush1.bf16.msra.mxu1 %v15036_v15  ;;  %v11255_v15 = vld [vmem:[#allocation2 + $0x4d0] sm:$0xff] }
 0x427   : > { %7208 = vmatprep.subr.bf16.mxu1 %v15037_v35  ;;  %v13839_v35 = vand.u32 4294901760, %v11253_v46 }
 0x42a   : > { %7210 = vmatpush1.bf16.msra.mxu1 %v15038_v63  ;;  %v13838_v63 = vand.u32 4294901760, %v11255_v15 }
 0x42b   : > { %7212 = vmatprep.subr.bf16.mxu1 %v15039_v30  ;;  %v11264_v30 = vpack.c.bf16 %v13840_v42, %v13845_v61  ;;  %v11331_v42 = vld [vmem:[#allocation2 + $0x520] sm:$0xff] }
 0x42d   : > { %15063 = vst [vmem:[#allocation25_spill] sm:$0xff] %v11264_v30 }
 0x42e   : > { %7214 = vmatpush1.bf16.msra.mxu1 %v15040_v56  ;;  %v11270_v56 = vpack.c.bf16 %v13838_v63, %v13839_v35 }
 0x42f   : > { %7216 = vmatprep.subr.bf16.mxu1 %v15041_v16  ;;  %v11272_v16 = vld [vmem:[#allocation2 + $0x4e8] sm:$0xff] }
 0x430   : > { %15064 = vst [vmem:[#allocation29_spill] sm:$0xff] %v11270_v56 }
 0x432   : > { %7218 = vmatpush1.bf16.msra.mxu1 %v15042_v48  ;;  %v11274_v48 = vld [vmem:[#allocation2 + $0x4f8] sm:$0xff] }
 0x433   : > { %7220 = vmatprep.subr.bf16.mxu1 %v15043_v14  ;;  %v13837_v14 = vand.u32 4294901760, %v11272_v16 }
 0x436   : > { %7222 = vmatpush1.bf16.msra.mxu1 %v15044_v12  ;;  %v13836_v12 = vand.u32 4294901760, %v11274_v48 }
 0x437   : > { %7224 = vmatprep.subr.bf16.mxu1 %v15045_v23  ;;  %v11279_v23 = vld [vmem:[#allocation2 + $0x4e0] sm:$0xff] }
 0x43a   : > { %7226 = vmatpush1.bf16.msra.mxu1 %v15046_v41  ;;  %v11281_v41 = vld [vmem:[#allocation2 + $0x4f0] sm:$0xff] }
 0x43b   : > { %7228 = vmatprep.subr.bf16.mxu1 %v15047_v20  ;;  %v13835_v20 = vand.u32 4294901760, %v11279_v23 }
 0x43e   : > { %7230 = vmatpush1.bf16.msra.mxu1 %v15048_v38  ;;  %v13834_v38 = vand.u32 4294901760, %v11281_v41 }
 0x43f   : > { %7232 = vmatprep.subr.bf16.mxu1 %v15049_v25  ;;  %v11290_v25 = vpack.c.bf16 %v13836_v12, %v13837_v14  ;;  %v11324_v12 = vld [vmem:[#allocation2 + $0x528] sm:$0xff]  ;;  %v11326_v14 = vld [vmem:[#allocation2 + $0x538] sm:$0xff] }
 0x440   : > { %v13852_v63 = vand.u32 4294901760, %v11324_v12  ;;  %v13851_v35 = vand.u32 4294901760, %v11326_v14 }
 0x441   : > { %15065 = vst [vmem:[#allocation45_spill] sm:$0xff] %v11290_v25 }
 0x442   : > { %7234 = vmatpush1.bf16.msra.mxu1 %v15050_v31  ;;  %v11296_v31 = vpack.c.bf16 %v13834_v38, %v13835_v20 }
 0x443   : > { %7236 = vmatprep.subr.bf16.mxu1 %v15051_v22  ;;  %v11298_v22 = vld [vmem:[#allocation2 + $0x508] sm:$0xff] }
 0x444   : > { %15066 = vst [vmem:[#allocation18_spill] sm:$0xff] %v11296_v31 }
 0x446   : > { %7238 = vmatpush1.bf16.msra.mxu1 %v15052_v9  ;;  %v11300_v9 = vld [vmem:[#allocation2 + $0x518] sm:$0xff] }
 0x447   : > { %7240 = vmatprep.subr.bf16.mxu1 %v15053_v10  ;;  %v13842_v10 = vand.u32 4294901760, %v11298_v22 }
 0x44a   : > { %7242 = vmatpush1.bf16.msra.mxu1 %v15054_v44  ;;  %v13841_v44 = vand.u32 4294901760, %v11300_v9 }
 0x44b   : > { %7244 = vmatprep.subr.bf16.mxu1 %v15055_v53  ;;  %v11305_v53 = vld [vmem:[#allocation2 + $0x500] sm:$0xff] }
 0x44c   : > { %v11316_v38 = vpack.c.bf16 %v13841_v44, %v13842_v10  ;;  %v11333_v44 = vld [vmem:[#allocation2 + $0x530] sm:$0xff]  ;;  %v13854_v10 = vand.u32 4294901760, %v11331_v42 }
 0x44e   : > { %7246 = vmatpush1.bf16.msra.mxu1 %v15056_v39  ;;  %v11307_v39 = vld [vmem:[#allocation2 + $0x510] sm:$0xff]  ;;  %15067 = vst [vmem:[#allocation94_spill] sm:$0xff] %v11316_v38 }
 0x44f   : > { %7248 = vmatprep.subr.bf16.mxu1 %v15057_v50  ;;  %v13844_v50 = vand.u32 4294901760, %v11305_v53 }
 0x452   : > { %7250 = vmatpush1.bf16.msra.mxu1 %v15058_v27  ;;  %v13843_v27 = vand.u32 4294901760, %v11307_v39 }
 0x454   : > { %v11322_v20 = vpack.c.bf16 %v13843_v27, %v13844_v50  ;;  %v13853_v27 = vand.u32 4294901760, %v11333_v44  ;;  %v11342_v50 = vpack.c.bf16 %v13851_v35, %v13852_v63  ;;  %v11359_v35 = vld [vmem:[#allocation2 + $0x550] sm:$0xff]  ;;  %v13867_v63 = vand.u32 4294901760, %v11357_v59 }
 0x455   : > { %3653 = vmatmul.mubr.f32.vlgmr.msra.gmra.mrb[4].mxu1 %v15025_v1  ;;  %v11227_v1 = vld [vmem:[#allocation2 + $0x4a0] sm:$0xff] }
 0x456   : > { %3659 = vmatprep.mubr.f32.mxu1 %v15026_v47  ;;  %v11229_v47 = vld [vmem:[#allocation2 + $0x4b0] sm:$0xff]  ;;  %v13847_v8 = vand.u32 4294901760, %v11227_v1  ;;  %15068 = vst [vmem:[#allocation8_spill] sm:$0xff] %v11322_v20  ;;  %15069 = vst [vmem:[#allocation21_spill] sm:$0xff] %v11342_v50  ;;  %v11348_v61 = vpack.c.bf16 %v13853_v27, %v13854_v10  ;;  %v13866_v27 = vand.u32 4294901760, %v11359_v35 }
 0x457   : > { %v13846_v34 = vand.u32 4294901760, %v11229_v47 }
 0x458   : > { %15070 = vst [vmem:[#allocation36_spill] sm:$0xff] %v11348_v61  ;;  %v11374_v6 = vpack.c.bf16 %v13866_v27, %v13867_v63 }
 0x459   : > { %3661 = vmatmul.mubr.f32.gmra.mrb[6].mxu1 %v15029_v24  ;;  %v11238_v24 = vpack.c.bf16 %v13848_v43, %v13849_v21  ;;  %v11244_v36 = vpack.c.bf16 %v13846_v34, %v13847_v8  ;;  %v11350_v34 = vld [vmem:[#allocation2 + $0x548] sm:$0xff]  ;;  %v11352_v8 = vld [vmem:[#allocation2 + $0x558] sm:$0xff] }
 0x45a   : > { %v13865_v43 = vand.u32 4294901760, %v11350_v34  ;;  %v13864_v21 = vand.u32 4294901760, %v11352_v8  ;;  %15072 = vst [vmem:[#allocation38_spill] sm:$0xff] %v11374_v6 }
 0x45b   : > { %15061 = vst [vmem:[#allocation22_spill] sm:$0xff] %v11238_v24  ;;  %15062 = vst [vmem:[#allocation28_spill] sm:$0xff] %v11244_v36  ;;  %7272 = vmatprep.subr.bf16.mxu0 %v11238_v24 }
 0x45c   : > { %7274 = vmatpush1.bf16.msra.mxu0 %v11244_v36  ;;  %v11368_v10 = vpack.c.bf16 %v13864_v21, %v13865_v43  ;;  %v11385_v21 = vld [vmem:[#allocation2 + $0x570] sm:$0xff]  ;;  %v11430_v36 = vld [vmem:[#allocation2 + $0x5b8] sm:$0xff] }
 0x45d   : > { %7276 = vmatprep.subr.bf16.mxu0 %v11264_v30  ;;  %v13882_v27 = vand.u32 4294901760, %v11385_v21  ;;  %v11428_v30 = vld [vmem:[#allocation2 + $0x5a8] sm:$0xff]  ;;  %v13912_v24 = vand.u32 4294901760, %v11430_v36 }
 0x45e   : > { %15071 = vst [vmem:[#allocation39_spill] sm:$0xff] %v11368_v10 }
 0x460   : > { %7278 = vmatpush1.bf16.msra.mxu0 %v11270_v56  ;;  %v11409_v56 = vld [vmem:[#allocation2 + $0x580] sm:$0xff] }
 0x461   : > { %7280 = vmatprep.subr.bf16.mxu0 %v11290_v25 }
 0x464   : > { %7282 = vmatpush1.bf16.msra.mxu0 %v11296_v31  ;;  %v11404_v31 = vld [vmem:[#allocation2 + $0x598] sm:$0xff] }
 0x465   : > { %7284 = vmatprep.subr.bf16.mxu0 %v11316_v38  ;;  %v11402_v38 = vld [vmem:[#allocation2 + $0x588] sm:$0xff]  ;;  %v13896_v25 = vand.u32 4294901760, %v11404_v31 }
 0x468   : > { %7286 = vmatpush1.bf16.msra.mxu0 %v11322_v20  ;;  %v11383_v20 = vld [vmem:[#allocation2 + $0x560] sm:$0xff] }
 0x469   : > { %7288 = vmatprep.subr.bf16.mxu0 %v11342_v50  ;;  %v13880_v50 = vand.u32 4294901760, %v11378_v57  ;;  %v13883_v43 = vand.u32 4294901760, %v11383_v20 }
 0x46c   : > { %7290 = vmatpush1.bf16.msra.mxu0 %v11348_v61  ;;  %v13881_v61 = vand.u32 4294901760, %v11376_v17 }
 0x46d   : > { %7292 = vmatprep.subr.bf16.mxu0 %v11368_v10  ;;  %v11400_v10 = vpack.c.bf16 %v13882_v27, %v13883_v43 }
 0x46e   : > { %v11394_v63 = vpack.c.bf16 %v13880_v50, %v13881_v61  ;;  %v11411_v50 = vld [vmem:[#allocation2 + $0x590] sm:$0xff]  ;;  %v13899_v61 = vand.u32 4294901760, %v11409_v56 }
 0x46f   : > { %15074 = vst [vmem:[#allocation43_spill] sm:$0xff] %v11400_v10  ;;  %v13898_v27 = vand.u32 4294901760, %v11411_v50 }
 0x470   : > { %7294 = vmatpush1.bf16.msra.mxu0 %v11374_v6  ;;  %15073 = vst [vmem:[#allocation47_spill] sm:$0xff] %v11394_v63  ;;  %v13897_v6 = vand.u32 4294901760, %v11402_v38 }
 0x471   : > { %7296 = vmatprep.subr.bf16.mxu0 %v11394_v63  ;;  %v11426_v63 = vpack.c.bf16 %v13898_v27, %v13899_v61 }
 0x472   : > { %v11420_v43 = vpack.c.bf16 %v13896_v25, %v13897_v6  ;;  %v11437_v25 = vld [vmem:[#allocation2 + $0x5b0] sm:$0xff]  ;;  %v13915_v6 = vand.u32 4294901760, %v11435_v37 }
 0x473   : > { %15076 = vst [vmem:[#allocation49_spill] sm:$0xff] %v11426_v63  ;;  %v13914_v27 = vand.u32 4294901760, %v11437_v25 }
 0x474   : > { %7298 = vmatpush1.bf16.msra.mxu0 %v11400_v10  ;;  %15075 = vst [vmem:[#allocation52_spill] sm:$0xff] %v11420_v43  ;;  %v13913_v10 = vand.u32 4294901760, %v11428_v30 }
 0x475   : > { %7300 = vmatprep.subr.bf16.mxu0 %v11420_v43  ;;  %v11452_v43 = vpack.c.bf16 %v13914_v27, %v13915_v6 }
 0x476   : > { %v11446_v61 = vpack.c.bf16 %v13912_v24, %v13913_v10  ;;  %v11463_v24 = vld [vmem:[#allocation2 + $0x5d0] sm:$0xff]  ;;  %v13931_v10 = vand.u32 4294901760, %v11461_v5 }
 0x477   : > { %15078 = vst [vmem:[#allocation55_spill] sm:$0xff] %v11452_v43  ;;  %v13930_v27 = vand.u32 4294901760, %v11463_v24 }
 0x478   : > { %7302 = vmatpush1.bf16.msra.mxu0 %v11426_v63  ;;  %15077 = vst [vmem:[#allocation59_spill] sm:$0xff] %v11446_v61  ;;  %v13928_v63 = vand.u32 4294901760, %v11454_v26 }
 0x479   : > { %7304 = vmatprep.subr.bf16.mxu0 %v11446_v61  ;;  %v11478_v61 = vpack.c.bf16 %v13930_v27, %v13931_v10  ;;  %v3927_v27 = vand.u32 4294901760, %v3788_v60  ;;  %v3931_v10 = vand.u32 4294901760, %v3790_v45 }
 0x47a   : > { %v11472_v6 = vpack.c.bf16 %v13927_v2, %v13928_v63  ;;  %v13944_v2 = vand.u32 4294901760, %v11011_v54  ;;  %v15083_v63 = vld [vmem:[#allocation66_spill] sm:$0xff] }
 0x47b   : > { %15080 = vst [vmem:[#allocation103_spill] sm:$0xff] %v11478_v61  ;;  %v13945_v0 = vand.u32 4294901760, %v15083_v63  ;;  %v11498_v13 = vpack.c.bf16 %v3931_v10, %v3927_v27 }
 0x47c   : > { %7306 = vmatpush1.bf16.msra.mxu0 %v11452_v43  ;;  %15079 = vst [vmem:[#allocation68_spill] sm:$0xff] %v11472_v6  ;;  %v3925_v43 = vand.u32 4294901760, %v11480_v58  ;;  %v11509_v58 = vsub.f32 %v11198_v29, %v15088_v3  ;;  %v15096_v3 = vand.u32 4294901760, %v11222_v11 }
 0x47d   : > { %7308 = vmatprep.subr.bf16.mxu0 %v11472_v6  ;;  %v3969_v6 = vsub.f32 %v11011_v54, %v13944_v2  ;;  %v3981_v62 = vsub.f32 %v15083_v63, %v13945_v0  ;;  %15085 = vst [vmem:[#allocation7_spill] sm:$0xff] %v11498_v13  ;;  %v15090_v2 = vand.u32 4294901760, %v11202_v55  ;;  %v15092_v63 = vand.u32 4294901760, %v11204_v18  ;;  %v15166_v54 = vld [vmem:[#allocation33_spill] sm:$0xff] }
 0x47e   : > { %v11490_v7 = vpack.c.bf16 %v3929_v51, %v3925_v43  ;;  %15089 = vst [vmem:[#allocation27_spill] sm:$0xff] %v11509_v58  ;;  %v11530_v29 = vsub.f32 %v11222_v11, %v15096_v3  ;;  %v15102_v3 = vand.u32 4294901760, %v11253_v46 }
 0x47f   : > { %v3970_v40 = vand.u32 4294901760, %v3969_v6  ;;  %v3982_v32 = vand.u32 4294901760, %v3981_v62  ;;  %v11514_v0 = vsub.f32 %v11202_v55, %v15090_v2  ;;  %v11519_v6 = vsub.f32 %v11204_v18, %v15092_v63 }
 0x480   : > { %7310 = vmatpush1.bf16.msra.mxu0 %v11478_v61  ;;  %15084 = vst [vmem:[#allocation19_spill] sm:$0xff] %v11490_v7  ;;  %v15086_v61 = vand.u32 4294901760, %v11196_v52  ;;  %v15094_v62 = vand.u32 4294901760, %v11220_v49  ;;  %15097 = vst [vmem:[#allocation41_spill] sm:$0xff] %v11530_v29  ;;  %v15098_v2 = vand.u32 4294901760, %v11227_v1  ;;  %v15099_v18 = vand.u32 4294901760, %v11229_v47 }
 0x481   : > { %7312 = vmatprep.subr.bf16.mxu0 %v11490_v7  ;;  %15091 = vst [vmem:[#allocation30_spill] sm:$0xff] %v11514_v0  ;;  %15093 = vst [vmem:[#allocation31_spill] sm:$0xff] %v11519_v6  ;;  %v15100_v63 = vand.u32 4294901760, %v11246_v28  ;;  %v11728_v7 = vsub.f32 %v3788_v60, %v3927_v27  ;;  %v15171_v60 = vld [vmem:[#allocation98_spill] sm:$0xff] }
 0x482   : > { %v11504_v4 = vsub.f32 %v11196_v52, %v15086_v61  ;;  %v11525_v52 = vsub.f32 %v11220_v49, %v15094_v62  ;;  %v11535_v55 = vsub.f32 %v11227_v1, %v15098_v2  ;;  %v11540_v61 = vsub.f32 %v11229_v47, %v15099_v18 }
 0x483   : > { %v11545_v49 = vsub.f32 %v11246_v28, %v15100_v63  ;;  %v15101_v62 = vand.u32 4294901760, %v11248_v19  ;;  %v11555_v1 = vsub.f32 %v11253_v46, %v15102_v3  ;;  %v15103_v2 = vand.u32 4294901760, %v11255_v15  ;;  %15164 = vst [vmem:[#allocation6_spill] sm:$0xff] %v11728_v7 }
 0x484   : > { %15087 = vst [vmem:[#allocation24_spill] sm:$0xff] %v11504_v4  ;;  %7314 = vmatpush1.bf16.msra.mxu0 %v11498_v13  ;;  %15095 = vst [vmem:[#allocation37_spill] sm:$0xff] %v11525_v52  ;;  %v15104_v18 = vand.u32 4294901760, %v11272_v16  ;;  %v15105_v63 = vand.u32 4294901760, %v11274_v48  ;;  %v15107_v3 = vand.u32 4294901760, %v11281_v41 }
 0x485   : > { %v11550_v11 = vsub.f32 %v11248_v19, %v15101_v62  ;;  %v11560_v47 = vsub.f32 %v11255_v15, %v15103_v2  ;;  %v15106_v62 = vand.u32 4294901760, %v11279_v23  ;;  %v15108_v2 = vand.u32 4294901760, %v11298_v22 }
 0x486   : > { %v11565_v28 = vsub.f32 %v11272_v16, %v15104_v18  ;;  %v11570_v19 = vsub.f32 %v11274_v48, %v15105_v63  ;;  %v11580_v15 = vsub.f32 %v11281_v41, %v15107_v3  ;;  %v15110_v18 = vand.u32 4294901760, %v11300_v9 }
 0x487   : > { %v11575_v46 = vsub.f32 %v11279_v23, %v15106_v62  ;;  %v11585_v16 = vsub.f32 %v11298_v22, %v15108_v2  ;;  %v15112_v63 = vand.u32 4294901760, %v11305_v53  ;;  %v15114_v62 = vand.u32 4294901760, %v11307_v39 }
 0x488   : > { %v11590_v48 = vsub.f32 %v11300_v9, %v15110_v18  ;;  %v15116_v3 = vand.u32 4294901760, %v11324_v12  ;;  %v15118_v2 = vand.u32 4294901760, %v11326_v14  ;;  %v15120_v18 = vand.u32 4294901760, %v11331_v42 }
 0x489   : > { %15109 = vst [vmem:[#allocation67_spill] sm:$0xff] %v11585_v16  ;;  %v11595_v23 = vsub.f32 %v11305_v53, %v15112_v63  ;;  %v11600_v41 = vsub.f32 %v11307_v39, %v15114_v62  ;;  %v15122_v63 = vand.u32 4294901760, %v11333_v44  ;;  %v15124_v62 = vand.u32 4294901760, %v11350_v34 }
 0x48a   : > { %15111 = vst [vmem:[#allocation71_spill] sm:$0xff] %v11590_v48  ;;  %v11605_v22 = vsub.f32 %v11324_v12, %v15116_v3  ;;  %v11610_v9 = vsub.f32 %v11326_v14, %v15118_v2  ;;  %v11615_v53 = vsub.f32 %v11331_v42, %v15120_v18  ;;  %v15126_v3 = vand.u32 4294901760, %v11352_v8 }
 0x48b   : > { %15113 = vst [vmem:[#allocation76_spill] sm:$0xff] %v11595_v23  ;;  %15115 = vst [vmem:[#allocation83_spill] sm:$0xff] %v11600_v41  ;;  %v11620_v39 = vsub.f32 %v11333_v44, %v15122_v63  ;;  %v11625_v12 = vsub.f32 %v11350_v34, %v15124_v62  ;;  %v15128_v2 = vand.u32 4294901760, %v11357_v59  ;;  %v15130_v18 = vand.u32 4294901760, %v11359_v35 }
 0x48c   : > { %15117 = vst [vmem:[#allocation85_spill] sm:$0xff] %v11605_v22  ;;  %15119 = vst [vmem:[#allocation88_spill] sm:$0xff] %v11610_v9  ;;  %v11630_v14 = vsub.f32 %v11352_v8, %v15126_v3  ;;  %v15132_v63 = vand.u32 4294901760, %v11376_v17  ;;  %v15134_v62 = vand.u32 4294901760, %v11378_v57  ;;  %v15136_v3 = vand.u32 4294901760, %v11383_v20 }
 0x48d   : > { %15121 = vst [vmem:[#allocation9_spill] sm:$0xff] %v11615_v53  ;;  %15123 = vst [vmem:[#allocation65_spill] sm:$0xff] %v11620_v39  ;;  %v11635_v42 = vsub.f32 %v11357_v59, %v15128_v2  ;;  %v11640_v44 = vsub.f32 %v11359_v35, %v15130_v18  ;;  %v15138_v2 = vand.u32 4294901760, %v11385_v21  ;;  %v15140_v18 = vand.u32 4294901760, %v11402_v38 }
 0x48e   : > { %15125 = vst [vmem:[#allocation12_spill] sm:$0xff] %v11625_v12  ;;  %15127 = vst [vmem:[#allocation13_spill] sm:$0xff] %v11630_v14  ;;  %v11645_v34 = vsub.f32 %v11376_v17, %v15132_v63  ;;  %v11650_v8 = vsub.f32 %v11378_v57, %v15134_v62  ;;  %v11655_v59 = vsub.f32 %v11383_v20, %v15136_v3  ;;  %v15142_v63 = vand.u32 4294901760, %v11404_v31 }
 0x48f   : > { %15129 = vst [vmem:[#allocation15_spill] sm:$0xff] %v11635_v42  ;;  %15131 = vst [vmem:[#allocation72_spill] sm:$0xff] %v11640_v44  ;;  %v11660_v35 = vsub.f32 %v11385_v21, %v15138_v2  ;;  %v11665_v17 = vsub.f32 %v11402_v38, %v15140_v18  ;;  %v15144_v62 = vand.u32 4294901760, %v11409_v56  ;;  %v15145_v3 = vand.u32 4294901760, %v11411_v50 }
 0x490   : > { %15133 = vst [vmem:[#allocation20_spill] sm:$0xff] %v11645_v34  ;;  %15135 = vst [vmem:[#allocation26_spill] sm:$0xff] %v11650_v8  ;;  %v11670_v57 = vsub.f32 %v11404_v31, %v15142_v63  ;;  %v15146_v2 = vand.u32 4294901760, %v11428_v30  ;;  %v15148_v18 = vand.u32 4294901760, %v11430_v36  ;;  %v15150_v63 = vand.u32 4294901760, %v11435_v37 }
 0x491   : > { %15137 = vst [vmem:[#allocation34_spill] sm:$0xff] %v11655_v59  ;;  %15139 = vst [vmem:[#allocation35_spill] sm:$0xff] %v11660_v35  ;;  %v11675_v20 = vsub.f32 %v11409_v56, %v15144_v62  ;;  %v11680_v21 = vsub.f32 %v11411_v50, %v15145_v3  ;;  %v15151_v62 = vand.u32 4294901760, %v11437_v25  ;;  %v15152_v3 = vand.u32 4294901760, %v11454_v26 }
 0x492   : > { %15141 = vst [vmem:[#allocation62_spill] sm:$0xff] %v11665_v17  ;;  %15143 = vst [vmem:[#allocation70_spill] sm:$0xff] %v11670_v57  ;;  %v11685_v38 = vsub.f32 %v11428_v30, %v15146_v2  ;;  %v11690_v31 = vsub.f32 %v11430_v36, %v15148_v18  ;;  %v11695_v56 = vsub.f32 %v11435_v37, %v15150_v63  ;;  %v15154_v2 = vand.u32 4294901760, %v11456_v33 }
 0x493   : > { %v11700_v50 = vsub.f32 %v11437_v25, %v15151_v62  ;;  %v11705_v30 = vsub.f32 %v11454_v26, %v15152_v3  ;;  %v15156_v18 = vand.u32 4294901760, %v11461_v5  ;;  %v15158_v63 = vand.u32 4294901760, %v11463_v24  ;;  %v15160_v62 = vld [vmem:[#allocation14_spill] sm:$0xff]  ;;  %v15162_v26 = vld [vmem:[#allocation69_spill] sm:$0xff] }
 0x494   : > { %15147 = vst [vmem:[#allocation75_spill] sm:$0xff] %v11685_v38  ;;  %15149 = vst [vmem:[#allocation74_spill] sm:$0xff] %v11690_v31  ;;  %v11710_v36 = vsub.f32 %v11456_v33, %v15154_v2  ;;  %v11723_v13 = vsub.f32 %v15160_v62, %v3925_v43  ;;  %v11726_v3 = vsub.f32 %v15162_v26, %v3929_v51  ;;  %v15169_v31 = vld [vmem:[#allocation96_spill] sm:$0xff]  ;;  %v13970_v43 = vand.u32 4294901760, %v15171_v60 }
 0x495   : > { %15153 = vst [vmem:[#allocation77_spill] sm:$0xff] %v11705_v30  ;;  %v11715_v37 = vsub.f32 %v11461_v5, %v15156_v18  ;;  %v11720_v25 = vsub.f32 %v11463_v24, %v15158_v63  ;;  %v11730_v33 = vsub.f32 %v3790_v45, %v3931_v10  ;;  %v7315_v2 = vpack.c.bf16 %v3982_v32, %v3970_v40  ;;  %v15167_v5 = vld [vmem:[#allocation42_spill] sm:$0xff]  ;;  %v15170_v63 = vld [vmem:[#allocation40_spill] sm:$0xff]  ;;  %v15172_v45 = vld [vmem:[#allocation99_spill] sm:$0xff] }
 0x496   : > { %15155 = vst [vmem:[#allocation80_spill] sm:$0xff] %v11710_v36  ;;  %15161 = vst [vmem:[#allocation86_spill] sm:$0xff] %v11723_v13  ;;  %v13959_v36 = vand.u32 4294901760, %v15166_v54  ;;  %v13958_v18 = vand.u32 4294901760, %v15167_v5  ;;  %v13965_v24 = vand.u32 4294901760, %v15169_v31  ;;  %v13972_v10 = vand.u32 4294901760, %v15172_v45 }
 0x497   : > { %15157 = vst [vmem:[#allocation84_spill] sm:$0xff] %v11715_v37  ;;  %15159 = vst [vmem:[#allocation82_spill] sm:$0xff] %v11720_v25  ;;  %v15168_v37 = vld [vmem:[#allocation95_spill] sm:$0xff]  ;;  %v13967_v25 = vand.u32 4294901760, %v15170_v63  ;;  %7316 = vmatprep.subr.bf16.mxu0 %v7315_v2  ;;  %v4029_v2 = vsub.f32 %v15171_v60, %v13970_v43  ;;  %v15177_v60 = vld [vmem:[#allocation102_spill] sm:$0xff] }
 0x498   : > { %15163 = vst [vmem:[#allocation5_spill] sm:$0xff] %v11726_v3  ;;  %15165 = vst [vmem:[#allocation91_spill] sm:$0xff] %v11730_v33  ;;  %v13961_v30 = vand.u32 4294901760, %v15168_v37  ;;  %v3993_v51 = vsub.f32 %v15166_v54, %v13959_v36  ;;  %v4005_v32 = vsub.f32 %v15167_v5, %v13958_v18  ;;  %v4011_v27 = vsub.f32 %v15169_v31, %v13965_v24  ;;  %v15173_v36 = vld [vmem:[#allocation61_spill] sm:$0xff] }
 0x499   : > { %v4017_v62 = vsub.f32 %v15170_v63, %v13967_v25  ;;  %v4023_v18 = vsub.f32 %v15172_v45, %v13972_v10  ;;  %v13976_v33 = vand.u32 4294901760, %v15173_v36  ;;  %v4030_v24 = vand.u32 4294901760, %v4029_v2  ;;  %v15174_v25 = vld [vmem:[#allocation64_spill] sm:$0xff]  ;;  %v15178_v45 = vld [vmem:[#allocation73_spill] sm:$0xff] }
 0x49a   : > { %v3999_v40 = vsub.f32 %v15168_v37, %v13961_v30  ;;  %v3994_v26 = vand.u32 4294901760, %v3993_v51  ;;  %v4006_v30 = vand.u32 4294901760, %v4005_v32  ;;  %v4012_v3 = vand.u32 4294901760, %v4011_v27  ;;  %v15180_v27 = vld [vmem:[#allocation79_spill] sm:$0xff] }
 0x49b   : > { %v4018_v13 = vand.u32 4294901760, %v4017_v62  ;;  %v4024_v38 = vand.u32 4294901760, %v4023_v18  ;;  %v4035_v51 = vsub.f32 %v15173_v36, %v13976_v33  ;;  %v13975_v44 = vand.u32 4294901760, %v15174_v25 }
 0x49c   : > { %v4000_v7 = vand.u32 4294901760, %v3999_v40  ;;  %v11765_v42 = vpack.c.bf16 %v4006_v30, %v3994_v26  ;;  %v13977_v10 = vand.u32 4294901760, %v15177_v60  ;;  %v13978_v63 = vand.u32 4294901760, %v15178_v45 }
 0x49d   : > { %v11771_v32 = vpack.c.bf16 %v4030_v24, %v4018_v13  ;;  %v4036_v40 = vand.u32 4294901760, %v4035_v51  ;;  %v4041_v18 = vsub.f32 %v15174_v25, %v13975_v44  ;;  %v13979_v62 = vand.u32 4294901760, %v15180_v27 }
 0x49e   : > { %15175 = vst [vmem:[#allocation46_spill] sm:$0xff] %v11765_v42  ;;  %v11767_v43 = vpack.c.bf16 %v4012_v3, %v4000_v7  ;;  %v4053_v30 = vsub.f32 %v15177_v60, %v13977_v10  ;;  %v4047_v7 = vsub.f32 %v15178_v45, %v13978_v63  ;;  %v13980_v3 = vand.u32 4294901760, %v11504_v4 }
 0x49f   : > { %15179 = vst [vmem:[#allocation50_spill] sm:$0xff] %v11771_v32  ;;  %v13982_v13 = vand.u32 4294901760, %v11509_v58  ;;  %v11785_v24 = vpack.c.bf16 %v4036_v40, %v4024_v38  ;;  %v4042_v26 = vand.u32 4294901760, %v4041_v18  ;;  %v4059_v2 = vsub.f32 %v15180_v27, %v13979_v62 }
 0x4a0   : > { %15176 = vst [vmem:[#allocation48_spill] sm:$0xff] %v11767_v43  ;;  %v13981_v51 = vand.u32 4294901760, %v11514_v0  ;;  %v4054_v44 = vand.u32 4294901760, %v4053_v30  ;;  %v4048_v33 = vand.u32 4294901760, %v4047_v7  ;;  %v4065_v10 = vsub.f32 %v11504_v4, %v13980_v3 }
 0x4a1   : > { %15181 = vst [vmem:[#allocation51_spill] sm:$0xff] %v11785_v24  ;;  %v4077_v63 = vsub.f32 %v11509_v58, %v13982_v13  ;;  %v4060_v32 = vand.u32 4294901760, %v4059_v2  ;;  %v13983_v40 = vand.u32 4294901760, %v11519_v6  ;;  %v13985_v18 = vand.u32 4294901760, %v11525_v52  ;;  %v15202_v58 = vld [vmem:[#allocation78_spill] sm:$0xff] }
 0x4a2   : > { %v4071_v38 = vsub.f32 %v11514_v0, %v13981_v51  ;;  %v11802_v62 = vpack.c.bf16 %v4054_v44, %v4042_v26  ;;  %v4066_v30 = vand.u32 4294901760, %v4065_v10  ;;  %v13984_v24 = vand.u32 4294901760, %v11530_v29 }
 0x4a3   : > { %v4078_v7 = vand.u32 4294901760, %v4077_v63  ;;  %v11805_v3 = vpack.c.bf16 %v4060_v32, %v4048_v33  ;;  %v4083_v2 = vsub.f32 %v11519_v6, %v13983_v40  ;;  %v4089_v51 = vsub.f32 %v11525_v52, %v13985_v18 }
 0x4a4   : > { %15182 = vst [vmem:[#allocation53_spill] sm:$0xff] %v11802_v62  ;;  %v4072_v43 = vand.u32 4294901760, %v4071_v38  ;;  %v4101_v44 = vsub.f32 %v11530_v29, %v13984_v24  ;;  %v13986_v63 = vand.u32 4294901760, %v11535_v55  ;;  %v13987_v33 = vand.u32 4294901760, %v11540_v61 }
 0x4a5   : > { %15183 = vst [vmem:[#allocation54_spill] sm:$0xff] %v11805_v3  ;;  %v11813_v13 = vpack.c.bf16 %v4078_v7, %v4066_v30  ;;  %v4084_v10 = vand.u32 4294901760, %v4083_v2  ;;  %v4090_v32 = vand.u32 4294901760, %v4089_v51  ;;  %v13988_v26 = vand.u32 4294901760, %v11545_v49 }
 0x4a6   : > { %v13989_v38 = vand.u32 4294901760, %v11550_v11  ;;  %v4102_v40 = vand.u32 4294901760, %v4101_v44  ;;  %v4095_v30 = vsub.f32 %v11535_v55, %v13986_v63  ;;  %v4107_v7 = vsub.f32 %v11540_v61, %v13987_v33 }
 0x4a7   : > { %15184 = vst [vmem:[#allocation56_spill] sm:$0xff] %v11813_v13  ;;  %v13992_v24 = vand.u32 4294901760, %v11555_v1  ;;  %v11829_v18 = vpack.c.bf16 %v4084_v10, %v4072_v43  ;;  %v4113_v51 = vsub.f32 %v11545_v49, %v13988_v26  ;;  %v13990_v44 = vand.u32 4294901760, %v11560_v47 }
 0x4a8   : > { %v4125_v2 = vsub.f32 %v11550_v11, %v13989_v38  ;;  %v11838_v13 = vpack.c.bf16 %v4102_v40, %v4090_v32  ;;  %v4096_v63 = vand.u32 4294901760, %v4095_v30  ;;  %v4108_v3 = vand.u32 4294901760, %v4107_v7 }
 0x4a9   : > { %15185 = vst [vmem:[#allocation57_spill] sm:$0xff] %v11829_v18  ;;  %v4119_v33 = vsub.f32 %v11555_v1, %v13992_v24  ;;  %v4114_v43 = vand.u32 4294901760, %v4113_v51  ;;  %v4131_v26 = vsub.f32 %v11560_v47, %v13990_v44  ;;  %v13991_v18 = vand.u32 4294901760, %v11565_v28 }
 0x4aa   : > { %15186 = vst [vmem:[#allocation58_spill] sm:$0xff] %v11838_v13  ;;  %v4126_v10 = vand.u32 4294901760, %v4125_v2  ;;  %v11847_v62 = vpack.c.bf16 %v4108_v3, %v4096_v63  ;;  %v13993_v40 = vand.u32 4294901760, %v11570_v19  ;;  %v13994_v32 = vand.u32 4294901760, %v11575_v46 }
 0x4ab   : > { %v4120_v38 = vand.u32 4294901760, %v4119_v33  ;;  %v4132_v7 = vand.u32 4294901760, %v4131_v26  ;;  %v4137_v51 = vsub.f32 %v11565_v28, %v13991_v18  ;;  %v13995_v2 = vand.u32 4294901760, %v11580_v15 }
 0x4ac   : > { %15187 = vst [vmem:[#allocation60_spill] sm:$0xff] %v11847_v62  ;;  %v11851_v30 = vpack.c.bf16 %v4126_v10, %v4114_v43  ;;  %v4149_v44 = vsub.f32 %v11570_v19, %v13993_v40  ;;  %v4143_v3 = vsub.f32 %v11575_v46, %v13994_v32  ;;  %v13996_v63 = vand.u32 4294901760, %v11585_v16 }
 0x4ad   : > { %v13998_v33 = vand.u32 4294901760, %v11590_v48  ;;  %v11865_v43 = vpack.c.bf16 %v4132_v7, %v4120_v38  ;;  %v4138_v26 = vand.u32 4294901760, %v4137_v51  ;;  %v4155_v10 = vsub.f32 %v11580_v15, %v13995_v2 }
 0x4ae   : > { %15188 = vst [vmem:[#allocation63_spill] sm:$0xff] %v11851_v30  ;;  %v13997_v18 = vand.u32 4294901760, %v11595_v23  ;;  %v4150_v24 = vand.u32 4294901760, %v4149_v44  ;;  %v4144_v30 = vand.u32 4294901760, %v4143_v3  ;;  %v4161_v40 = vsub.f32 %v11585_v16, %v13996_v63 }
 0x4af   : > { %15189 = vst [vmem:[#allocation81_spill] sm:$0xff] %v11865_v43  ;;  %v4173_v32 = vsub.f32 %v11590_v48, %v13998_v33  ;;  %v4156_v62 = vand.u32 4294901760, %v4155_v10  ;;  %v13999_v7 = vand.u32 4294901760, %v11600_v41  ;;  %v14001_v51 = vand.u32 4294901760, %v11605_v22 }
 0x4b0   : > { %v4167_v38 = vsub.f32 %v11595_v23, %v13997_v18  ;;  %v11882_v2 = vpack.c.bf16 %v4150_v24, %v4138_v26  ;;  %v4162_v44 = vand.u32 4294901760, %v4161_v40  ;;  %v14000_v43 = vand.u32 4294901760, %v11610_v9 }
 0x4b1   : > { %v4174_v3 = vand.u32 4294901760, %v4173_v32  ;;  %v11885_v63 = vpack.c.bf16 %v4156_v62, %v4144_v30  ;;  %v4179_v10 = vsub.f32 %v11600_v41, %v13999_v7  ;;  %v4185_v18 = vsub.f32 %v11605_v22, %v14001_v51 }
 0x4b2   : > { %15190 = vst [vmem:[#allocation87_spill] sm:$0xff] %v11882_v2  ;;  %v4168_v13 = vand.u32 4294901760, %v4167_v38  ;;  %v4197_v24 = vsub.f32 %v11610_v9, %v14000_v43  ;;  %v14002_v40 = vand.u32 4294901760, %v11615_v53  ;;  %v14003_v62 = vand.u32 4294901760, %v11620_v39 }
 0x4b3   : > { %15191 = vst [vmem:[#allocation14_spill] sm:$0xff] %v11885_v63  ;;  %v11893_v33 = vpack.c.bf16 %v4174_v3, %v4162_v44  ;;  %v4180_v32 = vand.u32 4294901760, %v4179_v10  ;;  %v4186_v30 = vand.u32 4294901760, %v4185_v18  ;;  %v14008_v26 = vand.u32 4294901760, %v11625_v12 }
 0x4b4   : > { %v14004_v38 = vand.u32 4294901760, %v11630_v14  ;;  %v4198_v7 = vand.u32 4294901760, %v4197_v24  ;;  %v4191_v44 = vsub.f32 %v11615_v53, %v14002_v40  ;;  %v4203_v3 = vsub.f32 %v11620_v39, %v14003_v62 }
 0x4b5   : > { %15192 = vst [vmem:[#allocation69_spill] sm:$0xff] %v11893_v33  ;;  %v11908_v43 = vpack.c.bf16 %v4180_v32, %v4168_v13  ;;  %v4209_v10 = vsub.f32 %v11625_v12, %v14008_v26  ;;  %v14007_v2 = vand.u32 4294901760, %v11645_v34  ;;  %v14005_v13 = vand.u32 4294901760, %v11650_v8 }
 0x4b6   : > { %v4221_v18 = vsub.f32 %v11630_v14, %v14004_v38  ;;  %v11916_v51 = vpack.c.bf16 %v4198_v7, %v4186_v30  ;;  %v4192_v24 = vand.u32 4294901760, %v4191_v44  ;;  %v4204_v33 = vand.u32 4294901760, %v4203_v3 }
 0x4b7   : > { %v4210_v63 = vand.u32 4294901760, %v4209_v10  ;;  %v14006_v32 = vand.u32 4294901760, %v11655_v59  ;;  %v4233_v38 = vsub.f32 %v11645_v34, %v14007_v2  ;;  %v14009_v7 = vand.u32 4294901760, %v11660_v35 }
 0x4b8   : > { %15193 = vst [vmem:[#allocation33_spill] sm:$0xff] %v11916_v51  ;;  %v4222_v40 = vand.u32 4294901760, %v4221_v18  ;;  %v11919_v42 = vpack.c.bf16 %v4204_v33, %v4192_v24  ;;  %v4245_v30 = vsub.f32 %v11650_v8, %v14005_v13  ;;  %v14010_v44 = vand.u32 4294901760, %v11665_v17 }
 0x4b9   : > { %v4239_v33 = vsub.f32 %v11655_v59, %v14006_v32  ;;  %v14011_v3 = vand.u32 4294901760, %v11670_v57  ;;  %v14012_v10 = vand.u32 4294901760, %v11675_v20  ;;  %v14013_v26 = vand.u32 4294901760, %v11680_v21 }
 0x4ba   : > { %15194 = vst [vmem:[#allocation42_spill] sm:$0xff] %v11919_v42  ;;  %v11923_v62 = vpack.c.bf16 %v4222_v40, %v4210_v63  ;;  %v4234_v63 = vand.u32 4294901760, %v4233_v38  ;;  %v4251_v40 = vsub.f32 %v11660_v35, %v14009_v7  ;;  %v4246_v18 = vand.u32 4294901760, %v4245_v30 }
 0x4bb   : > { %v4240_v24 = vand.u32 4294901760, %v4239_v33  ;;  %v4257_v13 = vsub.f32 %v11665_v17, %v14010_v44  ;;  %v4269_v32 = vsub.f32 %v11670_v57, %v14011_v3  ;;  %v4263_v38 = vsub.f32 %v11675_v20, %v14012_v10 }
 0x4bc   : > { %15195 = vst [vmem:[#allocation95_spill] sm:$0xff] %v11923_v62  ;;  %v4252_v2 = vand.u32 4294901760, %v4251_v40  ;;  %v11951_v7 = vpack.c.bf16 %v4246_v18, %v4234_v63  ;;  %v4275_v44 = vsub.f32 %v11680_v21, %v14013_v26  ;;  %v14014_v40 = vand.u32 4294901760, %v11695_v56 }
 0x4bd   : > { %v4258_v62 = vand.u32 4294901760, %v4257_v13  ;;  %v4270_v30 = vand.u32 4294901760, %v4269_v32  ;;  %v4264_v42 = vand.u32 4294901760, %v4263_v38  ;;  %v14015_v3 = vand.u32 4294901760, %v11700_v50  ;;  %v15197_v38 = vld [vmem:[#allocation40_spill] sm:$0xff] }
 0x4be   : > { %v11953_v33 = vpack.c.bf16 %v4252_v2, %v4240_v24  ;;  %v4276_v10 = vand.u32 4294901760, %v4275_v44  ;;  %v4287_v63 = vsub.f32 %v11695_v56, %v14014_v40  ;;  %v14055_v26 = vand.u32 4294901760, %v15202_v58 }
 0x4bf   : > { %v11958_v51 = vpack.c.bf16 %v4270_v30, %v4258_v62  ;;  %v4299_v2 = vsub.f32 %v11700_v50, %v14015_v3  ;;  %v15198_v30 = vld [vmem:[#allocation98_spill] sm:$0xff] }
 0x4c0   : > { %v11968_v13 = vpack.c.bf16 %v4276_v10, %v4264_v42  ;;  %v4288_v32 = vand.u32 4294901760, %v4287_v63  ;;  %v6250_v42 = vld [vmem:[%s13286_s4 + $0x2] sm:$0x3] }
 0x4c1   : > { %15196 = vst [vmem:[#allocation96_spill] sm:$0xff] %v11958_v51  ;;  %v4300_v18 = vand.u32 4294901760, %v4299_v2  ;;  %v15200_v2 = vld [vmem:[#allocation92_spill] sm:$0xff] }
 0x4c3   : > { %v11970_v24 = vpack.c.bf16 %v4300_v18, %v4288_v32  ;;  %v2314_v32 = vrot.slane %v6250_v42, %v15200_v2  ;;  %v15201_v18 = vld [vmem:[#allocation93_spill] sm:$0xff] }
 0x4c4   : > { %v2318_v3 = vrot.slane %v6250_v42, %v15201_v18 }
 0x528   : > { %v3654_v44 = vpop.f32.mrb[4].mxu1 }
 0x529   : > { %v11993_v62 = vadd.f32 %v3654_v44, %v2314_v32  ;;  %v3656_v40 = vpop.f32.mrb[5].mxu1 }
 0x52a   : > { %v11995_v36 = vadd.f32 %v3656_v40, %v2318_v3 }
 0x52b   : > { %v3671_v10 = vand.u32 2147483647, %v11993_v62 }
 0x52c   : > { %v3672_v2 = vand.u32 2147483647, %v11995_v36  ;;  %v3662_v42 = vpop.f32.mrb[6].mxu1 }
 0x52d   : > { %v3675_v18 = vsub.f32 0.0, %v3671_v10  ;;  %v12003_v4 = vadd.f32 %v3662_v42, %v2314_v32  ;;  %v3664_v51 = vpop.f32.mrb[7].mxu1 }
 0x52e   : > { %v3676_v44 = vsub.f32 0.0, %v3672_v2  ;;  %v12005_v0 = vadd.f32 %v3664_v51, %v2318_v3 }
 0x52f   : > { %v3679_v40 = vmul.f32 1.442695, %v3675_v18  ;;  %v3673_v6 = vand.u32 2147483647, %v12003_v4 }
 0x530   : > { %v3681_v63 = vmul.f32 1.442695, %v3676_v44  ;;  %v3674_v52 = vand.u32 2147483647, %v12005_v0 }
 0x531   : > { %8001 = vpow2.f32 %v3679_v40  ;;  %v3677_v10 = vsub.f32 0.0, %v3673_v6  ;;  %v15203_v6 = vld [vmem:[#allocation17_spill] sm:$0xff] }
 0x532   : > { %8003 = vpow2.f32 %v3681_v63  ;;  %v3678_v32 = vsub.f32 0.0, %v3674_v52  ;;  %v15204_v16 = vand.u32 4294901760, %v15203_v6 }
 0x533   : > { %v3683_v42 = vmul.f32 1.442695, %v3677_v10 }
 0x534   : > { %v3685_v3 = vmul.f32 1.442695, %v3678_v32 }
 0x535   : > { %8005 = vpow2.f32 %v3683_v42 }
 0x536   : > { %8007 = vpow2.f32 %v3685_v3 }
 0x53b   : > { %v8002_v40 = vpop.eup %8001 }
 0x53c   : > { %v8004_v52 = vpop.eup %8003  ;;  %v3687_v63 = vadd.f32 1.0, %v8002_v40  ;;  %v3690_v51 = vmul.f32 -0.5, %v8002_v40 }
 0x53d   : > { %v3696_v32 = vadd.f32 1.0, %v8004_v52  ;;  %v3699_v29 = vmul.f32 -0.5, %v8004_v52  ;;  %v3702_v12 = vand.u32 2147483647, %v8004_v52 }
 0x53e   : > { %8009 = vlog2.f32 %v3687_v63  ;;  %v3691_v10 = vadd.f32 1.0, %v3690_v51  ;;  %v3987_v51 = vsub.f32 %v15203_v6, %v15204_v16 }
 0x53f   : > { %v8006_v2 = vpop.eup %8005  ;;  %8011 = vlog2.f32 %v3696_v32  ;;  %v3693_v32 = vand.u32 2147483647, %v8002_v40  ;;  %v3700_v39 = vadd.f32 1.0, %v3699_v29  ;;  %vm3703_vm9 = vcmp.lt.f32.partialorder %v3702_v12, 0.0004427343 }
 0x540   : > { %v8008_v3 = vpop.eup %8007  ;;  %v3705_v18 = vadd.f32 1.0, %v8006_v2  ;;  %v3708_v53 = vmul.f32 -0.5, %v8006_v2  ;;  %v3692_v29 = vmul.f32 %v8002_v40, %v3691_v10  ;;  %v3711_v14 = vand.u32 2147483647, %v8006_v2 }
 0x541   : > { %v3714_v44 = vadd.f32 1.0, %v8008_v3  ;;  %v3717_v42 = vmul.f32 -0.5, %v8008_v3  ;;  %vm3694_vm8 = vcmp.lt.f32.partialorder %v3693_v32, 0.0004427343  ;;  %v3701_v9 = vmul.f32 %v8004_v52, %v3700_v39 }
 0x542   : > { %8013 = vlog2.f32 %v3705_v18  ;;  %v3667_v18 = vmax.f32 %v11993_v62, 0.0  ;;  %v3709_v35 = vadd.f32 1.0, %v3708_v53  ;;  %v3668_v62 = vmax.f32 %v11995_v36, 0.0 }
 0x543   : > { %8015 = vlog2.f32 %v3714_v44  ;;  %v3975_v44 = vsub.f32 %v15202_v58, %v14055_v26  ;;  %v3718_v17 = vadd.f32 1.0, %v3717_v42  ;;  %v3720_v23 = vand.u32 2147483647, %v8008_v3 }
 0x544   : > { %v3669_v39 = vmax.f32 %v12003_v4, 0.0  ;;  %vm3712_vm10 = vcmp.lt.f32.partialorder %v3711_v14, 0.0004427343 }
 0x545   : > { %v3719_v36 = vmul.f32 %v8008_v3, %v3718_v17  ;;  %vm3721_vm11 = vcmp.lt.f32.partialorder %v3720_v23, 0.0004427343  ;;  %v3976_v3 = vand.u32 4294901760, %v3975_v44 }
 0x548   : > { %v8010_v22 = vpop.eup %8009 }
 0x549   : > { %v8012_v63 = vpop.eup %8011  ;;  %v3689_v59 = vmul.f32 0.6931472, %v8010_v22 }
 0x54a   : > { %v3698_v8 = vmul.f32 0.6931472, %v8012_v63 }
 0x54b   : > { %v3695_v57 = vsel %vm3694_vm8, %v3692_v29, %v3689_v59  ;;  %v3710_v59 = vmul.f32 %v8006_v2, %v3709_v35 }
 0x54c   : > { %v8014_v26 = vpop.eup %8013  ;;  %v3723_v41 = vadd.f32 %v3695_v57, %v3667_v18  ;;  %v3704_v34 = vsel %vm3703_vm9, %v3701_v9, %v3698_v8  ;;  %v3670_v8 = vmax.f32 %v12005_v0, 0.0  ;;  %v3988_v0 = vand.u32 4294901760, %v3987_v51 }
 0x54d   : > { %v8016_v53 = vpop.eup %8015  ;;  %v3724_v40 = vadd.f32 %v3704_v34, %v3668_v62  ;;  %v3707_v52 = vmul.f32 0.6931472, %v8014_v26 }
 0x54e   : > { %v12048_v10 = vand.u32 4294901760, %v3723_v41  ;;  %v3716_v12 = vmul.f32 0.6931472, %v8016_v53  ;;  %v7317_v62 = vpack.c.bf16 %v3988_v0, %v3976_v3  ;;  %v15220_v3 = vld [vmem:[#allocation58_spill] sm:$0xff]  ;;  %v15221_v0 = vld [vmem:[#allocation60_spill] sm:$0xff] }
 0x54f   : > { %v12050_v57 = vand.u32 4294901760, %v3724_v40  ;;  %v3713_v9 = vsel %vm3712_vm10, %v3710_v59, %v3707_v52  ;;  %v15212_v52 = vld [vmem:[#allocation46_spill] sm:$0xff] }
 0x550   : > { %15205 = vst [vmem:[#allocation64_spill] sm:$0xff] %v12048_v10  ;;  %v12054_v16 = vsub.f32 %v3723_v41, %v12048_v10  ;;  %v3725_v42 = vadd.f32 %v3713_v9, %v3669_v39  ;;  %v3722_v34 = vsel %vm3721_vm11, %v3719_v36, %v3716_v12  ;;  %v15213_v12 = vld [vmem:[#allocation48_spill] sm:$0xff]  ;;  %v15214_v36 = vld [vmem:[#allocation50_spill] sm:$0xff]  ;;  %v15215_v9 = vld [vmem:[#allocation51_spill] sm:$0xff] }
 0x551   : > { %15206 = vst [vmem:[#allocation102_spill] sm:$0xff] %v12050_v57  ;;  %v12057_v4 = vsub.f32 %v3724_v40, %v12050_v57  ;;  %v3726_v35 = vadd.f32 %v3722_v34, %v3670_v8  ;;  %v15216_v8 = vld [vmem:[#allocation53_spill] sm:$0xff]  ;;  %v15218_v34 = vld [vmem:[#allocation56_spill] sm:$0xff] }
 0x552   : > { %15207 = vst [vmem:[#allocation73_spill] sm:$0xff] %v12054_v16  ;;  %v14067_v26 = vand.u32 4294901760, %v12054_v16  ;;  %v12060_v14 = vand.u32 4294901760, %v3725_v42 }
 0x553   : > { %v12062_v17 = vand.u32 4294901760, %v3726_v35  ;;  %v14068_v2 = vand.u32 4294901760, %v12057_v4 }
 0x554   : > { %15208 = vst [vmem:[#allocation79_spill] sm:$0xff] %v12060_v14  ;;  %v3942_v23 = vsub.f32 %v12054_v16, %v14067_v26  ;;  %v12069_v41 = vsub.f32 %v3725_v42, %v12060_v14  ;;  %v15217_v42 = vld [vmem:[#allocation54_spill] sm:$0xff] }
 0x555   : > { %15209 = vst [vmem:[#allocation40_spill] sm:$0xff] %v12062_v17  ;;  %v12072_v63 = vsub.f32 %v3726_v35, %v12062_v17  ;;  %v3936_v32 = vsub.f32 %v12057_v4, %v14068_v2  ;;  %v15219_v35 = vld [vmem:[#allocation57_spill] sm:$0xff]  ;;  %v15241_v2 = vld [vmem:[#allocation91_spill] sm:$0xff] }
 0x556   : > { %15210 = vst [vmem:[#allocation98_spill] sm:$0xff] %v12069_v41  ;;  %v14062_v18 = vand.u32 4294901760, %v12069_v41  ;;  %v3943_v51 = vand.u32 4294901760, %v3942_v23  ;;  %v15222_v23 = vld [vmem:[#allocation63_spill] sm:$0xff] }
 0x557   : > { %15211 = vst [vmem:[#allocation78_spill] sm:$0xff] %v12072_v63  ;;  %v3937_v29 = vand.u32 4294901760, %v3936_v32  ;;  %v14063_v44 = vand.u32 4294901760, %v12072_v63  ;;  %v15223_v32 = vld [vmem:[#allocation81_spill] sm:$0xff] }
 0x558   : > { %v3958_v53 = vsub.f32 %v12069_v41, %v14062_v18 }
 0x559   : > { %3938 = vmatprep.mubr.f32.mxu0 %v3937_v29  ;;  %v3952_v40 = vsub.f32 %v12072_v63, %v14063_v44  ;;  %v15224_v29 = vld [vmem:[#allocation15_spill] sm:$0xff]  ;;  %v15237_v44 = vld [vmem:[#allocation82_spill] sm:$0xff] }
 0x55a   : > { %3944 = vmatmul.mubr.f32.vlgmr.msra.gmra.mrb[4].mxu0 %v3943_v51  ;;  %v3959_v59 = vand.u32 4294901760, %v3958_v53  ;;  %v15225_v51 = vld [vmem:[#allocation72_spill] sm:$0xff] }
 0x55b   : > { %7318 = vmatpush1.bf16.msra.mxu0 %v7317_v62  ;;  %v3953_v39 = vand.u32 4294901760, %v3952_v40  ;;  %v14061_v62 = vand.u32 4294901760, %v15224_v29  ;;  %v14060_v53 = vand.u32 4294901760, %v15225_v51  ;;  %v15226_v40 = vld [vmem:[#allocation87_spill] sm:$0xff] }
 0x55c   : > { %7320 = vmatprep.subr.bf16.mxu0 %v15212_v52 }
 0x55d   : > { %3954 = vmatprep.mubr.f32.mxu0 %v3953_v39  ;;  %v15227_v39 = vld [vmem:[#allocation14_spill] sm:$0xff]  ;;  %v4215_v52 = vsub.f32 %v15224_v29, %v14061_v62 }
 0x55e   : > { %3960 = vmatmul.mubr.f32.gmra.mrb[6].mxu0 %v3959_v59  ;;  %v4227_v59 = vsub.f32 %v15225_v51, %v14060_v53 }
 0x55f   : > { %7322 = vmatpush1.bf16.msra.mxu0 %v15213_v12  ;;  %4351 = vmatprep.mubr.f32.mxu0 %v12050_v57  ;;  %v15228_v12 = vld [vmem:[#allocation69_spill] sm:$0xff] }
 0x560   : > { %7324 = vmatprep.subr.bf16.mxu0 %v15214_v36  ;;  %v15229_v36 = vld [vmem:[#allocation75_spill] sm:$0xff] }
 0x563   : > { %7326 = vmatpush1.bf16.msra.mxu0 %v15215_v9  ;;  %v14064_v9 = vand.u32 4294901760, %v15229_v36 }
 0x564   : > { %7328 = vmatprep.subr.bf16.mxu0 %v15216_v8  ;;  %v15230_v8 = vld [vmem:[#allocation74_spill] sm:$0xff] }
 0x567   : > { %7330 = vmatpush1.bf16.msra.mxu0 %v15217_v42  ;;  %v14065_v42 = vand.u32 4294901760, %v15230_v8 }
 0x568   : > { %7332 = vmatprep.subr.bf16.mxu0 %v15218_v34  ;;  %v4216_v34 = vand.u32 4294901760, %v4215_v52 }
 0x56b   : > { %7334 = vmatpush1.bf16.msra.mxu0 %v15219_v35  ;;  %v4228_v35 = vand.u32 4294901760, %v4227_v59 }
 0x56c   : > { %7336 = vmatprep.subr.bf16.mxu0 %v15220_v3  ;;  %v15231_v3 = vld [vmem:[#allocation33_spill] sm:$0xff] }
 0x56f   : > { %7338 = vmatpush1.bf16.msra.mxu0 %v15221_v0  ;;  %v4281_v0 = vsub.f32 %v15229_v36, %v14064_v9  ;;  %v14073_v9 = vand.u32 4294901760, %v15237_v44 }
 0x570   : > { %7340 = vmatprep.subr.bf16.mxu0 %v15222_v23  ;;  %v4293_v23 = vsub.f32 %v15230_v8, %v14065_v42  ;;  %v15239_v42 = vld [vmem:[#allocation5_spill] sm:$0xff] }
 0x571   : > { %v4282_v59 = vand.u32 4294901760, %v4281_v0  ;;  %v14078_v0 = vand.u32 4294901760, %v15239_v42 }
 0x572   : > { %v4294_v62 = vand.u32 4294901760, %v4293_v23 }
 0x573   : > { %7342 = vmatpush1.bf16.msra.mxu0 %v15223_v32  ;;  %v15232_v32 = vld [vmem:[#allocation42_spill] sm:$0xff] }
 0x574   : > { %7344 = vmatprep.subr.bf16.mxu0 %v15226_v40  ;;  %v7357_v40 = vpack.c.bf16 %v4228_v35, %v4216_v34  ;;  %v15238_v35 = vld [vmem:[#allocation86_spill] sm:$0xff]  ;;  %v7367_v23 = vpack.c.bf16 %v4294_v62, %v4282_v59  ;;  %v4341_v59 = vsub.f32 %v15239_v42, %v14078_v0 }
 0x575   : > { %v15243_v62 = vand.u32 4294901760, %v15238_v35 }
 0x577   : > { %7346 = vmatpush1.bf16.msra.mxu0 %v15227_v39  ;;  %v15233_v39 = vld [vmem:[#allocation95_spill] sm:$0xff] }
 0x578   : > { %7348 = vmatprep.subr.bf16.mxu0 %v15228_v12  ;;  %v15234_v12 = vld [vmem:[#allocation77_spill] sm:$0xff] }
 0x579   : > { %v14066_v53 = vand.u32 4294901760, %v15234_v12 }
 0x57b   : > { %7350 = vmatpush1.bf16.msra.mxu0 %v11908_v43  ;;  %v15235_v43 = vld [vmem:[#allocation80_spill] sm:$0xff] }
 0x57c   : > { %7352 = vmatprep.subr.bf16.mxu0 %v15231_v3  ;;  %v14069_v52 = vand.u32 4294901760, %v15235_v43  ;;  %v15236_v3 = vld [vmem:[#allocation84_spill] sm:$0xff] }
 0x57d   : > { %v14072_v18 = vand.u32 4294901760, %v15236_v3 }
 0x57e   : > { %v4317_v34 = vsub.f32 %v15235_v43, %v14069_v52  ;;  %v15242_v52 = vld [vmem:[#allocation96_spill] sm:$0xff] }
 0x57f   : > { %7354 = vmatpush1.bf16.msra.mxu0 %v15232_v32  ;;  %v4305_v32 = vsub.f32 %v15234_v12, %v14066_v53  ;;  %v15240_v53 = vld [vmem:[#allocation6_spill] sm:$0xff] }
 0x580   : > { %7356 = vmatprep.subr.bf16.mxu0 %v15233_v39  ;;  %v14081_v26 = vand.u32 4294901760, %v15240_v53  ;;  %v4318_v57 = vand.u32 4294901760, %v4317_v34 }
 0x581   : > { %v4306_v39 = vand.u32 4294901760, %v4305_v32 }
 0x582   : > { %v4335_v22 = vsub.f32 %v15240_v53, %v14081_v26  ;;  %v15246_v26 = vld [vmem:[#allocation66_spill] sm:$0xff] }
 0x583   : > { %7358 = vmatpush1.bf16.msra.mxu0 %v7357_v40  ;;  %v4311_v40 = vsub.f32 %v15236_v3, %v14072_v18  ;;  %v7371_v34 = vpack.c.bf16 %v4318_v57, %v4306_v39  ;;  %v15249_v57 = vpack.c.bf16 %v15198_v30, %v15197_v38  ;;  %v15256_v39 = vld [vmem:[#allocation24_spill] sm:$0xff] }
 0x584   : > { %7360 = vmatprep.subr.bf16.mxu0 %v11951_v7  ;;  %v4323_v7 = vsub.f32 %v15237_v44, %v14073_v9  ;;  %v4336_v0 = vand.u32 4294901760, %v4335_v22  ;;  %v15248_v22 = vpack.c.bf16 %v15169_v31, %v15168_v37 }
 0x585   : > { %v4312_v18 = vand.u32 4294901760, %v4311_v40 }
 0x586   : > { %v4324_v9 = vand.u32 4294901760, %v4323_v7  ;;  %v15245_v7 = vld [vmem:[#allocation90_spill] sm:$0xff] }
 0x587   : > { %7362 = vmatpush1.bf16.msra.mxu0 %v11953_v33  ;;  %v4329_v33 = vsub.f32 %v15238_v35, %v15243_v62  ;;  %v4342_v62 = vand.u32 4294901760, %v4341_v59  ;;  %v7379_v53 = vpack.c.bf16 %v15246_v26, %v15245_v7  ;;  %v15259_v59 = vld [vmem:[#allocation30_spill] sm:$0xff] }
 0x588   : > { %7364 = vmatprep.subr.bf16.mxu0 %v15242_v52  ;;  %v15244_v52 = vand.u32 4294901760, %v15241_v2  ;;  %v7373_v63 = vpack.c.bf16 %v4324_v9, %v4312_v18  ;;  %v15253_v18 = vpack.c.bf16 %v15177_v60, %v15174_v25  ;;  %v15255_v9 = vld [vmem:[#allocation27_spill] sm:$0xff] }
 0x589   : > { %v4330_v41 = vand.u32 4294901760, %v4329_v33  ;;  %v15258_v33 = vld [vmem:[#allocation31_spill] sm:$0xff] }
 0x58a   : > { %v4347_v32 = vsub.f32 %v15241_v2, %v15244_v52  ;;  %v15260_v52 = vpack.c.bf16 %v15258_v33, %v15259_v59 }
 0x58b   : > { %7366 = vmatpush1.bf16.msra.mxu0 %v11968_v13  ;;  %v7375_v13 = vpack.c.bf16 %v4342_v62, %v4330_v41  ;;  %v15251_v41 = vld [vmem:[#allocation99_spill] sm:$0xff] }
 0x58c   : > { %7368 = vmatprep.subr.bf16.mxu0 %v7367_v23  ;;  %v4348_v16 = vand.u32 4294901760, %v4347_v32  ;;  %v7381_v23 = vpack.c.bf16 %v15203_v6, %v15202_v58  ;;  %v15261_v32 = vld [vmem:[#allocation41_spill] sm:$0xff] }
 0x58e   : > { %v7377_v40 = vpack.c.bf16 %v4348_v16, %v4336_v0  ;;  %v15250_v16 = vld [vmem:[#allocation61_spill] sm:$0xff]  ;;  %v15257_v0 = vpack.c.bf16 %v15255_v9, %v15256_v39 }
 0x58f   : > { %7370 = vmatpush1.bf16.msra.mxu0 %v11970_v24  ;;  %v15247_v24 = vpack.c.bf16 %v15167_v5, %v15166_v54 }
 0x590   : > { %7372 = vmatprep.subr.bf16.mxu0 %v7371_v34  ;;  %v15262_v34 = vld [vmem:[#allocation37_spill] sm:$0xff] }
 0x591   : > { %v15263_v62 = vpack.c.bf16 %v15261_v32, %v15262_v34 }
 0x593   : > { %7374 = vmatpush1.bf16.msra.mxu0 %v7373_v63  ;;  %v15252_v63 = vpack.c.bf16 %v15250_v16, %v15251_v41 }
 0x594   : > { %7376 = vmatprep.subr.bf16.mxu0 %v7375_v13  ;;  %v15264_v13 = vpack.c.bf16 %v11540_v61, %v11535_v55 }
 0x597   : > { %7378 = vmatpush1.bf16.msra.mxu0 %v7377_v40  ;;  %v15265_v40 = vpack.c.bf16 %v11550_v11, %v11545_v49 }
 0x598   : > { %7380 = vmatprep.subr.bf16.mxu0 %v7379_v53  ;;  %v15254_v53 = vpack.c.bf16 %v15180_v27, %v15178_v45 }
 0x59a   : > { %4353 = vmatmul.mubr.f32.vlgmr.msra.gmra.mrb[4].mxu0 %v12048_v10 }
 0x59b   : > { %4359 = vmatprep.mubr.f32.mxu0 %v12062_v17  ;;  %7382 = vmatpush1.bf16.msra.mxu0 %v7381_v23  ;;  %v15266_v23 = vpack.c.bf16 %v11560_v47, %v11555_v1  ;;  %v15281_v17 = vld [vmem:[#allocation12_spill] sm:$0xff] }
 0x59c   : > { %7384 = vmatprep.subr.bf16.mxu0 %v15247_v24  ;;  %v15267_v24 = vpack.c.bf16 %v11570_v19, %v11565_v28 }
 0x59e   : > { %4361 = vmatmul.mubr.f32.gmra.mrb[6].mxu0 %v12060_v14 }
 0x59f   : > { %7386 = vmatpush1.bf16.msra.mxu0 %v15248_v22  ;;  %4561 = vmatprep.mubr.f32.mxu0 %v12057_v4  ;;  %v15268_v22 = vpack.c.bf16 %v11580_v15, %v11575_v46 }
 0x5a0   : > { %7388 = vmatprep.subr.bf16.mxu0 %v15249_v57  ;;  %v15269_v57 = vld [vmem:[#allocation67_spill] sm:$0xff] }
 0x5a3   : > { %7390 = vmatpush1.bf16.msra.mxu0 %v15252_v63  ;;  %v15270_v63 = vpack.c.bf16 %v11590_v48, %v15269_v57  ;;  %v15284_v48 = vld [vmem:[#allocation20_spill] sm:$0xff] }
 0x5a4   : > { %7392 = vmatprep.subr.bf16.mxu0 %v15253_v18  ;;  %v15271_v18 = vld [vmem:[#allocation83_spill] sm:$0xff] }
 0x5a7   : > { %7394 = vmatpush1.bf16.msra.mxu0 %v15254_v53  ;;  %v15272_v53 = vld [vmem:[#allocation76_spill] sm:$0xff] }
 0x5a8   : > { %7396 = vmatprep.subr.bf16.mxu0 %v15257_v0  ;;  %v15273_v0 = vpack.c.bf16 %v15271_v18, %v15272_v53  ;;  %v15287_v53 = vld [vmem:[#allocation34_spill] sm:$0xff] }
 0x5ab   : > { %7398 = vmatpush1.bf16.msra.mxu0 %v15260_v52  ;;  %v15274_v52 = vld [vmem:[#allocation88_spill] sm:$0xff] }
 0x5ac   : > { %7400 = vmatprep.subr.bf16.mxu0 %v15263_v62  ;;  %v15275_v62 = vld [vmem:[#allocation85_spill] sm:$0xff] }
 0x5af   : > { %7402 = vmatpush1.bf16.msra.mxu0 %v15264_v13  ;;  %v15276_v13 = vpack.c.bf16 %v15274_v52, %v15275_v62  ;;  %v15290_v62 = vld [vmem:[#allocation62_spill] sm:$0xff] }
 0x5b0   : > { %7404 = vmatprep.subr.bf16.mxu0 %v15265_v40  ;;  %v15277_v40 = vld [vmem:[#allocation65_spill] sm:$0xff] }
 0x5b3   : > { %7406 = vmatpush1.bf16.msra.mxu0 %v15266_v23  ;;  %v15278_v23 = vld [vmem:[#allocation9_spill] sm:$0xff] }
 0x5b4   : > { %7408 = vmatprep.subr.bf16.mxu0 %v15267_v24  ;;  %v15279_v14 = vpack.c.bf16 %v15277_v40, %v15278_v23  ;;  %v7421_v24 = vpack.c.bf16 %v15225_v51, %v15224_v29  ;;  %v15292_v51 = vpack.c.bf16 %v11680_v21, %v11675_v20 }
 0x5b7   : > { %7410 = vmatpush1.bf16.msra.mxu0 %v15268_v22  ;;  %v15280_v22 = vld [vmem:[#allocation13_spill] sm:$0xff] }
 0x5b8   : > { %7412 = vmatprep.subr.bf16.mxu0 %v15270_v63  ;;  %v15282_v10 = vpack.c.bf16 %v15280_v22, %v15281_v17  ;;  %v15283_v63 = vld [vmem:[#allocation26_spill] sm:$0xff] }
 0x5b9   : > { %v15285_v18 = vpack.c.bf16 %v15283_v63, %v15284_v48 }
 0x5bb   : > { %7414 = vmatpush1.bf16.msra.mxu0 %v15273_v0  ;;  %v15286_v0 = vld [vmem:[#allocation35_spill] sm:$0xff] }
 0x5bc   : > { %7416 = vmatprep.subr.bf16.mxu0 %v15276_v13  ;;  %v15288_v52 = vpack.c.bf16 %v15286_v0, %v15287_v53  ;;  %v15289_v13 = vld [vmem:[#allocation70_spill] sm:$0xff] }
 0x5bd   : > { %v15291_v40 = vpack.c.bf16 %v15289_v13, %v15290_v62 }
 0x5bf   : > { %7418 = vmatpush1.bf16.msra.mxu0 %v15279_v14  ;;  %v7431_v14 = vpack.c.bf16 %v15230_v8, %v15229_v36 }
 0x5c0   : > { %7420 = vmatprep.subr.bf16.mxu0 %v15282_v10  ;;  %v7435_v10 = vpack.c.bf16 %v15235_v43, %v15234_v12  ;;  %v15297_v43 = vld [vmem:[#allocation78_spill] sm:$0xff]  ;;  %v15299_v12 = vld [vmem:[#allocation32_spill] sm:$0xff] }
 0x5c3   : > { %7422 = vmatpush1.bf16.msra.mxu0 %v7421_v24  ;;  %v15294_v24 = vld [vmem:[#allocation6_spill] sm:$0xff] }
 0x5c4   : > { %7424 = vmatprep.subr.bf16.mxu0 %v15285_v18  ;;  %v15293_v18 = vpack.c.bf16 %v11700_v50, %v11695_v56  ;;  %v7441_v8 = vpack.c.bf16 %v15241_v2, %v15294_v24  ;;  %v15303_v2 = vld [vmem:[#allocation97_spill] sm:$0xff]  ;;  %v15307_v24 = vld [vmem:[#allocation11_spill] sm:$0xff] }
 0x5c7   : > { %7426 = vmatpush1.bf16.msra.mxu0 %v15288_v52  ;;  %v7437_v52 = vpack.c.bf16 %v15237_v44, %v15236_v3  ;;  %v15301_v44 = vld [vmem:[#allocation44_spill] sm:$0xff] }
 0x5c8   : > { %7428 = vmatprep.subr.bf16.mxu0 %v15291_v40  ;;  %v7439_v40 = vpack.c.bf16 %v15239_v42, %v15238_v35  ;;  %v15310_v42 = vld [vmem:[#allocation28_spill] sm:$0xff] }
 0x5cb   : > { %7430 = vmatpush1.bf16.msra.mxu0 %v15292_v51  ;;  %v15295_v51 = vld [vmem:[#allocation89_spill] sm:$0xff] }
 0x5cc   : > { %7432 = vmatprep.subr.bf16.mxu0 %v7431_v14  ;;  %v15296_v14 = vld [vmem:[#allocation73_spill] sm:$0xff] }
 0x5cf   : > { %7434 = vmatpush1.bf16.msra.mxu0 %v15293_v18  ;;  %v15298_v18 = vld [vmem:[#allocation16_spill] sm:$0xff] }
 0x5d0   : > { %7436 = vmatprep.subr.bf16.mxu0 %v7435_v10  ;;  %v15300_v10 = vld [vmem:[#allocation98_spill] sm:$0xff] }
 0x5d3   : > { %7438 = vmatpush1.bf16.msra.mxu0 %v7437_v52  ;;  %v15302_v52 = vand.u32 4294901760, %v12057_v4  ;;  %v15312_v4 = vld [vmem:[#allocation29_spill] sm:$0xff] }
 0x5d4   : > { %7440 = vmatprep.subr.bf16.mxu0 %v7439_v40  ;;  %v15305_v40 = vld [vmem:[#allocation101_spill] sm:$0xff] }
 0x5d7   : > { %7442 = vmatpush1.bf16.msra.mxu0 %v7441_v8  ;;  %v15304_v8 = vld [vmem:[#allocation100_spill] sm:$0xff] }
 0x5d8   : > { %7444 = vmatprep.subr.bf16.mxu0 %v15295_v51  ;;  %v15306_v51 = vld [vmem:[#allocation10_spill] sm:$0xff] }
 0x5da   : > { %4564 = vmatmul.mubr.f32.vlgmr.msra.gmra.mrb[4].mxu0 %v15296_v14 }
 0x5db   : > { %4571 = vmatprep.mubr.f32.mxu0 %v15297_v43  ;;  %7446 = vmatpush1.bf16.msra.mxu0 %v15298_v18  ;;  %v15308_v18 = vld [vmem:[#allocation23_spill] sm:$0xff] }
 0x5dc   : > { %7448 = vmatprep.subr.bf16.mxu0 %v15299_v12  ;;  %v15309_v12 = vld [vmem:[#allocation22_spill] sm:$0xff] }
 0x5de   : > { %4574 = vmatmul.mubr.f32.gmra.mrb[6].mxu0 %v15300_v10 }
 0x5df   : > { %7450 = vmatpush1.bf16.msra.mxu0 %v15301_v44  ;;  %4711 = vmatprep.mubr.f32.mxu0 %v15302_v52  ;;  %v15311_v44 = vld [vmem:[#allocation25_spill] sm:$0xff] }
 0x5e0   : > { %7452 = vmatprep.subr.bf16.mxu0 %v15303_v2  ;;  %v15313_v52 = vld [vmem:[#allocation45_spill] sm:$0xff]  ;;  %v15314_v2 = vld [vmem:[#allocation18_spill] sm:$0xff] }
 0x5e3   : > { %7454 = vmatpush1.bf16.msra.mxu0 %v15304_v8  ;;  %v15315_v8 = vld [vmem:[#allocation94_spill] sm:$0xff] }
 0x5e4   : > { %7456 = vmatprep.subr.bf16.mxu0 %v15305_v40  ;;  %v15316_v40 = vld [vmem:[#allocation8_spill] sm:$0xff] }
 0x5e7   : > { %7458 = vmatpush1.bf16.msra.mxu0 %v15306_v51  ;;  %v15317_v51 = vld [vmem:[#allocation21_spill] sm:$0xff] }
 0x5e8   : > { %7460 = vmatprep.subr.bf16.mxu0 %v15307_v24  ;;  %v15318_v24 = vld [vmem:[#allocation36_spill] sm:$0xff] }
 0x5eb   : > { %7462 = vmatpush1.bf16.msra.mxu0 %v15308_v18  ;;  %v15319_v18 = vld [vmem:[#allocation39_spill] sm:$0xff] }
 0x5ec   : > { %7464 = vmatprep.subr.bf16.mxu0 %v15309_v12  ;;  %v15320_v12 = vld [vmem:[#allocation38_spill] sm:$0xff] }
 0x5ef   : > { %7466 = vmatpush1.bf16.msra.mxu0 %v15310_v42  ;;  %v15321_v42 = vld [vmem:[#allocation47_spill] sm:$0xff] }
 0x5f0   : > { %7468 = vmatprep.subr.bf16.mxu0 %v15311_v44  ;;  %v15322_v44 = vld [vmem:[#allocation43_spill] sm:$0xff] }
 0x5f3   : > { %7470 = vmatpush1.bf16.msra.mxu0 %v15312_v4  ;;  %v15323_v4 = vld [vmem:[#allocation52_spill] sm:$0xff] }
 0x5f4   : > { %7472 = vmatprep.subr.bf16.mxu0 %v15313_v52  ;;  %v15324_v52 = vld [vmem:[#allocation49_spill] sm:$0xff] }
 0x5f7   : > { %7474 = vmatpush1.bf16.msra.mxu0 %v15314_v2  ;;  %v15325_v2 = vld [vmem:[#allocation59_spill] sm:$0xff] }
 0x5f8   : > { %7476 = vmatprep.subr.bf16.mxu0 %v15315_v8  ;;  %v15326_v8 = vld [vmem:[#allocation55_spill] sm:$0xff] }
 0x5fb   : > { %7478 = vmatpush1.bf16.msra.mxu0 %v15316_v40  ;;  %v15327_v40 = vld [vmem:[#allocation68_spill] sm:$0xff] }
 0x5fc   : > { %7480 = vmatprep.subr.bf16.mxu0 %v15317_v51  ;;  %v15328_v51 = vld [vmem:[#allocation103_spill] sm:$0xff] }
 0x5ff   : > { %7482 = vmatpush1.bf16.msra.mxu0 %v15318_v24  ;;  %v15329_v24 = vld [vmem:[#allocation19_spill] sm:$0xff] }
 0x600   : > { %7484 = vmatprep.subr.bf16.mxu0 %v15319_v18 }
 0x603   : > { %7486 = vmatpush1.bf16.msra.mxu0 %v15320_v12  ;;  %v15330_v12 = vand.u32 4294901760, %v15245_v7  ;;  %v15338_v7 = vand.u32 4294901760, %v15297_v43  ;;  %v15345_v43 = vand.u32 4294901760, %v15251_v41  ;;  %v15352_v41 = vand.u32 4294901760, %v15255_v9 }
 0x604   : > { %7488 = vmatprep.subr.bf16.mxu0 %v15321_v42  ;;  %v15331_v42 = vand.u32 4294901760, %v15246_v26  ;;  %v15339_v26 = vand.u32 4294901760, %v15168_v37  ;;  %v15359_v9 = vand.u32 4294901760, %v11545_v49  ;;  %v15366_v49 = vand.u32 4294901760, %v11580_v15 }
 0x605   : > { %v15378_v15 = vand.u32 4294901760, %v15278_v23  ;;  %v15387_v23 = vand.u32 4294901760, %v15283_v63  ;;  %v15394_v63 = vand.u32 4294901760, %v15229_v36 }
 0x606   : > { %v7507_v18 = vpack.c.bf16 %v15331_v42, %v15330_v12 }
 0x607   : > { %7490 = vmatpush1.bf16.msra.mxu0 %v15322_v44  ;;  %v15332_v44 = vld [vmem:[#allocation7_spill] sm:$0xff] }
 0x608   : > { %7492 = vmatprep.subr.bf16.mxu0 %v15323_v4  ;;  %v15333_v4 = vand.u32 4294901760, %v15202_v58  ;;  %v15340_v58 = vand.u32 4294901760, %v15169_v31  ;;  %v15347_v31 = vand.u32 4294901760, %v15174_v25  ;;  %v15354_v25 = vand.u32 4294901760, %v15258_v33 }
 0x609   : > { %v15361_v33 = vand.u32 4294901760, %v11555_v1 }
 0x60a   : > { %v7513_v42 = vpack.c.bf16 %v15340_v58, %v15339_v26 }
 0x60b   : > { %7494 = vmatpush1.bf16.msra.mxu0 %v15324_v52  ;;  %v15334_v52 = vand.u32 4294901760, %v15203_v6  ;;  %v15341_v6 = vand.u32 4294901760, %v15197_v38 }
 0x60c   : > { %7496 = vmatprep.subr.bf16.mxu0 %v15325_v2 }
 0x60d   : > { %v7509_v2 = vpack.c.bf16 %v15334_v52, %v15333_v4 }
 0x60f   : > { %7498 = vmatpush1.bf16.msra.mxu0 %v15326_v8  ;;  %v15335_v8 = vand.u32 4294901760, %v15166_v54  ;;  %v15342_v54 = vand.u32 4294901760, %v15198_v30  ;;  %v15349_v30 = vand.u32 4294901760, %v15178_v45  ;;  %v15356_v45 = vand.u32 4294901760, %v15261_v32 }
 0x610   : > { %7500 = vmatprep.subr.bf16.mxu0 %v15327_v40  ;;  %v15336_v40 = vand.u32 4294901760, %v15167_v5  ;;  %v15343_v5 = vand.u32 4294901760, %v15300_v10  ;;  %v15351_v10 = vand.u32 4294901760, %v15256_v39  ;;  %v15358_v39 = vand.u32 4294901760, %v11540_v61 }
 0x611   : > { %v7515_v12 = vpack.c.bf16 %v15342_v54, %v15341_v6  ;;  %v15363_v32 = vand.u32 4294901760, %v11565_v28  ;;  %v15365_v61 = vand.u32 4294901760, %v11575_v46  ;;  %v15368_v6 = vld [vmem:[#allocation71_spill] sm:$0xff] }
 0x612   : > { %v15369_v1 = vand.u32 4294901760, %v15368_v6 }
 0x613   : > { %7502 = vmatpush1.bf16.msra.mxu0 %v15328_v51  ;;  %v7511_v51 = vpack.c.bf16 %v15336_v40, %v15335_v8  ;;  %v7523_v8 = vpack.c.bf16 %v15352_v41, %v15351_v10  ;;  %v15383_v10 = vand.u32 4294901760, %v15224_v29  ;;  %v15384_v41 = vld [vmem:[#allocation72_spill] sm:$0xff]  ;;  %v15391_v29 = vand.u32 4294901760, %v15289_v13  ;;  %v15399_v13 = vld [vmem:[#allocation77_spill] sm:$0xff] }
 0x614   : > { %7504 = vmatprep.subr.bf16.mxu0 %v15329_v24  ;;  %v15337_v24 = vand.u32 4294901760, %v15296_v14  ;;  %v15350_v14 = vand.u32 4294901760, %v15180_v27  ;;  %v15357_v27 = vand.u32 4294901760, %v11535_v55  ;;  %v15364_v55 = vand.u32 4294901760, %v11570_v19  ;;  %v15374_v19 = vld [vmem:[#allocation85_spill] sm:$0xff] }
 0x616   : > { %v7529_v52 = vpack.c.bf16 %v15358_v39, %v15357_v27  ;;  %v7535_v58 = vpack.c.bf16 %v15364_v55, %v15363_v32  ;;  %v15392_v27 = vand.u32 4294901760, %v11675_v20  ;;  %v15406_v55 = vand.u32 4294901760, %v15238_v35  ;;  %v15417_v35 = vld [vmem:[#allocation32_spill] sm:$0xff] }
 0x617   : > { %7506 = vmatpush1.bf16.msra.mxu0 %v15332_v44 }
 0x618   : > { %7508 = vmatprep.subr.bf16.mxu0 %v7507_v18  ;;  %v7521_v18 = vpack.c.bf16 %v15350_v14, %v15349_v30  ;;  %v15381_v30 = vand.u32 4294901760, %v15281_v17  ;;  %v15382_v14 = vand.u32 4294901760, %v15280_v22  ;;  %v15389_v17 = vand.u32 4294901760, %v15286_v0 }
 0x619   : > { %v15390_v22 = vand.u32 4294901760, %v15290_v62  ;;  %v15397_v0 = vand.u32 4294901760, %v11695_v56  ;;  %v15398_v62 = vand.u32 4294901760, %v11700_v50  ;;  %v15409_v50 = vld [vmem:[#allocation6_spill] sm:$0xff] }
 0x61a   : > { %4715 = vmatmul.mubr.f32.vlgmr.msra.gmra.mrb[4].mxu0 %v15337_v24  ;;  %v15344_v24 = vld [vmem:[#allocation102_spill] sm:$0xff] }
 0x61b   : > { %4723 = vmatprep.mubr.f32.mxu0 %v15338_v7  ;;  %7510 = vmatpush1.bf16.msra.mxu0 %v7509_v2  ;;  %v15346_v2 = vand.u32 4294901760, %v15250_v16  ;;  %v15353_v16 = vand.u32 4294901760, %v15259_v59  ;;  %v15360_v59 = vand.u32 4294901760, %v11550_v11  ;;  %v15367_v11 = vand.u32 4294901760, %v15269_v57 }
 0x61c   : > { %7512 = vmatprep.subr.bf16.mxu0 %v7511_v51  ;;  %v15348_v51 = vand.u32 4294901760, %v15177_v60  ;;  %v15355_v60 = vand.u32 4294901760, %v15262_v34  ;;  %v15362_v34 = vand.u32 4294901760, %v11560_v47  ;;  %v15370_v47 = vld [vmem:[#allocation76_spill] sm:$0xff] }
 0x61d   : > { %v7517_v37 = vpack.c.bf16 %v15346_v2, %v15345_v43  ;;  %v7525_v40 = vpack.c.bf16 %v15354_v25, %v15353_v16  ;;  %v7531_v7 = vpack.c.bf16 %v15360_v59, %v15359_v9  ;;  %v7539_v54 = vpack.c.bf16 %v15369_v1, %v15367_v11  ;;  %v15413_v1 = vld [vmem:[#allocation89_spill] sm:$0xff] }
 0x61e   : > { %4727 = vmatmul.mubr.f32.gmra.mrb[6].mxu0 %v15343_v5  ;;  %v7519_v38 = vpack.c.bf16 %v15348_v51, %v15347_v31  ;;  %v7527_v4 = vpack.c.bf16 %v15356_v45, %v15355_v60  ;;  %v7533_v26 = vpack.c.bf16 %v15362_v34, %v15361_v33  ;;  %v15372_v5 = vld [vmem:[#allocation83_spill] sm:$0xff]  ;;  %v15375_v2 = vand.u32 4294901760, %v15374_v19  ;;  %v15379_v51 = vld [vmem:[#allocation65_spill] sm:$0xff]  ;;  %v15401_v33 = vld [vmem:[#allocation80_spill] sm:$0xff] }
 0x61f   : > { %7514 = vmatpush1.bf16.msra.mxu0 %v7513_v42  ;;  %4990 = vmatprep.mubr.f32.mxu0 %v15344_v24  ;;  %v7537_v42 = vpack.c.bf16 %v15366_v49, %v15365_v61  ;;  %v15373_v28 = vand.u32 4294901760, %v15372_v5  ;;  %v15380_v57 = vand.u32 4294901760, %v15379_v51  ;;  %v15386_v25 = vand.u32 4294901760, %v15284_v48  ;;  %v15419_v5 = vld [vmem:[#allocation44_spill] sm:$0xff]  ;;  %v15422_v19 = vld [vmem:[#allocation101_spill] sm:$0xff] }
 0x620   : > { %7516 = vmatprep.subr.bf16.mxu0 %v7515_v12  ;;  %v15371_v12 = vand.u32 4294901760, %v15370_v47  ;;  %v15388_v60 = vand.u32 4294901760, %v15287_v53  ;;  %v15393_v48 = vand.u32 4294901760, %v11680_v21  ;;  %v7561_v59 = vpack.c.bf16 %v15398_v62, %v15397_v0  ;;  %v15416_v47 = vld [vmem:[#allocation16_spill] sm:$0xff]  ;;  %v15428_v51 = vld [vmem:[#allocation25_spill] sm:$0xff]  ;;  %v12500_v62 = vld [vmem:[%s13287_s5 + $0x90] sm:$0xff] }
 0x621   : > { %v15402_v20 = vand.u32 4294901760, %v15401_v33  ;;  %v15403_v21 = vand.u32 4294901760, %v15236_v3  ;;  %v15410_v49 = vand.u32 4294901760, %v15409_v50  ;;  %v15414_v3 = vld [vmem:[#allocation64_spill] sm:$0xff]  ;;  %v12513_v33 = vld [vmem:[%s13287_s5 + $0x10] sm:$0xff]  ;;  %v12556_v50 = vld [vmem:[%s13287_s5 + $0x28] sm:$0xff] }
 0x622   : > { %v7541_v43 = vpack.c.bf16 %v15373_v28, %v15371_v12  ;;  %v7553_v45 = vpack.c.bf16 %v15389_v17, %v15388_v60  ;;  %v7557_v39 = vpack.c.bf16 %v15393_v48, %v15392_v27  ;;  %v15418_v12 = vld [vmem:[#allocation79_spill] sm:$0xff]  ;;  %v15420_v28 = vld [vmem:[#allocation97_spill] sm:$0xff]  ;;  %v12469_v27 = vld [vmem:[%s13287_s5 + $0x88] sm:$0xff] }
 0x623   : > { %7518 = vmatpush1.bf16.msra.mxu0 %v7517_v37  ;;  %v15376_v37 = vld [vmem:[#allocation88_spill] sm:$0xff]  ;;  %v15442_v60 = vld [vmem:[#allocation59_spill] sm:$0xff] }
 0x624   : > { %7520 = vmatprep.subr.bf16.mxu0 %v7519_v38  ;;  %v15377_v46 = vand.u32 4294901760, %v15376_v37  ;;  %v7545_v38 = vpack.c.bf16 %v15380_v57, %v15378_v15  ;;  %v15424_v37 = vld [vmem:[#allocation11_spill] sm:$0xff]  ;;  %v15427_v15 = vld [vmem:[#allocation28_spill] sm:$0xff]  ;;  %v15429_v57 = vld [vmem:[#allocation29_spill] sm:$0xff] }
 0x625   : > { %v15443_v17 = vld [vmem:[#allocation55_spill] sm:$0xff] }
 0x626   : > { %v7543_v31 = vpack.c.bf16 %v15377_v46, %v15375_v2  ;;  %v15423_v2 = vld [vmem:[#allocation10_spill] sm:$0xff]  ;;  %v15425_v46 = vld [vmem:[#allocation23_spill] sm:$0xff] }
 0x627   : > { %7522 = vmatpush1.bf16.msra.mxu0 %v7521_v18  ;;  %v7547_v18 = vpack.c.bf16 %v15382_v14, %v15381_v30  ;;  %v15432_v30 = vld [vmem:[#allocation94_spill] sm:$0xff]  ;;  %v15433_v14 = vld [vmem:[#allocation8_spill] sm:$0xff] }
 0x628   : > { %7524 = vmatprep.subr.bf16.mxu0 %v7523_v8  ;;  %v15385_v8 = vand.u32 4294901760, %v15384_v41  ;;  %v15436_v41 = vld [vmem:[#allocation39_spill] sm:$0xff] }
 0x62a   : > { %v7549_v16 = vpack.c.bf16 %v15385_v8, %v15383_v10  ;;  %v15435_v10 = vld [vmem:[#allocation36_spill] sm:$0xff]  ;;  %v15437_v8 = vld [vmem:[#allocation38_spill] sm:$0xff] }
 0x62b   : > { %7526 = vmatpush1.bf16.msra.mxu0 %v7525_v40  ;;  %v7551_v40 = vpack.c.bf16 %v15387_v23, %v15386_v25  ;;  %v15439_v25 = vld [vmem:[#allocation43_spill] sm:$0xff]  ;;  %v15440_v23 = vld [vmem:[#allocation52_spill] sm:$0xff] }
 0x62c   : > { %7528 = vmatprep.subr.bf16.mxu0 %v7527_v4  ;;  %v7555_v4 = vpack.c.bf16 %v15391_v29, %v15390_v22  ;;  %v15445_v22 = vld [vmem:[#allocation103_spill] sm:$0xff] }
 0x62d   : > { %v15446_v29 = vld [vmem:[#allocation19_spill] sm:$0xff] }
 0x62f   : > { %7530 = vmatpush1.bf16.msra.mxu0 %v7529_v52  ;;  %v15395_v52 = vld [vmem:[#allocation74_spill] sm:$0xff] }
 0x630   : > { %7532 = vmatprep.subr.bf16.mxu0 %v7531_v7  ;;  %v15396_v53 = vand.u32 4294901760, %v15395_v52  ;;  %v15400_v7 = vand.u32 4294901760, %v15399_v13  ;;  %v5305_v13 = vand.u32 4294901760, %v12500_v62 }
 0x632   : > { %v7559_v9 = vpack.c.bf16 %v15396_v53, %v15394_v63  ;;  %v7563_v34 = vpack.c.bf16 %v15402_v20, %v15400_v7  ;;  %v12481_v63 = vld [vmem:[%s13287_s5 + $0x8] sm:$0xff]  ;;  %v12518_v20 = vld [vmem:[%s13287_s5 + $0x18] sm:$0xff] }
 0x633   : > { %7534 = vmatpush1.bf16.msra.mxu0 %v7533_v26  ;;  %v15404_v26 = vld [vmem:[#allocation82_spill] sm:$0xff]  ;;  %v5254_v53 = vand.u32 4294901760, %v12481_v63 }
 0x634   : > { %7536 = vmatprep.subr.bf16.mxu0 %v7535_v58  ;;  %v15405_v36 = vand.u32 4294901760, %v15404_v26  ;;  %v15407_v58 = vld [vmem:[#allocation5_spill] sm:$0xff] }
 0x635   : > { %v15408_v56 = vand.u32 4294901760, %v15407_v58 }
 0x636   : > { %v7565_v32 = vpack.c.bf16 %v15405_v36, %v15403_v21  ;;  %v14111_v21 = vand.u32 4294901760, %v12518_v20 }
 0x637   : > { %7538 = vmatpush1.bf16.msra.mxu0 %v7537_v42  ;;  %v7567_v61 = vpack.c.bf16 %v15408_v56, %v15406_v55  ;;  %v15411_v42 = vld [vmem:[#allocation91_spill] sm:$0xff]  ;;  %v12543_v55 = vld [vmem:[%s13287_s5 + $0xa8] sm:$0xff] }
 0x638   : > { %7540 = vmatprep.subr.bf16.mxu0 %v7539_v54  ;;  %v15412_v11 = vand.u32 4294901760, %v15411_v42  ;;  %v15415_v54 = vld [vmem:[#allocation40_spill] sm:$0xff]  ;;  %v14109_v56 = vand.u32 4294901760, %v12543_v55  ;;  %v14107_v42 = vand.u32 4294901760, %v12556_v50 }
 0x63a   : > { %v7569_v6 = vpack.c.bf16 %v15412_v11, %v15410_v49 }
 0x63b   : > { %7542 = vmatpush1.bf16.msra.mxu0 %v7541_v43  ;;  %v15421_v43 = vld [vmem:[#allocation100_spill] sm:$0xff] }
 0x63c   : > { %7544 = vmatprep.subr.bf16.mxu0 %v7543_v31  ;;  %v15426_v31 = vld [vmem:[#allocation22_spill] sm:$0xff] }
 0x63f   : > { %7546 = vmatpush1.bf16.msra.mxu0 %v7545_v38  ;;  %v15431_v38 = vld [vmem:[#allocation18_spill] sm:$0xff] }
 0x640   : > { %7548 = vmatprep.subr.bf16.mxu0 %v7547_v18  ;;  %v15434_v18 = vld [vmem:[#allocation21_spill] sm:$0xff] }
 0x643   : > { %7550 = vmatpush1.bf16.msra.mxu0 %v7549_v16  ;;  %v15438_v16 = vld [vmem:[#allocation47_spill] sm:$0xff] }
 0x644   : > { %7552 = vmatprep.subr.bf16.mxu0 %v7551_v40  ;;  %v15441_v40 = vld [vmem:[#allocation49_spill] sm:$0xff] }
 0x647   : > { %7554 = vmatpush1.bf16.msra.mxu0 %v7553_v45  ;;  %v15444_v45 = vld [vmem:[#allocation68_spill] sm:$0xff] }
 0x648   : > { %7556 = vmatprep.subr.bf16.mxu0 %v7555_v4  ;;  %v12464_v4 = vld [vmem:[%s13287_s5 + $0x80] sm:$0xff] }
 0x649   : > { %v5299_v48 = vand.u32 4294901760, %v12464_v4 }
 0x64b   : > { %7558 = vmatpush1.bf16.msra.mxu0 %v7557_v39  ;;  %v12476_v39 = vld [vmem:[%s13287_s5] sm:$0xff] }
 0x64c   : > { %7560 = vmatprep.subr.bf16.mxu0 %v7559_v9  ;;  %v5251_v52 = vand.u32 4294901760, %v12476_v39 }
 0x64e   : > { %v12495_v0 = vpack.c.bf16 %v5254_v53, %v5251_v52 }
 0x64f   : > { %7562 = vmatpush1.bf16.msra.mxu0 %v7561_v59  ;;  %v12505_v59 = vld [vmem:[%s13287_s5 + $0x98] sm:$0xff] }
 0x650   : > { %7564 = vmatprep.subr.bf16.mxu0 %v7563_v34  ;;  %15448 = vst [vmem:[#allocation46_spill] sm:$0xff] %v12495_v0  ;;  %v5308_v7 = vand.u32 4294901760, %v12505_v59  ;;  %v14112_v34 = vand.u32 4294901760, %v12513_v33 }
 0x652   : > { %v12527_v26 = vpack.c.bf16 %v5308_v7, %v5305_v13  ;;  %v12533_v36 = vpack.c.bf16 %v14111_v21, %v14112_v34  ;;  %v12742_v21 = vsub.f32 %v12500_v62, %v5305_v13  ;;  %v12747_v34 = vsub.f32 %v12505_v59, %v5308_v7 }
 0x653   : > { %7566 = vmatpush1.bf16.msra.mxu0 %v7565_v32  ;;  %v12538_v32 = vld [vmem:[%s13287_s5 + $0xa0] sm:$0xff] }
 0x654   : > { %7568 = vmatprep.subr.bf16.mxu0 %v7567_v61  ;;  %15449 = vst [vmem:[#allocation48_spill] sm:$0xff] %v12527_v26  ;;  %15450 = vst [vmem:[#allocation50_spill] sm:$0xff] %v12533_v36  ;;  %v14110_v58 = vand.u32 4294901760, %v12538_v32  ;;  %v12551_v61 = vld [vmem:[%s13287_s5 + $0x20] sm:$0xff] }
 0x655   : > { %v14108_v49 = vand.u32 4294901760, %v12551_v61 }
 0x656   : > { %v12565_v11 = vpack.c.bf16 %v14109_v56, %v14110_v58  ;;  %v15463_v56 = vand.u32 4294901760, %v12513_v33 }
 0x657   : > { %7570 = vmatpush1.bf16.msra.mxu0 %v7569_v6  ;;  %v12571_v6 = vpack.c.bf16 %v14107_v42, %v14108_v49 }
 0x658   : > { %7572 = vmatprep.subr.bf16.mxu0 %v15413_v1  ;;  %15451 = vst [vmem:[#allocation51_spill] sm:$0xff] %v12565_v11  ;;  %v12576_v1 = vld [vmem:[%s13287_s5 + $0xb0] sm:$0xff]  ;;  %v12757_v58 = vsub.f32 %v12513_v33, %v15463_v56 }
 0x659   : > { %15452 = vst [vmem:[#allocation53_spill] sm:$0xff] %v12571_v6 }
 0x65a   : > { %4992 = vmatmul.mubr.f32.vlgmr.msra.gmra.mrb[4].mxu0 %v15414_v3 }
 0x65b   : > { %4998 = vmatprep.mubr.f32.mxu0 %v15415_v54  ;;  %7574 = vmatpush1.bf16.msra.mxu0 %v15416_v47 }
 0x65c   : > { %7576 = vmatprep.subr.bf16.mxu0 %v15417_v35  ;;  %v12589_v35 = vld [vmem:[%s13287_s5 + $0x30] sm:$0xff] }
 0x65e   : > { %5000 = vmatmul.mubr.f32.gmra.mrb[6].mxu0 %v15418_v12 }
 0x65f   : > { %7578 = vmatpush1.bf16.msra.mxu0 %v15419_v5  ;;  %5135 = vmatprep.mubr.f32.mxu0 %v15344_v24  ;;  %v15430_v24 = vld [vmem:[#allocation45_spill] sm:$0xff]  ;;  %v14104_v5 = vand.u32 4294901760, %v12589_v35 }
 0x660   : > { %7580 = vmatprep.subr.bf16.mxu0 %v15420_v28 }
 0x663   : > { %7582 = vmatpush1.bf16.msra.mxu0 %v15421_v43 }
 0x664   : > { %7584 = vmatprep.subr.bf16.mxu0 %v15422_v19 }
 0x667   : > { %7586 = vmatpush1.bf16.msra.mxu0 %v15423_v2  ;;  %v12614_v2 = vld [vmem:[%s13287_s5 + $0xc0] sm:$0xff] }
 0x668   : > { %7588 = vmatprep.subr.bf16.mxu0 %v15424_v37  ;;  %v12619_v37 = vld [vmem:[%s13287_s5 + $0xc8] sm:$0xff] }
 0x66b   : > { %7590 = vmatpush1.bf16.msra.mxu0 %v15425_v46  ;;  %v14102_v46 = vand.u32 4294901760, %v12614_v2 }
 0x66c   : > { %7592 = vmatprep.subr.bf16.mxu0 %v15426_v31  ;;  %v14101_v31 = vand.u32 4294901760, %v12619_v37 }
 0x66f   : > { %7594 = vmatpush1.bf16.msra.mxu0 %v15427_v15  ;;  %v12627_v15 = vld [vmem:[%s13287_s5 + $0x40] sm:$0xff] }
 0x670   : > { %7596 = vmatprep.subr.bf16.mxu0 %v15428_v51  ;;  %v12632_v51 = vld [vmem:[%s13287_s5 + $0x48] sm:$0xff] }
 0x673   : > { %7598 = vmatpush1.bf16.msra.mxu0 %v15429_v57  ;;  %v14100_v57 = vand.u32 4294901760, %v12627_v15 }
 0x674   : > { %7600 = vmatprep.subr.bf16.mxu0 %v15430_v24  ;;  %v14097_v24 = vand.u32 4294901760, %v12632_v51 }
 0x677   : > { %7602 = vmatpush1.bf16.msra.mxu0 %v15431_v38  ;;  %v12641_v38 = vpack.c.bf16 %v14101_v31, %v14102_v46  ;;  %v12700_v31 = vsub.f32 %v12464_v4, %v5299_v48  ;;  %v5241_v4 = vld [vmem:[%s13287_s5 + $0xf0] sm:$0xff] }
 0x678   : > { %7604 = vmatprep.subr.bf16.mxu0 %v15432_v30  ;;  %v12647_v30 = vpack.c.bf16 %v14097_v24, %v14100_v57  ;;  %v5223_v24 = vld [vmem:[%s13287_s5 + $0x60] sm:$0xff] }
 0x679   : > { %15455 = vst [vmem:[#allocation57_spill] sm:$0xff] %v12641_v38 }
 0x67a   : > { %15456 = vst [vmem:[#allocation58_spill] sm:$0xff] %v12647_v30 }
 0x67b   : > { %7606 = vmatpush1.bf16.msra.mxu0 %v15433_v14  ;;  %v12652_v14 = vld [vmem:[%s13287_s5 + $0xd0] sm:$0xff] }
 0x67c   : > { %7608 = vmatprep.subr.bf16.mxu0 %v15434_v18  ;;  %v12657_v18 = vld [vmem:[%s13287_s5 + $0xd8] sm:$0xff] }
 0x67f   : > { %7610 = vmatpush1.bf16.msra.mxu0 %v15435_v10  ;;  %v14099_v10 = vand.u32 4294901760, %v12652_v14 }
 0x680   : > { %7612 = vmatprep.subr.bf16.mxu0 %v15436_v41  ;;  %v14098_v41 = vand.u32 4294901760, %v12657_v18 }
 0x683   : > { %7614 = vmatpush1.bf16.msra.mxu0 %v15437_v8  ;;  %v12665_v8 = vld [vmem:[%s13287_s5 + $0x50] sm:$0xff] }
 0x684   : > { %7616 = vmatprep.subr.bf16.mxu0 %v15438_v16  ;;  %v12670_v16 = vld [vmem:[%s13287_s5 + $0x58] sm:$0xff] }
 0x687   : > { %7618 = vmatpush1.bf16.msra.mxu0 %v15439_v25  ;;  %v5281_v25 = vand.u32 4294901760, %v12665_v8 }
 0x688   : > { %7620 = vmatprep.subr.bf16.mxu0 %v15440_v23  ;;  %v5284_v23 = vand.u32 4294901760, %v12670_v16 }
 0x68b   : > { %7622 = vmatpush1.bf16.msra.mxu0 %v15441_v40  ;;  %v12679_v40 = vpack.c.bf16 %v14098_v41, %v14099_v10  ;;  %v5224_v41 = vld [vmem:[%s13287_s5 + $0x68] sm:$0xff]  ;;  %v5287_v10 = vand.u32 4294901760, %v5223_v24 }
 0x68c   : > { %7624 = vmatprep.subr.bf16.mxu0 %v15442_v60  ;;  %v12681_v60 = vpack.c.bf16 %v5284_v23, %v5281_v25  ;;  %v5290_v57 = vand.u32 4294901760, %v5224_v41 }
 0x68d   : > { %15457 = vst [vmem:[#allocation60_spill] sm:$0xff] %v12679_v40 }
 0x68e   : > { %15458 = vst [vmem:[#allocation63_spill] sm:$0xff] %v12681_v60 }
 0x68f   : > { %7626 = vmatpush1.bf16.msra.mxu0 %v15443_v17  ;;  %v5239_v17 = vld [vmem:[%s13287_s5 + $0xe0] sm:$0xff] }
 0x690   : > { %7628 = vmatprep.subr.bf16.mxu0 %v15444_v45  ;;  %v5240_v45 = vld [vmem:[%s13287_s5 + $0xe8] sm:$0xff] }
 0x693   : > { %7630 = vmatpush1.bf16.msra.mxu0 %v15445_v22  ;;  %v5335_v22 = vand.u32 4294901760, %v5239_v17 }
 0x694   : > { %7632 = vmatprep.subr.bf16.mxu0 %v15446_v29  ;;  %v5338_v29 = vand.u32 4294901760, %v5240_v45 }
 0x697   : > { %7634 = vmatpush1.bf16.msra.mxu0 %v15332_v44  ;;  %v5302_v44 = vand.u32 4294901760, %v12469_v27 }
 0x699   : > { %v12489_v9 = vpack.c.bf16 %v5302_v44, %v5299_v48  ;;  %v12705_v46 = vsub.f32 %v12469_v27, %v5302_v44  ;;  %v5242_v27 = vld [vmem:[%s13287_s5 + $0xf8] sm:$0xff]  ;;  %v5341_v48 = vand.u32 4294901760, %v5241_v4 }
 0x69a   : > { %5137 = vmatmul.mubr.f32.vlgmr.msra.gmra.mrb[4].mxu0 %v15414_v3  ;;  %v12581_v3 = vld [vmem:[%s13287_s5 + $0xb8] sm:$0xff]  ;;  %v5344_v44 = vand.u32 4294901760, %v5242_v27 }
 0x69b   : > { %5143 = vmatprep.mubr.f32.mxu0 %v15415_v54  ;;  %15447 = vst [vmem:[#allocation17_spill] sm:$0xff] %v12489_v9  ;;  %7636 = vmatprep.subr.bf16.mxu1 %v12489_v9  ;;  %v14106_v54 = vand.u32 4294901760, %v12576_v1  ;;  %v14105_v47 = vand.u32 4294901760, %v12581_v3  ;;  %v15466_v7 = vand.u32 4294901760, %v12705_v46 }
 0x69c   : > { %7638 = vmatpush3.bf16.msra.mxu1 %v12495_v0 }
 0x69d   : > { %7640 = vmatprep.subr.bf16.mxu1 %v12527_v26  ;;  %v12603_v43 = vpack.c.bf16 %v14105_v47, %v14106_v54  ;;  %v12717_v47 = vsub.f32 %v12481_v63, %v5254_v53  ;;  %v12719_v54 = vpack.c.bf16 %v5290_v57, %v5287_v10  ;;  %v5226_v63 = vld [vmem:[%s13287_s5 + $0x78] sm:$0xff]  ;;  %v15462_v53 = vand.u32 4294901760, %v12700_v31 }
 0x69e   : > { %5145 = vmatmul.mubr.f32.gmra.mrb[6].mxu0 %v15418_v12  ;;  %v12594_v12 = vld [vmem:[%s13287_s5 + $0x38] sm:$0xff]  ;;  %v5296_v49 = vand.u32 4294901760, %v5226_v63 }
 0x69f   : > { %v14103_v28 = vand.u32 4294901760, %v12594_v12  ;;  %15453 = vst [vmem:[#allocation54_spill] sm:$0xff] %v12603_v43  ;;  %15460 = vst [vmem:[#allocation15_spill] sm:$0xff] %v12719_v54  ;;  %v15468_v33 = vand.u32 4294901760, %v12717_v47 }
 0x6a0   : > { %7642 = vmatpush3.bf16.msra.mxu1 %v12533_v36 }
 0x6a1   : > { %7644 = vmatprep.subr.bf16.mxu1 %v12565_v11  ;;  %v12609_v19 = vpack.c.bf16 %v14103_v28, %v14104_v5  ;;  %v12707_v28 = vpack.c.bf16 %v5338_v29, %v5335_v22  ;;  %v12712_v5 = vsub.f32 %v12476_v39, %v5251_v52  ;;  %v5225_v39 = vld [vmem:[%s13287_s5 + $0x70] sm:$0xff]  ;;  %v12749_v52 = vpack.c.bf16 %v5344_v44, %v5341_v48 }
 0x6a2   : > { %v5293_v42 = vand.u32 4294901760, %v5225_v39  ;;  %v5388_v56 = vsub.f32 %v12717_v47, %v15468_v33 }
 0x6a3   : > { %15454 = vst [vmem:[#allocation56_spill] sm:$0xff] %v12609_v19  ;;  %15459 = vst [vmem:[#allocation81_spill] sm:$0xff] %v12707_v28 }
 0x6a4   : > { %7646 = vmatpush3.bf16.msra.mxu1 %v12571_v6  ;;  %15461 = vst [vmem:[#allocation87_spill] sm:$0xff] %v12749_v52  ;;  %v12764_v13 = vpack.c.bf16 %v5296_v49, %v5293_v42 }
 0x6a5   : > { %7648 = vmatprep.subr.bf16.mxu1 %v12603_v43 }
 0x6a6   : > { %15465 = vst [vmem:[#allocation14_spill] sm:$0xff] %v12764_v13 }
 0x6a8   : > { %7650 = vmatpush3.bf16.msra.mxu1 %v12609_v19 }
 0x6a9   : > { %7652 = vmatprep.subr.bf16.mxu1 %v12641_v38 }
 0x6ac   : > { %7654 = vmatpush3.bf16.msra.mxu1 %v12647_v30 }
 0x6ad   : > { %7656 = vmatprep.subr.bf16.mxu1 %v12679_v40 }
 0x6b0   : > { %7658 = vmatpush3.bf16.msra.mxu1 %v12681_v60  ;;  %v5500_v60 = vsub.f32 %v12705_v46, %v15466_v7  ;;  %v15471_v7 = vand.u32 4294901760, %v12551_v61 }
 0x6b1   : > { %7660 = vmatprep.subr.bf16.mxu1 %v12707_v28  ;;  %v15464_v28 = vand.u32 4294901760, %v12518_v20 }
 0x6b2   : > { %v12789_v30 = vsub.f32 %v12551_v61, %v15471_v7  ;;  %v15475_v61 = vand.u32 4294901760, %v12589_v35 }
 0x6b3   : > { %v12762_v62 = vsub.f32 %v12518_v20, %v15464_v28  ;;  %v15469_v20 = vand.u32 4294901760, %v12538_v32 }
 0x6b4   : > { %7662 = vmatpush3.bf16.msra.mxu1 %v12719_v54  ;;  %v5493_v54 = vsub.f32 %v12700_v31, %v15462_v53  ;;  %v15467_v53 = vand.u32 4294901760, %v12712_v5 }
 0x6b5   : > { %7664 = vmatprep.subr.bf16.mxu1 %v12749_v52  ;;  %v12779_v28 = vsub.f32 %v12538_v32, %v15469_v20  ;;  %v15470_v52 = vand.u32 4294901760, %v12543_v55  ;;  %v15473_v32 = vand.u32 4294901760, %v12576_v1  ;;  %v12810_v20 = vsub.f32 %v12589_v35, %v15475_v61 }
 0x6b6   : > { %v5494_v59 = vand.u32 4294901760, %v5493_v54  ;;  %v5381_v40 = vsub.f32 %v12712_v5, %v15467_v53  ;;  %v15472_v53 = vand.u32 4294901760, %v12556_v50  ;;  %v15483_v61 = vand.u32 4294901760, %v12632_v51 }
 0x6b7   : > { %v12784_v54 = vsub.f32 %v12543_v55, %v15470_v52  ;;  %v12800_v33 = vsub.f32 %v12576_v1, %v15473_v32  ;;  %v15474_v55 = vand.u32 4294901760, %v12581_v3  ;;  %v15479_v32 = vand.u32 4294901760, %v12619_v37 }
 0x6b8   : > { %v12794_v38 = vsub.f32 %v12556_v50, %v15472_v53  ;;  %7666 = vmatpush3.bf16.msra.mxu1 %v12764_v13  ;;  %v15476_v50 = vand.u32 4294901760, %v12594_v12  ;;  %v15477_v53 = vand.u32 4294901760, %v12614_v2  ;;  %v12859_v13 = vsub.f32 %v5224_v41, %v5290_v57 }
 0x6b9   : > { %v12805_v52 = vsub.f32 %v12581_v3, %v15474_v55  ;;  %v12825_v3 = vsub.f32 %v12619_v37, %v15479_v32  ;;  %v15481_v55 = vand.u32 4294901760, %v12627_v15  ;;  %v12848_v32 = vsub.f32 %v12665_v8, %v5281_v25 }
 0x6ba   : > { %v12815_v7 = vsub.f32 %v12594_v12, %v15476_v50  ;;  %v12820_v1 = vsub.f32 %v12614_v2, %v15477_v53  ;;  %v12835_v12 = vsub.f32 %v12632_v51, %v15483_v61  ;;  %v15485_v50 = vand.u32 4294901760, %v12652_v14  ;;  %15494 = vst [vmem:[#allocation99_spill] sm:$0xff] %v12859_v13 }
 0x6bb   : > { %15480 = vst [vmem:[#allocation75_spill] sm:$0xff] %v12825_v3  ;;  %v12830_v35 = vsub.f32 %v12627_v15, %v15481_v55  ;;  %v15487_v53 = vand.u32 4294901760, %v12657_v18  ;;  %15489 = vst [vmem:[#allocation86_spill] sm:$0xff] %v12848_v32  ;;  %v12851_v15 = vsub.f32 %v12670_v16, %v5284_v23  ;;  %v12853_v55 = vsub.f32 %v5239_v17, %v5335_v22 }
 0x6bc   : > { %15478 = vst [vmem:[#allocation69_spill] sm:$0xff] %v12820_v1  ;;  %15484 = vst [vmem:[#allocation42_spill] sm:$0xff] %v12835_v12  ;;  %v12840_v2 = vsub.f32 %v12652_v14, %v15485_v50  ;;  %v12855_v51 = vsub.f32 %v5240_v45, %v5338_v29  ;;  %v12857_v61 = vsub.f32 %v5223_v24, %v5287_v10  ;;  %v5501_v8 = vand.u32 4294901760, %v5500_v60 }
 0x6bd   : > { %15482 = vst [vmem:[#allocation33_spill] sm:$0xff] %v12830_v35  ;;  %v12845_v37 = vsub.f32 %v12657_v18, %v15487_v53  ;;  %15490 = vst [vmem:[#allocation96_spill] sm:$0xff] %v12851_v15  ;;  %v12861_v14 = vsub.f32 %v5241_v4, %v5341_v48  ;;  %v12863_v50 = vsub.f32 %v5242_v27, %v5344_v44  ;;  %v5382_v25 = vand.u32 4294901760, %v5381_v40 }
 0x6be   : > { %15486 = vst [vmem:[#allocation95_spill] sm:$0xff] %v12840_v2  ;;  %15491 = vst [vmem:[#allocation90_spill] sm:$0xff] %v12853_v55  ;;  %v12865_v18 = vsub.f32 %v5225_v39, %v5293_v42  ;;  %v12867_v53 = vsub.f32 %v5226_v63, %v5296_v49  ;;  %v5389_v16 = vand.u32 4294901760, %v5388_v56  ;;  %v14144_v23 = vand.u32 4294901760, %v12742_v21 }
 0x6bf   : > { %15488 = vst [vmem:[#allocation84_spill] sm:$0xff] %v12845_v37  ;;  %15492 = vst [vmem:[#allocation66_spill] sm:$0xff] %v12855_v51  ;;  %v14142_v17 = vand.u32 4294901760, %v12747_v34  ;;  %v14138_v24 = vand.u32 4294901760, %v12757_v58  ;;  %v14137_v57 = vand.u32 4294901760, %v12762_v62  ;;  %v14135_v10 = vand.u32 4294901760, %v12779_v28 }
 0x6c0   : > { %15493 = vst [vmem:[#allocation61_spill] sm:$0xff] %v12857_v61  ;;  %15495 = vst [vmem:[#allocation27_spill] sm:$0xff] %v12861_v14  ;;  %v7667_v41 = vpack.c.bf16 %v5501_v8, %v5494_v59  ;;  %v12874_v45 = vpack.c.bf16 %v5389_v16, %v5382_v25  ;;  %v5507_v49 = vsub.f32 %v12742_v21, %v14144_v23  ;;  %v14129_v42 = vand.u32 4294901760, %v12784_v54 }
 0x6c1   : > { %15496 = vst [vmem:[#allocation24_spill] sm:$0xff] %v12863_v50  ;;  %15497 = vst [vmem:[#allocation31_spill] sm:$0xff] %v12865_v18  ;;  %v5514_v40 = vsub.f32 %v12747_v34, %v14142_v17  ;;  %v5395_v60 = vsub.f32 %v12757_v58, %v14138_v24  ;;  %v5402_v22 = vsub.f32 %v12762_v62, %v14137_v57  ;;  %v14130_v48 = vand.u32 4294901760, %v12789_v30 }
 0x6c2   : > { %15498 = vst [vmem:[#allocation30_spill] sm:$0xff] %v12867_v53  ;;  %v5521_v29 = vsub.f32 %v12779_v28, %v14135_v10  ;;  %7668 = vmatprep.subr.bf16.mxu1 %v7667_v41  ;;  %v5508_v4 = vand.u32 4294901760, %v5507_v49  ;;  %v5528_v27 = vsub.f32 %v12784_v54, %v14129_v42  ;;  %v14131_v44 = vand.u32 4294901760, %v12794_v38 }
 0x6c3   : > { %v5515_v39 = vand.u32 4294901760, %v5514_v40  ;;  %v5396_v63 = vand.u32 4294901760, %v5395_v60  ;;  %v5403_v59 = vand.u32 4294901760, %v5402_v22  ;;  %v5409_v25 = vsub.f32 %v12789_v30, %v14130_v48 }
 0x6c4   : > { %v5522_v56 = vand.u32 4294901760, %v5521_v29  ;;  %v5529_v8 = vand.u32 4294901760, %v5528_v27  ;;  %v5416_v16 = vsub.f32 %v12794_v38, %v14131_v44  ;;  %v14132_v41 = vand.u32 4294901760, %v12800_v33 }
 0x6c5   : > { %v12904_v49 = vpack.c.bf16 %v5515_v39, %v5508_v4  ;;  %v12906_v42 = vpack.c.bf16 %v5403_v59, %v5396_v63  ;;  %v14133_v40 = vand.u32 4294901760, %v12805_v52  ;;  %v14134_v60 = vand.u32 4294901760, %v12810_v20 }
 0x6c6   : > { %v12910_v22 = vpack.c.bf16 %v5529_v8, %v5522_v56  ;;  %v5410_v29 = vand.u32 4294901760, %v5409_v25  ;;  %v5417_v27 = vand.u32 4294901760, %v5416_v16  ;;  %v5535_v48 = vsub.f32 %v12800_v33, %v14132_v41 }
 0x6c7   : > { %v5542_v44 = vsub.f32 %v12805_v52, %v14133_v40  ;;  %v5423_v4 = vsub.f32 %v12810_v20, %v14134_v60  ;;  %v14136_v39 = vand.u32 4294901760, %v12815_v7  ;;  %v14139_v63 = vand.u32 4294901760, %v12820_v1 }
 0x6c8   : > { %v12923_v59 = vpack.c.bf16 %v5417_v27, %v5410_v29  ;;  %v5536_v56 = vand.u32 4294901760, %v5535_v48  ;;  %v14140_v8 = vand.u32 4294901760, %v12825_v3  ;;  %v14141_v25 = vand.u32 4294901760, %v12830_v35 }
 0x6c9   : > { %v5543_v16 = vand.u32 4294901760, %v5542_v44  ;;  %v5424_v41 = vand.u32 4294901760, %v5423_v4  ;;  %v5430_v40 = vsub.f32 %v12815_v7, %v14136_v39  ;;  %v5549_v60 = vsub.f32 %v12820_v1, %v14139_v63 }
 0x6ca   : > { %v5556_v29 = vsub.f32 %v12825_v3, %v14140_v8  ;;  %v5437_v48 = vsub.f32 %v12830_v35, %v14141_v25  ;;  %v14143_v27 = vand.u32 4294901760, %v12835_v12  ;;  %v14146_v44 = vand.u32 4294901760, %v12840_v2 }
 0x6cb   : > { %v12941_v4 = vpack.c.bf16 %v5543_v16, %v5536_v56  ;;  %v5431_v10 = vand.u32 4294901760, %v5430_v40  ;;  %v5550_v39 = vand.u32 4294901760, %v5549_v60  ;;  %v14145_v57 = vand.u32 4294901760, %v12845_v37 }
 0x6cc   : > { %v5557_v24 = vand.u32 4294901760, %v5556_v29  ;;  %v5438_v63 = vand.u32 4294901760, %v5437_v48  ;;  %v5444_v8 = vsub.f32 %v12835_v12, %v14143_v27  ;;  %v5563_v25 = vsub.f32 %v12840_v2, %v14146_v44 }
 0x6cd   : > { %v12950_v17 = vpack.c.bf16 %v5431_v10, %v5424_v41  ;;  %v5570_v56 = vsub.f32 %v12845_v37, %v14145_v57  ;;  %v14147_v40 = vand.u32 4294901760, %v12848_v32  ;;  %v14148_v60 = vand.u32 4294901760, %v12851_v15 }
 0x6ce   : > { %v12957_v16 = vpack.c.bf16 %v5557_v24, %v5550_v39  ;;  %v5445_v29 = vand.u32 4294901760, %v5444_v8  ;;  %v5564_v48 = vand.u32 4294901760, %v5563_v25  ;;  %v14151_v27 = vand.u32 4294901760, %v12853_v55 }
 0x6cf   : > { %v5571_v23 = vand.u32 4294901760, %v5570_v56  ;;  %v5451_v10 = vsub.f32 %v12848_v32, %v14147_v40  ;;  %v5458_v41 = vsub.f32 %v12851_v15, %v14148_v60  ;;  %v14154_v57 = vand.u32 4294901760, %v12855_v51 }
 0x6d0   : > { %v12967_v44 = vpack.c.bf16 %v5445_v29, %v5438_v63  ;;  %v5577_v24 = vsub.f32 %v12853_v55, %v14151_v27  ;;  %v14155_v39 = vand.u32 4294901760, %v12857_v61  ;;  %v14159_v8 = vand.u32 4294901760, %v12859_v13 }
 0x6d1   : > { %v12974_v25 = vpack.c.bf16 %v5571_v23, %v5564_v48  ;;  %v5452_v56 = vand.u32 4294901760, %v5451_v10  ;;  %v5459_v40 = vand.u32 4294901760, %v5458_v41  ;;  %v5584_v60 = vsub.f32 %v12855_v51, %v14154_v57 }
 0x6d2   : > { %v5578_v19 = vand.u32 4294901760, %v5577_v24  ;;  %v5465_v63 = vsub.f32 %v12857_v61, %v14155_v39  ;;  %v5472_v29 = vsub.f32 %v12859_v13, %v14159_v8  ;;  %v14158_v27 = vand.u32 4294901760, %v12861_v14 }
 0x6d3   : > { %v12986_v43 = vpack.c.bf16 %v5459_v40, %v5452_v56  ;;  %v5585_v23 = vand.u32 4294901760, %v5584_v60  ;;  %v14162_v48 = vand.u32 4294901760, %v12863_v50  ;;  %v14163_v10 = vand.u32 4294901760, %v12865_v18 }
 0x6d4   : > { %v5466_v41 = vand.u32 4294901760, %v5465_v63  ;;  %v5473_v57 = vand.u32 4294901760, %v5472_v29  ;;  %v5591_v24 = vsub.f32 %v12861_v14, %v14158_v27  ;;  %v14164_v39 = vand.u32 4294901760, %v12867_v53 }
 0x6d5   : > { %v12994_v6 = vpack.c.bf16 %v5585_v23, %v5578_v19  ;;  %v5598_v40 = vsub.f32 %v12863_v50, %v14162_v48  ;;  %v5479_v60 = vsub.f32 %v12865_v18, %v14163_v10 }
 0x6d6   : > { %v13002_v56 = vpack.c.bf16 %v5473_v57, %v5466_v41  ;;  %v5592_v63 = vand.u32 4294901760, %v5591_v24  ;;  %v5486_v29 = vsub.f32 %v12867_v53, %v14164_v39  ;;  %v15500_v24 = vld [vmem:[#allocation93_spill] sm:$0xff] }
 0x6d7   : > { %v5599_v27 = vand.u32 4294901760, %v5598_v40  ;;  %v5480_v8 = vand.u32 4294901760, %v5479_v60  ;;  %v6251_v60 = vld [vmem:[%s13286_s4 + $0x4] sm:$0x3] }
 0x6d8   : > { %v5487_v11 = vand.u32 4294901760, %v5486_v29  ;;  %v3802_v29 = vrot.slane %v6251_v60, %v15500_v24 }
 0x6d9   : > { %v13007_v19 = vpack.c.bf16 %v5599_v27, %v5592_v63  ;;  %v15499_v63 = vld [vmem:[#allocation92_spill] sm:$0xff] }
 0x6da   : > { %v13009_v23 = vpack.c.bf16 %v5487_v11, %v5480_v8  ;;  %v3798_v27 = vrot.slane %v6251_v60, %v15499_v63 }
 0x76d   : > { %v5138_v41 = vpop.f32.mrb[4].mxu0 }
 0x76e   : > { %v7839_v57 = vadd.f32 %v5138_v41, %v3798_v27  ;;  %v5140_v39 = vpop.f32.mrb[5].mxu0 }
 0x76f   : > { %v7840_v10 = vadd.f32 %v5140_v39, %v3802_v29 }
 0x770   : > { %v5155_v48 = vand.u32 2147483647, %v7839_v57 }
 0x771   : > { %v5156_v11 = vand.u32 2147483647, %v7840_v10  ;;  %v5146_v36 = vpop.f32.mrb[6].mxu0 }
 0x772   : > { %v5159_v26 = vsub.f32 0.0, %v5155_v48  ;;  %v13048_v8 = vadd.f32 %v5146_v36, %v3798_v27  ;;  %v5148_v0 = vpop.f32.mrb[7].mxu0 }
 0x773   : > { %v5160_v40 = vsub.f32 0.0, %v5156_v11  ;;  %v13050_v9 = vadd.f32 %v5148_v0, %v3802_v29 }
 0x774   : > { %v5163_v18 = vmul.f32 1.442695, %v5159_v26  ;;  %v5157_v53 = vand.u32 2147483647, %v13048_v8 }
 0x775   : > { %v5165_v63 = vmul.f32 1.442695, %v5160_v40  ;;  %v5158_v24 = vand.u32 2147483647, %v13050_v9 }
 0x776   : > { %8017 = vpow2.f32 %v5163_v18  ;;  %v5161_v41 = vsub.f32 0.0, %v5157_v53 }
 0x777   : > { %8019 = vpow2.f32 %v5165_v63  ;;  %v5162_v39 = vsub.f32 0.0, %v5158_v24 }
 0x778   : > { %v5167_v60 = vmul.f32 1.442695, %v5161_v41 }
 0x779   : > { %v5169_v14 = vmul.f32 1.442695, %v5162_v39 }
 0x77a   : > { %8021 = vpow2.f32 %v5167_v60  ;;  %v5151_v60 = vmax.f32 %v7839_v57, 0.0  ;;  %v5153_v57 = vmax.f32 %v13048_v8, 0.0 }
 0x77b   : > { %8023 = vpow2.f32 %v5169_v14 }
 0x780   : > { %v8018_v36 = vpop.eup %8017 }
 0x781   : > { %v8020_v48 = vpop.eup %8019  ;;  %v5171_v27 = vadd.f32 1.0, %v8018_v36  ;;  %v5174_v40 = vmul.f32 -0.5, %v8018_v36  ;;  %v5177_v53 = vand.u32 2147483647, %v8018_v36 }
 0x782   : > { %v5180_v11 = vadd.f32 1.0, %v8020_v48  ;;  %v5183_v61 = vmul.f32 -0.5, %v8020_v48  ;;  %v5186_v14 = vand.u32 2147483647, %v8020_v48 }
 0x783   : > { %8025 = vlog2.f32 %v5171_v27  ;;  %v5175_v18 = vadd.f32 1.0, %v5174_v40  ;;  %vm5178_vm12 = vcmp.lt.f32.partialorder %v5177_v53, 0.0004427343 }
 0x784   : > { %v8022_v0 = vpop.eup %8021  ;;  %8027 = vlog2.f32 %v5180_v11  ;;  %v5184_v24 = vadd.f32 1.0, %v5183_v61  ;;  %vm5187_vm13 = vcmp.lt.f32.partialorder %v5186_v14, 0.0004427343 }
 0x785   : > { %v8024_v26 = vpop.eup %8023  ;;  %v5189_v29 = vadd.f32 1.0, %v8022_v0  ;;  %v5192_v63 = vmul.f32 -0.5, %v8022_v0  ;;  %v5176_v27 = vmul.f32 %v8018_v36, %v5175_v18  ;;  %v5195_v15 = vand.u32 2147483647, %v8022_v0 }
 0x786   : > { %v5198_v50 = vadd.f32 1.0, %v8024_v26  ;;  %v5201_v41 = vmul.f32 -0.5, %v8024_v26  ;;  %v5185_v32 = vmul.f32 %v8020_v48, %v5184_v24 }
 0x787   : > { %8029 = vlog2.f32 %v5189_v29  ;;  %v5193_v11 = vadd.f32 1.0, %v5192_v63  ;;  %v5152_v29 = vmax.f32 %v7840_v10, 0.0  ;;  %vm5196_vm14 = vcmp.lt.f32.partialorder %v5195_v15, 0.0004427343 }
 0x788   : > { %8031 = vlog2.f32 %v5198_v50  ;;  %v5202_v2 = vadd.f32 1.0, %v5201_v41  ;;  %v5204_v50 = vand.u32 2147483647, %v8024_v26  ;;  %v5154_v10 = vmax.f32 %v13050_v9, 0.0 }
 0x78a   : > { %v5203_v48 = vmul.f32 %v8024_v26, %v5202_v2  ;;  %vm5205_vm15 = vcmp.lt.f32.partialorder %v5204_v50, 0.0004427343 }
 0x78d   : > { %v8026_v39 = vpop.eup %8025 }
 0x78e   : > { %v8028_v13 = vpop.eup %8027  ;;  %v5173_v55 = vmul.f32 0.6931472, %v8026_v39  ;;  %v5194_v39 = vmul.f32 %v8022_v0, %v5193_v11 }
 0x78f   : > { %v5182_v51 = vmul.f32 0.6931472, %v8028_v13 }
 0x790   : > { %v5179_v37 = vsel %vm5178_vm12, %v5176_v27, %v5173_v55 }
 0x791   : > { %v8030_v40 = vpop.eup %8029  ;;  %v5207_v35 = vadd.f32 %v5179_v37, %v5151_v60  ;;  %v5188_v61 = vsel %vm5187_vm13, %v5185_v32, %v5182_v51 }
 0x792   : > { %v8032_v12 = vpop.eup %8031  ;;  %v5208_v1 = vadd.f32 %v5188_v61, %v5152_v29  ;;  %v5191_v3 = vmul.f32 0.6931472, %v8030_v40  ;;  %v15516_v29 = vld [vmem:[#allocation95_spill] sm:$0xff]  ;;  %v15518_v40 = vld [vmem:[#allocation96_spill] sm:$0xff]  ;;  %v15519_v61 = vld [vmem:[#allocation86_spill] sm:$0xff] }
 0x793   : > { %v13055_v36 = vand.u32 4294901760, %v5207_v35  ;;  %v5200_v13 = vmul.f32 0.6931472, %v8032_v12 }
 0x794   : > { %v13057_v18 = vand.u32 4294901760, %v5208_v1  ;;  %v5197_v55 = vsel %vm5196_vm14, %v5194_v39, %v5191_v3  ;;  %v15521_v39 = vld [vmem:[#allocation66_spill] sm:$0xff] }
 0x795   : > { %v13061_v37 = vsub.f32 %v5207_v35, %v13055_v36  ;;  %v5209_v32 = vadd.f32 %v5197_v55, %v5153_v57  ;;  %v5206_v51 = vsel %vm5205_vm15, %v5203_v48, %v5200_v13  ;;  %v15520_v57 = vpack.c.bf16 %v15518_v40, %v15519_v61  ;;  %v15522_v13 = vld [vmem:[#allocation90_spill] sm:$0xff]  ;;  %v15524_v55 = vld [vmem:[#allocation99_spill] sm:$0xff] }
 0x796   : > { %v13064_v8 = vsub.f32 %v5208_v1, %v13057_v18  ;;  %v5210_v0 = vadd.f32 %v5206_v51, %v5154_v10  ;;  %v15523_v48 = vpack.c.bf16 %v15521_v39, %v15522_v13  ;;  %v15525_v10 = vld [vmem:[#allocation61_spill] sm:$0xff]  ;;  %v15527_v51 = vld [vmem:[#allocation24_spill] sm:$0xff] }
 0x797   : > { %v14207_v53 = vand.u32 4294901760, %v13061_v37  ;;  %v13067_v15 = vand.u32 4294901760, %v5209_v32 }
 0x798   : > { %v13069_v12 = vand.u32 4294901760, %v5210_v0  ;;  %v5348_v3 = vand.u32 4294901760, %v13064_v8 }
 0x799   : > { %v5355_v9 = vsub.f32 %v13061_v37, %v14207_v53  ;;  %v13076_v35 = vsub.f32 %v5209_v32, %v13067_v15  ;;  %v15526_v32 = vpack.c.bf16 %v15524_v55, %v15525_v10 }
 0x79a   : > { %v13079_v2 = vsub.f32 %v5210_v0, %v13069_v12  ;;  %v5349_v1 = vsub.f32 %v13064_v8, %v5348_v3 }
 0x79b   : > { %v14205_v26 = vand.u32 4294901760, %v13076_v35  ;;  %v5356_v41 = vand.u32 4294901760, %v5355_v9  ;;  %v15530_v9 = vld [vmem:[#allocation30_spill] sm:$0xff] }
 0x79c   : > { %v5350_v63 = vand.u32 4294901760, %v5349_v1  ;;  %v14206_v24 = vand.u32 4294901760, %v13079_v2  ;;  %v15531_v1 = vld [vmem:[#allocation31_spill] sm:$0xff] }
 0x79d   : > { %v5370_v14 = vsub.f32 %v13076_v35, %v14205_v26  ;;  %v15553_v26 = vand.u32 4294901760, %v12742_v21 }
 0x79e   : > { %5351 = vmatprep.mubr.f32.mxu1 %v5350_v63  ;;  %v5364_v60 = vsub.f32 %v13079_v2, %v14206_v24  ;;  %v15532_v63 = vpack.c.bf16 %v15530_v9, %v15531_v1  ;;  %v15554_v24 = vand.u32 4294901760, %v12747_v34 }
 0x79f   : > { %5357 = vmatmul.mubr.f32.vlgmr.msra.gmra.mrb[8].mxu1 %v5356_v41  ;;  %v5371_v11 = vand.u32 4294901760, %v5370_v14  ;;  %v15533_v41 = vld [vmem:[#allocation17_spill] sm:$0xff]  ;;  %v15534_v14 = vld [vmem:[#allocation46_spill] sm:$0xff] }
 0x7a0   : > { %7670 = vmatpush3.bf16.msra.mxu1 %v12874_v45  ;;  %v5365_v27 = vand.u32 4294901760, %v5364_v60  ;;  %v15501_v45 = vpack.c.bf16 %v12705_v46, %v12700_v31  ;;  %v15535_v60 = vld [vmem:[#allocation48_spill] sm:$0xff]  ;;  %v7767_v53 = vpack.c.bf16 %v15554_v24, %v15553_v26 }
 0x7a1   : > { %7672 = vmatprep.subr.bf16.mxu1 %v12904_v49  ;;  %v15506_v49 = vpack.c.bf16 %v12794_v38, %v12789_v30 }
 0x7a2   : > { %5366 = vmatprep.mubr.f32.mxu1 %v5365_v27  ;;  %v15536_v27 = vld [vmem:[#allocation50_spill] sm:$0xff] }
 0x7a3   : > { %5372 = vmatmul.mubr.f32.gmra.mrb[10].mxu1 %v5371_v11  ;;  %v15537_v11 = vld [vmem:[#allocation51_spill] sm:$0xff] }
 0x7a4   : > { %7674 = vmatpush3.bf16.msra.mxu1 %v12906_v42  ;;  %5602 = vmatprep.mubr.f32.mxu1 %v13057_v18  ;;  %v15505_v42 = vpack.c.bf16 %v12784_v54, %v12779_v28 }
 0x7a5   : > { %7676 = vmatprep.subr.bf16.mxu1 %v12910_v22  ;;  %v15507_v22 = vpack.c.bf16 %v12805_v52, %v12800_v33 }
 0x7a8   : > { %7678 = vmatpush3.bf16.msra.mxu1 %v12923_v59  ;;  %v15508_v59 = vpack.c.bf16 %v12815_v7, %v12810_v20 }
 0x7a9   : > { %7680 = vmatprep.subr.bf16.mxu1 %v12941_v4  ;;  %v15510_v4 = vld [vmem:[#allocation69_spill] sm:$0xff] }
 0x7aa   : > { %v15568_v24 = vand.u32 4294901760, %v15510_v4 }
 0x7ac   : > { %7682 = vmatpush3.bf16.msra.mxu1 %v12950_v17  ;;  %v15502_v17 = vpack.c.bf16 %v12717_v47, %v12712_v5 }
 0x7ad   : > { %7684 = vmatprep.subr.bf16.mxu1 %v12957_v16 }
 0x7b0   : > { %7686 = vmatpush3.bf16.msra.mxu1 %v12967_v44  ;;  %v15509_v44 = vld [vmem:[#allocation75_spill] sm:$0xff] }
 0x7b1   : > { %7688 = vmatprep.subr.bf16.mxu1 %v12974_v25  ;;  %v15511_v16 = vpack.c.bf16 %v15509_v44, %v15510_v4  ;;  %v15512_v25 = vld [vmem:[#allocation42_spill] sm:$0xff]  ;;  %v15575_v4 = vand.u32 4294901760, %v15518_v40  ;;  %v15582_v40 = vand.u32 4294901760, %v15531_v1  ;;  %v6252_v1 = vld [vmem:[%s13288_s6] ss:$0 sm:$0xff] }
 0x7b4   : > { %7690 = vmatpush3.bf16.msra.mxu1 %v12986_v43  ;;  %v15504_v43 = vpack.c.bf16 %v12762_v62, %v12757_v58 }
 0x7b5   : > { %7692 = vmatprep.subr.bf16.mxu1 %v12994_v6  ;;  %v15503_v6 = vpack.c.bf16 %v12747_v34, %v12742_v21  ;;  %v15560_v21 = vand.u32 4294901760, %v12784_v54  ;;  %v15561_v34 = vand.u32 4294901760, %v13076_v35  ;;  %v15566_v54 = vand.u32 4294901760, %v12810_v20 }
 0x7b8   : > { %7694 = vmatpush3.bf16.msra.mxu1 %v13002_v56  ;;  %v15513_v56 = vld [vmem:[#allocation33_spill] sm:$0xff] }
 0x7b9   : > { %7696 = vmatprep.subr.bf16.mxu1 %v13007_v19  ;;  %v15514_v19 = vpack.c.bf16 %v15512_v25, %v15513_v56 }
 0x7bc   : > { %7698 = vmatpush3.bf16.msra.mxu1 %v13009_v23  ;;  %v15515_v23 = vld [vmem:[#allocation84_spill] sm:$0xff] }
 0x7bd   : > { %7700 = vmatprep.subr.bf16.mxu1 %v15501_v45  ;;  %v15517_v50 = vpack.c.bf16 %v15515_v23, %v15516_v29  ;;  %v15538_v45 = vld [vmem:[#allocation53_spill] sm:$0xff]  ;;  %v15573_v20 = vand.u32 4294901760, %v15515_v23 }
 0x7bf   : > { %5604 = vmatmul.mubr.f32.vlgmr.msra.gmra.mrb[12].mxu1 %v13055_v36 }
 0x7c0   : > { %5609 = vmatprep.mubr.f32.mxu1 %v13069_v12  ;;  %7702 = vmatpush3.bf16.msra.mxu1 %v15502_v17  ;;  %v15539_v17 = vld [vmem:[#allocation54_spill] sm:$0xff] }
 0x7c1   : > { %7704 = vmatprep.subr.bf16.mxu1 %v15503_v6  ;;  %v15540_v6 = vld [vmem:[#allocation56_spill] sm:$0xff] }
 0x7c3   : > { %5611 = vmatmul.mubr.f32.gmra.mrb[14].mxu1 %v13067_v15 }
 0x7c4   : > { %7706 = vmatpush3.bf16.msra.mxu1 %v15504_v43  ;;  %5746 = vmatprep.mubr.f32.mxu1 %v13064_v8  ;;  %v15528_v8 = vld [vmem:[#allocation27_spill] sm:$0xff]  ;;  %v15541_v43 = vld [vmem:[#allocation57_spill] sm:$0xff] }
 0x7c5   : > { %7708 = vmatprep.subr.bf16.mxu1 %v15505_v42  ;;  %v15529_v0 = vpack.c.bf16 %v15527_v51, %v15528_v8  ;;  %v15542_v42 = vld [vmem:[#allocation58_spill] sm:$0xff]  ;;  %v15580_v23 = vand.u32 4294901760, %v15528_v8 }
 0x7c8   : > { %7710 = vmatpush3.bf16.msra.mxu1 %v15506_v49  ;;  %v15543_v49 = vld [vmem:[#allocation60_spill] sm:$0xff] }
 0x7c9   : > { %7712 = vmatprep.subr.bf16.mxu1 %v15507_v22  ;;  %v15544_v22 = vld [vmem:[#allocation63_spill] sm:$0xff] }
 0x7cc   : > { %7714 = vmatpush3.bf16.msra.mxu1 %v15508_v59  ;;  %v15545_v59 = vld [vmem:[#allocation81_spill] sm:$0xff] }
 0x7cd   : > { %7716 = vmatprep.subr.bf16.mxu1 %v15511_v16  ;;  %v15546_v16 = vld [vmem:[#allocation15_spill] sm:$0xff] }
 0x7d0   : > { %7718 = vmatpush3.bf16.msra.mxu1 %v15514_v19  ;;  %v15548_v19 = vand.u32 4294901760, %v12700_v31  ;;  %v15556_v31 = vand.u32 4294901760, %v13079_v2 }
 0x7d1   : > { %7720 = vmatprep.subr.bf16.mxu1 %v15517_v50  ;;  %v15549_v50 = vand.u32 4294901760, %v12705_v46  ;;  %v15557_v46 = vand.u32 4294901760, %v12757_v58 }
 0x7d4   : > { %7722 = vmatpush3.bf16.msra.mxu1 %v15520_v57  ;;  %v7763_v57 = vpack.c.bf16 %v15549_v50, %v15548_v19 }
 0x7d5   : > { %7724 = vmatprep.subr.bf16.mxu1 %v15523_v48  ;;  %v15550_v48 = vld [vmem:[#allocation14_spill] sm:$0xff] }
 0x7d8   : > { %7726 = vmatpush3.bf16.msra.mxu1 %v15526_v32  ;;  %v15551_v32 = vand.u32 4294901760, %v12712_v5  ;;  %v15558_v5 = vand.u32 4294901760, %v12762_v62  ;;  %v15564_v62 = vand.u32 4294901760, %v12800_v33  ;;  %v15571_v33 = vand.u32 4294901760, %v15512_v25 }
 0x7d9   : > { %7728 = vmatprep.subr.bf16.mxu1 %v15529_v0  ;;  %v15552_v0 = vand.u32 4294901760, %v12717_v47  ;;  %v15559_v47 = vand.u32 4294901760, %v12779_v28  ;;  %v15578_v25 = vand.u32 4294901760, %v15525_v10 }
 0x7da   : > { %v7769_v19 = vpack.c.bf16 %v15558_v5, %v15557_v46 }
 0x7db   : > { %v7771_v50 = vpack.c.bf16 %v15560_v21, %v15559_v47 }
 0x7dc   : > { %7730 = vmatpush3.bf16.msra.mxu1 %v15532_v63  ;;  %v7765_v63 = vpack.c.bf16 %v15552_v0, %v15551_v32 }
 0x7dd   : > { %7732 = vmatprep.subr.bf16.mxu1 %v15533_v41 }
 0x7df   : > { %5749 = vmatmul.mubr.f32.vlgmr.msra.gmra.mrb[16].mxu1 %v13061_v37 }
 0x7e0   : > { %5755 = vmatprep.mubr.f32.mxu1 %v13079_v2  ;;  %7734 = vmatpush3.bf16.msra.mxu1 %v15534_v14  ;;  %v15563_v2 = vand.u32 4294901760, %v12794_v38  ;;  %v15570_v38 = vand.u32 4294901760, %v15513_v56  ;;  %v15577_v56 = vand.u32 4294901760, %v15521_v39 }
 0x7e1   : > { %7736 = vmatprep.subr.bf16.mxu1 %v15535_v60 }
 0x7e3   : > { %5758 = vmatmul.mubr.f32.gmra.mrb[18].mxu1 %v13076_v35  ;;  %v15567_v35 = vand.u32 4294901760, %v12815_v7  ;;  %v15574_v7 = vand.u32 4294901760, %v15519_v61  ;;  %v15581_v61 = vand.u32 4294901760, %v15527_v51 }
 0x7e4   : > { %7738 = vmatpush3.bf16.msra.mxu1 %v15536_v27  ;;  %5862 = vmatprep.mubr.f32.mxu1 %v5348_v3  ;;  %v15547_v3 = vld [vmem:[#allocation87_spill] sm:$0xff] }
 0x7e5   : > { %7740 = vmatprep.subr.bf16.mxu1 %v15537_v11  ;;  %v7777_v26 = vpack.c.bf16 %v15567_v35, %v15566_v54  ;;  %v7785_v0 = vpack.c.bf16 %v15575_v4, %v15574_v7  ;;  %v7791_v46 = vpack.c.bf16 %v15581_v61, %v15580_v23 }
 0x7e8   : > { %7742 = vmatpush3.bf16.msra.mxu1 %v15538_v45 }
 0x7e9   : > { %7744 = vmatprep.subr.bf16.mxu1 %v15539_v17 }
 0x7ec   : > { %7746 = vmatpush3.bf16.msra.mxu1 %v15540_v6 }
 0x7ed   : > { %7748 = vmatprep.subr.bf16.mxu1 %v15541_v43 }
 0x7f0   : > { %7750 = vmatpush3.bf16.msra.mxu1 %v15542_v42 }
 0x7f1   : > { %7752 = vmatprep.subr.bf16.mxu1 %v15543_v49 }
 0x7f4   : > { %7754 = vmatpush3.bf16.msra.mxu1 %v15544_v22 }
 0x7f5   : > { %7756 = vmatprep.subr.bf16.mxu1 %v15545_v59 }
 0x7f8   : > { %7758 = vmatpush3.bf16.msra.mxu1 %v15546_v16 }
 0x7f9   : > { %7760 = vmatprep.subr.bf16.mxu1 %v15547_v3  ;;  %v15555_v3 = vand.u32 4294901760, %v13061_v37  ;;  %v15562_v37 = vand.u32 4294901760, %v12789_v30  ;;  %v15569_v30 = vand.u32 4294901760, %v15509_v44  ;;  %v15576_v44 = vand.u32 4294901760, %v15522_v13 }
 0x7fa   : > { %v15583_v13 = vand.u32 4294901760, %v15530_v9 }
 0x7fb   : > { %v7773_v58 = vpack.c.bf16 %v15563_v2, %v15562_v37 }
 0x7fc   : > { %7762 = vmatpush3.bf16.msra.mxu1 %v15550_v48  ;;  %v7793_v5 = vpack.c.bf16 %v15583_v13, %v15582_v40 }
 0x7fd   : > { %7764 = vmatprep.subr.bf16.mxu1 %v7763_v57  ;;  %v7781_v57 = vpack.c.bf16 %v15571_v33, %v15570_v38 }
 0x7ff   : > { %5866 = vmatmul.mubr.f32.vlgmr.msra.gmra.mrb[20].mxu1 %v15555_v3  ;;  %v7779_v3 = vpack.c.bf16 %v15569_v30, %v15568_v24 }
 0x800   : > { %5873 = vmatprep.mubr.f32.mxu1 %v15556_v31  ;;  %7766 = vmatpush3.bf16.msra.mxu1 %v7765_v63  ;;  %v7787_v63 = vpack.c.bf16 %v15577_v56, %v15576_v44 }
 0x801   : > { %7768 = vmatprep.subr.bf16.mxu1 %v7767_v53  ;;  %v15565_v53 = vand.u32 4294901760, %v12805_v52  ;;  %v15572_v52 = vand.u32 4294901760, %v15516_v29  ;;  %v15579_v29 = vand.u32 4294901760, %v15524_v55 }
 0x803   : > { %5877 = vmatmul.mubr.f32.gmra.mrb[22].mxu1 %v15561_v34  ;;  %v7775_v28 = vpack.c.bf16 %v15565_v53, %v15564_v62  ;;  %v7783_v32 = vpack.c.bf16 %v15573_v20, %v15572_v52  ;;  %v7789_v31 = vpack.c.bf16 %v15579_v29, %v15578_v25 }
 0x804   : > { %7770 = vmatpush3.bf16.msra.mxu1 %v7769_v19  ;;  %6043 = vmatprep.mubr.f32.mxu1 %v13057_v18 }
 0x805   : > { %7772 = vmatprep.subr.bf16.mxu1 %v7771_v50 }
 0x808   : > { %7774 = vmatpush3.bf16.msra.mxu1 %v7773_v58 }
 0x809   : > { %7776 = vmatprep.subr.bf16.mxu1 %v7775_v28 }
 0x80c   : > { %7778 = vmatpush3.bf16.msra.mxu1 %v7777_v26 }
 0x80d   : > { %7780 = vmatprep.subr.bf16.mxu1 %v7779_v3 }
 0x810   : > { %7782 = vmatpush3.bf16.msra.mxu1 %v7781_v57 }
 0x811   : > { %7784 = vmatprep.subr.bf16.mxu1 %v7783_v32 }
 0x814   : > { %7786 = vmatpush3.bf16.msra.mxu1 %v7785_v0 }
 0x815   : > { %7788 = vmatprep.subr.bf16.mxu1 %v7787_v63 }
 0x818   : > { %7790 = vmatpush3.bf16.msra.mxu1 %v7789_v31 }
 0x819   : > { %7792 = vmatprep.subr.bf16.mxu1 %v7791_v46 }
 0x81c   : > { %7794 = vmatpush3.bf16.msra.mxu1 %v7793_v5 }
 0x81d   : > { %7796 = vmatprep.subr.bf16.mxu1 %v15533_v41 }
 0x81f   : > { %6045 = vmatmul.mubr.f32.vlgmr.msra.gmra.mrb[24].mxu1 %v13055_v36 }
 0x820   : > { %6050 = vmatprep.mubr.f32.mxu1 %v13069_v12  ;;  %7798 = vmatpush3.bf16.msra.mxu1 %v15534_v14 }
 0x821   : > { %7800 = vmatprep.subr.bf16.mxu1 %v15535_v60 }
 0x823   : > { %6052 = vmatmul.mubr.f32.gmra.mrb[26].mxu1 %v13067_v15 }
 0x824   : > { %7802 = vmatpush3.bf16.msra.mxu1 %v15536_v27  ;;  %6154 = vmatprep.mubr.f32.mxu1 %v13057_v18  ;;  %v15584_v18 = vld [vmem:[#allocation87_spill] sm:$0xff] }
 0x825   : > { %7804 = vmatprep.subr.bf16.mxu1 %v15537_v11 }
 0x828   : > { %7806 = vmatpush3.bf16.msra.mxu1 %v15538_v45 }
 0x829   : > { %7808 = vmatprep.subr.bf16.mxu1 %v15539_v17 }
 0x82c   : > { %7810 = vmatpush3.bf16.msra.mxu1 %v15540_v6 }
 0x82d   : > { %7812 = vmatprep.subr.bf16.mxu1 %v15541_v43 }
 0x830   : > { %7814 = vmatpush3.bf16.msra.mxu1 %v15542_v42 }
 0x831   : > { %7816 = vmatprep.subr.bf16.mxu1 %v15543_v49 }
 0x834   : > { %7818 = vmatpush3.bf16.msra.mxu1 %v15544_v22 }
 0x835   : > { %7820 = vmatprep.subr.bf16.mxu1 %v15545_v59 }
 0x838   : > { %7822 = vmatpush3.bf16.msra.mxu1 %v15546_v16 }
 0x839   : > { %7824 = vmatprep.subr.bf16.mxu1 %v15584_v18 }
 0x83c   : > { %7826 = vmatpush3.bf16.msra.mxu1 %v15550_v48 }
 0x83f   : > { %6156 = vmatmul.mubr.f32.vlgmr.msra.gmra.mrb[28].mxu1 %v13055_v36 }
 0x840   : > { %6161 = vmatprep.mubr.f32.mxu1 %v13069_v12 }
 0x843   : > { %6163 = vmatmul.mubr.f32.gmra.mrb[30].mxu1 %v13067_v15 }
 0x872   : > { %v6287_v39 = vpop.f32.mrb[8].mxu1 }
 0x873   : > { %v6288_v55 = vpop.f32.mrb[9].mxu1 }
 0x874   : > { %v6289_v10 = vadd.f32 %v6288_v55, %v6287_v39 }
 0x876   : > { %v6290_v51 = vpop.f32.mrb[10].mxu1  ;;  %v5359_v60 = vadd.f32 %v6289_v10, %v6252_v1 }
 0x877   : > { %v6291_v8 = vpop.f32.mrb[11].mxu1 }
 0x878   : > { %v6292_v9 = vadd.f32 %v6291_v8, %v6290_v51 }
 0x87a   : > { %v5374_v12 = vadd.f32 %v6292_v9, %v6252_v1 }
 0x892   : > { %v6325_v41 = vpop.f32.mrb[12].mxu1 }
 0x893   : > { %v6326_v14 = vpop.f32.mrb[13].mxu1 }
 0x894   : > { %v6327_v27 = vadd.f32 %v6326_v14, %v6325_v41 }
 0x896   : > { %v5606_v11 = vadd.f32 %v6327_v27, %v5359_v60  ;;  %v6328_v36 = vpop.f32.mrb[14].mxu1 }
 0x897   : > { %v6329_v45 = vpop.f32.mrb[15].mxu1 }
 0x898   : > { %v6330_v17 = vadd.f32 %v6329_v45, %v6328_v36 }
 0x89a   : > { %v5613_v15 = vadd.f32 %v6330_v17, %v5374_v12 }
 0x8b2   : > { %v6363_v6 = vpop.f32.mrb[16].mxu1 }
 0x8b3   : > { %v6364_v43 = vpop.f32.mrb[17].mxu1 }
 0x8b4   : > { %v6365_v42 = vadd.f32 %v6364_v43, %v6363_v6 }
 0x8b6   : > { %v5751_v49 = vadd.f32 %v6365_v42, %v5606_v11  ;;  %v6366_v22 = vpop.f32.mrb[18].mxu1 }
 0x8b7   : > { %v6367_v59 = vpop.f32.mrb[19].mxu1 }
 0x8b8   : > { %v6368_v16 = vadd.f32 %v6367_v59, %v6366_v22 }
 0x8ba   : > { %v5760_v48 = vadd.f32 %v6368_v16, %v5613_v15 }
 0x8d2   : > { %v6401_v19 = vpop.f32.mrb[20].mxu1 }
 0x8d3   : > { %v6402_v47 = vpop.f32.mrb[21].mxu1 }
 0x8d4   : > { %v6403_v21 = vadd.f32 %v6402_v47, %v6401_v19 }
 0x8d6   : > { %v5868_v50 = vadd.f32 %v6403_v21, %v5751_v49  ;;  %v6404_v34 = vpop.f32.mrb[22].mxu1 }
 0x8d7   : > { %v6405_v37 = vpop.f32.mrb[23].mxu1 }
 0x8d8   : > { %v6406_v2 = vadd.f32 %v6405_v37, %v6404_v34 }
 0x8da   : > { %v5879_v58 = vadd.f32 %v6406_v2, %v5760_v48 }
 0x8f2   : > { %v6439_v62 = vpop.f32.mrb[24].mxu1 }
 0x8f3   : > { %v6440_v53 = vpop.f32.mrb[25].mxu1 }
 0x8f4   : > { %v6441_v28 = vadd.f32 %v6440_v53, %v6439_v62 }
 0x8f6   : > { %v6047_v54 = vadd.f32 %v6441_v28, %v5868_v50  ;;  %v6442_v35 = vpop.f32.mrb[26].mxu1 }
 0x8f7   : > { %v6443_v26 = vpop.f32.mrb[27].mxu1 }
 0x8f8   : > { %v6444_v24 = vadd.f32 %v6443_v26, %v6442_v35 }
 0x8fa   : > { %v6054_v30 = vadd.f32 %v6444_v24, %v5879_v58 }
 0x912   : > { %v6477_v3 = vpop.f32.mrb[28].mxu1 }
 0x913   : > { %v6478_v38 = vpop.f32.mrb[29].mxu1 }
 0x914   : > { %v6479_v33 = vadd.f32 %v6478_v38, %v6477_v3 }
 0x916   : > { %v6158_v57 = vadd.f32 %v6479_v33, %v6047_v54  ;;  %v6480_v52 = vpop.f32.mrb[30].mxu1 }
 0x917   : > { %v6481_v20 = vpop.f32.mrb[31].mxu1 }
 0x918   : > { %6169 = vst.msk [vmem:[%s295_s30] sm:$0xff] %vm6168_vm0, %v6158_v57  ;;  %v6482_v32 = vadd.f32 %v6481_v20, %v6480_v52 }
 0x91a   : > { %v6165_v7 = vadd.f32 %v6482_v32, %v6054_v30 }
 0x91c   : > { %6170 = vst.msk [vmem:[%s295_s30 + $0x8] sm:$0xff] %vm6168_vm0, %v6165_v7 }
 0x91d PF: > { %s18_s24 = sadd.s32 1, %s8071_s24  }
 0x91e   : > { %p15_p3 = scmp.ge.s32.totalorder %s18_s24, 4  }
 0x920   :  { %17 = sbr.rel (!%p15_p3) target bundleno = 1 (0x1), region = 87 }
 0x927   :  { %6193 = vsyncpa [#allocation3], 1 }
 0x928   :  { %6195 = vsyncpa [#allocation3 + $0x1], 1 }

</bundles_post_ra>
